<compile_context>
chip_gen: v7x
topology: tpu7x:2x2x1
jax: 0.10.0
libtpu: 0.0.40
codegen_flags: <defaults>
</compile_context>

<pallas_src>
import functools

import jax
import jax.numpy as jnp
from jax.experimental import pallas as pl
from jax.experimental.pallas import tpu as pltpu


def _residual_block_kernel(x_ref, w1_ref, b1_ref, w2_ref, b2_ref, mask_ref,
                           out_ref, acc_ref, mid_ref, *, wp):
    # x_ref    : (1, Mtot, Cp)  flattened, spatially padded, margin-padded input
    # w1_ref   : (9, Cp, Cp)    conv1 per-tap weights, [tap, cin, cout]
    # b1_ref   : (1, Cp)
    # w2_ref   : (9, Cp, Cp)    conv2 per-tap weights
    # b2_ref   : (1, Cp)
    # mask_ref : (Sp, 1)        1.0 on interior pixels, 0.0 on padded border / tail
    # out_ref  : (1, Sp, Cp)    full slab output (interior extracted in wrapper)
    # acc_ref  : VMEM (Sp, Cp)  f32 accumulator (shared by conv1 / conv2)
    # mid_ref  : VMEM (Mtot, Cp) f32, margin-padded conv1 activation
    sp, cp = acc_ref.shape
    mtot = mid_ref.shape[0]
    marg = (mtot - sp) // 2

    # Zero only the small halo margins of the scratch each step (the interior is
    # fully overwritten below; kept outputs never read the margins -- hygiene only).
    mid_ref[0:marg, :] = jnp.zeros((marg, cp), jnp.float32)
    mid_ref[marg + sp:mtot, :] = jnp.zeros((mtot - marg - sp, cp), jnp.float32)

    # Flattened-index offsets of the nine 3x3 taps.
    taps = [(dy - 1) * wp + (dx - 1) for dy in range(3) for dx in range(3)]

    # ---- conv1: 9 shifted (Sp, Cp) x (Cp, Cp) matmuls, accumulate in VMEM ------
    for t, off in enumerate(taps):
        patch = x_ref[0, marg + off:marg + off + sp, :]
        contrib = jnp.dot(patch, w1_ref[t], preferred_element_type=jnp.float32)
        if t == 0:
            acc_ref[...] = contrib
        else:
            acc_ref[...] += contrib

    # bias + ReLU, then re-create conv2's zero padding with the interior mask.
    mask = mask_ref[...]                                   # (Sp, 1)
    out1 = jnp.maximum(acc_ref[...] + b1_ref[0], 0.0) * mask
    mid_ref[marg:marg + sp, :] = out1                      # aligned, lane-dense store

    # ---- conv2 -----------------------------------------------------------------
    for t, off in enumerate(taps):
        patch = mid_ref[marg + off:marg + off + sp, :]
        contrib = jnp.dot(patch, w2_ref[t], preferred_element_type=jnp.float32)
        if t == 0:
            acc_ref[...] = contrib
        else:
            acc_ref[...] += contrib

    # ---- bias + residual + ReLU, single full-slab (lane-dense) store -----------
    residual = x_ref[0, marg:marg + sp, :]                 # aligned read
    out = jnp.maximum(acc_ref[...] + b2_ref[0] + residual, 0.0)
    out_ref[0] = out.astype(out_ref.dtype)


@jax.jit
def residual_block(x_nchw, w1, b1, w2, b2):
    """x_nchw: (N, C, H, W) f32. Weights in torch Conv2d layout (cout, cin, 3, 3)."""
    N, C, H, W = x_nchw.shape
    Hp, Wp = H + 2, W + 2
    HpWp = Hp * Wp
    Cp = ((C + 127) // 128) * 128                      # lane-dense channel padding
    Sp = ((HpWp + 7) // 8) * 8                         # sublane-aligned slab height
    MARG = ((Wp + 1 + 7) // 8) * 8                     # halo margin, multiple of 8
    Mtot = 2 * MARG + Sp

    # ---- input: NCHW -> NHWC -> spatial pad -> flatten -> margin/channel pad ----
    x_nhwc = jnp.transpose(x_nchw, (0, 2, 3, 1)).astype(jnp.float32)
    x_sp = jnp.pad(x_nhwc, ((0, 0), (1, 1), (1, 1), (0, 0)))       # (N, Hp, Wp, C)
    x_flat = x_sp.reshape(N, HpWp, C)
    x_k = jnp.pad(x_flat, ((0, 0), (MARG, Mtot - MARG - HpWp), (0, Cp - C)))

    # ---- weights: torch (cout, cin, kh, kw) -> (9, Cp, Cp) [tap, cin, cout] -----
    def prep_w(w):
        wk = jnp.transpose(w.astype(jnp.float32), (2, 3, 1, 0))    # (kh, kw, cin, cout)
        wk = wk.reshape(9, C, C)
        return jnp.pad(wk, ((0, 0), (0, Cp - C), (0, Cp - C)))

    w1_k = prep_w(w1)
    w2_k = prep_w(w2)
    b1_k = jnp.pad(b1.astype(jnp.float32).reshape(1, C), ((0, 0), (0, Cp - C)))
    b2_k = jnp.pad(b2.astype(jnp.float32).reshape(1, C), ((0, 0), (0, Cp - C)))

    # ---- interior mask (recreates conv2's zero padding inside the kernel) -------
    idx = jnp.arange(Sp)
    row = idx // Wp
    col = idx % Wp
    valid = ((idx < HpWp) & (row >= 1) & (row <= Hp - 2)
             & (col >= 1) & (col <= Wp - 2))
    mask = valid.astype(jnp.float32).reshape(Sp, 1)

    kernel = functools.partial(_residual_block_kernel, wp=Wp)

    out_full = pl.pallas_call(
        kernel,
        out_shape=jax.ShapeDtypeStruct((N, Sp, Cp), jnp.float32),
        grid_spec=pltpu.PrefetchScalarGridSpec(
            num_scalar_prefetch=0,
            grid=(N,),
            in_specs=[
                pl.BlockSpec((1, Mtot, Cp), lambda n: (n, 0, 0)),   # x
                pl.BlockSpec((9, Cp, Cp), lambda n: (0, 0, 0)),     # w1
                pl.BlockSpec((1, Cp), lambda n: (0, 0)),            # b1
                pl.BlockSpec((9, Cp, Cp), lambda n: (0, 0, 0)),     # w2
                pl.BlockSpec((1, Cp), lambda n: (0, 0)),            # b2
                pl.BlockSpec((Sp, 1), lambda n: (0, 0)),            # interior mask
            ],
            out_specs=pl.BlockSpec((1, Sp, Cp), lambda n: (n, 0, 0)),
            scratch_shapes=[
                pltpu.VMEM((Sp, Cp), jnp.float32),    # conv accumulator
                pltpu.VMEM((Mtot, Cp), jnp.float32),  # margin-padded conv1 output
            ],
        ),
        compiler_params=pltpu.CompilerParams(
            dimension_semantics=("parallel",),
            vmem_limit_bytes=32 * 1024 * 1024,
        ),
    )(x_k, w1_k, b1_k, w2_k, b2_k, mask)

    # Slice interior, drop channel padding, back to NCHW.
    out = out_full[:, :HpWp, :C].reshape(N, Hp, Wp, C)[:, 1:1 + H, 1:1 + W, :]
    return jnp.transpose(out, (0, 3, 1, 2))


def _reference(x_nchw, w1, b1, w2, b2):
    """Pure-JAX reference replicating the PyTorch forward (NCHW convs)."""
    dn = jax.lax.conv_dimension_numbers(x_nchw.shape, w1.shape,
                                        ("NCHW", "OIHW", "NCHW"))
    prec = jax.lax.Precision.HIGHEST
    out = jax.lax.conv_general_dilated(x_nchw, w1, (1, 1), ((1, 1), (1, 1)),
                                       dimension_numbers=dn, precision=prec)
    out = jnp.maximum(out + b1[None, :, None, None], 0.0)
    out = jax.lax.conv_general_dilated(out, w2, (1, 1), ((1, 1), (1, 1)),
                                       dimension_numbers=dn, precision=prec)
    out = out + b2[None, :, None, None] + x_nchw
    return jnp.maximum(out, 0.0)


if __name__ == "__main__":
    key = jax.random.PRNGKey(0)
    N, C, H, W = 2, 4, 16, 16

    k_x, k_w1, k_b1, k_w2, k_b2 = jax.random.split(key, 5)
    x = jax.random.normal(k_x, (N, C, H, W), dtype=jnp.float32)
    # Torch Conv2d-shaped synthetic parameters: (cout, cin, 3, 3) and (cout,).
    w1 = 0.1 * jax.random.normal(k_w1, (C, C, 3, 3), dtype=jnp.float32)
    b1 = 0.1 * jax.random.normal(k_b1, (C,), dtype=jnp.float32)
    w2 = 0.1 * jax.random.normal(k_w2, (C, C, 3, 3), dtype=jnp.float32)
    b2 = 0.1 * jax.random.normal(k_b2, (C,), dtype=jnp.float32)

    out = jax.block_until_ready(residual_block(x, w1, b1, w2, b2))
    ref = jax.block_until_ready(_reference(x, w1, b1, w2, b2))

    assert out.shape == (N, C, H, W)
    max_err = float(jnp.max(jnp.abs(out - ref)))
    assert jnp.allclose(out, ref, atol=1e-3, rtol=1e-3), (
        f"mismatch vs reference, max abs err = {max_err}")
    print("KERNEL_OK")
</pallas_src>

<mosaic_0001>
module attributes {stable_mosaic.version = 11 : i64} {
  func.func @_residual_block_kernel(%arg0: i32, %arg1: memref<1x376x128xf32, #tpu.memory_space<vmem>>, %arg2: memref<9x128x128xf32, #tpu.memory_space<vmem>>, %arg3: memref<1x128xf32, #tpu.memory_space<vmem>>, %arg4: memref<9x128x128xf32, #tpu.memory_space<vmem>>, %arg5: memref<1x128xf32, #tpu.memory_space<vmem>>, %arg6: memref<328x1xf32, #tpu.memory_space<vmem>>, %arg7: memref<1x328x128xf32, #tpu.memory_space<vmem>>, %arg8: memref<328x128xf32, #tpu.memory_space<vmem>>, %arg9: memref<376x128xf32, #tpu.memory_space<vmem>>) attributes {dimension_semantics = [#tpu.dimension_semantics<parallel>], iteration_bounds = array<i64: 2>, scalar_prefetch = 0 : i64, scratch_operands = 2 : i64, tpu.core_type = #tpu.core_type<tc>, window_params = [{transform_indices = @transform_0, window_bounds = array<i64: 1, 376, 128>}, {pipeline_mode = #tpu.pipeline_mode<synchronous>, transform_indices = @transform_1, window_bounds = array<i64: 9, 128, 128>}, {pipeline_mode = #tpu.pipeline_mode<synchronous>, transform_indices = @transform_2, window_bounds = array<i64: 1, 128>}, {pipeline_mode = #tpu.pipeline_mode<synchronous>, transform_indices = @transform_3, window_bounds = array<i64: 9, 128, 128>}, {pipeline_mode = #tpu.pipeline_mode<synchronous>, transform_indices = @transform_4, window_bounds = array<i64: 1, 128>}, {pipeline_mode = #tpu.pipeline_mode<synchronous>, transform_indices = @transform_5, window_bounds = array<i64: 328, 1>}, {transform_indices = @transform_6, window_bounds = array<i64: 1, 328, 128>}]} {
    %cst = arith.constant 0.000000e+00 : f32
    %0 = vector.broadcast %cst : f32 to vector<24x128xf32>
    %c0 = arith.constant 0 : index
    %c0_0 = arith.constant 0 : index
    %1 = vector.load %arg9[%c0, %c0_0] : memref<376x128xf32, #tpu.memory_space<vmem>>, vector<24x128xf32>
    tpu.vector_store %arg9[%c0, %c0_0], %0 {strides = array<i32>} : memref<376x128xf32, #tpu.memory_space<vmem>>, vector<24x128xf32>,
    %cst_1 = arith.constant 0.000000e+00 : f32
    %2 = vector.broadcast %cst_1 : f32 to vector<24x128xf32>
    %c352 = arith.constant 352 : index
    %c0_2 = arith.constant 0 : index
    %3 = vector.load %arg9[%c352, %c0_2] : memref<376x128xf32, #tpu.memory_space<vmem>>, vector<24x128xf32>
    tpu.vector_store %arg9[%c352, %c0_2], %2 {strides = array<i32>} : memref<376x128xf32, #tpu.memory_space<vmem>>, vector<24x128xf32>,
    %c0_3 = arith.constant 0 : index
    %c5 = arith.constant 5 : index
    %c0_4 = arith.constant 0 : index
    %4 = vector.load %arg1[%c0_3, %c5, %c0_4] : memref<1x376x128xf32, #tpu.memory_space<vmem>>, vector<1x328x128xf32>
    %5 = vector.shape_cast %4 : vector<1x328x128xf32> to vector<328x128xf32>
    %c0_5 = arith.constant 0 : index
    %c0_6 = arith.constant 0 : index
    %c0_7 = arith.constant 0 : index
    %6 = vector.load %arg2[%c0_5, %c0_6, %c0_7] : memref<9x128x128xf32, #tpu.memory_space<vmem>>, vector<1x128x128xf32>
    %7 = vector.shape_cast %6 : vector<1x128x128xf32> to vector<128x128xf32>
    %cst_8 = arith.constant dense<0.000000e+00> : vector<328x128xf32>
    %8 = tpu.matmul %5, %7, %cst_8 {dimension_numbers = #tpu.dot_dimension_numbers<[1], [0], [0], [1], [0, 0, 1, 1], [], []>} : vector<328x128xf32>, vector<128x128xf32>, vector<328x128xf32> -> vector<328x128xf32>
    %c0_9 = arith.constant 0 : index
    %c0_10 = arith.constant 0 : index
    %9 = vector.load %arg8[%c0_9, %c0_10] : memref<328x128xf32, #tpu.memory_space<vmem>>, vector<328x128xf32>
    tpu.vector_store %arg8[%c0_9, %c0_10], %8 {strides = array<i32>} : memref<328x128xf32, #tpu.memory_space<vmem>>, vector<328x128xf32>,
    %c0_11 = arith.constant 0 : index
    %c6 = arith.constant 6 : index
    %c0_12 = arith.constant 0 : index
    %10 = vector.load %arg1[%c0_11, %c6, %c0_12] : memref<1x376x128xf32, #tpu.memory_space<vmem>>, vector<1x328x128xf32>
    %11 = vector.shape_cast %10 : vector<1x328x128xf32> to vector<328x128xf32>
    %c1 = arith.constant 1 : index
    %c0_13 = arith.constant 0 : index
    %c0_14 = arith.constant 0 : index
    %12 = vector.load %arg2[%c1, %c0_13, %c0_14] : memref<9x128x128xf32, #tpu.memory_space<vmem>>, vector<1x128x128xf32>
    %13 = vector.shape_cast %12 : vector<1x128x128xf32> to vector<128x128xf32>
    %cst_15 = arith.constant dense<0.000000e+00> : vector<328x128xf32>
    %14 = tpu.matmul %11, %13, %cst_15 {dimension_numbers = #tpu.dot_dimension_numbers<[1], [0], [0], [1], [0, 0, 1, 1], [], []>} : vector<328x128xf32>, vector<128x128xf32>, vector<328x128xf32> -> vector<328x128xf32>
    %c0_16 = arith.constant 0 : index
    %c0_17 = arith.constant 0 : index
    %15 = vector.load %arg8[%c0_16, %c0_17] : memref<328x128xf32, #tpu.memory_space<vmem>>, vector<328x128xf32>
    %16 = arith.addf %15, %14 : vector<328x128xf32>
    %c0_18 = arith.constant 0 : index
    %c0_19 = arith.constant 0 : index
    %17 = vector.load %arg8[%c0_18, %c0_19] : memref<328x128xf32, #tpu.memory_space<vmem>>, vector<328x128xf32>
    tpu.vector_store %arg8[%c0_18, %c0_19], %16 {strides = array<i32>} : memref<328x128xf32, #tpu.memory_space<vmem>>, vector<328x128xf32>,
    %c0_20 = arith.constant 0 : index
    %c7 = arith.constant 7 : index
    %c0_21 = arith.constant 0 : index
    %18 = vector.load %arg1[%c0_20, %c7, %c0_21] : memref<1x376x128xf32, #tpu.memory_space<vmem>>, vector<1x328x128xf32>
    %19 = vector.shape_cast %18 : vector<1x328x128xf32> to vector<328x128xf32>
    %c2 = arith.constant 2 : index
    %c0_22 = arith.constant 0 : index
    %c0_23 = arith.constant 0 : index
    %20 = vector.load %arg2[%c2, %c0_22, %c0_23] : memref<9x128x128xf32, #tpu.memory_space<vmem>>, vector<1x128x128xf32>
    %21 = vector.shape_cast %20 : vector<1x128x128xf32> to vector<128x128xf32>
    %cst_24 = arith.constant dense<0.000000e+00> : vector<328x128xf32>
    %22 = tpu.matmul %19, %21, %cst_24 {dimension_numbers = #tpu.dot_dimension_numbers<[1], [0], [0], [1], [0, 0, 1, 1], [], []>} : vector<328x128xf32>, vector<128x128xf32>, vector<328x128xf32> -> vector<328x128xf32>
    %c0_25 = arith.constant 0 : index
    %c0_26 = arith.constant 0 : index
    %23 = vector.load %arg8[%c0_25, %c0_26] : memref<328x128xf32, #tpu.memory_space<vmem>>, vector<328x128xf32>
    %24 = arith.addf %23, %22 : vector<328x128xf32>
    %c0_27 = arith.constant 0 : index
    %c0_28 = arith.constant 0 : index
    %25 = vector.load %arg8[%c0_27, %c0_28] : memref<328x128xf32, #tpu.memory_space<vmem>>, vector<328x128xf32>
    tpu.vector_store %arg8[%c0_27, %c0_28], %24 {strides = array<i32>} : memref<328x128xf32, #tpu.memory_space<vmem>>, vector<328x128xf32>,
    %c0_29 = arith.constant 0 : index
    %c23 = arith.constant 23 : index
    %c0_30 = arith.constant 0 : index
    %26 = vector.load %arg1[%c0_29, %c23, %c0_30] : memref<1x376x128xf32, #tpu.memory_space<vmem>>, vector<1x328x128xf32>
    %27 = vector.shape_cast %26 : vector<1x328x128xf32> to vector<328x128xf32>
    %c3 = arith.constant 3 : index
    %c0_31 = arith.constant 0 : index
    %c0_32 = arith.constant 0 : index
    %28 = vector.load %arg2[%c3, %c0_31, %c0_32] : memref<9x128x128xf32, #tpu.memory_space<vmem>>, vector<1x128x128xf32>
    %29 = vector.shape_cast %28 : vector<1x128x128xf32> to vector<128x128xf32>
    %cst_33 = arith.constant dense<0.000000e+00> : vector<328x128xf32>
    %30 = tpu.matmul %27, %29, %cst_33 {dimension_numbers = #tpu.dot_dimension_numbers<[1], [0], [0], [1], [0, 0, 1, 1], [], []>} : vector<328x128xf32>, vector<128x128xf32>, vector<328x128xf32> -> vector<328x128xf32>
    %c0_34 = arith.constant 0 : index
    %c0_35 = arith.constant 0 : index
    %31 = vector.load %arg8[%c0_34, %c0_35] : memref<328x128xf32, #tpu.memory_space<vmem>>, vector<328x128xf32>
    %32 = arith.addf %31, %30 : vector<328x128xf32>
    %c0_36 = arith.constant 0 : index
    %c0_37 = arith.constant 0 : index
    %33 = vector.load %arg8[%c0_36, %c0_37] : memref<328x128xf32, #tpu.memory_space<vmem>>, vector<328x128xf32>
    tpu.vector_store %arg8[%c0_36, %c0_37], %32 {strides = array<i32>} : memref<328x128xf32, #tpu.memory_space<vmem>>, vector<328x128xf32>,
    %c0_38 = arith.constant 0 : index
    %c24 = arith.constant 24 : index
    %c0_39 = arith.constant 0 : index
    %34 = vector.load %arg1[%c0_38, %c24, %c0_39] : memref<1x376x128xf32, #tpu.memory_space<vmem>>, vector<1x328x128xf32>
    %35 = vector.shape_cast %34 : vector<1x328x128xf32> to vector<328x128xf32>
    %c4 = arith.constant 4 : index
    %c0_40 = arith.constant 0 : index
    %c0_41 = arith.constant 0 : index
    %36 = vector.load %arg2[%c4, %c0_40, %c0_41] : memref<9x128x128xf32, #tpu.memory_space<vmem>>, vector<1x128x128xf32>
    %37 = vector.shape_cast %36 : vector<1x128x128xf32> to vector<128x128xf32>
    %cst_42 = arith.constant dense<0.000000e+00> : vector<328x128xf32>
    %38 = tpu.matmul %35, %37, %cst_42 {dimension_numbers = #tpu.dot_dimension_numbers<[1], [0], [0], [1], [0, 0, 1, 1], [], []>} : vector<328x128xf32>, vector<128x128xf32>, vector<328x128xf32> -> vector<328x128xf32>
    %c0_43 = arith.constant 0 : index
    %c0_44 = arith.constant 0 : index
    %39 = vector.load %arg8[%c0_43, %c0_44] : memref<328x128xf32, #tpu.memory_space<vmem>>, vector<328x128xf32>
    %40 = arith.addf %39, %38 : vector<328x128xf32>
    %c0_45 = arith.constant 0 : index
    %c0_46 = arith.constant 0 : index
    %41 = vector.load %arg8[%c0_45, %c0_46] : memref<328x128xf32, #tpu.memory_space<vmem>>, vector<328x128xf32>
    tpu.vector_store %arg8[%c0_45, %c0_46], %40 {strides = array<i32>} : memref<328x128xf32, #tpu.memory_space<vmem>>, vector<328x128xf32>,
    %c0_47 = arith.constant 0 : index
    %c25 = arith.constant 25 : index
    %c0_48 = arith.constant 0 : index
    %42 = vector.load %arg1[%c0_47, %c25, %c0_48] : memref<1x376x128xf32, #tpu.memory_space<vmem>>, vector<1x328x128xf32>
    %43 = vector.shape_cast %42 : vector<1x328x128xf32> to vector<328x128xf32>
    %c5_49 = arith.constant 5 : index
    %c0_50 = arith.constant 0 : index
    %c0_51 = arith.constant 0 : index
    %44 = vector.load %arg2[%c5_49, %c0_50, %c0_51] : memref<9x128x128xf32, #tpu.memory_space<vmem>>, vector<1x128x128xf32>
    %45 = vector.shape_cast %44 : vector<1x128x128xf32> to vector<128x128xf32>
    %cst_52 = arith.constant dense<0.000000e+00> : vector<328x128xf32>
    %46 = tpu.matmul %43, %45, %cst_52 {dimension_numbers = #tpu.dot_dimension_numbers<[1], [0], [0], [1], [0, 0, 1, 1], [], []>} : vector<328x128xf32>, vector<128x128xf32>, vector<328x128xf32> -> vector<328x128xf32>
    %c0_53 = arith.constant 0 : index
    %c0_54 = arith.constant 0 : index
    %47 = vector.load %arg8[%c0_53, %c0_54] : memref<328x128xf32, #tpu.memory_space<vmem>>, vector<328x128xf32>
    %48 = arith.addf %47, %46 : vector<328x128xf32>
    %c0_55 = arith.constant 0 : index
    %c0_56 = arith.constant 0 : index
    %49 = vector.load %arg8[%c0_55, %c0_56] : memref<328x128xf32, #tpu.memory_space<vmem>>, vector<328x128xf32>
    tpu.vector_store %arg8[%c0_55, %c0_56], %48 {strides = array<i32>} : memref<328x128xf32, #tpu.memory_space<vmem>>, vector<328x128xf32>,
    %c0_57 = arith.constant 0 : index
    %c41 = arith.constant 41 : index
    %c0_58 = arith.constant 0 : index
    %50 = vector.load %arg1[%c0_57, %c41, %c0_58] : memref<1x376x128xf32, #tpu.memory_space<vmem>>, vector<1x328x128xf32>
    %51 = vector.shape_cast %50 : vector<1x328x128xf32> to vector<328x128xf32>
    %c6_59 = arith.constant 6 : index
    %c0_60 = arith.constant 0 : index
    %c0_61 = arith.constant 0 : index
    %52 = vector.load %arg2[%c6_59, %c0_60, %c0_61] : memref<9x128x128xf32, #tpu.memory_space<vmem>>, vector<1x128x128xf32>
    %53 = vector.shape_cast %52 : vector<1x128x128xf32> to vector<128x128xf32>
    %cst_62 = arith.constant dense<0.000000e+00> : vector<328x128xf32>
    %54 = tpu.matmul %51, %53, %cst_62 {dimension_numbers = #tpu.dot_dimension_numbers<[1], [0], [0], [1], [0, 0, 1, 1], [], []>} : vector<328x128xf32>, vector<128x128xf32>, vector<328x128xf32> -> vector<328x128xf32>
    %c0_63 = arith.constant 0 : index
    %c0_64 = arith.constant 0 : index
    %55 = vector.load %arg8[%c0_63, %c0_64] : memref<328x128xf32, #tpu.memory_space<vmem>>, vector<328x128xf32>
    %56 = arith.addf %55, %54 : vector<328x128xf32>
    %c0_65 = arith.constant 0 : index
    %c0_66 = arith.constant 0 : index
    %57 = vector.load %arg8[%c0_65, %c0_66] : memref<328x128xf32, #tpu.memory_space<vmem>>, vector<328x128xf32>
    tpu.vector_store %arg8[%c0_65, %c0_66], %56 {strides = array<i32>} : memref<328x128xf32, #tpu.memory_space<vmem>>, vector<328x128xf32>,
    %c0_67 = arith.constant 0 : index
    %c42 = arith.constant 42 : index
    %c0_68 = arith.constant 0 : index
    %58 = vector.load %arg1[%c0_67, %c42, %c0_68] : memref<1x376x128xf32, #tpu.memory_space<vmem>>, vector<1x328x128xf32>
    %59 = vector.shape_cast %58 : vector<1x328x128xf32> to vector<328x128xf32>
    %c7_69 = arith.constant 7 : index
    %c0_70 = arith.constant 0 : index
    %c0_71 = arith.constant 0 : index
    %60 = vector.load %arg2[%c7_69, %c0_70, %c0_71] : memref<9x128x128xf32, #tpu.memory_space<vmem>>, vector<1x128x128xf32>
    %61 = vector.shape_cast %60 : vector<1x128x128xf32> to vector<128x128xf32>
    %cst_72 = arith.constant dense<0.000000e+00> : vector<328x128xf32>
    %62 = tpu.matmul %59, %61, %cst_72 {dimension_numbers = #tpu.dot_dimension_numbers<[1], [0], [0], [1], [0, 0, 1, 1], [], []>} : vector<328x128xf32>, vector<128x128xf32>, vector<328x128xf32> -> vector<328x128xf32>
    %c0_73 = arith.constant 0 : index
    %c0_74 = arith.constant 0 : index
    %63 = vector.load %arg8[%c0_73, %c0_74] : memref<328x128xf32, #tpu.memory_space<vmem>>, vector<328x128xf32>
    %64 = arith.addf %63, %62 : vector<328x128xf32>
    %c0_75 = arith.constant 0 : index
    %c0_76 = arith.constant 0 : index
    %65 = vector.load %arg8[%c0_75, %c0_76] : memref<328x128xf32, #tpu.memory_space<vmem>>, vector<328x128xf32>
    tpu.vector_store %arg8[%c0_75, %c0_76], %64 {strides = array<i32>} : memref<328x128xf32, #tpu.memory_space<vmem>>, vector<328x128xf32>,
    %c0_77 = arith.constant 0 : index
    %c43 = arith.constant 43 : index
    %c0_78 = arith.constant 0 : index
    %66 = vector.load %arg1[%c0_77, %c43, %c0_78] : memref<1x376x128xf32, #tpu.memory_space<vmem>>, vector<1x328x128xf32>
    %67 = vector.shape_cast %66 : vector<1x328x128xf32> to vector<328x128xf32>
    %c8 = arith.constant 8 : index
    %c0_79 = arith.constant 0 : index
    %c0_80 = arith.constant 0 : index
    %68 = vector.load %arg2[%c8, %c0_79, %c0_80] : memref<9x128x128xf32, #tpu.memory_space<vmem>>, vector<1x128x128xf32>
    %69 = vector.shape_cast %68 : vector<1x128x128xf32> to vector<128x128xf32>
    %cst_81 = arith.constant dense<0.000000e+00> : vector<328x128xf32>
    %70 = tpu.matmul %67, %69, %cst_81 {dimension_numbers = #tpu.dot_dimension_numbers<[1], [0], [0], [1], [0, 0, 1, 1], [], []>} : vector<328x128xf32>, vector<128x128xf32>, vector<328x128xf32> -> vector<328x128xf32>
    %c0_82 = arith.constant 0 : index
    %c0_83 = arith.constant 0 : index
    %71 = vector.load %arg8[%c0_82, %c0_83] : memref<328x128xf32, #tpu.memory_space<vmem>>, vector<328x128xf32>
    %72 = arith.addf %71, %70 : vector<328x128xf32>
    %c0_84 = arith.constant 0 : index
    %c0_85 = arith.constant 0 : index
    %73 = vector.load %arg8[%c0_84, %c0_85] : memref<328x128xf32, #tpu.memory_space<vmem>>, vector<328x128xf32>
    tpu.vector_store %arg8[%c0_84, %c0_85], %72 {strides = array<i32>} : memref<328x128xf32, #tpu.memory_space<vmem>>, vector<328x128xf32>,
    %c0_86 = arith.constant 0 : index
    %c0_87 = arith.constant 0 : index
    %74 = vector.load %arg6[%c0_86, %c0_87] : memref<328x1xf32, #tpu.memory_space<vmem>>, vector<328x1xf32>
    %c0_88 = arith.constant 0 : index
    %c0_89 = arith.constant 0 : index
    %75 = vector.load %arg8[%c0_88, %c0_89] : memref<328x128xf32, #tpu.memory_space<vmem>>, vector<328x128xf32>
    %c0_90 = arith.constant 0 : index
    %c0_91 = arith.constant 0 : index
    %76 = vector.load %arg3[%c0_90, %c0_91] : memref<1x128xf32, #tpu.memory_space<vmem>>, vector<1x128xf32>
    %77 = vector.shape_cast %76 : vector<1x128xf32> to vector<128xf32>
    %78 = vector.shape_cast %77 : vector<128xf32> to vector<1x128xf32>
    %79 = vector.broadcast %78 : vector<1x128xf32> to vector<328x128xf32>
    %80 = arith.addf %75, %79 : vector<328x128xf32>
    %cst_92 = arith.constant 0.000000e+00 : f32
    %81 = vector.broadcast %cst_92 : f32 to vector<328x128xf32>
    %82 = arith.maximumf %80, %81 : vector<328x128xf32>
    %83 = vector.broadcast %74 : vector<328x1xf32> to vector<328x128xf32>
    %84 = arith.mulf %82, %83 : vector<328x128xf32>
    %c24_93 = arith.constant 24 : index
    %c0_94 = arith.constant 0 : index
    %85 = vector.load %arg9[%c24_93, %c0_94] : memref<376x128xf32, #tpu.memory_space<vmem>>, vector<328x128xf32>
    tpu.vector_store %arg9[%c24_93, %c0_94], %84 {strides = array<i32>} : memref<376x128xf32, #tpu.memory_space<vmem>>, vector<328x128xf32>,
    %c5_95 = arith.constant 5 : index
    %c0_96 = arith.constant 0 : index
    %86 = vector.load %arg9[%c5_95, %c0_96] : memref<376x128xf32, #tpu.memory_space<vmem>>, vector<328x128xf32>
    %c0_97 = arith.constant 0 : index
    %c0_98 = arith.constant 0 : index
    %c0_99 = arith.constant 0 : index
    %87 = vector.load %arg4[%c0_97, %c0_98, %c0_99] : memref<9x128x128xf32, #tpu.memory_space<vmem>>, vector<1x128x128xf32>
    %88 = vector.shape_cast %87 : vector<1x128x128xf32> to vector<128x128xf32>
    %cst_100 = arith.constant dense<0.000000e+00> : vector<328x128xf32>
    %89 = tpu.matmul %86, %88, %cst_100 {dimension_numbers = #tpu.dot_dimension_numbers<[1], [0], [0], [1], [0, 0, 1, 1], [], []>} : vector<328x128xf32>, vector<128x128xf32>, vector<328x128xf32> -> vector<328x128xf32>
    %c0_101 = arith.constant 0 : index
    %c0_102 = arith.constant 0 : index
    %90 = vector.load %arg8[%c0_101, %c0_102] : memref<328x128xf32, #tpu.memory_space<vmem>>, vector<328x128xf32>
    tpu.vector_store %arg8[%c0_101, %c0_102], %89 {strides = array<i32>} : memref<328x128xf32, #tpu.memory_space<vmem>>, vector<328x128xf32>,
    %c6_103 = arith.constant 6 : index
    %c0_104 = arith.constant 0 : index
    %91 = vector.load %arg9[%c6_103, %c0_104] : memref<376x128xf32, #tpu.memory_space<vmem>>, vector<328x128xf32>
    %c1_105 = arith.constant 1 : index
    %c0_106 = arith.constant 0 : index
    %c0_107 = arith.constant 0 : index
    %92 = vector.load %arg4[%c1_105, %c0_106, %c0_107] : memref<9x128x128xf32, #tpu.memory_space<vmem>>, vector<1x128x128xf32>
    %93 = vector.shape_cast %92 : vector<1x128x128xf32> to vector<128x128xf32>
    %cst_108 = arith.constant dense<0.000000e+00> : vector<328x128xf32>
    %94 = tpu.matmul %91, %93, %cst_108 {dimension_numbers = #tpu.dot_dimension_numbers<[1], [0], [0], [1], [0, 0, 1, 1], [], []>} : vector<328x128xf32>, vector<128x128xf32>, vector<328x128xf32> -> vector<328x128xf32>
    %c0_109 = arith.constant 0 : index
    %c0_110 = arith.constant 0 : index
    %95 = vector.load %arg8[%c0_109, %c0_110] : memref<328x128xf32, #tpu.memory_space<vmem>>, vector<328x128xf32>
    %96 = arith.addf %95, %94 : vector<328x128xf32>
    %c0_111 = arith.constant 0 : index
    %c0_112 = arith.constant 0 : index
    %97 = vector.load %arg8[%c0_111, %c0_112] : memref<328x128xf32, #tpu.memory_space<vmem>>, vector<328x128xf32>
    tpu.vector_store %arg8[%c0_111, %c0_112], %96 {strides = array<i32>} : memref<328x128xf32, #tpu.memory_space<vmem>>, vector<328x128xf32>,
    %c7_113 = arith.constant 7 : index
    %c0_114 = arith.constant 0 : index
    %98 = vector.load %arg9[%c7_113, %c0_114] : memref<376x128xf32, #tpu.memory_space<vmem>>, vector<328x128xf32>
    %c2_115 = arith.constant 2 : index
    %c0_116 = arith.constant 0 : index
    %c0_117 = arith.constant 0 : index
    %99 = vector.load %arg4[%c2_115, %c0_116, %c0_117] : memref<9x128x128xf32, #tpu.memory_space<vmem>>, vector<1x128x128xf32>
    %100 = vector.shape_cast %99 : vector<1x128x128xf32> to vector<128x128xf32>
    %cst_118 = arith.constant dense<0.000000e+00> : vector<328x128xf32>
    %101 = tpu.matmul %98, %100, %cst_118 {dimension_numbers = #tpu.dot_dimension_numbers<[1], [0], [0], [1], [0, 0, 1, 1], [], []>} : vector<328x128xf32>, vector<128x128xf32>, vector<328x128xf32> -> vector<328x128xf32>
    %c0_119 = arith.constant 0 : index
    %c0_120 = arith.constant 0 : index
    %102 = vector.load %arg8[%c0_119, %c0_120] : memref<328x128xf32, #tpu.memory_space<vmem>>, vector<328x128xf32>
    %103 = arith.addf %102, %101 : vector<328x128xf32>
    %c0_121 = arith.constant 0 : index
    %c0_122 = arith.constant 0 : index
    %104 = vector.load %arg8[%c0_121, %c0_122] : memref<328x128xf32, #tpu.memory_space<vmem>>, vector<328x128xf32>
    tpu.vector_store %arg8[%c0_121, %c0_122], %103 {strides = array<i32>} : memref<328x128xf32, #tpu.memory_space<vmem>>, vector<328x128xf32>,
    %c23_123 = arith.constant 23 : index
    %c0_124 = arith.constant 0 : index
    %105 = vector.load %arg9[%c23_123, %c0_124] : memref<376x128xf32, #tpu.memory_space<vmem>>, vector<328x128xf32>
    %c3_125 = arith.constant 3 : index
    %c0_126 = arith.constant 0 : index
    %c0_127 = arith.constant 0 : index
    %106 = vector.load %arg4[%c3_125, %c0_126, %c0_127] : memref<9x128x128xf32, #tpu.memory_space<vmem>>, vector<1x128x128xf32>
    %107 = vector.shape_cast %106 : vector<1x128x128xf32> to vector<128x128xf32>
    %cst_128 = arith.constant dense<0.000000e+00> : vector<328x128xf32>
    %108 = tpu.matmul %105, %107, %cst_128 {dimension_numbers = #tpu.dot_dimension_numbers<[1], [0], [0], [1], [0, 0, 1, 1], [], []>} : vector<328x128xf32>, vector<128x128xf32>, vector<328x128xf32> -> vector<328x128xf32>
    %c0_129 = arith.constant 0 : index
    %c0_130 = arith.constant 0 : index
    %109 = vector.load %arg8[%c0_129, %c0_130] : memref<328x128xf32, #tpu.memory_space<vmem>>, vector<328x128xf32>
    %110 = arith.addf %109, %108 : vector<328x128xf32>
    %c0_131 = arith.constant 0 : index
    %c0_132 = arith.constant 0 : index
    %111 = vector.load %arg8[%c0_131, %c0_132] : memref<328x128xf32, #tpu.memory_space<vmem>>, vector<328x128xf32>
    tpu.vector_store %arg8[%c0_131, %c0_132], %110 {strides = array<i32>} : memref<328x128xf32, #tpu.memory_space<vmem>>, vector<328x128xf32>,
    %c24_133 = arith.constant 24 : index
    %c0_134 = arith.constant 0 : index
    %112 = vector.load %arg9[%c24_133, %c0_134] : memref<376x128xf32, #tpu.memory_space<vmem>>, vector<328x128xf32>
    %c4_135 = arith.constant 4 : index
    %c0_136 = arith.constant 0 : index
    %c0_137 = arith.constant 0 : index
    %113 = vector.load %arg4[%c4_135, %c0_136, %c0_137] : memref<9x128x128xf32, #tpu.memory_space<vmem>>, vector<1x128x128xf32>
    %114 = vector.shape_cast %113 : vector<1x128x128xf32> to vector<128x128xf32>
    %cst_138 = arith.constant dense<0.000000e+00> : vector<328x128xf32>
    %115 = tpu.matmul %112, %114, %cst_138 {dimension_numbers = #tpu.dot_dimension_numbers<[1], [0], [0], [1], [0, 0, 1, 1], [], []>} : vector<328x128xf32>, vector<128x128xf32>, vector<328x128xf32> -> vector<328x128xf32>
    %c0_139 = arith.constant 0 : index
    %c0_140 = arith.constant 0 : index
    %116 = vector.load %arg8[%c0_139, %c0_140] : memref<328x128xf32, #tpu.memory_space<vmem>>, vector<328x128xf32>
    %117 = arith.addf %116, %115 : vector<328x128xf32>
    %c0_141 = arith.constant 0 : index
    %c0_142 = arith.constant 0 : index
    %118 = vector.load %arg8[%c0_141, %c0_142] : memref<328x128xf32, #tpu.memory_space<vmem>>, vector<328x128xf32>
    tpu.vector_store %arg8[%c0_141, %c0_142], %117 {strides = array<i32>} : memref<328x128xf32, #tpu.memory_space<vmem>>, vector<328x128xf32>,
    %c25_143 = arith.constant 25 : index
    %c0_144 = arith.constant 0 : index
    %119 = vector.load %arg9[%c25_143, %c0_144] : memref<376x128xf32, #tpu.memory_space<vmem>>, vector<328x128xf32>
    %c5_145 = arith.constant 5 : index
    %c0_146 = arith.constant 0 : index
    %c0_147 = arith.constant 0 : index
    %120 = vector.load %arg4[%c5_145, %c0_146, %c0_147] : memref<9x128x128xf32, #tpu.memory_space<vmem>>, vector<1x128x128xf32>
    %121 = vector.shape_cast %120 : vector<1x128x128xf32> to vector<128x128xf32>
    %cst_148 = arith.constant dense<0.000000e+00> : vector<328x128xf32>
    %122 = tpu.matmul %119, %121, %cst_148 {dimension_numbers = #tpu.dot_dimension_numbers<[1], [0], [0], [1], [0, 0, 1, 1], [], []>} : vector<328x128xf32>, vector<128x128xf32>, vector<328x128xf32> -> vector<328x128xf32>
    %c0_149 = arith.constant 0 : index
    %c0_150 = arith.constant 0 : index
    %123 = vector.load %arg8[%c0_149, %c0_150] : memref<328x128xf32, #tpu.memory_space<vmem>>, vector<328x128xf32>
    %124 = arith.addf %123, %122 : vector<328x128xf32>
    %c0_151 = arith.constant 0 : index
    %c0_152 = arith.constant 0 : index
    %125 = vector.load %arg8[%c0_151, %c0_152] : memref<328x128xf32, #tpu.memory_space<vmem>>, vector<328x128xf32>
    tpu.vector_store %arg8[%c0_151, %c0_152], %124 {strides = array<i32>} : memref<328x128xf32, #tpu.memory_space<vmem>>, vector<328x128xf32>,
    %c41_153 = arith.constant 41 : index
    %c0_154 = arith.constant 0 : index
    %126 = vector.load %arg9[%c41_153, %c0_154] : memref<376x128xf32, #tpu.memory_space<vmem>>, vector<328x128xf32>
    %c6_155 = arith.constant 6 : index
    %c0_156 = arith.constant 0 : index
    %c0_157 = arith.constant 0 : index
    %127 = vector.load %arg4[%c6_155, %c0_156, %c0_157] : memref<9x128x128xf32, #tpu.memory_space<vmem>>, vector<1x128x128xf32>
    %128 = vector.shape_cast %127 : vector<1x128x128xf32> to vector<128x128xf32>
    %cst_158 = arith.constant dense<0.000000e+00> : vector<328x128xf32>
    %129 = tpu.matmul %126, %128, %cst_158 {dimension_numbers = #tpu.dot_dimension_numbers<[1], [0], [0], [1], [0, 0, 1, 1], [], []>} : vector<328x128xf32>, vector<128x128xf32>, vector<328x128xf32> -> vector<328x128xf32>
    %c0_159 = arith.constant 0 : index
    %c0_160 = arith.constant 0 : index
    %130 = vector.load %arg8[%c0_159, %c0_160] : memref<328x128xf32, #tpu.memory_space<vmem>>, vector<328x128xf32>
    %131 = arith.addf %130, %129 : vector<328x128xf32>
    %c0_161 = arith.constant 0 : index
    %c0_162 = arith.constant 0 : index
    %132 = vector.load %arg8[%c0_161, %c0_162] : memref<328x128xf32, #tpu.memory_space<vmem>>, vector<328x128xf32>
    tpu.vector_store %arg8[%c0_161, %c0_162], %131 {strides = array<i32>} : memref<328x128xf32, #tpu.memory_space<vmem>>, vector<328x128xf32>,
    %c42_163 = arith.constant 42 : index
    %c0_164 = arith.constant 0 : index
    %133 = vector.load %arg9[%c42_163, %c0_164] : memref<376x128xf32, #tpu.memory_space<vmem>>, vector<328x128xf32>
    %c7_165 = arith.constant 7 : index
    %c0_166 = arith.constant 0 : index
    %c0_167 = arith.constant 0 : index
    %134 = vector.load %arg4[%c7_165, %c0_166, %c0_167] : memref<9x128x128xf32, #tpu.memory_space<vmem>>, vector<1x128x128xf32>
    %135 = vector.shape_cast %134 : vector<1x128x128xf32> to vector<128x128xf32>
    %cst_168 = arith.constant dense<0.000000e+00> : vector<328x128xf32>
    %136 = tpu.matmul %133, %135, %cst_168 {dimension_numbers = #tpu.dot_dimension_numbers<[1], [0], [0], [1], [0, 0, 1, 1], [], []>} : vector<328x128xf32>, vector<128x128xf32>, vector<328x128xf32> -> vector<328x128xf32>
    %c0_169 = arith.constant 0 : index
    %c0_170 = arith.constant 0 : index
    %137 = vector.load %arg8[%c0_169, %c0_170] : memref<328x128xf32, #tpu.memory_space<vmem>>, vector<328x128xf32>
    %138 = arith.addf %137, %136 : vector<328x128xf32>
    %c0_171 = arith.constant 0 : index
    %c0_172 = arith.constant 0 : index
    %139 = vector.load %arg8[%c0_171, %c0_172] : memref<328x128xf32, #tpu.memory_space<vmem>>, vector<328x128xf32>
    tpu.vector_store %arg8[%c0_171, %c0_172], %138 {strides = array<i32>} : memref<328x128xf32, #tpu.memory_space<vmem>>, vector<328x128xf32>,
    %c43_173 = arith.constant 43 : index
    %c0_174 = arith.constant 0 : index
    %140 = vector.load %arg9[%c43_173, %c0_174] : memref<376x128xf32, #tpu.memory_space<vmem>>, vector<328x128xf32>
    %c8_175 = arith.constant 8 : index
    %c0_176 = arith.constant 0 : index
    %c0_177 = arith.constant 0 : index
    %141 = vector.load %arg4[%c8_175, %c0_176, %c0_177] : memref<9x128x128xf32, #tpu.memory_space<vmem>>, vector<1x128x128xf32>
    %142 = vector.shape_cast %141 : vector<1x128x128xf32> to vector<128x128xf32>
    %cst_178 = arith.constant dense<0.000000e+00> : vector<328x128xf32>
    %143 = tpu.matmul %140, %142, %cst_178 {dimension_numbers = #tpu.dot_dimension_numbers<[1], [0], [0], [1], [0, 0, 1, 1], [], []>} : vector<328x128xf32>, vector<128x128xf32>, vector<328x128xf32> -> vector<328x128xf32>
    %c0_179 = arith.constant 0 : index
    %c0_180 = arith.constant 0 : index
    %144 = vector.load %arg8[%c0_179, %c0_180] : memref<328x128xf32, #tpu.memory_space<vmem>>, vector<328x128xf32>
    %145 = arith.addf %144, %143 : vector<328x128xf32>
    %c0_181 = arith.constant 0 : index
    %c0_182 = arith.constant 0 : index
    %146 = vector.load %arg8[%c0_181, %c0_182] : memref<328x128xf32, #tpu.memory_space<vmem>>, vector<328x128xf32>
    tpu.vector_store %arg8[%c0_181, %c0_182], %145 {strides = array<i32>} : memref<328x128xf32, #tpu.memory_space<vmem>>, vector<328x128xf32>,
    %c0_183 = arith.constant 0 : index
    %c24_184 = arith.constant 24 : index
    %c0_185 = arith.constant 0 : index
    %147 = vector.load %arg1[%c0_183, %c24_184, %c0_185] : memref<1x376x128xf32, #tpu.memory_space<vmem>>, vector<1x328x128xf32>
    %148 = vector.shape_cast %147 : vector<1x328x128xf32> to vector<328x128xf32>
    %c0_186 = arith.constant 0 : index
    %c0_187 = arith.constant 0 : index
    %149 = vector.load %arg8[%c0_186, %c0_187] : memref<328x128xf32, #tpu.memory_space<vmem>>, vector<328x128xf32>
    %c0_188 = arith.constant 0 : index
    %c0_189 = arith.constant 0 : index
    %150 = vector.load %arg5[%c0_188, %c0_189] : memref<1x128xf32, #tpu.memory_space<vmem>>, vector<1x128xf32>
    %151 = vector.shape_cast %150 : vector<1x128xf32> to vector<128xf32>
    %152 = vector.shape_cast %151 : vector<128xf32> to vector<1x128xf32>
    %153 = vector.broadcast %152 : vector<1x128xf32> to vector<328x128xf32>
    %154 = arith.addf %149, %153 : vector<328x128xf32>
    %155 = arith.addf %154, %148 : vector<328x128xf32>
    %cst_190 = arith.constant 0.000000e+00 : f32
    %156 = vector.broadcast %cst_190 : f32 to vector<328x128xf32>
    %157 = arith.maximumf %155, %156 : vector<328x128xf32>
    %c0_191 = arith.constant 0 : index
    %c0_192 = arith.constant 0 : index
    %c0_193 = arith.constant 0 : index
    %158 = vector.load %arg7[%c0_191, %c0_192, %c0_193] : memref<1x328x128xf32, #tpu.memory_space<vmem>>, vector<1x328x128xf32>
    %159 = vector.shape_cast %158 : vector<1x328x128xf32> to vector<328x128xf32>
    %160 = vector.shape_cast %157 : vector<328x128xf32> to vector<1x328x128xf32>
    tpu.vector_store %arg7[%c0_191, %c0_192, %c0_193], %160 {strides = array<i32>} : memref<1x328x128xf32, #tpu.memory_space<vmem>>, vector<1x328x128xf32>,
    return
  }
  func.func @transform_0(%arg0: i32) -> (i32, i32, i32) {
    %c0_i32 = arith.constant 0 : i32
    %c0_i32_0 = arith.constant 0 : i32
    %c0_i32_1 = arith.constant 0 : i32
    return %arg0, %c0_i32, %c0_i32_0 : i32, i32, i32
  }
  func.func @transform_1(%arg0: i32) -> (i32, i32, i32) {
    %c0_i32 = arith.constant 0 : i32
    %c0_i32_0 = arith.constant 0 : i32
    %c0_i32_1 = arith.constant 0 : i32
    %c0_i32_2 = arith.constant 0 : i32
    return %c0_i32, %c0_i32_0, %c0_i32_1 : i32, i32, i32
  }
  func.func @transform_2(%arg0: i32) -> (i32, i32) {
    %c0_i32 = arith.constant 0 : i32
    %c0_i32_0 = arith.constant 0 : i32
    %c0_i32_1 = arith.constant 0 : i32
    return %c0_i32, %c0_i32_0 : i32, i32
  }
  func.func @transform_3(%arg0: i32) -> (i32, i32, i32) {
    %c0_i32 = arith.constant 0 : i32
    %c0_i32_0 = arith.constant 0 : i32
    %c0_i32_1 = arith.constant 0 : i32
    %c0_i32_2 = arith.constant 0 : i32
    return %c0_i32, %c0_i32_0, %c0_i32_1 : i32, i32, i32
  }
  func.func @transform_4(%arg0: i32) -> (i32, i32) {
    %c0_i32 = arith.constant 0 : i32
    %c0_i32_0 = arith.constant 0 : i32
    %c0_i32_1 = arith.constant 0 : i32
    return %c0_i32, %c0_i32_0 : i32, i32
  }
  func.func @transform_5(%arg0: i32) -> (i32, i32) {
    %c0_i32 = arith.constant 0 : i32
    %c0_i32_0 = arith.constant 0 : i32
    %c0_i32_1 = arith.constant 0 : i32
    return %c0_i32, %c0_i32_0 : i32, i32
  }
  func.func @transform_6(%arg0: i32) -> (i32, i32, i32) {
    %c0_i32 = arith.constant 0 : i32
    %c0_i32_0 = arith.constant 0 : i32
    %c0_i32_1 = arith.constant 0 : i32
    return %arg0, %c0_i32, %c0_i32_0 : i32, i32, i32
  }
}

</mosaic_0001>

<bundles_post_ra>
// kernel: residual_block.1
= control target key start
LH: loop header
LB: loop body
LE: loop exit
PB: predicated region body
PF: predicated region fallthrough
CT: control target
= control target key end

     0   :  { %s13565_s21 = smov 0   ;;  %s17728_s0 = inlined_call_operand.vmem [shape: f32[2,376,128], index: 0, kind: input, shape index: {}]   ;;  %s17729_s1 = inlined_call_operand.vmem [shape: f32[9,128,128], index: 1, kind: input, shape index: {}]   ;;  %s17730_s2 = inlined_call_operand.vmem [shape: f32[1,128], index: 2, kind: input, shape index: {}]   ;;  %s17731_s3 = inlined_call_operand.vmem [shape: f32[9,128,128], index: 3, kind: input, shape index: {}]   ;;  %s17732_s4 = inlined_call_operand.vmem [shape: f32[1,128], index: 4, kind: input, shape index: {}]   ;;  %s17733_s5 = inlined_call_operand.vmem [shape: f32[328,1], index: 5, kind: input, shape index: {}]   ;;  %s17734_s6 = inlined_call_operand.vmem [shape: f32[2,328,128], index: 6, kind: output, shape index: {}]  }
   0x1 LB: > { %s8976_s22 = sadd.s32 4294967295, %s13524_s21   ;;  %p8980_p0 = scmp.ge.s32.totalorder %s13524_s21, 1  ;;  %s13524_s21 = sphi %s13565_s21, %s16_s21  }
   0x2   : > { %p212_p1 = scmp.lt.s32.totalorder %s13524_s21, 3 }
   0x4   : > { %p213_p2 = pnand %p8980_p0, %p212_p1 }
   0x5   : > { %v299_v0 = vld [vmem:[%s17729_s1] sm:$0xff] (!%p213_p2)  ;;  %v300_v1 = vld [vmem:[%s17729_s1 + $0x8] sm:$0xff] (!%p213_p2)  ;;  %v13526_v3 = vmov (!%p213_p2), 0.0|0.0   ;;  %v301_v6 = vld [vmem:[%s17729_s1 + $0x10] sm:$0xff] (!%p213_p2)  ;;  %v13527_v8 = vmov (!%p213_p2), 0.0   ;;  %vm13528_vm0 = vmmov (!%p213_p2), 0  }
   0x6   : > { %216 = sbr.rel (%p213_p2) target bundleno = 1952 (0x7a0), region = 44  ;;  %v8983_v2 = vld [vmem:[%s17729_s1 + $0x80] sm:$0xff] (!%p213_p2)  ;;  %13059 = vmatprep.subr.bf16.mxu0 (!%p213_p2), %v13526_v3  ;;  %v13060_v4 = vpack.c.bf16 (!%p213_p2), %v300_v1, %v299_v0  ;;  %13083 = vmatprep.subr.bf16.mxu1 (!%p213_p2), %v13526_v3  ;;  %v8984_v5 = vld [vmem:[%s17729_s1 + $0x88] sm:$0xff] (!%p213_p2)  ;;  %v302_v7 = vld [vmem:[%s17729_s1 + $0x18] sm:$0xff] (!%p213_p2)  ;;  %252 = vst [vmem:[#allocation3] sm:$0xff] (!%p213_p2), %v13527_v8  ;;  %p242_p3 = scmp.lt.s32.totalorder (!%p213_p2), %s8976_s22, 1 }
   0x7   : > { %253 = vst [vmem:[#allocation3 + $0x8] sm:$0xff] (!%p213_p2), %v13527_v8  ;;  %254 = vst [vmem:[#allocation3 + $0x10] sm:$0xff] (!%p213_p2), %v13527_v8  ;;  %v13084_v9 = vpack.c.bf16 (!%p213_p2), %v8984_v5, %v8983_v2  ;;  %v8985_v10 = vld [vmem:[%s17729_s1 + $0x90] sm:$0xff] (!%p213_p2)  ;;  %v8986_v11 = vld [vmem:[%s17729_s1 + $0x98] sm:$0xff] (!%p213_p2)  ;;  %10301 = vmatprep.mubr.msk.f32.mxu0 (!%p213_p2), %vm13528_vm0, %v13527_v8  ;;  %10456 = vmatprep.mubr.msk.f32.mxu1 (!%p213_p2), %vm13528_vm0, %v13527_v8  ;;  %v13063_v12 = vpack.c.bf16 (!%p213_p2), %v302_v7, %v301_v6 }
   0x8   : > { %255 = vst [vmem:[#allocation3 + $0x160] sm:$0xff] (!%p213_p2), %v13527_v8  ;;  %256 = vst [vmem:[#allocation3 + $0x168] sm:$0xff] (!%p213_p2), %v13527_v8  ;;  %13061 = vmatpush3.bf16.msra.mxu0 (!%p213_p2), %v13060_v4  ;;  %v13087_v13 = vpack.c.bf16 (!%p213_p2), %v8986_v11, %v8985_v10  ;;  %v303_v14 = vld [vmem:[%s17729_s1 + $0x20] sm:$0xff] (!%p213_p2)  ;;  %v304_v15 = vld [vmem:[%s17729_s1 + $0x28] sm:$0xff] (!%p213_p2) }
   0x9   : > { %257 = vst [vmem:[#allocation3 + $0x170] sm:$0xff] (!%p213_p2), %v13527_v8  ;;  %13085 = vmatpush3.bf16.msra.mxu1 (!%p213_p2), %v13084_v9  ;;  %13062 = vmatprep.subr.bf16.mxu0 (!%p213_p2), %v13526_v3  ;;  %v8987_v16 = vld [vmem:[%s17729_s1 + $0xa0] sm:$0xff] (!%p213_p2)  ;;  %v8988_v17 = vld [vmem:[%s17729_s1 + $0xa8] sm:$0xff] (!%p213_p2)  ;;  %v13066_v18 = vpack.c.bf16 (!%p213_p2), %v304_v15, %v303_v14  ;;  %v305_v20 = vld [vmem:[%s17729_s1 + $0x30] sm:$0xff] (!%p213_p2) }
   0xa   : > { %13086 = vmatprep.subr.bf16.mxu1 (!%p213_p2), %v13526_v3  ;;  %v13090_v19 = vpack.c.bf16 (!%p213_p2), %v8988_v17, %v8987_v16  ;;  %v306_v21 = vld [vmem:[%s17729_s1 + $0x38] sm:$0xff] (!%p213_p2)  ;;  %v8989_v22 = vld [vmem:[%s17729_s1 + $0xb0] sm:$0xff] (!%p213_p2)  ;;  %v307_v26 = vld [vmem:[%s17729_s1 + $0x40] sm:$0xff] (!%p213_p2) }
   0xb   : > { %v8990_v23 = vld [vmem:[%s17729_s1 + $0xb8] sm:$0xff] (!%p213_p2)  ;;  %v13069_v24 = vpack.c.bf16 (!%p213_p2), %v306_v21, %v305_v20  ;;  %v308_v27 = vld [vmem:[%s17729_s1 + $0x48] sm:$0xff] (!%p213_p2)  ;;  %v8991_v28 = vld [vmem:[%s17729_s1 + $0xc0] sm:$0xff] (!%p213_p2) }
   0xc   : > { %13064 = vmatpush3.bf16.msra.mxu0 (!%p213_p2), %v13063_v12  ;;  %v13093_v25 = vpack.c.bf16 (!%p213_p2), %v8990_v23, %v8989_v22  ;;  %v8992_v29 = vld [vmem:[%s17729_s1 + $0xc8] sm:$0xff] (!%p213_p2)  ;;  %v13072_v30 = vpack.c.bf16 (!%p213_p2), %v308_v27, %v307_v26  ;;  %v309_v32 = vld [vmem:[%s17729_s1 + $0x50] sm:$0xff] (!%p213_p2)  ;;  %v310_v33 = vld [vmem:[%s17729_s1 + $0x58] sm:$0xff] (!%p213_p2) }
   0xd   : > { %13088 = vmatpush3.bf16.msra.mxu1 %v13087_v13  ;;  %13065 = vmatprep.subr.bf16.mxu0 %v13526_v3  ;;  %v13096_v31 = vpack.c.bf16 %v8992_v29, %v8991_v28  ;;  %v8993_v34 = vld [vmem:[%s17729_s1 + $0xd0] sm:$0xff]  ;;  %v8994_v35 = vld [vmem:[%s17729_s1 + $0xd8] sm:$0xff]  ;;  %v13075_v36 = vpack.c.bf16 %v310_v33, %v309_v32  ;;  %v311_v38 = vld [vmem:[%s17729_s1 + $0x60] sm:$0xff]  ;;  %s17736_s22 = smov (!%p242_p3, %s8976_s22), 1 }
   0xe   : > { %13089 = vmatprep.subr.bf16.mxu1 %v13526_v3  ;;  %v13099_v37 = vpack.c.bf16 %v8994_v35, %v8993_v34  ;;  %v312_v39 = vld [vmem:[%s17729_s1 + $0x68] sm:$0xff]  ;;  %v8995_v40 = vld [vmem:[%s17729_s1 + $0xe0] sm:$0xff]  ;;  %v313_v44 = vld [vmem:[%s17729_s1 + $0x70] sm:$0xff]  ;;  %s13491_s15 = smul.u32 376, %s17736_s22 }
   0xf   : > { %v8996_v41 = vld [vmem:[%s17729_s1 + $0xe8] sm:$0xff]  ;;  %v13078_v42 = vpack.c.bf16 %v312_v39, %v311_v38  ;;  %v314_v45 = vld [vmem:[%s17729_s1 + $0x78] sm:$0xff]  ;;  %v8997_v46 = vld [vmem:[%s17729_s1 + $0xf0] sm:$0xff]  ;;  %s13492_s13 = smul.u32 328, %s17736_s22 }
  0x10   : > { %13067 = vmatpush3.bf16.msra.mxu0 %v13066_v18  ;;  %v13102_v43 = vpack.c.bf16 %v8996_v41, %v8995_v40  ;;  %v8998_v47 = vld [vmem:[%s17729_s1 + $0xf8] sm:$0xff]  ;;  %v13081_v48 = vpack.c.bf16 %v314_v45, %v313_v44  ;;  %s13704_s24 = scalar_lea.vmem %s17728_s0, %s13491_s15  ;;  %v8999_v50 = vld [vmem:[%s17729_s1 + $0x100] sm:$0xff]  ;;  %v9000_v51 = vld [vmem:[%s17729_s1 + $0x108] sm:$0xff] }
  0x11   : > { %13091 = vmatpush3.bf16.msra.mxu1 %v13090_v19  ;;  %13068 = vmatprep.subr.bf16.mxu0 %v13526_v3  ;;  %v13105_v49 = vpack.c.bf16 %v8998_v47, %v8997_v46  ;;  %v258_v52 = vld [vmem:[%s13704_s24 + $0x5] sm:$0xff]  ;;  %v13108_v53 = vpack.c.bf16 %v9000_v51, %v8999_v50  ;;  %v9001_v55 = vld [vmem:[%s17729_s1 + $0x110] sm:$0xff]  ;;  %v9002_v56 = vld [vmem:[%s17729_s1 + $0x118] sm:$0xff]  ;;  %s17563_s16 = scalar_lea.vmem %s17734_s6, %s13492_s13 }
  0x12   : > { %13092 = vmatprep.subr.bf16.mxu1 %v13526_v3  ;;  %v626_v54 = vld [vmem:[%s13704_s24 + $0x6] sm:$0xff]  ;;  %v627_v58 = vld [vmem:[%s13704_s24 + $0xe] sm:$0xff]  ;;  %v13111_v59 = vpack.c.bf16 %v9002_v56, %v9001_v55  ;;  %v628_v1 = vld [vmem:[%s13704_s24 + $0x16] sm:$0xff] }
  0x13   : > { %v259_v57 = vld [vmem:[%s13704_s24 + $0xd] sm:$0xff]  ;;  %v9003_v60 = vld [vmem:[%s17729_s1 + $0x120] sm:$0xff]  ;;  %v260_v62 = vld [vmem:[%s13704_s24 + $0x15] sm:$0xff] }
  0x14   : > { %13070 = vmatpush3.bf16.msra.mxu0 %v13069_v24  ;;  %v9004_v61 = vld [vmem:[%s17729_s1 + $0x128] sm:$0xff]  ;;  %v9015_v63 = vld [vmem:[%s17729_s1 + $0x180] sm:$0xff]  ;;  %v9005_v5 = vld [vmem:[%s17729_s1 + $0x130] sm:$0xff] }
  0x15   : > { %13094 = vmatpush3.bf16.msra.mxu1 %v13093_v25  ;;  %13071 = vmatprep.subr.bf16.mxu0 %v13526_v3  ;;  %v9016_v0 = vld [vmem:[%s17729_s1 + $0x188] sm:$0xff]  ;;  %v13114_v2 = vpack.c.bf16 %v9004_v61, %v9003_v60  ;;  %v9006_v6 = vld [vmem:[%s17729_s1 + $0x138] sm:$0xff]  ;;  %v9017_v9 = vld [vmem:[%s17729_s1 + $0x190] sm:$0xff] }
  0x16   : > { %13095 = vmatprep.subr.bf16.mxu1 %v13526_v3  ;;  %v13132_v4 = vpack.c.bf16 %v9016_v0, %v9015_v63  ;;  %v261_v7 = vld [vmem:[%s13704_s24 + $0x1d] sm:$0xff]  ;;  %v13117_v12 = vpack.c.bf16 %v9006_v6, %v9005_v5  ;;  %v9008_v15 = vld [vmem:[%s17729_s1 + $0x148] sm:$0xff]  ;;  %v9009_v22 = vld [vmem:[%s17729_s1 + $0x150] sm:$0xff] }
  0x17   : > { %v9018_v10 = vld [vmem:[%s17729_s1 + $0x198] sm:$0xff]  ;;  %v9007_v14 = vld [vmem:[%s17729_s1 + $0x140] sm:$0xff]  ;;  %v9020_v18 = vld [vmem:[%s17729_s1 + $0x1a8] sm:$0xff] }
  0x18   : > { %13073 = vmatpush3.bf16.msra.mxu0 %v13072_v30  ;;  %v629_v11 = vld [vmem:[%s13704_s24 + $0x1e] sm:$0xff]  ;;  %v13135_v13 = vpack.c.bf16 %v9018_v10, %v9017_v9  ;;  %v630_v19 = vld [vmem:[%s13704_s24 + $0x26] sm:$0xff]  ;;  %v13120_v20 = vpack.c.bf16 %v9008_v15, %v9007_v14  ;;  %v9021_v25 = vld [vmem:[%s17729_s1 + $0x1b0] sm:$0xff] }
  0x19   : > { %13097 = vmatpush3.bf16.msra.mxu1 %v13096_v31  ;;  %13074 = vmatprep.subr.bf16.mxu0 %v13526_v3  ;;  %v262_v16 = vld [vmem:[%s13704_s24 + $0x25] sm:$0xff]  ;;  %v9010_v23 = vld [vmem:[%s17729_s1 + $0x158] sm:$0xff]  ;;  %v263_v24 = vld [vmem:[%s13704_s24 + $0x2d] sm:$0xff] }
  0x1a   : > { %13098 = vmatprep.subr.bf16.mxu1 %v13526_v3  ;;  %v9019_v17 = vld [vmem:[%s17729_s1 + $0x1a0] sm:$0xff]  ;;  %v631_v26 = vld [vmem:[%s13704_s24 + $0x2e] sm:$0xff]  ;;  %v13123_v27 = vpack.c.bf16 %v9010_v23, %v9009_v22  ;;  %v9022_v28 = vld [vmem:[%s17729_s1 + $0x1b8] sm:$0xff] }
  0x1b   : > { %v13138_v21 = vpack.c.bf16 %v9020_v18, %v9019_v17  ;;  %v9011_v29 = vld [vmem:[%s17729_s1 + $0x160] sm:$0xff]  ;;  %v9012_v30 = vld [vmem:[%s17729_s1 + $0x168] sm:$0xff]  ;;  %v13141_v31 = vpack.c.bf16 %v9022_v28, %v9021_v25  ;;  %v264_v32 = vld [vmem:[%s13704_s24 + $0x35] sm:$0xff] }
  0x1c   : > { %13076 = vmatpush3.bf16.msra.mxu0 %v13075_v36  ;;  %v9023_v33 = vld [vmem:[%s17729_s1 + $0x1c0] sm:$0xff]  ;;  %v9024_v34 = vld [vmem:[%s17729_s1 + $0x1c8] sm:$0xff]  ;;  %v632_v35 = vld [vmem:[%s13704_s24 + $0x36] sm:$0xff]  ;;  %v13126_v36 = vpack.c.bf16 %v9012_v30, %v9011_v29 }
  0x1d   : > { %13100 = vmatpush3.bf16.msra.mxu1 %v13099_v37  ;;  %13077 = vmatprep.subr.bf16.mxu0 %v13526_v3  ;;  %v9013_v37 = vld [vmem:[%s17729_s1 + $0x170] sm:$0xff]  ;;  %v9014_v38 = vld [vmem:[%s17729_s1 + $0x178] sm:$0xff]  ;;  %v13144_v39 = vpack.c.bf16 %v9024_v34, %v9023_v33  ;;  %v266_v46 = vld [vmem:[%s13704_s24 + $0x45] sm:$0xff] }
  0x1e   : > { %13101 = vmatprep.subr.bf16.mxu1 %v13526_v3  ;;  %v265_v40 = vld [vmem:[%s13704_s24 + $0x3d] sm:$0xff]  ;;  %v9025_v41 = vld [vmem:[%s17729_s1 + $0x1d0] sm:$0xff]  ;;  %v13129_v44 = vpack.c.bf16 %v9014_v38, %v9013_v37  ;;  %v270_v60 = vld [vmem:[%s13704_s24 + $0x65] sm:$0xff] }
  0x1f   : > { %v9027_v47 = vld [vmem:[%s17729_s1 + $0x1e0] sm:$0xff]  ;;  %v267_v51 = vld [vmem:[%s13704_s24 + $0x4d] sm:$0xff]  ;;  %v268_v56 = vld [vmem:[%s13704_s24 + $0x55] sm:$0xff] }
  0x20   : > { %13079 = vmatpush3.bf16.msra.mxu0 %v13078_v42  ;;  %v9026_v42 = vld [vmem:[%s17729_s1 + $0x1d8] sm:$0xff]  ;;  %v638_v61 = vld [vmem:[%s13704_s24 + $0x66] sm:$0xff]  ;;  %v639_v63 = vld [vmem:[%s13704_s24 + $0x6e] sm:$0xff] }
  0x21   : > { %13103 = vmatpush3.bf16.msra.mxu1 %v13102_v43  ;;  %13080 = vmatprep.subr.bf16.mxu0 %v13526_v3  ;;  %v633_v43 = vld [vmem:[%s13704_s24 + $0x3e] sm:$0xff]  ;;  %v13147_v45 = vpack.c.bf16 %v9026_v42, %v9025_v41  ;;  %v272_v0 = vld [vmem:[%s13704_s24 + $0x75] sm:$0xff]  ;;  %v642_v6 = vld [vmem:[%s13704_s24 + $0x86] sm:$0xff] }
  0x22   : > { %13104 = vmatprep.subr.bf16.mxu1 %v13526_v3  ;;  %v274_v5 = vld [vmem:[%s13704_s24 + $0x85] sm:$0xff]  ;;  %v643_v9 = vld [vmem:[%s13704_s24 + $0x8e] sm:$0xff]  ;;  %v285_v28 = vld [vmem:[%s13704_s24 + $0xdd] sm:$0xff] }
  0x23   : > { %v276_v10 = vld [vmem:[%s13704_s24 + $0x95] sm:$0xff]  ;;  %v278_v14 = vld [vmem:[%s13704_s24 + $0xa5] sm:$0xff] }
  0x24   : > { %13082 = vmatpush3.bf16.msra.mxu0 %v13081_v48  ;;  %v9028_v48 = vld [vmem:[%s17729_s1 + $0x1e8] sm:$0xff]  ;;  %v280_v18 = vld [vmem:[%s13704_s24 + $0xb5] sm:$0xff]  ;;  %v653_v29 = vld [vmem:[%s13704_s24 + $0xde] sm:$0xff] }
  0x25   : > { %13106 = vmatpush3.bf16.msra.mxu1 %v13105_v49  ;;  %13107 = vmatprep.subr.bf16.mxu0 %v13526_v3  ;;  %v634_v49 = vld [vmem:[%s13704_s24 + $0x46] sm:$0xff]  ;;  %v13150_v50 = vpack.c.bf16 %v9028_v48, %v9027_v47  ;;  %v647_v17 = vld [vmem:[%s13704_s24 + $0xae] sm:$0xff]  ;;  %v657_v37 = vld [vmem:[%s13704_s24 + $0xfe] sm:$0xff] }
  0x26   : > { %13131 = vmatprep.subr.bf16.mxu1 %v13526_v3  ;;  %v646_v15 = vld [vmem:[%s13704_s24 + $0xa6] sm:$0xff]  ;;  %v651_v25 = vld [vmem:[%s13704_s24 + $0xce] sm:$0xff] }
  0x27   : > { %10302 = vmatmul.mubr.f32.vlgmr.msra.gmra.mrb[0].mxu0 %v258_v52  ;;  %v9029_v52 = vld [vmem:[%s17729_s1 + $0x1f0] sm:$0xff]  ;;  %v282_v22 = vld [vmem:[%s13704_s24 + $0xc5] sm:$0xff] }
  0x28   : > { %10457 = vmatmul.mubr.f32.vlgmr.msra.gmra.mrb[0].mxu1 %v626_v54  ;;  %13109 = vmatpush3.bf16.msra.mxu0 %v13108_v53  ;;  %v9030_v53 = vld [vmem:[%s17729_s1 + $0x1f8] sm:$0xff]  ;;  %v635_v54 = vld [vmem:[%s13704_s24 + $0x4e] sm:$0xff]  ;;  %v650_v23 = vld [vmem:[%s13704_s24 + $0xc6] sm:$0xff] }
  0x29   : > { %10304 = vmatprep.mubr.msk.f32.mxu0 %vm13528_vm0, %v13527_v8  ;;  %10459 = vmatprep.mubr.msk.f32.mxu1 %vm13528_vm0, %v13527_v8  ;;  %v13153_v55 = vpack.c.bf16 %v9030_v53, %v9029_v52  ;;  %v286_v30 = vld [vmem:[%s13704_s24 + $0xe5] sm:$0xff]  ;;  %v655_v33 = vld [vmem:[%s13704_s24 + $0xee] sm:$0xff]  ;;  %v297_v52 = vld [vmem:[%s13704_s24 + $0x13d] sm:$0xff] }
  0x2a   : > { %13110 = vmatprep.subr.bf16.mxu0 %v13526_v3  ;;  %13133 = vmatpush3.bf16.msra.mxu1 %v13132_v4  ;;  %v641_v4 = vld [vmem:[%s13704_s24 + $0x7e] sm:$0xff]  ;;  %v288_v34 = vld [vmem:[%s13704_s24 + $0xf5] sm:$0xff]  ;;  %v662_v47 = vld [vmem:[%s13704_s24 + $0x126] sm:$0xff] }
  0x2b   : > { %10305 = vmatmul.mubr.f32.gmra.mrb[2].mxu0 %v259_v57  ;;  %13134 = vmatprep.subr.bf16.mxu1 %v13526_v3  ;;  %v636_v57 = vld [vmem:[%s13704_s24 + $0x56] sm:$0xff]  ;;  %v290_v38 = vld [vmem:[%s13704_s24 + $0x105] sm:$0xff]  ;;  %v659_v41 = vld [vmem:[%s13704_s24 + $0x10e] sm:$0xff] }
  0x2c   : > { %10460 = vmatmul.mubr.f32.gmra.mrb[2].mxu1 %v627_v58  ;;  %10307 = vmatprep.mubr.msk.f32.mxu0 %vm13528_vm0, %v13527_v8  ;;  %v269_v58 = vld [vmem:[%s13704_s24 + $0x5d] sm:$0xff]  ;;  %v292_v42 = vld [vmem:[%s13704_s24 + $0x115] sm:$0xff]  ;;  %v295_v48 = vld [vmem:[%s13704_s24 + $0x12d] sm:$0xff] }
  0x2d   : > { %10462 = vmatprep.mubr.msk.f32.mxu1 %vm13528_vm0, %v13527_v8  ;;  %13112 = vmatpush3.bf16.msra.mxu0 %v13111_v59  ;;  %v637_v59 = vld [vmem:[%s13704_s24 + $0x5e] sm:$0xff] }
  0x2e   : > { %13113 = vmatprep.subr.bf16.mxu0 %v13526_v3  ;;  %13136 = vmatpush3.bf16.msra.mxu1 %v13135_v13  ;;  %v645_v13 = vld [vmem:[%s13704_s24 + $0x9e] sm:$0xff] }
  0x2f   : > { %10308 = vmatmul.mubr.f32.gmra.mrb[4].mxu0 %v260_v62  ;;  %13137 = vmatprep.subr.bf16.mxu1 %v13526_v3  ;;  %v271_v62 = vld [vmem:[%s13704_s24 + $0x6d] sm:$0xff]  ;;  %v665_v53 = vld [vmem:[%s13704_s24 + $0x13e] sm:$0xff] }
  0x30   : > { %10463 = vmatmul.mubr.f32.gmra.mrb[4].mxu1 %v628_v1  ;;  %10310 = vmatprep.mubr.msk.f32.mxu0 %vm13528_vm0, %v13527_v8  ;;  %v640_v1 = vld [vmem:[%s13704_s24 + $0x76] sm:$0xff] }
  0x31   : > { %10465 = vmatprep.mubr.msk.f32.mxu1 %vm13528_vm0, %v13527_v8  ;;  %13115 = vmatpush3.bf16.msra.mxu0 %v13114_v2  ;;  %v273_v2 = vld [vmem:[%s13704_s24 + $0x7d] sm:$0xff] }
  0x32   : > { %13116 = vmatprep.subr.bf16.mxu0 %v13526_v3  ;;  %13139 = vmatpush3.bf16.msra.mxu1 %v13138_v21  ;;  %v649_v21 = vld [vmem:[%s13704_s24 + $0xbe] sm:$0xff] }
  0x33   : > { %10311 = vmatmul.mubr.f32.gmra.mrb[6].mxu0 %v261_v7  ;;  %13140 = vmatprep.subr.bf16.mxu1 %v13526_v3  ;;  %v275_v7 = vld [vmem:[%s13704_s24 + $0x8d] sm:$0xff] }
  0x34   : > { %10466 = vmatmul.mubr.f32.gmra.mrb[6].mxu1 %v629_v11  ;;  %10313 = vmatprep.mubr.msk.f32.mxu0 %vm13528_vm0, %v13527_v8  ;;  %v644_v11 = vld [vmem:[%s13704_s24 + $0x96] sm:$0xff] }
  0x35   : > { %10468 = vmatprep.mubr.msk.f32.mxu1 %vm13528_vm0, %v13527_v8  ;;  %13118 = vmatpush3.bf16.msra.mxu0 %v13117_v12  ;;  %v277_v12 = vld [vmem:[%s13704_s24 + $0x9d] sm:$0xff] }
  0x36   : > { %13119 = vmatprep.subr.bf16.mxu0 %v13526_v3  ;;  %13142 = vmatpush3.bf16.msra.mxu1 %v13141_v31  ;;  %v654_v31 = vld [vmem:[%s13704_s24 + $0xe6] sm:$0xff] }
  0x37   : > { %10314 = vmatmul.mubr.f32.gmra.mrb[8].mxu0 %v262_v16  ;;  %13143 = vmatprep.subr.bf16.mxu1 %v13526_v3  ;;  %v279_v16 = vld [vmem:[%s13704_s24 + $0xad] sm:$0xff] }
  0x38   : > { %10469 = vmatmul.mubr.f32.gmra.mrb[8].mxu1 %v630_v19  ;;  %10316 = vmatprep.mubr.msk.f32.mxu0 %vm13528_vm0, %v13527_v8  ;;  %v648_v19 = vld [vmem:[%s13704_s24 + $0xb6] sm:$0xff] }
  0x39   : > { %10471 = vmatprep.mubr.msk.f32.mxu1 %vm13528_vm0, %v13527_v8  ;;  %13121 = vmatpush3.bf16.msra.mxu0 %v13120_v20  ;;  %v281_v20 = vld [vmem:[%s13704_s24 + $0xbd] sm:$0xff] }
  0x3a   : > { %13122 = vmatprep.subr.bf16.mxu0 %v13526_v3  ;;  %13145 = vmatpush3.bf16.msra.mxu1 %v13144_v39  ;;  %v658_v39 = vld [vmem:[%s13704_s24 + $0x106] sm:$0xff] }
  0x3b   : > { %10317 = vmatmul.mubr.f32.gmra.mrb[10].mxu0 %v263_v24  ;;  %13146 = vmatprep.subr.bf16.mxu1 %v13526_v3  ;;  %v283_v24 = vld [vmem:[%s13704_s24 + $0xcd] sm:$0xff] }
  0x3c   : > { %10472 = vmatmul.mubr.f32.gmra.mrb[10].mxu1 %v631_v26  ;;  %10319 = vmatprep.mubr.msk.f32.mxu0 %vm13528_vm0, %v13527_v8  ;;  %v284_v26 = vld [vmem:[%s13704_s24 + $0xd5] sm:$0xff] }
  0x3d   : > { %10474 = vmatprep.mubr.msk.f32.mxu1 %vm13528_vm0, %v13527_v8  ;;  %13124 = vmatpush3.bf16.msra.mxu0 %v13123_v27  ;;  %v652_v27 = vld [vmem:[%s13704_s24 + $0xd6] sm:$0xff] }
  0x3e   : > { %13125 = vmatprep.subr.bf16.mxu0 %v13526_v3  ;;  %13148 = vmatpush3.bf16.msra.mxu1 %v13147_v45  ;;  %v661_v45 = vld [vmem:[%s13704_s24 + $0x11e] sm:$0xff] }
  0x3f   : > { %10320 = vmatmul.mubr.f32.gmra.mrb[12].mxu0 %v264_v32  ;;  %13149 = vmatprep.subr.bf16.mxu1 %v13526_v3  ;;  %v287_v32 = vld [vmem:[%s13704_s24 + $0xed] sm:$0xff] }
  0x40   : > { %10475 = vmatmul.mubr.f32.gmra.mrb[12].mxu1 %v632_v35  ;;  %10322 = vmatprep.mubr.msk.f32.mxu0 %vm13528_vm0, %v13527_v8  ;;  %v656_v35 = vld [vmem:[%s13704_s24 + $0xf6] sm:$0xff] }
  0x41   : > { %10477 = vmatprep.mubr.msk.f32.mxu1 %vm13528_vm0, %v13527_v8  ;;  %13127 = vmatpush3.bf16.msra.mxu0 %v13126_v36  ;;  %v289_v36 = vld [vmem:[%s13704_s24 + $0xfd] sm:$0xff] }
  0x42   : > { %13128 = vmatprep.subr.bf16.mxu0 %v13526_v3  ;;  %13151 = vmatpush3.bf16.msra.mxu1 %v13150_v50  ;;  %v296_v50 = vld [vmem:[%s13704_s24 + $0x135] sm:$0xff] }
  0x43   : > { %10323 = vmatmul.mubr.f32.gmra.mrb[14].mxu0 %v265_v40  ;;  %13152 = vmatprep.subr.bf16.mxu1 %v13526_v3  ;;  %v291_v40 = vld [vmem:[%s13704_s24 + $0x10d] sm:$0xff] }
  0x44   : > { %10478 = vmatmul.mubr.f32.gmra.mrb[14].mxu1 %v633_v43  ;;  %10325 = vmatprep.mubr.msk.f32.mxu0 %vm13528_vm0, %v13527_v8  ;;  %v660_v43 = vld [vmem:[%s13704_s24 + $0x116] sm:$0xff] }
  0x45   : > { %10480 = vmatprep.mubr.msk.f32.mxu1 %vm13528_vm0, %v13527_v8  ;;  %13130 = vmatpush3.bf16.msra.mxu0 %v13129_v44  ;;  %v293_v44 = vld [vmem:[%s13704_s24 + $0x11d] sm:$0xff] }
  0x46   : > { %13155 = vmatprep.subr.bf16.mxu0 %v13526_v3  ;;  %13154 = vmatpush3.bf16.msra.mxu1 %v13153_v55  ;;  %v666_v55 = vld [vmem:[%s13704_s24 + $0x146] sm:$0xff] }
  0x47   : > { %10326 = vmatmul.mubr.f32.gmra.mrb[16].mxu0 %v266_v46  ;;  %13179 = vmatprep.subr.bf16.mxu1 %v13526_v3  ;;  %v294_v46 = vld [vmem:[%s13704_s24 + $0x125] sm:$0xff] }
  0x48   : > { %10481 = vmatmul.mubr.f32.gmra.mrb[16].mxu1 %v634_v49  ;;  %10328 = vmatprep.mubr.msk.f32.mxu0 %vm13528_vm0, %v13527_v8  ;;  %v663_v49 = vld [vmem:[%s13704_s24 + $0x12e] sm:$0xff] }
  0x49   : > { %10483 = vmatprep.mubr.msk.f32.mxu1 %vm13528_vm0, %v13527_v8 }
  0x4b   : > { %10329 = vmatmul.mubr.f32.gmra.mrb[18].mxu0 %v267_v51  ;;  %v664_v51 = vld [vmem:[%s13704_s24 + $0x136] sm:$0xff] }
  0x4c   : > { %10484 = vmatmul.mubr.f32.gmra.mrb[18].mxu1 %v635_v54  ;;  %10331 = vmatprep.mubr.msk.f32.mxu0 %vm13528_vm0, %v13527_v8  ;;  %v298_v54 = vld [vmem:[%s13704_s24 + $0x145] sm:$0xff] }
  0x4d   : > { %10486 = vmatprep.mubr.msk.f32.mxu1 %vm13528_vm0, %v13527_v8 }
  0x4f   : > { %10332 = vmatmul.mubr.f32.gmra.mrb[20].mxu0 %v268_v56  ;;  %v9031_v56 = vld [vmem:[%s17729_s1 + $0x200] sm:$0xff] }
  0x50   : > { %10487 = vmatmul.mubr.f32.gmra.mrb[20].mxu1 %v636_v57  ;;  %10334 = vmatprep.mubr.msk.f32.mxu0 %vm13528_vm0, %v13527_v8  ;;  %v9032_v57 = vld [vmem:[%s17729_s1 + $0x208] sm:$0xff] }
  0x51   : > { %10489 = vmatprep.mubr.msk.f32.mxu1 %vm13528_vm0, %v13527_v8 }
  0x53   : > { %10335 = vmatmul.mubr.f32.gmra.mrb[22].mxu0 %v269_v58  ;;  %v1077_v58 = vld [vmem:[%s13704_s24 + $0x7] sm:$0xff] }
  0x54   : > { %10490 = vmatmul.mubr.f32.gmra.mrb[22].mxu1 %v637_v59  ;;  %10337 = vmatprep.mubr.msk.f32.mxu0 %vm13528_vm0, %v13527_v8  ;;  %v13156_v59 = vpack.c.bf16 %v9032_v57, %v9031_v56  ;;  %v1540_v56 = vld [vmem:[%s13704_s24 + $0x77] sm:$0xff] }
  0x55   : > { %10492 = vmatprep.mubr.msk.f32.mxu1 %vm13528_vm0, %v13527_v8 }
  0x57   : > { %10338 = vmatmul.mubr.f32.gmra.mrb[24].mxu0 %v270_v60  ;;  %v1528_v60 = vld [vmem:[%s13704_s24 + $0x17] sm:$0xff] }
  0x58   : > { %10493 = vmatmul.mubr.f32.gmra.mrb[24].mxu1 %v638_v61  ;;  %10340 = vmatprep.mubr.msk.f32.mxu0 %vm13528_vm0, %v13527_v8  ;;  %v9033_v61 = vld [vmem:[%s17729_s1 + $0x210] sm:$0xff] }
  0x59   : > { %10495 = vmatprep.mubr.msk.f32.mxu1 %vm13528_vm0, %v13527_v8 }
  0x5b   : > { %10341 = vmatmul.mubr.f32.gmra.mrb[26].mxu0 %v271_v62  ;;  %v9034_v62 = vld [vmem:[%s17729_s1 + $0x218] sm:$0xff] }
  0x5c   : > { %10496 = vmatmul.mubr.f32.gmra.mrb[26].mxu1 %v639_v63  ;;  %10343 = vmatprep.mubr.msk.f32.mxu0 %vm13528_vm0, %v13527_v8  ;;  %v1078_v63 = vld [vmem:[%s13704_s24 + $0xf] sm:$0xff] }
  0x5d   : > { %10498 = vmatprep.mubr.msk.f32.mxu1 %vm13528_vm0, %v13527_v8 }
  0x5f   : > { %10344 = vmatmul.mubr.f32.gmra.mrb[28].mxu0 %v272_v0  ;;  %v1529_v0 = vld [vmem:[%s13704_s24 + $0x1f] sm:$0xff] }
  0x60   : > { %10499 = vmatmul.mubr.f32.gmra.mrb[28].mxu1 %v640_v1  ;;  %10346 = vmatprep.mubr.msk.f32.mxu0 %vm13528_vm0, %v13527_v8  ;;  %v13159_v1 = vpack.c.bf16 %v9034_v62, %v9033_v61  ;;  %v1541_v62 = vld [vmem:[%s13704_s24 + $0x7f] sm:$0xff] }
  0x61   : > { %10501 = vmatprep.mubr.msk.f32.mxu1 %vm13528_vm0, %v13527_v8 }
  0x63   : > { %10347 = vmatmul.mubr.f32.gmra.mrb[30].mxu0 %v273_v2  ;;  %v9035_v2 = vld [vmem:[%s17729_s1 + $0x220] sm:$0xff] }
  0x64   : > { %10502 = vmatmul.mubr.f32.gmra.mrb[30].mxu1 %v641_v4  ;;  %10349 = vmatprep.mubr.msk.f32.mxu0 %vm13528_vm0, %v13527_v8  ;;  %v9036_v4 = vld [vmem:[%s17729_s1 + $0x228] sm:$0xff] }
  0x65   : > { %10504 = vmatprep.mubr.msk.f32.mxu1 %vm13528_vm0, %v13527_v8 }
  0x67   : > { %10350 = vmatmul.mubr.f32.gmra.mrb[32].mxu0 %v274_v5  ;;  %v9047_v5 = vld [vmem:[%s17729_s1 + $0x280] sm:$0xff] }
  0x68   : > { %10505 = vmatmul.mubr.f32.gmra.mrb[32].mxu1 %v642_v6  ;;  %10352 = vmatprep.mubr.msk.f32.mxu0 %vm13528_vm0, %v13527_v8  ;;  %v9048_v6 = vld [vmem:[%s17729_s1 + $0x288] sm:$0xff] }
  0x69   : > { %10507 = vmatprep.mubr.msk.f32.mxu1 %vm13528_vm0, %v13527_v8 }
  0x6b   : > { %10353 = vmatmul.mubr.f32.gmra.mrb[34].mxu0 %v275_v7  ;;  %v1530_v7 = vld [vmem:[%s13704_s24 + $0x27] sm:$0xff] }
  0x6c   : > { %10508 = vmatmul.mubr.f32.gmra.mrb[34].mxu1 %v643_v9  ;;  %10355 = vmatprep.mubr.msk.f32.mxu0 %vm13528_vm0, %v13527_v8  ;;  %v13162_v9 = vpack.c.bf16 %v9036_v4, %v9035_v2 }
  0x6d   : > { %10510 = vmatprep.mubr.msk.f32.mxu1 %vm13528_vm0, %v13527_v8 }
  0x6f   : > { %10356 = vmatmul.mubr.f32.gmra.mrb[36].mxu0 %v276_v10  ;;  %v13180_v10 = vpack.c.bf16 %v9048_v6, %v9047_v5  ;;  %v1542_v5 = vld [vmem:[%s13704_s24 + $0x87] sm:$0xff] }
  0x70   : > { %10511 = vmatmul.mubr.f32.gmra.mrb[36].mxu1 %v644_v11  ;;  %10358 = vmatprep.mubr.msk.f32.mxu0 %vm13528_vm0, %v13527_v8  ;;  %v9037_v11 = vld [vmem:[%s17729_s1 + $0x230] sm:$0xff] }
  0x71   : > { %10513 = vmatprep.mubr.msk.f32.mxu1 %vm13528_vm0, %v13527_v8 }
  0x73   : > { %10359 = vmatmul.mubr.f32.gmra.mrb[38].mxu0 %v277_v12  ;;  %v9038_v12 = vld [vmem:[%s17729_s1 + $0x238] sm:$0xff] }
  0x74   : > { %10514 = vmatmul.mubr.f32.gmra.mrb[38].mxu1 %v645_v13  ;;  %10361 = vmatprep.mubr.msk.f32.mxu0 %vm13528_vm0, %v13527_v8  ;;  %v9049_v13 = vld [vmem:[%s17729_s1 + $0x290] sm:$0xff] }
  0x75   : > { %10516 = vmatprep.mubr.msk.f32.mxu1 %vm13528_vm0, %v13527_v8 }
  0x77   : > { %10362 = vmatmul.mubr.f32.gmra.mrb[40].mxu0 %v278_v14  ;;  %v9050_v14 = vld [vmem:[%s17729_s1 + $0x298] sm:$0xff] }
  0x78   : > { %10517 = vmatmul.mubr.f32.gmra.mrb[40].mxu1 %v646_v15  ;;  %10364 = vmatprep.mubr.msk.f32.mxu0 %vm13528_vm0, %v13527_v8  ;;  %v1531_v15 = vld [vmem:[%s13704_s24 + $0x2f] sm:$0xff] }
  0x79   : > { %10519 = vmatprep.mubr.msk.f32.mxu1 %vm13528_vm0, %v13527_v8 }
  0x7b   : > { %10365 = vmatmul.mubr.f32.gmra.mrb[42].mxu0 %v279_v16  ;;  %v13165_v16 = vpack.c.bf16 %v9038_v12, %v9037_v11  ;;  %v1543_v12 = vld [vmem:[%s13704_s24 + $0x8f] sm:$0xff] }
  0x7c   : > { %10520 = vmatmul.mubr.f32.gmra.mrb[42].mxu1 %v647_v17  ;;  %10367 = vmatprep.mubr.msk.f32.mxu0 %vm13528_vm0, %v13527_v8  ;;  %v13183_v17 = vpack.c.bf16 %v9050_v14, %v9049_v13 }
  0x7d   : > { %10522 = vmatprep.mubr.msk.f32.mxu1 %vm13528_vm0, %v13527_v8 }
  0x7f   : > { %10368 = vmatmul.mubr.f32.gmra.mrb[44].mxu0 %v280_v18  ;;  %v9039_v18 = vld [vmem:[%s17729_s1 + $0x240] sm:$0xff] }
  0x80   : > { %10523 = vmatmul.mubr.f32.gmra.mrb[44].mxu1 %v648_v19  ;;  %10370 = vmatprep.mubr.msk.f32.mxu0 %vm13528_vm0, %v13527_v8  ;;  %v9040_v19 = vld [vmem:[%s17729_s1 + $0x248] sm:$0xff] }
  0x81   : > { %10525 = vmatprep.mubr.msk.f32.mxu1 %vm13528_vm0, %v13527_v8 }
  0x83   : > { %10371 = vmatmul.mubr.f32.gmra.mrb[46].mxu0 %v281_v20  ;;  %v9051_v20 = vld [vmem:[%s17729_s1 + $0x2a0] sm:$0xff] }
  0x84   : > { %10526 = vmatmul.mubr.f32.gmra.mrb[46].mxu1 %v649_v21  ;;  %10373 = vmatprep.mubr.msk.f32.mxu0 %vm13528_vm0, %v13527_v8  ;;  %v9052_v21 = vld [vmem:[%s17729_s1 + $0x2a8] sm:$0xff] }
  0x85   : > { %10528 = vmatprep.mubr.msk.f32.mxu1 %vm13528_vm0, %v13527_v8 }
  0x87   : > { %10374 = vmatmul.mubr.f32.gmra.mrb[48].mxu0 %v282_v22  ;;  %v1532_v22 = vld [vmem:[%s13704_s24 + $0x37] sm:$0xff] }
  0x88   : > { %10529 = vmatmul.mubr.f32.gmra.mrb[48].mxu1 %v650_v23  ;;  %10376 = vmatprep.mubr.msk.f32.mxu0 %vm13528_vm0, %v13527_v8  ;;  %v13168_v23 = vpack.c.bf16 %v9040_v19, %v9039_v18  ;;  %v1544_v18 = vld [vmem:[%s13704_s24 + $0x97] sm:$0xff] }
  0x89   : > { %10531 = vmatprep.mubr.msk.f32.mxu1 %vm13528_vm0, %v13527_v8 }
  0x8b   : > { %10377 = vmatmul.mubr.f32.gmra.mrb[50].mxu0 %v283_v24  ;;  %v13186_v24 = vpack.c.bf16 %v9052_v21, %v9051_v20 }
  0x8c   : > { %10532 = vmatmul.mubr.f32.gmra.mrb[50].mxu1 %v651_v25  ;;  %10379 = vmatprep.mubr.msk.f32.mxu0 %vm13528_vm0, %v13527_v8  ;;  %v9041_v25 = vld [vmem:[%s17729_s1 + $0x250] sm:$0xff] }
  0x8d   : > { %10534 = vmatprep.mubr.msk.f32.mxu1 %vm13528_vm0, %v13527_v8 }
  0x8f   : > { %10380 = vmatmul.mubr.f32.gmra.mrb[52].mxu0 %v284_v26  ;;  %v9042_v26 = vld [vmem:[%s17729_s1 + $0x258] sm:$0xff] }
  0x90   : > { %10535 = vmatmul.mubr.f32.gmra.mrb[52].mxu1 %v652_v27  ;;  %10382 = vmatprep.mubr.msk.f32.mxu0 %vm13528_vm0, %v13527_v8  ;;  %v1533_v27 = vld [vmem:[%s13704_s24 + $0x3f] sm:$0xff] }
  0x91   : > { %10537 = vmatprep.mubr.msk.f32.mxu1 %vm13528_vm0, %v13527_v8 }
  0x93   : > { %10383 = vmatmul.mubr.f32.gmra.mrb[54].mxu0 %v285_v28  ;;  %v13171_v28 = vpack.c.bf16 %v9042_v26, %v9041_v25 }
  0x94   : > { %10538 = vmatmul.mubr.f32.gmra.mrb[54].mxu1 %v653_v29  ;;  %10385 = vmatprep.mubr.msk.f32.mxu0 %vm13528_vm0, %v13527_v8  ;;  %v9053_v29 = vld [vmem:[%s17729_s1 + $0x2b0] sm:$0xff] }
  0x95   : > { %10540 = vmatprep.mubr.msk.f32.mxu1 %vm13528_vm0, %v13527_v8 }
  0x97   : > { %10386 = vmatmul.mubr.f32.gmra.mrb[56].mxu0 %v286_v30  ;;  %v9054_v30 = vld [vmem:[%s17729_s1 + $0x2b8] sm:$0xff] }
  0x98   : > { %10541 = vmatmul.mubr.f32.gmra.mrb[56].mxu1 %v654_v31  ;;  %10388 = vmatprep.mubr.msk.f32.mxu0 %vm13528_vm0, %v13527_v8  ;;  %v9043_v31 = vld [vmem:[%s17729_s1 + $0x260] sm:$0xff] }
  0x99   : > { %10543 = vmatprep.mubr.msk.f32.mxu1 %vm13528_vm0, %v13527_v8 }
  0x9b   : > { %10389 = vmatmul.mubr.f32.gmra.mrb[58].mxu0 %v287_v32  ;;  %v9044_v32 = vld [vmem:[%s17729_s1 + $0x268] sm:$0xff] }
  0x9c   : > { %10544 = vmatmul.mubr.f32.gmra.mrb[58].mxu1 %v655_v33  ;;  %10391 = vmatprep.mubr.msk.f32.mxu0 %vm13528_vm0, %v13527_v8  ;;  %v13189_v33 = vpack.c.bf16 %v9054_v30, %v9053_v29  ;;  %v1546_v30 = vld [vmem:[%s13704_s24 + $0xa7] sm:$0xff] }
  0x9d   : > { %10546 = vmatprep.mubr.msk.f32.mxu1 %vm13528_vm0, %v13527_v8 }
  0x9f   : > { %10392 = vmatmul.mubr.f32.gmra.mrb[60].mxu0 %v288_v34  ;;  %v9055_v34 = vld [vmem:[%s17729_s1 + $0x2c0] sm:$0xff] }
  0xa0   : > { %10547 = vmatmul.mubr.f32.gmra.mrb[60].mxu1 %v656_v35  ;;  %10394 = vmatprep.mubr.msk.f32.mxu0 %vm13528_vm0, %v13527_v8  ;;  %v9056_v35 = vld [vmem:[%s17729_s1 + $0x2c8] sm:$0xff] }
  0xa1   : > { %10549 = vmatprep.mubr.msk.f32.mxu1 %vm13528_vm0, %v13527_v8 }
  0xa3   : > { %10395 = vmatmul.mubr.f32.gmra.mrb[62].mxu0 %v289_v36  ;;  %v1534_v36 = vld [vmem:[%s13704_s24 + $0x47] sm:$0xff] }
  0xa4   : > { %10550 = vmatmul.mubr.f32.gmra.mrb[62].mxu1 %v657_v37  ;;  %10397 = vmatprep.mubr.msk.f32.mxu0 %vm13528_vm0, %v13527_v8  ;;  %v13174_v37 = vpack.c.bf16 %v9044_v32, %v9043_v31 }
  0xa5   : > { %10552 = vmatprep.mubr.msk.f32.mxu1 %vm13528_vm0, %v13527_v8 }
  0xa7   : > { %10398 = vmatmul.mubr.f32.gmra.mrb[64].mxu0 %v290_v38  ;;  %v9045_v38 = vld [vmem:[%s17729_s1 + $0x270] sm:$0xff] }
  0xa8   : > { %10553 = vmatmul.mubr.f32.gmra.mrb[64].mxu1 %v658_v39  ;;  %10400 = vmatprep.mubr.msk.f32.mxu0 %vm13528_vm0, %v13527_v8  ;;  %v9046_v39 = vld [vmem:[%s17729_s1 + $0x278] sm:$0xff] }
  0xa9   : > { %10555 = vmatprep.mubr.msk.f32.mxu1 %vm13528_vm0, %v13527_v8 }
  0xab   : > { %10401 = vmatmul.mubr.f32.gmra.mrb[66].mxu0 %v291_v40  ;;  %v13192_v40 = vpack.c.bf16 %v9056_v35, %v9055_v34 }
  0xac   : > { %10556 = vmatmul.mubr.f32.gmra.mrb[66].mxu1 %v659_v41  ;;  %10403 = vmatprep.mubr.msk.f32.mxu0 %vm13528_vm0, %v13527_v8  ;;  %v9057_v41 = vld [vmem:[%s17729_s1 + $0x2d0] sm:$0xff] }
  0xad   : > { %10558 = vmatprep.mubr.msk.f32.mxu1 %vm13528_vm0, %v13527_v8 }
  0xaf   : > { %10404 = vmatmul.mubr.f32.gmra.mrb[68].mxu0 %v292_v42  ;;  %v9058_v42 = vld [vmem:[%s17729_s1 + $0x2d8] sm:$0xff] }
  0xb0   : > { %10559 = vmatmul.mubr.f32.gmra.mrb[68].mxu1 %v660_v43  ;;  %10406 = vmatprep.mubr.msk.f32.mxu0 %vm13528_vm0, %v13527_v8  ;;  %v1535_v43 = vld [vmem:[%s13704_s24 + $0x4f] sm:$0xff] }
  0xb1   : > { %10561 = vmatprep.mubr.msk.f32.mxu1 %vm13528_vm0, %v13527_v8 }
  0xb3   : > { %10407 = vmatmul.mubr.f32.gmra.mrb[70].mxu0 %v293_v44  ;;  %v13177_v44 = vpack.c.bf16 %v9046_v39, %v9045_v38 }
  0xb4   : > { %10562 = vmatmul.mubr.f32.gmra.mrb[70].mxu1 %v661_v45  ;;  %10409 = vmatprep.mubr.msk.f32.mxu0 %vm13528_vm0, %v13527_v8  ;;  %v13195_v45 = vpack.c.bf16 %v9058_v42, %v9057_v41  ;;  %v1548_v42 = vld [vmem:[%s13704_s24 + $0xb7] sm:$0xff] }
  0xb5   : > { %10564 = vmatprep.mubr.msk.f32.mxu1 %vm13528_vm0, %v13527_v8 }
  0xb7   : > { %10410 = vmatmul.mubr.f32.gmra.mrb[72].mxu0 %v294_v46  ;;  %v14201_v46 = vld [vmem:[#allocation3] sm:$0xff] }
  0xb8   : > { %10565 = vmatmul.mubr.f32.gmra.mrb[72].mxu1 %v662_v47  ;;  %10412 = vmatprep.mubr.msk.f32.mxu0 %vm13528_vm0, %v13527_v8  ;;  %v9060_v47 = vld [vmem:[%s17729_s1 + $0x2e8] sm:$0xff] }
  0xb9   : > { %10567 = vmatprep.mubr.msk.f32.mxu1 %vm13528_vm0, %v13527_v8 }
  0xbb   : > { %10413 = vmatmul.mubr.f32.gmra.mrb[74].mxu0 %v295_v48  ;;  %v1536_v48 = vld [vmem:[%s13704_s24 + $0x57] sm:$0xff] }
  0xbc   : > { %10568 = vmatmul.mubr.f32.gmra.mrb[74].mxu1 %v663_v49  ;;  %10415 = vmatprep.mubr.msk.f32.mxu0 %vm13528_vm0, %v13527_v8 }
  0xbd   : > { %10570 = vmatprep.mubr.msk.f32.mxu1 %vm13528_vm0, %v13527_v8 }
  0xbf   : > { %10416 = vmatmul.mubr.f32.gmra.mrb[76].mxu0 %v296_v50  ;;  %v9061_v50 = vld [vmem:[%s17729_s1 + $0x2f0] sm:$0xff] }
  0xc0   : > { %10571 = vmatmul.mubr.f32.gmra.mrb[76].mxu1 %v664_v51  ;;  %10418 = vmatprep.mubr.msk.f32.mxu0 %vm13528_vm0, %v13527_v8  ;;  %v9062_v51 = vld [vmem:[%s17729_s1 + $0x2f8] sm:$0xff] }
  0xc1   : > { %10573 = vmatprep.mubr.msk.f32.mxu1 %vm13528_vm0, %v13527_v8 }
  0xc3   : > { %10419 = vmatmul.mubr.f32.gmra.mrb[78].mxu0 %v297_v52  ;;  %v1537_v52 = vld [vmem:[%s13704_s24 + $0x5f] sm:$0xff] }
  0xc4   : > { %10574 = vmatmul.mubr.f32.gmra.mrb[78].mxu1 %v665_v53  ;;  %10421 = vmatprep.mubr.msk.f32.mxu0 %vm13528_vm0, %v13527_v8  ;;  %v13201_v53 = vpack.c.bf16 %v9062_v51, %v9061_v50 }
  0xc5   : > { %10576 = vmatprep.mubr.msk.f32.mxu1 %vm13528_vm0, %v13527_v8 }
  0xc7   : > { %10422 = vmatmul.mubr.f32.gmra.mrb[80].mxu0 %v298_v54  ;;  %v1538_v54 = vld [vmem:[%s13704_s24 + $0x67] sm:$0xff] }
  0xc8   : > { %10577 = vmatmul.mubr.f32.gmra.mrb[80].mxu1 %v666_v55  ;;  %10611 = vmatprep.mubr.msk.f32.mxu0 %vm13528_vm0, %v13527_v8  ;;  %v1539_v55 = vld [vmem:[%s13704_s24 + $0x6f] sm:$0xff] }
  0xc9   : > { %10766 = vmatprep.mubr.msk.f32.mxu1 %vm13528_vm0, %v13527_v8 }
  0xcb   : > { %10612 = vmatmul.mubr.f32.vlgmr.msra.gmra.mrb[82].mxu0 %v1077_v58 }
  0xcc   : > { %13157 = vmatpush3.bf16.msra.mxu0 %v13156_v59  ;;  %10767 = vmatmul.mubr.f32.vlgmr.msra.gmra.mrb[82].mxu1 %v1528_v60 }
  0xcd   : > { %10614 = vmatprep.mubr.msk.f32.mxu0 %vm13528_vm0, %v13527_v8  ;;  %10769 = vmatprep.mubr.msk.f32.mxu1 %vm13528_vm0, %v13527_v8 }
  0xce   : > { %13158 = vmatprep.subr.bf16.mxu0 %v13526_v3  ;;  %13181 = vmatpush3.bf16.msra.mxu1 %v13180_v10 }
  0xcf   : > { %10615 = vmatmul.mubr.f32.gmra.mrb[84].mxu0 %v1078_v63  ;;  %13182 = vmatprep.subr.bf16.mxu1 %v13526_v3 }
  0xd0   : > { %10770 = vmatmul.mubr.f32.gmra.mrb[84].mxu1 %v1529_v0  ;;  %10617 = vmatprep.mubr.msk.f32.mxu0 %vm13528_vm0, %v13527_v8 }
  0xd1   : > { %10772 = vmatprep.mubr.msk.f32.mxu1 %vm13528_vm0, %v13527_v8  ;;  %13160 = vmatpush3.bf16.msra.mxu0 %v13159_v1 }
  0xd2   : > { %13161 = vmatprep.subr.bf16.mxu0 %v13526_v3  ;;  %13184 = vmatpush3.bf16.msra.mxu1 %v13183_v17 }
  0xd3   : > { %10618 = vmatmul.mubr.f32.gmra.mrb[86].mxu0 %v1528_v60  ;;  %13185 = vmatprep.subr.bf16.mxu1 %v13526_v3 }
  0xd4   : > { %10773 = vmatmul.mubr.f32.gmra.mrb[86].mxu1 %v1530_v7  ;;  %10620 = vmatprep.mubr.msk.f32.mxu0 %vm13528_vm0, %v13527_v8 }
  0xd5   : > { %10775 = vmatprep.mubr.msk.f32.mxu1 %vm13528_vm0, %v13527_v8  ;;  %13163 = vmatpush3.bf16.msra.mxu0 %v13162_v9 }
  0xd6   : > { %13164 = vmatprep.subr.bf16.mxu0 %v13526_v3  ;;  %13187 = vmatpush3.bf16.msra.mxu1 %v13186_v24  ;;  %v1545_v24 = vld [vmem:[%s13704_s24 + $0x9f] sm:$0xff] }
  0xd7   : > { %10621 = vmatmul.mubr.f32.gmra.mrb[88].mxu0 %v1529_v0  ;;  %13188 = vmatprep.subr.bf16.mxu1 %v13526_v3 }
  0xd8   : > { %10776 = vmatmul.mubr.f32.gmra.mrb[88].mxu1 %v1531_v15  ;;  %10623 = vmatprep.mubr.msk.f32.mxu0 %vm13528_vm0, %v13527_v8 }
  0xd9   : > { %10778 = vmatprep.mubr.msk.f32.mxu1 %vm13528_vm0, %v13527_v8  ;;  %13166 = vmatpush3.bf16.msra.mxu0 %v13165_v16 }
  0xda   : > { %13167 = vmatprep.subr.bf16.mxu0 %v13526_v3  ;;  %13190 = vmatpush3.bf16.msra.mxu1 %v13189_v33 }
  0xdb   : > { %10624 = vmatmul.mubr.f32.gmra.mrb[90].mxu0 %v1530_v7  ;;  %13191 = vmatprep.subr.bf16.mxu1 %v13526_v3 }
  0xdc   : > { %10779 = vmatmul.mubr.f32.gmra.mrb[90].mxu1 %v1532_v22  ;;  %10626 = vmatprep.mubr.msk.f32.mxu0 %vm13528_vm0, %v13527_v8 }
  0xdd   : > { %10781 = vmatprep.mubr.msk.f32.mxu1 %vm13528_vm0, %v13527_v8  ;;  %13169 = vmatpush3.bf16.msra.mxu0 %v13168_v23 }
  0xde   : > { %13170 = vmatprep.subr.bf16.mxu0 %v13526_v3  ;;  %13193 = vmatpush3.bf16.msra.mxu1 %v13192_v40 }
  0xdf   : > { %10627 = vmatmul.mubr.f32.gmra.mrb[92].mxu0 %v1531_v15  ;;  %13194 = vmatprep.subr.bf16.mxu1 %v13526_v3 }
  0xe0   : > { %10782 = vmatmul.mubr.f32.gmra.mrb[92].mxu1 %v1533_v27  ;;  %10629 = vmatprep.mubr.msk.f32.mxu0 %vm13528_vm0, %v13527_v8 }
  0xe1   : > { %10784 = vmatprep.mubr.msk.f32.mxu1 %vm13528_vm0, %v13527_v8  ;;  %13172 = vmatpush3.bf16.msra.mxu0 %v13171_v28 }
  0xe2   : > { %13173 = vmatprep.subr.bf16.mxu0 %v13526_v3  ;;  %13196 = vmatpush3.bf16.msra.mxu1 %v13195_v45 }
  0xe3   : > { %10630 = vmatmul.mubr.f32.gmra.mrb[94].mxu0 %v1532_v22  ;;  %13197 = vmatprep.subr.bf16.mxu1 %v13526_v3 }
  0xe4   : > { %10785 = vmatmul.mubr.f32.gmra.mrb[94].mxu1 %v1534_v36  ;;  %10632 = vmatprep.mubr.msk.f32.mxu0 %vm13528_vm0, %v13527_v8 }
  0xe5   : > { %10787 = vmatprep.mubr.msk.f32.mxu1 %vm13528_vm0, %v13527_v8  ;;  %13175 = vmatpush3.bf16.msra.mxu0 %v13174_v37  ;;  %v9059_v8 = vld [vmem:[%s17729_s1 + $0x2e0] sm:$0xff] }
  0xe6   : > { %13176 = vmatprep.subr.bf16.mxu0 %v13526_v3  ;;  %v13198_v49 = vpack.c.bf16 %v9060_v47, %v9059_v8 }
  0xe7   : > { %10633 = vmatmul.mubr.f32.gmra.mrb[96].mxu0 %v1533_v27 }
  0xe8   : > { %10788 = vmatmul.mubr.f32.gmra.mrb[96].mxu1 %v1535_v43  ;;  %10635 = vmatprep.mubr.msk.f32.mxu0 %vm13528_vm0, %v14201_v46 }
  0xe9   : > { %10790 = vmatprep.mubr.msk.f32.mxu1 %vm13528_vm0, %v14201_v46  ;;  %13178 = vmatpush3.bf16.msra.mxu0 %v13177_v44 }
  0xea   : > { %13203 = vmatprep.subr.bf16.mxu0 %v13526_v3  ;;  %13199 = vmatpush3.bf16.msra.mxu1 %v13198_v49 }
  0xeb   : > { %10636 = vmatmul.mubr.f32.gmra.mrb[98].mxu0 %v1534_v36  ;;  %13200 = vmatprep.subr.bf16.mxu1 %v13526_v3  ;;  %v1547_v36 = vld [vmem:[%s13704_s24 + $0xaf] sm:$0xff] }
  0xec   : > { %10791 = vmatmul.mubr.f32.gmra.mrb[98].mxu1 %v1536_v48  ;;  %10638 = vmatprep.mubr.msk.f32.mxu0 %vm13528_vm0, %v14201_v46 }
  0xed   : > { %10793 = vmatprep.mubr.msk.f32.mxu1 %vm13528_vm0, %v14201_v46 }
  0xee   : > { %13202 = vmatpush3.bf16.msra.mxu1 %v13201_v53 }
  0xef   : > { %10639 = vmatmul.mubr.f32.gmra.mrb[100].mxu0 %v1535_v43  ;;  %13227 = vmatprep.subr.bf16.mxu1 %v13526_v3 }
  0xf0   : > { %10794 = vmatmul.mubr.f32.gmra.mrb[100].mxu1 %v1537_v52  ;;  %10641 = vmatprep.mubr.msk.f32.mxu0 %vm13528_vm0, %v14201_v46 }
  0xf1   : > { %10796 = vmatprep.mubr.msk.f32.mxu1 %vm13528_vm0, %v14201_v46 }
  0xf3   : > { %10642 = vmatmul.mubr.f32.gmra.mrb[102].mxu0 %v1536_v48  ;;  %v1549_v48 = vld [vmem:[%s13704_s24 + $0xbf] sm:$0xff] }
  0xf4   : > { %10797 = vmatmul.mubr.f32.gmra.mrb[102].mxu1 %v1538_v54  ;;  %10644 = vmatprep.mubr.msk.f32.mxu0 %vm13528_vm0, %v14201_v46 }
  0xf5   : > { %10799 = vmatprep.mubr.msk.f32.mxu1 %vm13528_vm0, %v14201_v46 }
  0xf7   : > { %10645 = vmatmul.mubr.f32.gmra.mrb[104].mxu0 %v1537_v52 }
  0xf8   : > { %10800 = vmatmul.mubr.f32.gmra.mrb[104].mxu1 %v1539_v55  ;;  %10647 = vmatprep.mubr.msk.f32.mxu0 %vm13528_vm0, %v14201_v46 }
  0xf9   : > { %10802 = vmatprep.mubr.msk.f32.mxu1 %vm13528_vm0, %v14201_v46 }
  0xfa   : > { %v381_v57 = vpop.f32.mrb[0].mxu0 }
  0xfb   : > { %v10303_v58 = vpop.f32.mrb[1].mxu0  ;;  %v750_v59 = vpop.f32.mrb[0].mxu1  ;;  %10648 = vmatmul.mubr.f32.gmra.mrb[106].mxu0 %v1538_v54  ;;  %v1550_v54 = vld [vmem:[%s13704_s24 + $0xc7] sm:$0xff] }
  0xfc   : > { %v14244_v60 = vadd.f32 %v750_v59, %v381_v57  ;;  %10803 = vmatmul.mubr.f32.gmra.mrb[106].mxu1 %v1540_v56  ;;  %v10458_v61 = vpop.f32.mrb[1].mxu1  ;;  %10650 = vmatprep.mubr.msk.f32.mxu0 %vm13528_vm0, %v14201_v46 }
  0xfd   : > { %10805 = vmatprep.mubr.msk.f32.mxu1 %vm13528_vm0, %v14201_v46  ;;  %v1551_v61 = vld [vmem:[%s13704_s24 + $0xcf] sm:$0xff] }
  0xfe   : > { %v386_v63 = vpop.f32.mrb[2].mxu0 }
  0xff   : > { %v10306_v0 = vpop.f32.mrb[3].mxu0  ;;  %v755_v1 = vpop.f32.mrb[2].mxu1  ;;  %10651 = vmatmul.mubr.f32.gmra.mrb[108].mxu0 %v1539_v55 }
 0x100   : > { %v14251_v2 = vadd.f32 %v755_v1, %v386_v63  ;;  %10806 = vmatmul.mubr.f32.gmra.mrb[108].mxu1 %v1541_v62  ;;  %v10461_v4 = vpop.f32.mrb[3].mxu1  ;;  %10653 = vmatprep.mubr.msk.f32.mxu0 %vm13528_vm0, %v14201_v46 }
 0x101   : > { %10808 = vmatprep.mubr.msk.f32.mxu1 %vm13528_vm0, %v14201_v46 }
 0x102   : > { %v391_v6 = vpop.f32.mrb[4].mxu0 }
 0x103   : > { %v10309_v7 = vpop.f32.mrb[5].mxu0  ;;  %v760_v9 = vpop.f32.mrb[4].mxu1  ;;  %10654 = vmatmul.mubr.f32.gmra.mrb[110].mxu0 %v1540_v56 }
 0x104   : > { %v14258_v10 = vadd.f32 %v760_v9, %v391_v6  ;;  %10809 = vmatmul.mubr.f32.gmra.mrb[110].mxu1 %v1542_v5  ;;  %v10464_v11 = vpop.f32.mrb[5].mxu1  ;;  %10656 = vmatprep.mubr.msk.f32.mxu0 %vm13528_vm0, %v14201_v46 }
 0x105   : > { %10811 = vmatprep.mubr.msk.f32.mxu1 %vm13528_vm0, %v14201_v46 }
 0x106   : > { %v396_v13 = vpop.f32.mrb[6].mxu0 }
 0x107   : > { %v10312_v14 = vpop.f32.mrb[7].mxu0  ;;  %v765_v15 = vpop.f32.mrb[6].mxu1  ;;  %10657 = vmatmul.mubr.f32.gmra.mrb[112].mxu0 %v1541_v62 }
 0x108   : > { %v14265_v16 = vadd.f32 %v765_v15, %v396_v13  ;;  %10812 = vmatmul.mubr.f32.gmra.mrb[112].mxu1 %v1543_v12  ;;  %v10467_v17 = vpop.f32.mrb[7].mxu1  ;;  %10659 = vmatprep.mubr.msk.f32.mxu0 %vm13528_vm0, %v14201_v46  ;;  %v1553_v13 = vld [vmem:[%s13704_s24 + $0xdf] sm:$0xff] }
 0x109   : > { %10814 = vmatprep.mubr.msk.f32.mxu1 %vm13528_vm0, %v14201_v46 }
 0x10a   : > { %v401_v19 = vpop.f32.mrb[8].mxu0 }
 0x10b   : > { %v10315_v20 = vpop.f32.mrb[9].mxu0  ;;  %v770_v21 = vpop.f32.mrb[8].mxu1  ;;  %10660 = vmatmul.mubr.f32.gmra.mrb[114].mxu0 %v1542_v5  ;;  %v1552_v5 = vld [vmem:[%s13704_s24 + $0xd7] sm:$0xff] }
 0x10c   : > { %v14272_v22 = vadd.f32 %v770_v21, %v401_v19  ;;  %10815 = vmatmul.mubr.f32.gmra.mrb[114].mxu1 %v1544_v18  ;;  %v10470_v23 = vpop.f32.mrb[9].mxu1  ;;  %10662 = vmatprep.mubr.msk.f32.mxu0 %vm13528_vm0, %v14201_v46  ;;  %v1554_v20 = vld [vmem:[%s13704_s24 + $0xe7] sm:$0xff] }
 0x10d   : > { %10817 = vmatprep.mubr.msk.f32.mxu1 %vm13528_vm0, %v14201_v46 }
 0x10e   : > { %v406_v25 = vpop.f32.mrb[10].mxu0 }
 0x10f   : > { %v10318_v26 = vpop.f32.mrb[11].mxu0  ;;  %v775_v27 = vpop.f32.mrb[10].mxu1  ;;  %10663 = vmatmul.mubr.f32.gmra.mrb[116].mxu0 %v1543_v12 }
 0x110   : > { %v14279_v28 = vadd.f32 %v775_v27, %v406_v25  ;;  %10818 = vmatmul.mubr.f32.gmra.mrb[116].mxu1 %v1545_v24  ;;  %v10473_v29 = vpop.f32.mrb[11].mxu1  ;;  %10665 = vmatprep.mubr.msk.f32.mxu0 %vm13528_vm0, %v14201_v46  ;;  %v1555_v27 = vld [vmem:[%s13704_s24 + $0xef] sm:$0xff] }
 0x111   : > { %10820 = vmatprep.mubr.msk.f32.mxu1 %vm13528_vm0, %v14201_v46 }
 0x112   : > { %v411_v31 = vpop.f32.mrb[12].mxu0 }
 0x113   : > { %v10321_v32 = vpop.f32.mrb[13].mxu0  ;;  %v780_v33 = vpop.f32.mrb[12].mxu1  ;;  %10666 = vmatmul.mubr.f32.gmra.mrb[118].mxu0 %v1544_v18 }
 0x114   : > { %v14286_v34 = vadd.f32 %v780_v33, %v411_v31  ;;  %10821 = vmatmul.mubr.f32.gmra.mrb[118].mxu1 %v1546_v30  ;;  %v10476_v35 = vpop.f32.mrb[13].mxu1  ;;  %10668 = vmatprep.mubr.msk.f32.mxu0 %vm13528_vm0, %v14201_v46 }
 0x115   : > { %10823 = vmatprep.mubr.msk.f32.mxu1 %vm13528_vm0, %v14201_v46  ;;  %v1556_v35 = vld [vmem:[%s13704_s24 + $0xf7] sm:$0xff] }
 0x116   : > { %v416_v37 = vpop.f32.mrb[14].mxu0 }
 0x117   : > { %v10324_v38 = vpop.f32.mrb[15].mxu0  ;;  %v785_v39 = vpop.f32.mrb[14].mxu1  ;;  %10669 = vmatmul.mubr.f32.gmra.mrb[120].mxu0 %v1545_v24 }
 0x118   : > { %v14293_v40 = vadd.f32 %v785_v39, %v416_v37  ;;  %10824 = vmatmul.mubr.f32.gmra.mrb[120].mxu1 %v1547_v36  ;;  %v10479_v41 = vpop.f32.mrb[15].mxu1  ;;  %10671 = vmatprep.mubr.msk.f32.mxu0 %vm13528_vm0, %v14201_v46 }
 0x119   : > { %10826 = vmatprep.mubr.msk.f32.mxu1 %vm13528_vm0, %v14201_v46 }
 0x11a   : > { %v421_v43 = vpop.f32.mrb[16].mxu0 }
 0x11b   : > { %v10327_v44 = vpop.f32.mrb[17].mxu0  ;;  %v790_v45 = vpop.f32.mrb[16].mxu1  ;;  %10672 = vmatmul.mubr.f32.gmra.mrb[122].mxu0 %v1546_v30 }
 0x11c   : > { %v14300_v8 = vadd.f32 %v790_v45, %v421_v43  ;;  %10827 = vmatmul.mubr.f32.gmra.mrb[122].mxu1 %v1548_v42  ;;  %v10482_v47 = vpop.f32.mrb[17].mxu1  ;;  %10674 = vmatprep.mubr.msk.f32.mxu0 %vm13528_vm0, %v14201_v46 }
 0x11d   : > { %10829 = vmatprep.mubr.msk.f32.mxu1 %vm13528_vm0, %v14201_v46 }
 0x11e   : > { %v426_v49 = vpop.f32.mrb[18].mxu0 }
 0x11f   : > { %v10330_v50 = vpop.f32.mrb[19].mxu0  ;;  %v795_v51 = vpop.f32.mrb[18].mxu1  ;;  %10675 = vmatmul.mubr.f32.gmra.mrb[124].mxu0 %v1547_v36 }
 0x120   : > { %v14307_v52 = vadd.f32 %v795_v51, %v426_v49  ;;  %10830 = vmatmul.mubr.f32.gmra.mrb[124].mxu1 %v1549_v48  ;;  %v10485_v53 = vpop.f32.mrb[19].mxu1  ;;  %10677 = vmatprep.mubr.msk.f32.mxu0 %vm13528_vm0, %v14201_v46  ;;  %v1558_v49 = vld [vmem:[%s13704_s24 + $0x107] sm:$0xff] }
 0x121   : > { %10832 = vmatprep.mubr.msk.f32.mxu1 %vm13528_vm0, %v14201_v46 }
 0x122   : > { %v431_v55 = vpop.f32.mrb[20].mxu0 }
 0x123   : > { %v10333_v56 = vpop.f32.mrb[21].mxu0  ;;  %v800_v57 = vpop.f32.mrb[20].mxu1  ;;  %10678 = vmatmul.mubr.f32.gmra.mrb[126].mxu0 %v1548_v42  ;;  %v1557_v42 = vld [vmem:[%s13704_s24 + $0xff] sm:$0xff] }
 0x124   : > { %v14314_v58 = vadd.f32 %v800_v57, %v431_v55  ;;  %10833 = vmatmul.mubr.f32.gmra.mrb[126].mxu1 %v1550_v54  ;;  %v10488_v59 = vpop.f32.mrb[21].mxu1  ;;  %10680 = vmatprep.mubr.msk.f32.mxu0 %vm13528_vm0, %v14201_v46  ;;  %v1559_v56 = vld [vmem:[%s13704_s24 + $0x10f] sm:$0xff] }
 0x125   : > { %10835 = vmatprep.mubr.msk.f32.mxu1 %vm13528_vm0, %v14201_v46 }
 0x126   : > { %v436_v62 = vpop.f32.mrb[22].mxu0 }
 0x127   : > { %v10336_v63 = vpop.f32.mrb[23].mxu0  ;;  %v805_v0 = vpop.f32.mrb[22].mxu1  ;;  %10681 = vmatmul.mubr.f32.gmra.mrb[128].mxu0 %v1549_v48 }
 0x128   : > { %v14321_v1 = vadd.f32 %v805_v0, %v436_v62  ;;  %10836 = vmatmul.mubr.f32.gmra.mrb[128].mxu1 %v1551_v61  ;;  %v10491_v4 = vpop.f32.mrb[23].mxu1  ;;  %10683 = vmatprep.mubr.msk.f32.mxu0 %vm13528_vm0, %v14201_v46  ;;  %v1560_v0 = vld [vmem:[%s13704_s24 + $0x117] sm:$0xff] }
 0x129   : > { %10838 = vmatprep.mubr.msk.f32.mxu1 %vm13528_vm0, %v14201_v46 }
 0x12a   : > { %v441_v6 = vpop.f32.mrb[24].mxu0 }
 0x12b   : > { %v10339_v7 = vpop.f32.mrb[25].mxu0  ;;  %v810_v9 = vpop.f32.mrb[24].mxu1  ;;  %10684 = vmatmul.mubr.f32.gmra.mrb[130].mxu0 %v1550_v54 }
 0x12c   : > { %v14328_v11 = vadd.f32 %v810_v9, %v441_v6  ;;  %10839 = vmatmul.mubr.f32.gmra.mrb[130].mxu1 %v1552_v5  ;;  %v10494_v12 = vpop.f32.mrb[25].mxu1  ;;  %10686 = vmatprep.mubr.msk.f32.mxu0 %vm13528_vm0, %v14201_v46 }
 0x12d   : > { %10841 = vmatprep.mubr.msk.f32.mxu1 %vm13528_vm0, %v14201_v46  ;;  %v1561_v12 = vld [vmem:[%s13704_s24 + $0x11f] sm:$0xff] }
 0x12e   : > { %v446_v14 = vpop.f32.mrb[26].mxu0 }
 0x12f   : > { %v10342_v15 = vpop.f32.mrb[27].mxu0  ;;  %v815_v17 = vpop.f32.mrb[26].mxu1  ;;  %10687 = vmatmul.mubr.f32.gmra.mrb[132].mxu0 %v1551_v61 }
 0x130   : > { %v14335_v18 = vadd.f32 %v815_v17, %v446_v14  ;;  %10842 = vmatmul.mubr.f32.gmra.mrb[132].mxu1 %v1553_v13  ;;  %v10497_v19 = vpop.f32.mrb[27].mxu1  ;;  %10689 = vmatprep.mubr.msk.f32.mxu0 %vm13528_vm0, %v14201_v46 }
 0x131   : > { %10844 = vmatprep.mubr.msk.f32.mxu1 %vm13528_vm0, %v14201_v46 }
 0x132   : > { %v451_v21 = vpop.f32.mrb[28].mxu0 }
 0x133   : > { %v10345_v23 = vpop.f32.mrb[29].mxu0  ;;  %v820_v24 = vpop.f32.mrb[28].mxu1  ;;  %10690 = vmatmul.mubr.f32.gmra.mrb[134].mxu0 %v1552_v5 }
 0x134   : > { %v14342_v25 = vadd.f32 %v820_v24, %v451_v21  ;;  %10845 = vmatmul.mubr.f32.gmra.mrb[134].mxu1 %v1554_v20  ;;  %v10500_v26 = vpop.f32.mrb[29].mxu1  ;;  %10692 = vmatprep.mubr.msk.f32.mxu0 %vm13528_vm0, %v14201_v46 }
 0x135   : > { %10847 = vmatprep.mubr.msk.f32.mxu1 %vm13528_vm0, %v14201_v46 }
 0x136   : > { %v456_v29 = vpop.f32.mrb[30].mxu0 }
 0x137   : > { %v10348_v30 = vpop.f32.mrb[31].mxu0  ;;  %v825_v31 = vpop.f32.mrb[30].mxu1  ;;  %10693 = vmatmul.mubr.f32.gmra.mrb[136].mxu0 %v1553_v13 }
 0x138   : > { %v14349_v32 = vadd.f32 %v825_v31, %v456_v29  ;;  %10848 = vmatmul.mubr.f32.gmra.mrb[136].mxu1 %v1555_v27  ;;  %v10503_v33 = vpop.f32.mrb[31].mxu1  ;;  %10695 = vmatprep.mubr.msk.f32.mxu0 %vm13528_vm0, %v14201_v46  ;;  %v1563_v29 = vld [vmem:[%s13704_s24 + $0x12f] sm:$0xff] }
 0x139   : > { %10850 = vmatprep.mubr.msk.f32.mxu1 %vm13528_vm0, %v14201_v46 }
 0x13a   : > { %v461_v36 = vpop.f32.mrb[32].mxu0 }
 0x13b   : > { %v10351_v37 = vpop.f32.mrb[33].mxu0  ;;  %v830_v38 = vpop.f32.mrb[32].mxu1  ;;  %10696 = vmatmul.mubr.f32.gmra.mrb[138].mxu0 %v1554_v20  ;;  %v1562_v20 = vld [vmem:[%s13704_s24 + $0x127] sm:$0xff] }
 0x13c   : > { %v14356_v39 = vadd.f32 %v830_v38, %v461_v36  ;;  %10851 = vmatmul.mubr.f32.gmra.mrb[138].mxu1 %v1556_v35  ;;  %v10506_v41 = vpop.f32.mrb[33].mxu1  ;;  %10698 = vmatprep.mubr.msk.f32.mxu0 %vm13528_vm0, %v14201_v46  ;;  %v1564_v37 = vld [vmem:[%s13704_s24 + $0x137] sm:$0xff] }
 0x13d   : > { %10853 = vmatprep.mubr.msk.f32.mxu1 %vm13528_vm0, %v14201_v46 }
 0x13e   : > { %v466_v43 = vpop.f32.mrb[34].mxu0 }
 0x13f   : > { %v10354_v44 = vpop.f32.mrb[35].mxu0  ;;  %v835_v45 = vpop.f32.mrb[34].mxu1  ;;  %10699 = vmatmul.mubr.f32.gmra.mrb[140].mxu0 %v1555_v27 }
 0x140   : > { %v14363_v47 = vadd.f32 %v835_v45, %v466_v43  ;;  %10854 = vmatmul.mubr.f32.gmra.mrb[140].mxu1 %v1557_v42  ;;  %v10509_v48 = vpop.f32.mrb[35].mxu1  ;;  %10701 = vmatprep.mubr.msk.f32.mxu0 %vm13528_vm0, %v14201_v46  ;;  %v1565_v45 = vld [vmem:[%s13704_s24 + $0x13f] sm:$0xff] }
 0x141   : > { %10856 = vmatprep.mubr.msk.f32.mxu1 %vm13528_vm0, %v14201_v46 }
 0x142   : > { %v471_v50 = vpop.f32.mrb[36].mxu0 }
 0x143   : > { %v10357_v51 = vpop.f32.mrb[37].mxu0  ;;  %v840_v53 = vpop.f32.mrb[36].mxu1  ;;  %10702 = vmatmul.mubr.f32.gmra.mrb[142].mxu0 %v1556_v35 }
 0x144   : > { %v14370_v54 = vadd.f32 %v840_v53, %v471_v50  ;;  %10857 = vmatmul.mubr.f32.gmra.mrb[142].mxu1 %v1558_v49  ;;  %v10512_v55 = vpop.f32.mrb[37].mxu1  ;;  %10704 = vmatprep.mubr.msk.f32.mxu0 %vm13528_vm0, %v14201_v46 }
 0x145   : > { %10859 = vmatprep.mubr.msk.f32.mxu1 %vm13528_vm0, %v14201_v46  ;;  %v1566_v55 = vld [vmem:[%s13704_s24 + $0x147] sm:$0xff] }
 0x146   : > { %v476_v57 = vpop.f32.mrb[38].mxu0 }
 0x147   : > { %v10360_v59 = vpop.f32.mrb[39].mxu0  ;;  %v845_v61 = vpop.f32.mrb[38].mxu1  ;;  %10705 = vmatmul.mubr.f32.gmra.mrb[144].mxu0 %v1557_v42 }
 0x148   : > { %v14377_v62 = vadd.f32 %v845_v61, %v476_v57  ;;  %10860 = vmatmul.mubr.f32.gmra.mrb[144].mxu1 %v1559_v56  ;;  %v10515_v63 = vpop.f32.mrb[39].mxu1  ;;  %10707 = vmatprep.mubr.msk.f32.mxu0 %vm13528_vm0, %v14201_v46 }
 0x149   : > { %10862 = vmatprep.mubr.msk.f32.mxu1 %vm13528_vm0, %v14201_v46 }
 0x14a   : > { %v481_v4 = vpop.f32.mrb[40].mxu0 }
 0x14b   : > { %v10363_v5 = vpop.f32.mrb[41].mxu0  ;;  %v850_v6 = vpop.f32.mrb[40].mxu1  ;;  %10708 = vmatmul.mubr.f32.gmra.mrb[146].mxu0 %v1558_v49 }
 0x14c   : > { %v14384_v7 = vadd.f32 %v850_v6, %v481_v4  ;;  %10863 = vmatmul.mubr.f32.gmra.mrb[146].mxu1 %v1560_v0  ;;  %v10518_v9 = vpop.f32.mrb[41].mxu1  ;;  %10710 = vmatprep.mubr.msk.f32.mxu0 %vm13528_vm0, %v14201_v46 }
 0x14d   : > { %10865 = vmatprep.mubr.msk.f32.mxu1 %vm13528_vm0, %v14201_v46 }
 0x14e   : > { %v486_v13 = vpop.f32.mrb[42].mxu0 }
 0x14f   : > { %v10366_v14 = vpop.f32.mrb[43].mxu0  ;;  %v855_v15 = vpop.f32.mrb[42].mxu1  ;;  %10711 = vmatmul.mubr.f32.gmra.mrb[148].mxu0 %v1559_v56 }
 0x150   : > { %v14391_v17 = vadd.f32 %v855_v15, %v486_v13  ;;  %10866 = vmatmul.mubr.f32.gmra.mrb[148].mxu1 %v1561_v12  ;;  %v10521_v19 = vpop.f32.mrb[43].mxu1  ;;  %10713 = vmatprep.mubr.msk.f32.mxu0 %vm13528_vm0, %v14201_v46  ;;  %v1568_v13 = vld [vmem:[%s13704_s24 + $0x157] sm:$0xff]  ;;  %v9063_v14 = vld [vmem:[%s17729_s1 + $0x300] sm:$0xff]  ;;  %v9064_v15 = vld [vmem:[%s17729_s1 + $0x308] sm:$0xff] }
 0x151   : > { %10868 = vmatprep.mubr.msk.f32.mxu1 %vm13528_vm0, %v14201_v46 }
 0x152   : > { %v491_v21 = vpop.f32.mrb[44].mxu0 }
 0x153   : > { %v10369_v23 = vpop.f32.mrb[45].mxu0  ;;  %v860_v24 = vpop.f32.mrb[44].mxu1  ;;  %10714 = vmatmul.mubr.f32.gmra.mrb[150].mxu0 %v1560_v0  ;;  %v1567_v0 = vld [vmem:[%s13704_s24 + $0x14f] sm:$0xff] }
 0x154   : > { %v14398_v26 = vadd.f32 %v860_v24, %v491_v21  ;;  %10869 = vmatmul.mubr.f32.gmra.mrb[150].mxu1 %v1562_v20  ;;  %v10524_v27 = vpop.f32.mrb[45].mxu1  ;;  %10716 = vmatprep.mubr.msk.f32.mxu0 %vm13528_vm0, %v14201_v46 }
 0x155   : > { %10871 = vmatprep.mubr.msk.f32.mxu1 %vm13528_vm0, %v14201_v46  ;;  %v1979_v27 = vld [vmem:[%s13704_s24 + $0x18] sm:$0xff] }
 0x156   : > { %v496_v30 = vpop.f32.mrb[46].mxu0 }
 0x157   : > { %v10372_v31 = vpop.f32.mrb[47].mxu0  ;;  %v865_v33 = vpop.f32.mrb[46].mxu1  ;;  %10717 = vmatmul.mubr.f32.gmra.mrb[152].mxu0 %v1561_v12 }
 0x158   : > { %v14405_v35 = vadd.f32 %v865_v33, %v496_v30  ;;  %10872 = vmatmul.mubr.f32.gmra.mrb[152].mxu1 %v1563_v29  ;;  %v10527_v36 = vpop.f32.mrb[47].mxu1  ;;  %10719 = vmatprep.mubr.msk.f32.mxu0 %vm13528_vm0, %v14201_v46  ;;  %v2430_v30 = vld [vmem:[%s13704_s24 + $0x19] sm:$0xff]  ;;  %v9065_v33 = vld [vmem:[%s17729_s1 + $0x310] sm:$0xff] }
 0x159   : > { %10874 = vmatprep.mubr.msk.f32.mxu1 %vm13528_vm0, %v14201_v46  ;;  %v9066_v36 = vld [vmem:[%s17729_s1 + $0x318] sm:$0xff] }
 0x15a   : > { %v501_v38 = vpop.f32.mrb[48].mxu0 }
 0x15b   : > { %v10375_v41 = vpop.f32.mrb[49].mxu0  ;;  %v870_v42 = vpop.f32.mrb[48].mxu1  ;;  %10720 = vmatmul.mubr.f32.gmra.mrb[154].mxu0 %v1562_v20 }
 0x15c   : > { %v14412_v43 = vadd.f32 %v870_v42, %v501_v38  ;;  %10875 = vmatmul.mubr.f32.gmra.mrb[154].mxu1 %v1564_v37  ;;  %v10530_v44 = vpop.f32.mrb[49].mxu1  ;;  %10722 = vmatprep.mubr.msk.f32.mxu0 %vm13528_vm0, %v14201_v46 }
 0x15d   : > { %10877 = vmatprep.mubr.msk.f32.mxu1 %vm13528_vm0, %v14201_v46  ;;  %v1980_v44 = vld [vmem:[%s13704_s24 + $0x20] sm:$0xff] }
 0x15e   : > { %v506_v48 = vpop.f32.mrb[50].mxu0 }
 0x15f   : > { %v10378_v49 = vpop.f32.mrb[51].mxu0  ;;  %v875_v50 = vpop.f32.mrb[50].mxu1  ;;  %10723 = vmatmul.mubr.f32.gmra.mrb[156].mxu0 %v1563_v29  ;;  %v13204_v29 = vpack.c.bf16 %v9064_v15, %v9063_v14  ;;  %v9069_v14 = vld [vmem:[%s17729_s1 + $0x330] sm:$0xff]  ;;  %v9070_v15 = vld [vmem:[%s17729_s1 + $0x338] sm:$0xff] }
 0x160   : > { %v14419_v51 = vadd.f32 %v875_v50, %v506_v48  ;;  %10878 = vmatmul.mubr.f32.gmra.mrb[156].mxu1 %v1565_v45  ;;  %v10533_v53 = vpop.f32.mrb[51].mxu1  ;;  %10725 = vmatprep.mubr.msk.f32.mxu0 %vm13528_vm0, %v14201_v46  ;;  %v13207_v48 = vpack.c.bf16 %v9066_v36, %v9065_v33  ;;  %v9067_v50 = vld [vmem:[%s17729_s1 + $0x320] sm:$0xff]  ;;  %v13213_v33 = vpack.c.bf16 %v9070_v15, %v9069_v14 }
 0x161   : > { %10880 = vmatprep.mubr.msk.f32.mxu1 %vm13528_vm0, %v14201_v46  ;;  %v9068_v53 = vld [vmem:[%s17729_s1 + $0x328] sm:$0xff]  ;;  %v1984_v15 = vld [vmem:[%s13704_s24 + $0x40] sm:$0xff] }
 0x162   : > { %v511_v56 = vpop.f32.mrb[52].mxu0 }
 0x163   : > { %v10381_v57 = vpop.f32.mrb[53].mxu0  ;;  %v880_v59 = vpop.f32.mrb[52].mxu1  ;;  %10726 = vmatmul.mubr.f32.gmra.mrb[158].mxu0 %v1564_v37 }
 0x164   : > { %v14426_v61 = vadd.f32 %v880_v59, %v511_v56  ;;  %10881 = vmatmul.mubr.f32.gmra.mrb[158].mxu1 %v1566_v55  ;;  %v10536_v63 = vpop.f32.mrb[53].mxu1  ;;  %10728 = vmatprep.mubr.msk.f32.mxu0 %vm13528_vm0, %v14201_v46 }
 0x165   : > { %10883 = vmatprep.mubr.msk.f32.mxu1 %vm13528_vm0, %v14201_v46  ;;  %v1981_v63 = vld [vmem:[%s13704_s24 + $0x28] sm:$0xff] }
 0x166   : > { %v516_v4 = vpop.f32.mrb[54].mxu0 }
 0x167   : > { %v10384_v5 = vpop.f32.mrb[55].mxu0  ;;  %v885_v6 = vpop.f32.mrb[54].mxu1  ;;  %10729 = vmatmul.mubr.f32.gmra.mrb[160].mxu0 %v1565_v45  ;;  %v2431_v45 = vld [vmem:[%s13704_s24 + $0x21] sm:$0xff] }
 0x168   : > { %v14433_v9 = vadd.f32 %v885_v6, %v516_v4  ;;  %10884 = vmatmul.mubr.f32.gmra.mrb[160].mxu1 %v1567_v0  ;;  %v10539_v12 = vpop.f32.mrb[55].mxu1  ;;  %10731 = vmatprep.mubr.msk.f32.mxu0 %vm13528_vm0, %v14201_v46  ;;  %v9079_v0 = vld [vmem:[%s17729_s1 + $0x380] sm:$0xff]  ;;  %v9080_v4 = vld [vmem:[%s17729_s1 + $0x388] sm:$0xff]  ;;  %v13210_v6 = vpack.c.bf16 %v9068_v53, %v9067_v50  ;;  %v1983_v50 = vld [vmem:[%s13704_s24 + $0x38] sm:$0xff] }
 0x169   : > { %10886 = vmatprep.mubr.msk.f32.mxu1 %vm13528_vm0, %v14201_v46  ;;  %v2432_v5 = vld [vmem:[%s13704_s24 + $0x29] sm:$0xff]  ;;  %v13228_v12 = vpack.c.bf16 %v9080_v4, %v9079_v0  ;;  %v9083_v53 = vld [vmem:[%s17729_s1 + $0x3a0] sm:$0xff] }
 0x16a   : > { %v521_v19 = vpop.f32.mrb[56].mxu0  ;;  %v9073_v4 = vld [vmem:[%s17729_s1 + $0x350] sm:$0xff] }
 0x16b   : > { %v10387_v20 = vpop.f32.mrb[57].mxu0  ;;  %v890_v21 = vpop.f32.mrb[56].mxu1  ;;  %10732 = vmatmul.mubr.f32.gmra.mrb[162].mxu0 %v1566_v55 }
 0x16c   : > { %v14446_v23 = vadd.f32 %v890_v21, %v521_v19  ;;  %10887 = vmatmul.mubr.f32.gmra.mrb[162].mxu1 %v1568_v13  ;;  %v10542_v24 = vpop.f32.mrb[57].mxu1  ;;  %10921 = vmatprep.mubr.msk.f32.mxu0 %vm13528_vm0, %v14201_v46 }
 0x16d   : > { %11076 = vmatprep.mubr.msk.f32.mxu1 %vm13528_vm0, %v14201_v46 }
 0x16e   : > { %v526_v31 = vpop.f32.mrb[58].mxu0 }
 0x16f   : > { %v10390_v37 = vpop.f32.mrb[59].mxu0  ;;  %v895_v38 = vpop.f32.mrb[58].mxu1  ;;  %10922 = vmatmul.mubr.f32.vlgmr.msra.gmra.mrb[164].mxu0 %v1979_v27  ;;  %v1982_v27 = vld [vmem:[%s13704_s24 + $0x30] sm:$0xff] }
 0x170   : > { %v14460_v41 = vadd.f32 %v895_v38, %v526_v31  ;;  %13205 = vmatpush3.bf16.msra.mxu0 %v13204_v29  ;;  %11077 = vmatmul.mubr.f32.vlgmr.msra.gmra.mrb[164].mxu1 %v2430_v30  ;;  %v10545_v42 = vpop.f32.mrb[59].mxu1  ;;  %v9081_v29 = vld [vmem:[%s17729_s1 + $0x390] sm:$0xff]  ;;  %v9082_v30 = vld [vmem:[%s17729_s1 + $0x398] sm:$0xff]  ;;  %v9071_v38 = vld [vmem:[%s17729_s1 + $0x340] sm:$0xff] }
 0x171   : > { %10924 = vmatprep.mubr.msk.f32.mxu0 %vm13528_vm0, %v14201_v46  ;;  %11079 = vmatprep.mubr.msk.f32.mxu1 %vm13528_vm0, %v14201_v46  ;;  %v2433_v31 = vld [vmem:[%s13704_s24 + $0x31] sm:$0xff]  ;;  %v13231_v36 = vpack.c.bf16 %v9082_v30, %v9081_v29  ;;  %v9072_v42 = vld [vmem:[%s17729_s1 + $0x348] sm:$0xff] }
 0x172   : > { %v531_v49 = vpop.f32.mrb[60].mxu0  ;;  %13206 = vmatprep.subr.bf16.mxu0 %v13526_v3  ;;  %13229 = vmatpush3.bf16.msra.mxu1 %v13228_v12 }
 0x173   : > { %v10393_v55 = vpop.f32.mrb[61].mxu0  ;;  %v900_v56 = vpop.f32.mrb[60].mxu1  ;;  %10925 = vmatmul.mubr.f32.gmra.mrb[166].mxu0 %v1980_v44  ;;  %13230 = vmatprep.subr.bf16.mxu1 %v13526_v3 }
 0x174   : > { %v14475_v57 = vadd.f32 %v900_v56, %v531_v49  ;;  %11080 = vmatmul.mubr.f32.gmra.mrb[166].mxu1 %v2431_v45  ;;  %v10548_v59 = vpop.f32.mrb[61].mxu1  ;;  %10927 = vmatprep.mubr.msk.f32.mxu0 %vm13528_vm0, %v14201_v46  ;;  %v9084_v55 = vld [vmem:[%s17729_s1 + $0x3a8] sm:$0xff]  ;;  %v2434_v56 = vld [vmem:[%s13704_s24 + $0x39] sm:$0xff] }
 0x175   : > { %11082 = vmatprep.mubr.msk.f32.mxu1 %vm13528_vm0, %v14201_v46  ;;  %13208 = vmatpush3.bf16.msra.mxu0 %v13207_v48  ;;  %v13216_v59 = vpack.c.bf16 %v9072_v42, %v9071_v38 }
 0x176   : > { %v536_v13 = vpop.f32.mrb[62].mxu0  ;;  %13209 = vmatprep.subr.bf16.mxu0 %v13526_v3  ;;  %13232 = vmatpush3.bf16.msra.mxu1 %v13231_v36 }
 0x177   : > { %v10396_v19 = vpop.f32.mrb[63].mxu0  ;;  %v905_v20 = vpop.f32.mrb[62].mxu1  ;;  %10928 = vmatmul.mubr.f32.gmra.mrb[168].mxu0 %v1981_v63  ;;  %v13234_v63 = vpack.c.bf16 %v9084_v55, %v9083_v53  ;;  %13233 = vmatprep.subr.bf16.mxu1 %v13526_v3 }
 0x178   : > { %v14496_v21 = vadd.f32 %v905_v20, %v536_v13  ;;  %11083 = vmatmul.mubr.f32.gmra.mrb[168].mxu1 %v2432_v5  ;;  %v10551_v24 = vpop.f32.mrb[63].mxu1  ;;  %10930 = vmatprep.mubr.msk.f32.mxu0 %vm13528_vm0, %v14201_v46  ;;  %v9074_v5 = vld [vmem:[%s17729_s1 + $0x358] sm:$0xff]  ;;  %v9085_v19 = vld [vmem:[%s17729_s1 + $0x3b0] sm:$0xff] }
 0x179   : > { %11085 = vmatprep.mubr.msk.f32.mxu1 %vm13528_vm0, %v14201_v46  ;;  %13211 = vmatpush3.bf16.msra.mxu0 %v13210_v6  ;;  %v9086_v20 = vld [vmem:[%s17729_s1 + $0x3b8] sm:$0xff]  ;;  %v2435_v24 = vld [vmem:[%s13704_s24 + $0x41] sm:$0xff] }
 0x17a   : > { %v541_v37 = vpop.f32.mrb[64].mxu0  ;;  %13212 = vmatprep.subr.bf16.mxu0 %v13526_v3  ;;  %13235 = vmatpush3.bf16.msra.mxu1 %v13234_v63  ;;  %v13237_v29 = vpack.c.bf16 %v9086_v20, %v9085_v19  ;;  %v9078_v63 = vld [vmem:[%s17729_s1 + $0x378] sm:$0xff] }
 0x17b   : > { %v10399_v44 = vpop.f32.mrb[65].mxu0  ;;  %v910_v45 = vpop.f32.mrb[64].mxu1  ;;  %10931 = vmatmul.mubr.f32.gmra.mrb[170].mxu0 %v1982_v27  ;;  %v13219_v27 = vpack.c.bf16 %v9074_v5, %v9073_v4  ;;  %13236 = vmatprep.subr.bf16.mxu1 %v13526_v3  ;;  %v2437_v19 = vld [vmem:[%s13704_s24 + $0x51] sm:$0xff] }
 0x17c   : > { %v14518_v48 = vadd.f32 %v910_v45, %v541_v37  ;;  %11086 = vmatmul.mubr.f32.gmra.mrb[170].mxu1 %v2433_v31  ;;  %v10554_v49 = vpop.f32.mrb[65].mxu1  ;;  %10933 = vmatprep.mubr.msk.f32.mxu0 %vm13528_vm0, %v14201_v46  ;;  %v9075_v31 = vld [vmem:[%s17729_s1 + $0x360] sm:$0xff]  ;;  %v1985_v44 = vld [vmem:[%s13704_s24 + $0x48] sm:$0xff] }
 0x17d   : > { %11088 = vmatprep.mubr.msk.f32.mxu1 %vm13528_vm0, %v14201_v46  ;;  %13214 = vmatpush3.bf16.msra.mxu0 %v13213_v33  ;;  %v9076_v33 = vld [vmem:[%s17729_s1 + $0x368] sm:$0xff]  ;;  %v9087_v45 = vld [vmem:[%s17729_s1 + $0x3c0] sm:$0xff] }
 0x17e   : > { %v546_v0 = vpop.f32.mrb[66].mxu0  ;;  %13215 = vmatprep.subr.bf16.mxu0 %v13526_v3  ;;  %13238 = vmatpush3.bf16.msra.mxu1 %v13237_v29  ;;  %v9088_v49 = vld [vmem:[%s17729_s1 + $0x3c8] sm:$0xff]  ;;  %v13222_v53 = vpack.c.bf16 %v9076_v33, %v9075_v31 }
 0x17f   : > { %v10402_v6 = vpop.f32.mrb[67].mxu0  ;;  %v915_v12 = vpop.f32.mrb[66].mxu1  ;;  %10934 = vmatmul.mubr.f32.gmra.mrb[172].mxu0 %v1983_v50  ;;  %v2436_v50 = vld [vmem:[%s13704_s24 + $0x49] sm:$0xff]  ;;  %v13240_v55 = vpack.c.bf16 %v9088_v49, %v9087_v45  ;;  %13239 = vmatprep.subr.bf16.mxu1 %v13526_v3 }
 0x180   : > { %v14540_v13 = vadd.f32 %v915_v12, %v546_v0  ;;  %11089 = vmatmul.mubr.f32.gmra.mrb[172].mxu1 %v2434_v56  ;;  %v10557_v14 = vpop.f32.mrb[67].mxu1  ;;  %10936 = vmatprep.mubr.msk.f32.mxu0 %vm13528_vm0, %v14201_v46  ;;  %v1986_v12 = vld [vmem:[%s13704_s24 + $0x50] sm:$0xff] }
 0x181   : > { %11091 = vmatprep.mubr.msk.f32.mxu1 %vm13528_vm0, %v14201_v46  ;;  %13217 = vmatpush3.bf16.msra.mxu0 %v13216_v59  ;;  %v9077_v59 = vld [vmem:[%s17729_s1 + $0x370] sm:$0xff] }
 0x182   : > { %v551_v30 = vpop.f32.mrb[68].mxu0  ;;  %13218 = vmatprep.subr.bf16.mxu0 %v13526_v3  ;;  %13241 = vmatpush3.bf16.msra.mxu1 %v13240_v55  ;;  %v9089_v14 = vld [vmem:[%s17729_s1 + $0x3d0] sm:$0xff]  ;;  %v13225_v20 = vpack.c.bf16 %v9078_v63, %v9077_v59  ;;  %v1988_v59 = vld [vmem:[%s13704_s24 + $0x60] sm:$0xff] }
 0x183   : > { %v10405_v36 = vpop.f32.mrb[69].mxu0  ;;  %v920_v37 = vpop.f32.mrb[68].mxu1  ;;  %10937 = vmatmul.mubr.f32.gmra.mrb[174].mxu0 %v1984_v15  ;;  %v9090_v15 = vld [vmem:[%s17729_s1 + $0x3d8] sm:$0xff]  ;;  %13242 = vmatprep.subr.bf16.mxu1 %v13526_v3  ;;  %v9093_v63 = vld [vmem:[%s17729_s1 + $0x3f0] sm:$0xff] }
 0x184   : > { %v14562_v38 = vadd.f32 %v920_v37, %v551_v30  ;;  %11092 = vmatmul.mubr.f32.gmra.mrb[174].mxu1 %v2435_v24  ;;  %v10560_v42 = vpop.f32.mrb[69].mxu1  ;;  %10939 = vmatprep.mubr.msk.f32.mxu0 %vm13528_vm0, %v14201_v46  ;;  %v13243_v24 = vpack.c.bf16 %v9090_v15, %v9089_v14  ;;  %v1987_v36 = vld [vmem:[%s13704_s24 + $0x58] sm:$0xff]  ;;  %v9091_v37 = vld [vmem:[%s17729_s1 + $0x3e0] sm:$0xff] }
 0x185   : > { %11094 = vmatprep.mubr.msk.f32.mxu1 %vm13528_vm0, %v14201_v46  ;;  %13220 = vmatpush3.bf16.msra.mxu0 %v13219_v27  ;;  %v9092_v42 = vld [vmem:[%s17729_s1 + $0x3e8] sm:$0xff] }
 0x186   : > { %v556_v56 = vpop.f32.mrb[70].mxu0  ;;  %13221 = vmatprep.subr.bf16.mxu0 %v13526_v3  ;;  %13244 = vmatpush3.bf16.msra.mxu1 %v13243_v24  ;;  %v13246_v45 = vpack.c.bf16 %v9092_v42, %v9091_v37  ;;  %v14633_v24 = vld [vmem:[#allocation3] sm:$0xff]  ;;  %v1990_v42 = vld [vmem:[%s13704_s24 + $0x70] sm:$0xff] }
 0x187   : > { %v10408_v0 = vpop.f32.mrb[71].mxu0  ;;  %v925_v4 = vpop.f32.mrb[70].mxu1  ;;  %10940 = vmatmul.mubr.f32.gmra.mrb[176].mxu0 %v1985_v44  ;;  %v2438_v44 = vld [vmem:[%s13704_s24 + $0x59] sm:$0xff]  ;;  %13245 = vmatprep.subr.bf16.mxu1 %v13526_v3 }
 0x188   : > { %v14584_v5 = vadd.f32 %v925_v4, %v556_v56  ;;  %11095 = vmatmul.mubr.f32.gmra.mrb[176].mxu1 %v2436_v50  ;;  %v10563_v6 = vpop.f32.mrb[71].mxu1  ;;  %10942 = vmatprep.mubr.msk.f32.mxu0 %vm13528_vm0, %v14201_v46  ;;  %v9094_v0 = vld [vmem:[%s17729_s1 + $0x3f8] sm:$0xff]  ;;  %v2439_v4 = vld [vmem:[%s13704_s24 + $0x61] sm:$0xff] }
 0x189   : > { %11097 = vmatprep.mubr.msk.f32.mxu1 %vm13528_vm0, %v14201_v46  ;;  %13223 = vmatpush3.bf16.msra.mxu0 %v13222_v53  ;;  %v13249_v6 = vpack.c.bf16 %v9094_v0, %v9093_v63  ;;  %v2442_v63 = vld [vmem:[%s13704_s24 + $0x79] sm:$0xff] }
 0x18a   : > { %v561_v27 = vpop.f32.mrb[72].mxu0  ;;  %13224 = vmatprep.subr.bf16.mxu0 %v13526_v3  ;;  %13247 = vmatpush3.bf16.msra.mxu1 %v13246_v45 }
 0x18b   : > { %v10411_v29 = vpop.f32.mrb[73].mxu0  ;;  %v930_v30 = vpop.f32.mrb[72].mxu1  ;;  %10943 = vmatmul.mubr.f32.gmra.mrb[178].mxu0 %v1986_v12  ;;  %13248 = vmatprep.subr.bf16.mxu1 %v13526_v3 }
 0x18c   : > { %v14600_v31 = vadd.f32 %v930_v30, %v561_v27  ;;  %11098 = vmatmul.mubr.f32.gmra.mrb[178].mxu1 %v2437_v19  ;;  %v10566_v33 = vpop.f32.mrb[73].mxu1  ;;  %10945 = vmatprep.mubr.msk.f32.mxu0 %vm13528_vm0, %v14201_v46  ;;  %v2440_v27 = vld [vmem:[%s13704_s24 + $0x69] sm:$0xff] }
 0x18d   : > { %11100 = vmatprep.mubr.msk.f32.mxu1 %vm13528_vm0, %v14201_v46  ;;  %13226 = vmatpush3.bf16.msra.mxu0 %v13225_v20 }
 0x18e   : > { %v566_v49 = vpop.f32.mrb[74].mxu0  ;;  %13251 = vmatprep.subr.bf16.mxu0 %v13526_v3  ;;  %13250 = vmatpush3.bf16.msra.mxu1 %v13249_v6 }
 0x18f   : > { %v10414_v50 = vpop.f32.mrb[75].mxu0  ;;  %v935_v53 = vpop.f32.mrb[74].mxu1  ;;  %10946 = vmatmul.mubr.f32.gmra.mrb[180].mxu0 %v1987_v36  ;;  %13275 = vmatprep.subr.bf16.mxu1 %v13526_v3 }
 0x190   : > { %v14616_v55 = vadd.f32 %v935_v53, %v566_v49  ;;  %11101 = vmatmul.mubr.f32.gmra.mrb[180].mxu1 %v2438_v44  ;;  %v10569_v56 = vpop.f32.mrb[75].mxu1  ;;  %10948 = vmatprep.mubr.msk.f32.mxu0 %vm13528_vm0, %v14201_v46  ;;  %v2441_v44 = vld [vmem:[%s13704_s24 + $0x71] sm:$0xff] }
 0x191   : > { %11103 = vmatprep.mubr.msk.f32.mxu1 %vm13528_vm0, %v14201_v46  ;;  %v1989_v46 = vld [vmem:[%s13704_s24 + $0x68] sm:$0xff] }
 0x192   : > { %v571_v12 = vpop.f32.mrb[76].mxu0 }
 0x193   : > { %v10417_v14 = vpop.f32.mrb[77].mxu0  ;;  %v940_v15 = vpop.f32.mrb[76].mxu1  ;;  %10949 = vmatmul.mubr.f32.gmra.mrb[182].mxu0 %v1988_v59  ;;  %v1991_v59 = vld [vmem:[%s13704_s24 + $0x78] sm:$0xff] }
 0x194   : > { %v14631_v19 = vadd.f32 %v940_v15, %v571_v12  ;;  %11104 = vmatmul.mubr.f32.gmra.mrb[182].mxu1 %v2439_v4  ;;  %v10572_v20 = vpop.f32.mrb[77].mxu1  ;;  %10951 = vmatprep.mubr.msk.f32.mxu0 %vm13528_vm0, %v14633_v24  ;;  %v1992_v15 = vld [vmem:[%s13704_s24 + $0x80] sm:$0xff] }
 0x195   : > { %11106 = vmatprep.mubr.msk.f32.mxu1 %vm13528_vm0, %v14633_v24 }
 0x196   : > { %v576_v29 = vpop.f32.mrb[78].mxu0 }
 0x197   : > { %v10420_v30 = vpop.f32.mrb[79].mxu0  ;;  %v945_v33 = vpop.f32.mrb[78].mxu1  ;;  %10952 = vmatmul.mubr.f32.gmra.mrb[184].mxu0 %v1989_v46  ;;  %v2443_v46 = vld [vmem:[%s13704_s24 + $0x81] sm:$0xff] }
 0x198   : > { %v14642_v36 = vadd.f32 %v945_v33, %v576_v29  ;;  %11107 = vmatmul.mubr.f32.gmra.mrb[184].mxu1 %v2440_v27  ;;  %v10575_v37 = vpop.f32.mrb[79].mxu1  ;;  %10954 = vmatprep.mubr.msk.f32.mxu0 %vm13528_vm0, %v14633_v24 }
 0x199   : > { %11109 = vmatprep.mubr.msk.f32.mxu1 %vm13528_vm0, %v14633_v24  ;;  %v1993_v37 = vld [vmem:[%s13704_s24 + $0x88] sm:$0xff] }
 0x19a   : > { %v581_v45 = vpop.f32.mrb[80].mxu0 }
 0x19b   : > { %v10423_v49 = vpop.f32.mrb[81].mxu0  ;;  %v950_v50 = vpop.f32.mrb[80].mxu1  ;;  %10955 = vmatmul.mubr.f32.gmra.mrb[186].mxu0 %v1990_v42 }
 0x19c   : > { %v14650_v53 = vadd.f32 %v950_v50, %v581_v45  ;;  %11110 = vmatmul.mubr.f32.gmra.mrb[186].mxu1 %v2441_v44  ;;  %10957 = vmatprep.mubr.msk.f32.mxu0 %vm13528_vm0, %v14633_v24  ;;  %v10578_v56 = vpop.f32.mrb[81].mxu1  ;;  %v2444_v44 = vld [vmem:[%s13704_s24 + $0x89] sm:$0xff] }
 0x19d   : > { %11112 = vmatprep.mubr.msk.f32.mxu1 %vm13528_vm0, %v14633_v24 }
 0x19e   : > { %v1201_v0 = vpop.f32.mrb[82].mxu0 }
 0x19f   : > { %v1446_v4 = vadd.f32 %v1201_v0, %v14244_v60  ;;  %v10613_v6 = vpop.f32.mrb[83].mxu0  ;;  %10958 = vmatmul.mubr.f32.gmra.mrb[188].mxu0 %v1991_v59  ;;  %v1652_v12 = vpop.f32.mrb[82].mxu1  ;;  %v1994_v59 = vld [vmem:[%s13704_s24 + $0x90] sm:$0xff] }
 0x1a0   : > { %11113 = vmatmul.mubr.f32.gmra.mrb[188].mxu1 %v2442_v63  ;;  %10960 = vmatprep.mubr.msk.f32.mxu0 %vm13528_vm0, %v14633_v24  ;;  %v10768_v14 = vpop.f32.mrb[83].mxu1  ;;  %v2445_v0 = vld [vmem:[%s13704_s24 + $0x91] sm:$0xff] }
 0x1a1   : > { %v14662_v20 = vadd.f32 %v1652_v12, %v1446_v4  ;;  %11115 = vmatprep.mubr.msk.f32.mxu1 %vm13528_vm0, %v14633_v24 }
 0x1a2   : > { %v1206_v27 = vpop.f32.mrb[84].mxu0 }
 0x1a3   : > { %v1447_v60 = vadd.f32 %v1206_v27, %v14251_v2  ;;  %v10616_v29 = vpop.f32.mrb[85].mxu0  ;;  %10961 = vmatmul.mubr.f32.gmra.mrb[190].mxu0 %v1992_v15  ;;  %v1657_v30 = vpop.f32.mrb[84].mxu1  ;;  %v1995_v15 = vld [vmem:[%s13704_s24 + $0x98] sm:$0xff] }
 0x1a4   : > { %11116 = vmatmul.mubr.f32.gmra.mrb[190].mxu1 %v2443_v46  ;;  %10963 = vmatprep.mubr.msk.f32.mxu0 %vm13528_vm0, %v14633_v24  ;;  %v10771_v33 = vpop.f32.mrb[85].mxu1  ;;  %v2446_v27 = vld [vmem:[%s13704_s24 + $0x99] sm:$0xff] }
 0x1a5   : > { %v14671_v42 = vadd.f32 %v1657_v30, %v1447_v60  ;;  %11118 = vmatprep.mubr.msk.f32.mxu1 %vm13528_vm0, %v14633_v24 }
 0x1a6   : > { %v1211_v45 = vpop.f32.mrb[86].mxu0 }
 0x1a7   : > { %v1448_v2 = vadd.f32 %v1211_v45, %v14258_v10  ;;  %v10619_v49 = vpop.f32.mrb[87].mxu0  ;;  %10964 = vmatmul.mubr.f32.gmra.mrb[192].mxu0 %v1993_v37  ;;  %v1662_v50 = vpop.f32.mrb[86].mxu1  ;;  %v1996_v37 = vld [vmem:[%s13704_s24 + $0xa0] sm:$0xff] }
 0x1a8   : > { %11119 = vmatmul.mubr.f32.gmra.mrb[192].mxu1 %v2444_v44  ;;  %10966 = vmatprep.mubr.msk.f32.mxu0 %vm13528_vm0, %v14633_v24  ;;  %v10774_v56 = vpop.f32.mrb[87].mxu1  ;;  %v2447_v45 = vld [vmem:[%s13704_s24 + $0xa1] sm:$0xff] }
 0x1a9   : > { %v14680_v63 = vadd.f32 %v1662_v50, %v1448_v2  ;;  %11121 = vmatprep.mubr.msk.f32.mxu1 %vm13528_vm0, %v14633_v24 }
 0x1aa   : > { %v1216_v4 = vpop.f32.mrb[88].mxu0 }
 0x1ab   : > { %v1449_v10 = vadd.f32 %v1216_v4, %v14265_v16  ;;  %v10622_v6 = vpop.f32.mrb[89].mxu0  ;;  %10967 = vmatmul.mubr.f32.gmra.mrb[194].mxu0 %v1994_v59  ;;  %v1667_v12 = vpop.f32.mrb[88].mxu1  ;;  %v1997_v59 = vld [vmem:[%s13704_s24 + $0xa8] sm:$0xff] }
 0x1ac   : > { %11122 = vmatmul.mubr.f32.gmra.mrb[194].mxu1 %v2445_v0  ;;  %10969 = vmatprep.mubr.msk.f32.mxu0 %vm13528_vm0, %v14633_v24  ;;  %v10777_v14 = vpop.f32.mrb[89].mxu1  ;;  %v2448_v4 = vld [vmem:[%s13704_s24 + $0xa9] sm:$0xff] }
 0x1ad   : > { %v14689_v46 = vadd.f32 %v1667_v12, %v1449_v10  ;;  %11124 = vmatprep.mubr.msk.f32.mxu1 %vm13528_vm0, %v14633_v24 }
 0x1ae   : > { %v1221_v60 = vpop.f32.mrb[90].mxu0 }
 0x1af   : > { %v1450_v16 = vadd.f32 %v1221_v60, %v14272_v22  ;;  %v10625_v29 = vpop.f32.mrb[91].mxu0  ;;  %10970 = vmatmul.mubr.f32.gmra.mrb[196].mxu0 %v1995_v15  ;;  %v1672_v30 = vpop.f32.mrb[90].mxu1  ;;  %v1998_v15 = vld [vmem:[%s13704_s24 + $0xb0] sm:$0xff] }
 0x1b0   : > { %11125 = vmatmul.mubr.f32.gmra.mrb[196].mxu1 %v2446_v27  ;;  %10972 = vmatprep.mubr.msk.f32.mxu0 %vm13528_vm0, %v14633_v24  ;;  %v10780_v33 = vpop.f32.mrb[91].mxu1  ;;  %v2449_v60 = vld [vmem:[%s13704_s24 + $0xb1] sm:$0xff] }
 0x1b1   : > { %v14698_v44 = vadd.f32 %v1672_v30, %v1450_v16  ;;  %11127 = vmatprep.mubr.msk.f32.mxu1 %vm13528_vm0, %v14633_v24 }
 0x1b2   : > { %v1226_v2 = vpop.f32.mrb[92].mxu0 }
 0x1b3   : > { %v1451_v22 = vadd.f32 %v1226_v2, %v14279_v28  ;;  %v10628_v49 = vpop.f32.mrb[93].mxu0  ;;  %10973 = vmatmul.mubr.f32.gmra.mrb[198].mxu0 %v1996_v37  ;;  %v1677_v50 = vpop.f32.mrb[92].mxu1  ;;  %v1999_v37 = vld [vmem:[%s13704_s24 + $0xb8] sm:$0xff] }
 0x1b4   : > { %11128 = vmatmul.mubr.f32.gmra.mrb[198].mxu1 %v2447_v45  ;;  %10975 = vmatprep.mubr.msk.f32.mxu0 %vm13528_vm0, %v14633_v24  ;;  %v10783_v56 = vpop.f32.mrb[93].mxu1  ;;  %v2450_v2 = vld [vmem:[%s13704_s24 + $0xb9] sm:$0xff] }
 0x1b5   : > { %v14707_v0 = vadd.f32 %v1677_v50, %v1451_v22  ;;  %11130 = vmatprep.mubr.msk.f32.mxu1 %vm13528_vm0, %v14633_v24 }
 0x1b6   : > { %v1231_v10 = vpop.f32.mrb[94].mxu0 }
 0x1b7   : > { %v1452_v28 = vadd.f32 %v1231_v10, %v14286_v34  ;;  %v10631_v6 = vpop.f32.mrb[95].mxu0  ;;  %10976 = vmatmul.mubr.f32.gmra.mrb[200].mxu0 %v1997_v59  ;;  %v1682_v12 = vpop.f32.mrb[94].mxu1  ;;  %v2000_v59 = vld [vmem:[%s13704_s24 + $0xc0] sm:$0xff] }
 0x1b8   : > { %11131 = vmatmul.mubr.f32.gmra.mrb[200].mxu1 %v2448_v4  ;;  %10978 = vmatprep.mubr.msk.f32.mxu0 %vm13528_vm0, %v14633_v24  ;;  %v10786_v14 = vpop.f32.mrb[95].mxu1  ;;  %v2451_v10 = vld [vmem:[%s13704_s24 + $0xc1] sm:$0xff] }
 0x1b9   : > { %v14716_v27 = vadd.f32 %v1682_v12, %v1452_v28  ;;  %11133 = vmatprep.mubr.msk.f32.mxu1 %vm13528_vm0, %v14633_v24 }
 0x1ba   : > { %v1236_v16 = vpop.f32.mrb[96].mxu0 }
 0x1bb   : > { %v1453_v34 = vadd.f32 %v1236_v16, %v14293_v40  ;;  %v10634_v29 = vpop.f32.mrb[97].mxu0  ;;  %10979 = vmatmul.mubr.f32.gmra.mrb[202].mxu0 %v1998_v15  ;;  %v1687_v30 = vpop.f32.mrb[96].mxu1  ;;  %v2001_v15 = vld [vmem:[%s13704_s24 + $0xc8] sm:$0xff] }
 0x1bc   : > { %11134 = vmatmul.mubr.f32.gmra.mrb[202].mxu1 %v2449_v60  ;;  %10981 = vmatprep.mubr.msk.f32.mxu0 %vm13528_vm0, %v14633_v24  ;;  %v10789_v33 = vpop.f32.mrb[97].mxu1  ;;  %v2452_v16 = vld [vmem:[%s13704_s24 + $0xc9] sm:$0xff] }
 0x1bd   : > { %v14725_v45 = vadd.f32 %v1687_v30, %v1453_v34  ;;  %11136 = vmatprep.mubr.msk.f32.mxu1 %vm13528_vm0, %v14633_v24 }
 0x1be   : > { %v1241_v22 = vpop.f32.mrb[98].mxu0 }
 0x1bf   : > { %v1454_v40 = vadd.f32 %v1241_v22, %v14300_v8  ;;  %v10637_v49 = vpop.f32.mrb[99].mxu0  ;;  %10982 = vmatmul.mubr.f32.gmra.mrb[204].mxu0 %v1999_v37  ;;  %v1692_v50 = vpop.f32.mrb[98].mxu1  ;;  %v2002_v37 = vld [vmem:[%s13704_s24 + $0xd0] sm:$0xff] }
 0x1c0   : > { %11137 = vmatmul.mubr.f32.gmra.mrb[204].mxu1 %v2450_v2  ;;  %10984 = vmatprep.mubr.msk.f32.mxu0 %vm13528_vm0, %v14633_v24  ;;  %v10792_v56 = vpop.f32.mrb[99].mxu1  ;;  %v2453_v22 = vld [vmem:[%s13704_s24 + $0xd1] sm:$0xff] }
 0x1c1   : > { %v14734_v4 = vadd.f32 %v1692_v50, %v1454_v40  ;;  %11139 = vmatprep.mubr.msk.f32.mxu1 %vm13528_vm0, %v14633_v24 }
 0x1c2   : > { %v1246_v28 = vpop.f32.mrb[100].mxu0 }
 0x1c3   : > { %v1455_v8 = vadd.f32 %v1246_v28, %v14307_v52  ;;  %v10640_v6 = vpop.f32.mrb[101].mxu0  ;;  %10985 = vmatmul.mubr.f32.gmra.mrb[206].mxu0 %v2000_v59  ;;  %v1697_v12 = vpop.f32.mrb[100].mxu1  ;;  %v2003_v59 = vld [vmem:[%s13704_s24 + $0xd8] sm:$0xff] }
 0x1c4   : > { %11140 = vmatmul.mubr.f32.gmra.mrb[206].mxu1 %v2451_v10  ;;  %10987 = vmatprep.mubr.msk.f32.mxu0 %vm13528_vm0, %v14633_v24  ;;  %v10795_v14 = vpop.f32.mrb[101].mxu1  ;;  %v2454_v28 = vld [vmem:[%s13704_s24 + $0xd9] sm:$0xff] }
 0x1c5   : > { %v14743_v60 = vadd.f32 %v1697_v12, %v1455_v8  ;;  %11142 = vmatprep.mubr.msk.f32.mxu1 %vm13528_vm0, %v14633_v24 }
 0x1c6   : > { %v1251_v34 = vpop.f32.mrb[102].mxu0 }
 0x1c7   : > { %v1456_v52 = vadd.f32 %v1251_v34, %v14314_v58  ;;  %v10643_v29 = vpop.f32.mrb[103].mxu0  ;;  %10988 = vmatmul.mubr.f32.gmra.mrb[208].mxu0 %v2001_v15  ;;  %v1702_v30 = vpop.f32.mrb[102].mxu1  ;;  %v2004_v15 = vld [vmem:[%s13704_s24 + $0xe0] sm:$0xff] }
 0x1c8   : > { %11143 = vmatmul.mubr.f32.gmra.mrb[208].mxu1 %v2452_v16  ;;  %10990 = vmatprep.mubr.msk.f32.mxu0 %vm13528_vm0, %v14633_v24  ;;  %v10798_v33 = vpop.f32.mrb[103].mxu1  ;;  %v2455_v34 = vld [vmem:[%s13704_s24 + $0xe1] sm:$0xff] }
 0x1c9   : > { %v14752_v2 = vadd.f32 %v1702_v30, %v1456_v52  ;;  %11145 = vmatprep.mubr.msk.f32.mxu1 %vm13528_vm0, %v14633_v24 }
 0x1ca   : > { %v1256_v40 = vpop.f32.mrb[104].mxu0 }
 0x1cb   : > { %v1457_v58 = vadd.f32 %v1256_v40, %v14321_v1  ;;  %v10646_v49 = vpop.f32.mrb[105].mxu0  ;;  %10991 = vmatmul.mubr.f32.gmra.mrb[210].mxu0 %v2002_v37  ;;  %v1707_v50 = vpop.f32.mrb[104].mxu1  ;;  %v2005_v37 = vld [vmem:[%s13704_s24 + $0xe8] sm:$0xff] }
 0x1cc   : > { %11146 = vmatmul.mubr.f32.gmra.mrb[210].mxu1 %v2453_v22  ;;  %10993 = vmatprep.mubr.msk.f32.mxu0 %vm13528_vm0, %v14633_v24  ;;  %v10801_v56 = vpop.f32.mrb[105].mxu1  ;;  %v2456_v40 = vld [vmem:[%s13704_s24 + $0xe9] sm:$0xff] }
 0x1cd   : > { %v14761_v10 = vadd.f32 %v1707_v50, %v1457_v58  ;;  %11148 = vmatprep.mubr.msk.f32.mxu1 %vm13528_vm0, %v14633_v24 }
 0x1ce   : > { %v1261_v8 = vpop.f32.mrb[106].mxu0 }
 0x1cf   : > { %v1458_v1 = vadd.f32 %v1261_v8, %v14328_v11  ;;  %v10649_v6 = vpop.f32.mrb[107].mxu0  ;;  %10994 = vmatmul.mubr.f32.gmra.mrb[212].mxu0 %v2003_v59  ;;  %v1712_v12 = vpop.f32.mrb[106].mxu1  ;;  %v2006_v59 = vld [vmem:[%s13704_s24 + $0xf0] sm:$0xff] }
 0x1d0   : > { %11149 = vmatmul.mubr.f32.gmra.mrb[212].mxu1 %v2454_v28  ;;  %10996 = vmatprep.mubr.msk.f32.mxu0 %vm13528_vm0, %v14633_v24  ;;  %v10804_v14 = vpop.f32.mrb[107].mxu1  ;;  %v2457_v8 = vld [vmem:[%s13704_s24 + $0xf1] sm:$0xff] }
 0x1d1   : > { %v14770_v16 = vadd.f32 %v1712_v12, %v1458_v1  ;;  %11151 = vmatprep.mubr.msk.f32.mxu1 %vm13528_vm0, %v14633_v24 }
 0x1d2   : > { %v1266_v52 = vpop.f32.mrb[108].mxu0 }
 0x1d3   : > { %v1459_v11 = vadd.f32 %v1266_v52, %v14335_v18  ;;  %v10652_v29 = vpop.f32.mrb[109].mxu0  ;;  %10997 = vmatmul.mubr.f32.gmra.mrb[214].mxu0 %v2004_v15  ;;  %v1717_v30 = vpop.f32.mrb[108].mxu1  ;;  %v2007_v15 = vld [vmem:[%s13704_s24 + $0xf8] sm:$0xff] }
 0x1d4   : > { %11152 = vmatmul.mubr.f32.gmra.mrb[214].mxu1 %v2455_v34  ;;  %10999 = vmatprep.mubr.msk.f32.mxu0 %vm13528_vm0, %v14633_v24  ;;  %v10807_v33 = vpop.f32.mrb[109].mxu1  ;;  %v2458_v52 = vld [vmem:[%s13704_s24 + $0xf9] sm:$0xff] }
 0x1d5   : > { %v14779_v22 = vadd.f32 %v1717_v30, %v1459_v11  ;;  %11154 = vmatprep.mubr.msk.f32.mxu1 %vm13528_vm0, %v14633_v24 }
 0x1d6   : > { %v1271_v58 = vpop.f32.mrb[110].mxu0 }
 0x1d7   : > { %v1460_v18 = vadd.f32 %v1271_v58, %v14342_v25  ;;  %v10655_v49 = vpop.f32.mrb[111].mxu0  ;;  %11000 = vmatmul.mubr.f32.gmra.mrb[216].mxu0 %v2005_v37  ;;  %v1722_v50 = vpop.f32.mrb[110].mxu1  ;;  %v2008_v37 = vld [vmem:[%s13704_s24 + $0x100] sm:$0xff] }
 0x1d8   : > { %11155 = vmatmul.mubr.f32.gmra.mrb[216].mxu1 %v2456_v40  ;;  %11002 = vmatprep.mubr.msk.f32.mxu0 %vm13528_vm0, %v14633_v24  ;;  %v10810_v56 = vpop.f32.mrb[111].mxu1  ;;  %v2459_v58 = vld [vmem:[%s13704_s24 + $0x101] sm:$0xff] }
 0x1d9   : > { %v14788_v28 = vadd.f32 %v1722_v50, %v1460_v18  ;;  %11157 = vmatprep.mubr.msk.f32.mxu1 %vm13528_vm0, %v14633_v24 }
 0x1da   : > { %v1276_v1 = vpop.f32.mrb[112].mxu0 }
 0x1db   : > { %v1461_v25 = vadd.f32 %v1276_v1, %v14349_v32  ;;  %v10658_v6 = vpop.f32.mrb[113].mxu0  ;;  %11003 = vmatmul.mubr.f32.gmra.mrb[218].mxu0 %v2006_v59  ;;  %v1727_v12 = vpop.f32.mrb[112].mxu1  ;;  %v2009_v59 = vld [vmem:[%s13704_s24 + $0x108] sm:$0xff] }
 0x1dc   : > { %11158 = vmatmul.mubr.f32.gmra.mrb[218].mxu1 %v2457_v8  ;;  %11005 = vmatprep.mubr.msk.f32.mxu0 %vm13528_vm0, %v14633_v24  ;;  %v10813_v14 = vpop.f32.mrb[113].mxu1  ;;  %v2460_v1 = vld [vmem:[%s13704_s24 + $0x109] sm:$0xff] }
 0x1dd   : > { %v14797_v34 = vadd.f32 %v1727_v12, %v1461_v25  ;;  %11160 = vmatprep.mubr.msk.f32.mxu1 %vm13528_vm0, %v14633_v24 }
 0x1de   : > { %v1281_v11 = vpop.f32.mrb[114].mxu0 }
 0x1df   : > { %v1462_v32 = vadd.f32 %v1281_v11, %v14356_v39  ;;  %v10661_v29 = vpop.f32.mrb[115].mxu0  ;;  %11006 = vmatmul.mubr.f32.gmra.mrb[220].mxu0 %v2007_v15  ;;  %v1732_v30 = vpop.f32.mrb[114].mxu1  ;;  %v2010_v15 = vld [vmem:[%s13704_s24 + $0x110] sm:$0xff] }
 0x1e0   : > { %11161 = vmatmul.mubr.f32.gmra.mrb[220].mxu1 %v2458_v52  ;;  %11008 = vmatprep.mubr.msk.f32.mxu0 %vm13528_vm0, %v14633_v24  ;;  %v10816_v33 = vpop.f32.mrb[115].mxu1  ;;  %v2461_v11 = vld [vmem:[%s13704_s24 + $0x111] sm:$0xff] }
 0x1e1   : > { %v14806_v40 = vadd.f32 %v1732_v30, %v1462_v32  ;;  %11163 = vmatprep.mubr.msk.f32.mxu1 %vm13528_vm0, %v14633_v24 }
 0x1e2   : > { %v1286_v18 = vpop.f32.mrb[116].mxu0 }
 0x1e3   : > { %v1463_v39 = vadd.f32 %v1286_v18, %v14363_v47  ;;  %v10664_v49 = vpop.f32.mrb[117].mxu0  ;;  %11009 = vmatmul.mubr.f32.gmra.mrb[222].mxu0 %v2008_v37  ;;  %v1737_v50 = vpop.f32.mrb[116].mxu1  ;;  %v2011_v37 = vld [vmem:[%s13704_s24 + $0x118] sm:$0xff] }
 0x1e4   : > { %11164 = vmatmul.mubr.f32.gmra.mrb[222].mxu1 %v2459_v58  ;;  %11011 = vmatprep.mubr.msk.f32.mxu0 %vm13528_vm0, %v14633_v24  ;;  %v10819_v56 = vpop.f32.mrb[117].mxu1  ;;  %v2462_v18 = vld [vmem:[%s13704_s24 + $0x119] sm:$0xff] }
 0x1e5   : > { %v14815_v8 = vadd.f32 %v1737_v50, %v1463_v39  ;;  %11166 = vmatprep.mubr.msk.f32.mxu1 %vm13528_vm0, %v14633_v24 }
 0x1e6   : > { %v1291_v25 = vpop.f32.mrb[118].mxu0 }
 0x1e7   : > { %v1464_v47 = vadd.f32 %v1291_v25, %v14370_v54  ;;  %v10667_v6 = vpop.f32.mrb[119].mxu0  ;;  %11012 = vmatmul.mubr.f32.gmra.mrb[224].mxu0 %v2009_v59  ;;  %v1742_v12 = vpop.f32.mrb[118].mxu1  ;;  %v2012_v59 = vld [vmem:[%s13704_s24 + $0x120] sm:$0xff] }
 0x1e8   : > { %11167 = vmatmul.mubr.f32.gmra.mrb[224].mxu1 %v2460_v1  ;;  %11014 = vmatprep.mubr.msk.f32.mxu0 %vm13528_vm0, %v14633_v24  ;;  %v10822_v14 = vpop.f32.mrb[119].mxu1  ;;  %v2463_v25 = vld [vmem:[%s13704_s24 + $0x121] sm:$0xff] }
 0x1e9   : > { %v14824_v52 = vadd.f32 %v1742_v12, %v1464_v47  ;;  %11169 = vmatprep.mubr.msk.f32.mxu1 %vm13528_vm0, %v14633_v24 }
 0x1ea   : > { %v1296_v32 = vpop.f32.mrb[120].mxu0 }
 0x1eb   : > { %v1465_v54 = vadd.f32 %v1296_v32, %v14377_v62  ;;  %v10670_v29 = vpop.f32.mrb[121].mxu0  ;;  %11015 = vmatmul.mubr.f32.gmra.mrb[226].mxu0 %v2010_v15  ;;  %v1747_v30 = vpop.f32.mrb[120].mxu1  ;;  %v2013_v15 = vld [vmem:[%s13704_s24 + $0x128] sm:$0xff] }
 0x1ec   : > { %11170 = vmatmul.mubr.f32.gmra.mrb[226].mxu1 %v2461_v11  ;;  %11017 = vmatprep.mubr.msk.f32.mxu0 %vm13528_vm0, %v14633_v24  ;;  %v10825_v33 = vpop.f32.mrb[121].mxu1  ;;  %v2464_v32 = vld [vmem:[%s13704_s24 + $0x129] sm:$0xff] }
 0x1ed   : > { %v14833_v58 = vadd.f32 %v1747_v30, %v1465_v54  ;;  %11172 = vmatprep.mubr.msk.f32.mxu1 %vm13528_vm0, %v14633_v24 }
 0x1ee   : > { %v1301_v39 = vpop.f32.mrb[122].mxu0 }
 0x1ef   : > { %v1466_v62 = vadd.f32 %v1301_v39, %v14384_v7  ;;  %v10673_v49 = vpop.f32.mrb[123].mxu0  ;;  %11018 = vmatmul.mubr.f32.gmra.mrb[228].mxu0 %v2011_v37  ;;  %v1752_v50 = vpop.f32.mrb[122].mxu1  ;;  %v2014_v37 = vld [vmem:[%s13704_s24 + $0x130] sm:$0xff] }
 0x1f0   : > { %11173 = vmatmul.mubr.f32.gmra.mrb[228].mxu1 %v2462_v18  ;;  %11020 = vmatprep.mubr.msk.f32.mxu0 %vm13528_vm0, %v14633_v24  ;;  %v10828_v56 = vpop.f32.mrb[123].mxu1  ;;  %v2465_v39 = vld [vmem:[%s13704_s24 + $0x131] sm:$0xff] }
 0x1f1   : > { %v14842_v1 = vadd.f32 %v1752_v50, %v1466_v62  ;;  %11175 = vmatprep.mubr.msk.f32.mxu1 %vm13528_vm0, %v14633_v24 }
 0x1f2   : > { %v1306_v47 = vpop.f32.mrb[124].mxu0 }
 0x1f3   : > { %v1467_v7 = vadd.f32 %v1306_v47, %v14391_v17  ;;  %v10676_v6 = vpop.f32.mrb[125].mxu0  ;;  %11021 = vmatmul.mubr.f32.gmra.mrb[230].mxu0 %v2012_v59  ;;  %v1757_v12 = vpop.f32.mrb[124].mxu1  ;;  %v2015_v59 = vld [vmem:[%s13704_s24 + $0x138] sm:$0xff] }
 0x1f4   : > { %11176 = vmatmul.mubr.f32.gmra.mrb[230].mxu1 %v2463_v25  ;;  %11023 = vmatprep.mubr.msk.f32.mxu0 %vm13528_vm0, %v14633_v24  ;;  %v10831_v14 = vpop.f32.mrb[125].mxu1  ;;  %v2466_v47 = vld [vmem:[%s13704_s24 + $0x139] sm:$0xff] }
 0x1f5   : > { %v14851_v11 = vadd.f32 %v1757_v12, %v1467_v7  ;;  %11178 = vmatprep.mubr.msk.f32.mxu1 %vm13528_vm0, %v14633_v24 }
 0x1f6   : > { %v1311_v54 = vpop.f32.mrb[126].mxu0 }
 0x1f7   : > { %v1468_v17 = vadd.f32 %v1311_v54, %v14398_v26  ;;  %v10679_v29 = vpop.f32.mrb[127].mxu0  ;;  %11024 = vmatmul.mubr.f32.gmra.mrb[232].mxu0 %v2013_v15  ;;  %v1762_v30 = vpop.f32.mrb[126].mxu1  ;;  %v2016_v15 = vld [vmem:[%s13704_s24 + $0x140] sm:$0xff] }
 0x1f8   : > { %11179 = vmatmul.mubr.f32.gmra.mrb[232].mxu1 %v2464_v32  ;;  %11026 = vmatprep.mubr.msk.f32.mxu0 %vm13528_vm0, %v14633_v24  ;;  %v10834_v33 = vpop.f32.mrb[127].mxu1  ;;  %v2467_v54 = vld [vmem:[%s13704_s24 + $0x141] sm:$0xff] }
 0x1f9   : > { %v14860_v18 = vadd.f32 %v1762_v30, %v1468_v17  ;;  %11181 = vmatprep.mubr.msk.f32.mxu1 %vm13528_vm0, %v14633_v24 }
 0x1fa   : > { %v1316_v62 = vpop.f32.mrb[128].mxu0 }
 0x1fb   : > { %v1469_v26 = vadd.f32 %v1316_v62, %v14405_v35  ;;  %v10682_v49 = vpop.f32.mrb[129].mxu0  ;;  %11027 = vmatmul.mubr.f32.gmra.mrb[234].mxu0 %v2014_v37  ;;  %v1767_v50 = vpop.f32.mrb[128].mxu1  ;;  %v2017_v37 = vld [vmem:[%s13704_s24 + $0x148] sm:$0xff] }
 0x1fc   : > { %11182 = vmatmul.mubr.f32.gmra.mrb[234].mxu1 %v2465_v39  ;;  %11029 = vmatprep.mubr.msk.f32.mxu0 %vm13528_vm0, %v14633_v24  ;;  %v10837_v56 = vpop.f32.mrb[129].mxu1  ;;  %v2468_v62 = vld [vmem:[%s13704_s24 + $0x149] sm:$0xff] }
 0x1fd   : > { %v14869_v25 = vadd.f32 %v1767_v50, %v1469_v26  ;;  %11184 = vmatprep.mubr.msk.f32.mxu1 %vm13528_vm0, %v14633_v24 }
 0x1fe   : > { %v1321_v7 = vpop.f32.mrb[130].mxu0 }
 0x1ff   : > { %v1470_v35 = vadd.f32 %v1321_v7, %v14412_v43  ;;  %v10685_v6 = vpop.f32.mrb[131].mxu0  ;;  %11030 = vmatmul.mubr.f32.gmra.mrb[236].mxu0 %v2015_v59  ;;  %v1772_v12 = vpop.f32.mrb[130].mxu1  ;;  %v2018_v59 = vld [vmem:[%s13704_s24 + $0x150] sm:$0xff] }
 0x200   : > { %11185 = vmatmul.mubr.f32.gmra.mrb[236].mxu1 %v2466_v47  ;;  %11032 = vmatprep.mubr.msk.f32.mxu0 %vm13528_vm0, %v14633_v24  ;;  %v10840_v14 = vpop.f32.mrb[131].mxu1  ;;  %v2469_v7 = vld [vmem:[%s13704_s24 + $0x151] sm:$0xff] }
 0x201   : > { %v14878_v32 = vadd.f32 %v1772_v12, %v1470_v35  ;;  %11187 = vmatprep.mubr.msk.f32.mxu1 %vm13528_vm0, %v14633_v24 }
 0x202   : > { %v1326_v17 = vpop.f32.mrb[132].mxu0 }
 0x203   : > { %v1471_v43 = vadd.f32 %v1326_v17, %v14419_v51  ;;  %v10688_v29 = vpop.f32.mrb[133].mxu0  ;;  %11033 = vmatmul.mubr.f32.gmra.mrb[238].mxu0 %v2016_v15  ;;  %v1777_v30 = vpop.f32.mrb[132].mxu1  ;;  %v2019_v15 = vld [vmem:[%s13704_s24 + $0x158] sm:$0xff] }
 0x204   : > { %11188 = vmatmul.mubr.f32.gmra.mrb[238].mxu1 %v2467_v54  ;;  %11035 = vmatprep.mubr.msk.f32.mxu0 %vm13528_vm0, %v14633_v24  ;;  %v10843_v33 = vpop.f32.mrb[133].mxu1  ;;  %v2470_v17 = vld [vmem:[%s13704_s24 + $0x159] sm:$0xff] }
 0x205   : > { %v14887_v39 = vadd.f32 %v1777_v30, %v1471_v43  ;;  %11190 = vmatprep.mubr.msk.f32.mxu1 %vm13528_vm0, %v14633_v24  ;;  %v9096_v43 = vld [vmem:[%s17729_s1 + $0x408] sm:$0xff] }
 0x206   : > { %v1331_v26 = vpop.f32.mrb[134].mxu0 }
 0x207   : > { %v1472_v51 = vadd.f32 %v1331_v26, %v14426_v61  ;;  %v10691_v49 = vpop.f32.mrb[135].mxu0  ;;  %11036 = vmatmul.mubr.f32.gmra.mrb[240].mxu0 %v2017_v37  ;;  %v1782_v50 = vpop.f32.mrb[134].mxu1  ;;  %v2881_v26 = vld [vmem:[%s13704_s24 + $0x29] sm:$0xff] }
 0x208   : > { %11191 = vmatmul.mubr.f32.gmra.mrb[240].mxu1 %v2468_v62  ;;  %11038 = vmatprep.mubr.msk.f32.mxu0 %vm13528_vm0, %v14633_v24  ;;  %v10846_v56 = vpop.f32.mrb[135].mxu1 }
 0x209   : > { %v14896_v47 = vadd.f32 %v1782_v50, %v1472_v51  ;;  %11193 = vmatprep.mubr.msk.f32.mxu1 %vm13528_vm0, %v14633_v24  ;;  %v3332_v50 = vld [vmem:[%s13704_s24 + $0x2a] sm:$0xff] }
 0x20a   : > { %v1336_v35 = vpop.f32.mrb[136].mxu0 }
 0x20b   : > { %v1473_v61 = vadd.f32 %v1336_v35, %v14433_v9  ;;  %v10694_v6 = vpop.f32.mrb[137].mxu0  ;;  %11039 = vmatmul.mubr.f32.gmra.mrb[242].mxu0 %v2018_v59  ;;  %v1787_v12 = vpop.f32.mrb[136].mxu1  ;;  %v9095_v9 = vld [vmem:[%s17729_s1 + $0x400] sm:$0xff]  ;;  %v9098_v59 = vld [vmem:[%s17729_s1 + $0x418] sm:$0xff] }
 0x20c   : > { %11194 = vmatmul.mubr.f32.gmra.mrb[242].mxu1 %v2469_v7  ;;  %11041 = vmatprep.mubr.msk.f32.mxu0 %vm13528_vm0, %v14633_v24  ;;  %v10849_v14 = vpop.f32.mrb[137].mxu1  ;;  %v13252_v51 = vpack.c.bf16 %v9096_v43, %v9095_v9  ;;  %v9099_v9 = vld [vmem:[%s17729_s1 + $0x420] sm:$0xff]  ;;  %v9100_v43 = vld [vmem:[%s17729_s1 + $0x428] sm:$0xff] }
 0x20d   : > { %v14905_v54 = vadd.f32 %v1787_v12, %v1473_v61  ;;  %11196 = vmatprep.mubr.msk.f32.mxu1 %vm13528_vm0, %v14633_v24  ;;  %v2882_v12 = vld [vmem:[%s13704_s24 + $0x31] sm:$0xff] }
 0x20e   : > { %v1341_v29 = vpop.f32.mrb[138].mxu0 }
 0x20f   : > { %v1474_v30 = vadd.f32 %v1341_v29, %v14446_v23  ;;  %v10697_v33 = vpop.f32.mrb[139].mxu0  ;;  %11042 = vmatmul.mubr.f32.gmra.mrb[244].mxu0 %v2019_v15  ;;  %v1792_v37 = vpop.f32.mrb[138].mxu1  ;;  %v9097_v23 = vld [vmem:[%s17729_s1 + $0x410] sm:$0xff] }
 0x210   : > { %11197 = vmatmul.mubr.f32.gmra.mrb[244].mxu1 %v2470_v17  ;;  %11231 = vmatprep.mubr.msk.f32.mxu0 %vm13528_vm0, %v14633_v24  ;;  %v10852_v62 = vpop.f32.mrb[139].mxu1  ;;  %v3333_v15 = vld [vmem:[%s13704_s24 + $0x32] sm:$0xff]  ;;  %v13255_v17 = vpack.c.bf16 %v9098_v59, %v9097_v23 }
 0x211   : > { %v14920_v49 = vadd.f32 %v1792_v37, %v1474_v30  ;;  %11386 = vmatprep.mubr.msk.f32.mxu1 %vm13528_vm0, %v14633_v24  ;;  %v2883_v62 = vld [vmem:[%s13704_s24 + $0x39] sm:$0xff] }
 0x212   : > { %v1346_v56 = vpop.f32.mrb[140].mxu0  ;;  %v9102_v23 = vld [vmem:[%s17729_s1 + $0x438] sm:$0xff] }
 0x213   : > { %v1475_v7 = vadd.f32 %v1346_v56, %v14460_v41  ;;  %v10700_v35 = vpop.f32.mrb[141].mxu0  ;;  %11232 = vmatmul.mubr.f32.vlgmr.msra.gmra.mrb[246].mxu0 %v2881_v26  ;;  %v1797_v61 = vpop.f32.mrb[140].mxu1  ;;  %v9101_v56 = vld [vmem:[%s17729_s1 + $0x430] sm:$0xff] }
 0x214   : > { %13253 = vmatpush3.bf16.msra.mxu0 %v13252_v51  ;;  %11387 = vmatmul.mubr.f32.vlgmr.msra.gmra.mrb[246].mxu1 %v3332_v50  ;;  %v10855_v6 = vpop.f32.mrb[141].mxu1  ;;  %v3334_v51 = vld [vmem:[%s13704_s24 + $0x3a] sm:$0xff]  ;;  %v13258_v50 = vpack.c.bf16 %v9100_v43, %v9099_v9  ;;  %v9104_v9 = vld [vmem:[%s17729_s1 + $0x448] sm:$0xff] }
 0x215   : > { %v14933_v14 = vadd.f32 %v1797_v61, %v1475_v7  ;;  %11234 = vmatprep.mubr.msk.f32.mxu0 %vm13528_vm0, %v14633_v24  ;;  %11389 = vmatprep.mubr.msk.f32.mxu1 %vm13528_vm0, %v14633_v24  ;;  %v2884_v6 = vld [vmem:[%s13704_s24 + $0x41] sm:$0xff] }
 0x216   : > { %v1351_v41 = vpop.f32.mrb[142].mxu0  ;;  %13254 = vmatprep.subr.bf16.mxu0 %v13526_v3 }
 0x217   : > { %v1476_v29 = vadd.f32 %v1351_v41, %v14475_v57  ;;  %v10703_v30 = vpop.f32.mrb[143].mxu0  ;;  %11235 = vmatmul.mubr.f32.gmra.mrb[248].mxu0 %v2882_v12  ;;  %v1802_v33 = vpop.f32.mrb[142].mxu1  ;;  %v9103_v41 = vld [vmem:[%s17729_s1 + $0x440] sm:$0xff] }
 0x218   : > { %11390 = vmatmul.mubr.f32.gmra.mrb[248].mxu1 %v3333_v15  ;;  %11237 = vmatprep.mubr.msk.f32.mxu0 %vm13528_vm0, %v14633_v24  ;;  %v10858_v37 = vpop.f32.mrb[143].mxu1  ;;  %v3335_v15 = vld [vmem:[%s13704_s24 + $0x42] sm:$0xff] }
 0x219   : > { %v14951_v26 = vadd.f32 %v1802_v33, %v1476_v29  ;;  %11392 = vmatprep.mubr.msk.f32.mxu1 %vm13528_vm0, %v14633_v24  ;;  %13256 = vmatpush3.bf16.msra.mxu0 %v13255_v17  ;;  %v13261_v17 = vpack.c.bf16 %v9102_v23, %v9101_v56  ;;  %v2885_v37 = vld [vmem:[%s13704_s24 + $0x49] sm:$0xff]  ;;  %v9106_v56 = vld [vmem:[%s17729_s1 + $0x458] sm:$0xff] }
 0x21a   : > { %v1356_v57 = vpop.f32.mrb[144].mxu0  ;;  %13257 = vmatprep.subr.bf16.mxu0 %v13526_v3 }
 0x21b   : > { %v1477_v59 = vadd.f32 %v1356_v57, %v14496_v21  ;;  %v10706_v7 = vpop.f32.mrb[145].mxu0  ;;  %11238 = vmatmul.mubr.f32.gmra.mrb[250].mxu0 %v2883_v62  ;;  %v1807_v35 = vpop.f32.mrb[144].mxu1  ;;  %v9105_v57 = vld [vmem:[%s17729_s1 + $0x450] sm:$0xff] }
 0x21c   : > { %11393 = vmatmul.mubr.f32.gmra.mrb[250].mxu1 %v3334_v51  ;;  %11240 = vmatprep.mubr.msk.f32.mxu0 %vm13528_vm0, %v14633_v24  ;;  %v10861_v61 = vpop.f32.mrb[145].mxu1  ;;  %v3336_v51 = vld [vmem:[%s13704_s24 + $0x4a] sm:$0xff] }
 0x21d   : > { %v14967_v12 = vadd.f32 %v1807_v35, %v1477_v59  ;;  %11395 = vmatprep.mubr.msk.f32.mxu1 %vm13528_vm0, %v14633_v24  ;;  %13259 = vmatpush3.bf16.msra.mxu0 %v13258_v50  ;;  %v13264_v50 = vpack.c.bf16 %v9104_v9, %v9103_v41  ;;  %v2886_v61 = vld [vmem:[%s13704_s24 + $0x51] sm:$0xff]  ;;  %v9108_v41 = vld [vmem:[%s17729_s1 + $0x468] sm:$0xff] }
 0x21e   : > { %v1361_v21 = vpop.f32.mrb[146].mxu0  ;;  %13260 = vmatprep.subr.bf16.mxu0 %v13526_v3 }
 0x21f   : > { %v1478_v43 = vadd.f32 %v1361_v21, %v14518_v48  ;;  %v10709_v29 = vpop.f32.mrb[147].mxu0  ;;  %11241 = vmatmul.mubr.f32.gmra.mrb[252].mxu0 %v2884_v6  ;;  %v1812_v30 = vpop.f32.mrb[146].mxu1  ;;  %v9107_v21 = vld [vmem:[%s17729_s1 + $0x460] sm:$0xff] }
 0x220   : > { %11396 = vmatmul.mubr.f32.gmra.mrb[252].mxu1 %v3335_v15  ;;  %11243 = vmatprep.mubr.msk.f32.mxu0 %vm13528_vm0, %v14633_v24  ;;  %v10864_v33 = vpop.f32.mrb[147].mxu1  ;;  %v3337_v15 = vld [vmem:[%s13704_s24 + $0x52] sm:$0xff] }
 0x221   : > { %v14983_v62 = vadd.f32 %v1812_v30, %v1478_v43  ;;  %11398 = vmatprep.mubr.msk.f32.mxu1 %vm13528_vm0, %v14633_v24  ;;  %13262 = vmatpush3.bf16.msra.mxu0 %v13261_v17  ;;  %v13267_v17 = vpack.c.bf16 %v9106_v56, %v9105_v57  ;;  %v2887_v33 = vld [vmem:[%s13704_s24 + $0x59] sm:$0xff] }
 0x222   : > { %v1366_v48 = vpop.f32.mrb[148].mxu0  ;;  %13263 = vmatprep.subr.bf16.mxu0 %v13526_v3  ;;  %v9110_v57 = vld [vmem:[%s17729_s1 + $0x478] sm:$0xff] }
 0x223   : > { %v1479_v23 = vadd.f32 %v1366_v48, %v14540_v13  ;;  %v10712_v59 = vpop.f32.mrb[149].mxu0  ;;  %11244 = vmatmul.mubr.f32.gmra.mrb[254].mxu0 %v2885_v37  ;;  %v1817_v7 = vpop.f32.mrb[148].mxu1  ;;  %v9109_v48 = vld [vmem:[%s17729_s1 + $0x470] sm:$0xff] }
 0x224   : > { %11399 = vmatmul.mubr.f32.gmra.mrb[254].mxu1 %v3336_v51  ;;  %11246 = vmatprep.mubr.msk.f32.mxu0 %vm13528_vm0, %v14633_v24  ;;  %v10867_v35 = vpop.f32.mrb[149].mxu1  ;;  %v3338_v51 = vld [vmem:[%s13704_s24 + $0x5a] sm:$0xff] }
 0x225   : > { %v14999_v6 = vadd.f32 %v1817_v7, %v1479_v23  ;;  %11401 = vmatprep.mubr.msk.f32.mxu1 %vm13528_vm0, %v14633_v24  ;;  %13265 = vmatpush3.bf16.msra.mxu0 %v13264_v50  ;;  %v13270_v50 = vpack.c.bf16 %v9108_v41, %v9107_v21  ;;  %v2888_v35 = vld [vmem:[%s13704_s24 + $0x61] sm:$0xff] }
 0x226   : > { %v1371_v13 = vpop.f32.mrb[150].mxu0  ;;  %13266 = vmatprep.subr.bf16.mxu0 %v13526_v3 }
 0x227   : > { %v1480_v9 = vadd.f32 %v1371_v13, %v14562_v38  ;;  %v10715_v43 = vpop.f32.mrb[151].mxu0  ;;  %11247 = vmatmul.mubr.f32.gmra.mrb[0].mxu0 %v2886_v61  ;;  %v1822_v29 = vpop.f32.mrb[150].mxu1 }
 0x228   : > { %11402 = vmatmul.mubr.f32.gmra.mrb[0].mxu1 %v3337_v15  ;;  %11249 = vmatprep.mubr.msk.f32.mxu0 %vm13528_vm0, %v14633_v24  ;;  %v10870_v30 = vpop.f32.mrb[151].mxu1  ;;  %v3339_v15 = vld [vmem:[%s13704_s24 + $0x62] sm:$0xff] }
 0x229   : > { %v15015_v37 = vadd.f32 %v1822_v29, %v1480_v9  ;;  %11404 = vmatprep.mubr.msk.f32.mxu1 %vm13528_vm0, %v14633_v24  ;;  %13268 = vmatpush3.bf16.msra.mxu0 %v13267_v17  ;;  %v13273_v17 = vpack.c.bf16 %v9110_v57, %v9109_v48  ;;  %v2889_v43 = vld [vmem:[%s13704_s24 + $0x69] sm:$0xff] }
 0x22a   : > { %v1376_v38 = vpop.f32.mrb[152].mxu0  ;;  %13269 = vmatprep.subr.bf16.mxu0 %v13526_v3  ;;  %v3340_v30 = vld [vmem:[%s13704_s24 + $0x6a] sm:$0xff] }
 0x22b   : > { %v1481_v56 = vadd.f32 %v1376_v38, %v14584_v5  ;;  %v10718_v23 = vpop.f32.mrb[153].mxu0  ;;  %11250 = vmatmul.mubr.f32.gmra.mrb[2].mxu0 %v2887_v33  ;;  %v1827_v59 = vpop.f32.mrb[152].mxu1  ;;  %v15048_v38 = vld [vmem:[#allocation3] sm:$0xff] }
 0x22c   : > { %11405 = vmatmul.mubr.f32.gmra.mrb[2].mxu1 %v3338_v51  ;;  %11252 = vmatprep.mubr.msk.f32.mxu0 %vm13528_vm0, %v14633_v24  ;;  %v10873_v7 = vpop.f32.mrb[153].mxu1 }
 0x22d   : > { %v15031_v61 = vadd.f32 %v1827_v59, %v1481_v56  ;;  %11407 = vmatprep.mubr.msk.f32.mxu1 %vm13528_vm0, %v14633_v24  ;;  %13271 = vmatpush3.bf16.msra.mxu0 %v13270_v50  ;;  %v3341_v56 = vld [vmem:[%s13704_s24 + $0x72] sm:$0xff] }
 0x22e   : > { %v1381_v5 = vpop.f32.mrb[154].mxu0  ;;  %13272 = vmatprep.subr.bf16.mxu0 %v13526_v3 }
 0x22f   : > { %v1482_v13 = vadd.f32 %v1381_v5, %v14600_v31  ;;  %v10721_v21 = vpop.f32.mrb[155].mxu0  ;;  %11253 = vmatmul.mubr.f32.gmra.mrb[4].mxu0 %v2888_v35  ;;  %v1832_v41 = vpop.f32.mrb[154].mxu1  ;;  %v3342_v5 = vld [vmem:[%s13704_s24 + $0x7a] sm:$0xff] }
 0x230   : > { %11408 = vmatmul.mubr.f32.gmra.mrb[4].mxu1 %v3339_v15  ;;  %11255 = vmatprep.mubr.msk.f32.mxu0 %vm13528_vm0, %v14633_v24  ;;  %v10876_v9 = vpop.f32.mrb[155].mxu1  ;;  %v2891_v15 = vld [vmem:[%s13704_s24 + $0x79] sm:$0xff] }
 0x231   : > { %v15041_v29 = vadd.f32 %v1832_v41, %v1482_v13  ;;  %11410 = vmatprep.mubr.msk.f32.mxu1 %vm13528_vm0, %v14633_v24  ;;  %13274 = vmatpush3.bf16.msra.mxu0 %v13273_v17  ;;  %v2890_v24 = vld [vmem:[%s13704_s24 + $0x71] sm:$0xff] }
 0x232   : > { %v1386_v33 = vpop.f32.mrb[156].mxu0  ;;  %13299 = vmatprep.subr.bf16.mxu0 %v13526_v3 }
 0x233   : > { %v1483_v31 = vadd.f32 %v1386_v33, %v14616_v55  ;;  %v10724_v51 = vpop.f32.mrb[157].mxu0  ;;  %11256 = vmatmul.mubr.f32.gmra.mrb[6].mxu0 %v2889_v43  ;;  %v1837_v50 = vpop.f32.mrb[156].mxu1  ;;  %v2892_v43 = vld [vmem:[%s13704_s24 + $0x81] sm:$0xff] }
 0x234   : > { %11411 = vmatmul.mubr.f32.gmra.mrb[6].mxu1 %v3340_v30  ;;  %11258 = vmatprep.mubr.msk.f32.mxu0 %vm13528_vm0, %v15048_v38  ;;  %v10879_v48 = vpop.f32.mrb[157].mxu1  ;;  %v3343_v33 = vld [vmem:[%s13704_s24 + $0x82] sm:$0xff] }
 0x235   : > { %v15053_v57 = vadd.f32 %v1837_v50, %v1483_v31  ;;  %11413 = vmatprep.mubr.msk.f32.mxu1 %vm13528_vm0, %v15048_v38 }
 0x236   : > { %v1391_v55 = vpop.f32.mrb[158].mxu0 }
 0x237   : > { %v1484_v23 = vadd.f32 %v1391_v55, %v14631_v19  ;;  %v10727_v59 = vpop.f32.mrb[159].mxu0  ;;  %11259 = vmatmul.mubr.f32.gmra.mrb[8].mxu0 %v2890_v24  ;;  %v1842_v7 = vpop.f32.mrb[158].mxu1  ;;  %v2893_v24 = vld [vmem:[%s13704_s24 + $0x89] sm:$0xff] }
 0x238   : > { %11414 = vmatmul.mubr.f32.gmra.mrb[8].mxu1 %v3341_v56  ;;  %11261 = vmatprep.mubr.msk.f32.mxu0 %vm13528_vm0, %v15048_v38  ;;  %v10882_v35 = vpop.f32.mrb[159].mxu1  ;;  %v3344_v55 = vld [vmem:[%s13704_s24 + $0x8a] sm:$0xff] }
 0x239   : > { %v15062_v17 = vadd.f32 %v1842_v7, %v1484_v23  ;;  %11416 = vmatprep.mubr.msk.f32.mxu1 %vm13528_vm0, %v15048_v38  ;;  %v13529_v23 = vmov 0  }
 0x23a   : > { %v1396_v13 = vpop.f32.mrb[160].mxu0  ;;  %13505 = vset.pattern.permute.xlu0 %v13529_v23  ;;  %13506 = vset.pattern.permute.xlu1 %v13529_v23 }
 0x23b   : > { %v1485_v19 = vadd.f32 %v1396_v13, %v14642_v36  ;;  %v10730_v21 = vpop.f32.mrb[161].mxu0  ;;  %11262 = vmatmul.mubr.f32.gmra.mrb[10].mxu0 %v2891_v15  ;;  %v1847_v41 = vpop.f32.mrb[160].mxu1  ;;  %v2894_v13 = vld [vmem:[%s13704_s24 + $0x91] sm:$0xff] }
 0x23c   : > { %11417 = vmatmul.mubr.f32.gmra.mrb[10].mxu1 %v3342_v5  ;;  %11264 = vmatprep.mubr.msk.f32.mxu0 %vm13528_vm0, %v15048_v38  ;;  %v10885_v9 = vpop.f32.mrb[161].mxu1  ;;  %v3345_v21 = vld [vmem:[%s13704_s24 + $0x92] sm:$0xff] }
 0x23d   : > { %v15071_v30 = vadd.f32 %v1847_v41, %v1485_v19  ;;  %11419 = vmatprep.mubr.msk.f32.mxu1 %vm13528_vm0, %v15048_v38 }
 0x23e   : > { %v1401_v31 = vpop.f32.mrb[162].mxu0 }
 0x23f   : > { %v1486_v36 = vadd.f32 %v1401_v31, %v14650_v53  ;;  %v10733_v51 = vpop.f32.mrb[163].mxu0  ;;  %11265 = vmatmul.mubr.f32.gmra.mrb[12].mxu0 %v2892_v43  ;;  %v1852_v50 = vpop.f32.mrb[162].mxu1  ;;  %v4234_v53 = vld [vmem:[%s17733_s5] sm:$0xff] }
 0x240   : > { %11420 = vmatmul.mubr.f32.gmra.mrb[12].mxu1 %v3343_v33  ;;  %11267 = vmatprep.mubr.msk.f32.mxu0 %vm13528_vm0, %v15048_v38  ;;  %v10888_v48 = vpop.f32.mrb[163].mxu1 }
 0x241   : > { %v15080_v56 = vadd.f32 %v1852_v50, %v1486_v36  ;;  %11422 = vmatprep.mubr.msk.f32.mxu1 %vm13528_vm0, %v15048_v38  ;;  %4407 = vperm.xlu0 %13505, %v4234_v53   ;;  %v2895_v36 = vld [vmem:[%s13704_s24 + $0x99] sm:$0xff] }
 0x242   : > { %v2103_v59 = vpop.f32.mrb[164].mxu0  ;;  %v3346_v50 = vld [vmem:[%s13704_s24 + $0x9a] sm:$0xff] }
 0x243   : > { %v2348_v7 = vadd.f32 %v2103_v59, %v14662_v20  ;;  %v10923_v35 = vpop.f32.mrb[165].mxu0  ;;  %11268 = vmatmul.mubr.f32.gmra.mrb[14].mxu0 %v2893_v24  ;;  %v2554_v15 = vpop.f32.mrb[164].mxu1  ;;  %v4235_v20 = vld [vmem:[%s17733_s5 + $0x8] sm:$0xff] }
 0x244   : > { %11423 = vmatmul.mubr.f32.gmra.mrb[14].mxu1 %v3344_v55  ;;  %11270 = vmatprep.mubr.msk.f32.mxu0 %vm13528_vm0, %v15048_v38  ;;  %v11078_v5 = vpop.f32.mrb[165].mxu1  ;;  %v2896_v59 = vld [vmem:[%s13704_s24 + $0xa1] sm:$0xff] }
 0x245   : > { %v15092_v19 = vadd.f32 %v2554_v15, %v2348_v7  ;;  %11425 = vmatprep.mubr.msk.f32.mxu1 %vm13528_vm0, %v15048_v38  ;;  %4412 = vperm.xlu0 %13505, %v4235_v20   ;;  %v3347_v35 = vld [vmem:[%s13704_s24 + $0xa2] sm:$0xff]  ;;  %v4240_v15 = vld [vmem:[%s17733_s5 + $0x30] sm:$0xff] }
 0x246   : > { %v2108_v41 = vpop.f32.mrb[166].mxu0 }
 0x247   : > { %v2349_v9 = vadd.f32 %v2108_v41, %v14671_v42  ;;  %v10926_v43 = vpop.f32.mrb[167].mxu0  ;;  %11271 = vmatmul.mubr.f32.gmra.mrb[16].mxu0 %v2894_v13  ;;  %v2559_v33 = vpop.f32.mrb[166].mxu1  ;;  %v4238_v42 = vld [vmem:[%s17733_s5 + $0x20] sm:$0xff] }
 0x248   : > { %11426 = vmatmul.mubr.f32.gmra.mrb[16].mxu1 %v3345_v21  ;;  %11273 = vmatprep.mubr.msk.f32.mxu0 %vm13528_vm0, %v15048_v38  ;;  %v11081_v31 = vpop.f32.mrb[167].mxu1 }
 0x249   : > { %v15104_v51 = vadd.f32 %v2559_v33, %v2349_v9  ;;  %11428 = vmatprep.mubr.msk.f32.mxu1 %vm13528_vm0, %v15048_v38  ;;  %4427 = vperm.xlu0 %13505, %v4238_v42   ;;  %v2897_v9 = vld [vmem:[%s13704_s24 + $0xa9] sm:$0xff]  ;;  %v4242_v31 = vld [vmem:[%s17733_s5 + $0x40] sm:$0xff] }
 0x24a   : > { %v2113_v48 = vpop.f32.mrb[168].mxu0  ;;  %v3348_v33 = vld [vmem:[%s13704_s24 + $0xaa] sm:$0xff] }
 0x24b   : > { %v2350_v24 = vadd.f32 %v2113_v48, %v14680_v63  ;;  %v10929_v55 = vpop.f32.mrb[169].mxu0  ;;  %11274 = vmatmul.mubr.f32.gmra.mrb[18].mxu0 %v2895_v36  ;;  %v2564_v23 = vpop.f32.mrb[168].mxu1  ;;  %v4236_v63 = vld [vmem:[%s17733_s5 + $0x10] sm:$0xff] }
 0x24c   : > { %11429 = vmatmul.mubr.f32.gmra.mrb[18].mxu1 %v3346_v50  ;;  %11276 = vmatprep.mubr.msk.f32.mxu0 %vm13528_vm0, %v15048_v38  ;;  %v11084_v53 = vpop.f32.mrb[169].mxu1  ;;  %v2898_v55 = vld [vmem:[%s13704_s24 + $0xb1] sm:$0xff] }
 0x24d   : > { %v15116_v7 = vadd.f32 %v2564_v23, %v2350_v24  ;;  %11431 = vmatprep.mubr.msk.f32.mxu1 %vm13528_vm0, %v15048_v38  ;;  %4417 = vperm.xlu1 %13506, %v4236_v63   ;;  %v3349_v53 = vld [vmem:[%s13704_s24 + $0xb2] sm:$0xff] }
 0x24e   : > { %v2118_v5 = vpop.f32.mrb[170].mxu0  ;;  %4437 = vperm.xlu0 %13505, %v4240_v15  }
 0x24f   : > { %v2351_v13 = vadd.f32 %v2118_v5, %v14689_v46  ;;  %v10932_v21 = vpop.f32.mrb[171].mxu0  ;;  %11277 = vmatmul.mubr.f32.gmra.mrb[20].mxu0 %v2896_v59  ;;  %v2569_v20 = vpop.f32.mrb[170].mxu1  ;;  %v4237_v46 = vld [vmem:[%s17733_s5 + $0x18] sm:$0xff]  ;;  %v4244_v59 = vld [vmem:[%s17733_s5 + $0x50] sm:$0xff] }
 0x250   : > { %11432 = vmatmul.mubr.f32.gmra.mrb[20].mxu1 %v3347_v35  ;;  %11279 = vmatprep.mubr.msk.f32.mxu0 %vm13528_vm0, %v15048_v38  ;;  %v11087_v41 = vpop.f32.mrb[171].mxu1  ;;  %v2899_v21 = vld [vmem:[%s13704_s24 + $0xb9] sm:$0xff] }
 0x251   : > { %v15131_v43 = vadd.f32 %v2569_v20, %v2351_v13  ;;  %11434 = vmatprep.mubr.msk.f32.mxu1 %vm13528_vm0, %v15048_v38  ;;  %4422 = vperm.xlu1 %13506, %v4237_v46   ;;  %v3350_v41 = vld [vmem:[%s13704_s24 + $0xba] sm:$0xff] }
 0x252   : > { %v2123_v36 = vpop.f32.mrb[172].mxu0  ;;  %4447 = vperm.xlu0 %13505, %v4242_v31  }
 0x253   : > { %v2352_v50 = vadd.f32 %v2123_v36, %v14698_v44  ;;  %v10935_v42 = vpop.f32.mrb[173].mxu0  ;;  %11280 = vmatmul.mubr.f32.gmra.mrb[22].mxu0 %v2897_v9  ;;  %v2574_v48 = vpop.f32.mrb[172].mxu1  ;;  %v4239_v44 = vld [vmem:[%s17733_s5 + $0x28] sm:$0xff]  ;;  %v4246_v9 = vld [vmem:[%s17733_s5 + $0x60] sm:$0xff] }
 0x254   : > { %11435 = vmatmul.mubr.f32.gmra.mrb[22].mxu1 %v3348_v33  ;;  %11282 = vmatprep.mubr.msk.f32.mxu0 %vm13528_vm0, %v15048_v38  ;;  %v11090_v24 = vpop.f32.mrb[173].mxu1  ;;  %v2900_v42 = vld [vmem:[%s13704_s24 + $0xc1] sm:$0xff] }
 0x255   : > { %v15146_v23 = vadd.f32 %v2574_v48, %v2352_v50  ;;  %11437 = vmatprep.mubr.msk.f32.mxu1 %vm13528_vm0, %v15048_v38  ;;  %4432 = vperm.xlu1 %13506, %v4239_v44   ;;  %v3351_v24 = vld [vmem:[%s13704_s24 + $0xc2] sm:$0xff] }
 0x256   : > { %v2128_v35 = vpop.f32.mrb[174].mxu0  ;;  %4457 = vperm.xlu0 %13505, %v4244_v59  }
 0x257   : > { %v2353_v63 = vadd.f32 %v2128_v35, %v14707_v0  ;;  %v10938_v15 = vpop.f32.mrb[175].mxu0  ;;  %11283 = vmatmul.mubr.f32.gmra.mrb[24].mxu0 %v2898_v55  ;;  %v2579_v5 = vpop.f32.mrb[174].mxu1  ;;  %v4241_v0 = vld [vmem:[%s17733_s5 + $0x38] sm:$0xff]  ;;  %v4248_v55 = vld [vmem:[%s17733_s5 + $0x70] sm:$0xff] }
 0x258   : > { %11438 = vmatmul.mubr.f32.gmra.mrb[24].mxu1 %v3349_v53  ;;  %11285 = vmatprep.mubr.msk.f32.mxu0 %vm13528_vm0, %v15048_v38  ;;  %v11093_v13 = vpop.f32.mrb[175].mxu1  ;;  %v2901_v15 = vld [vmem:[%s13704_s24 + $0xc9] sm:$0xff] }
 0x259   : > { %v15161_v20 = vadd.f32 %v2579_v5, %v2353_v63  ;;  %11440 = vmatprep.mubr.msk.f32.mxu1 %vm13528_vm0, %v15048_v38  ;;  %4442 = vperm.xlu1 %13506, %v4241_v0   ;;  %v3352_v13 = vld [vmem:[%s13704_s24 + $0xca] sm:$0xff] }
 0x25a   : > { %v2133_v33 = vpop.f32.mrb[176].mxu0  ;;  %4467 = vperm.xlu0 %13505, %v4246_v9  }
 0x25b   : > { %v2354_v46 = vadd.f32 %v2133_v33, %v14716_v27  ;;  %v10941_v31 = vpop.f32.mrb[177].mxu0  ;;  %11286 = vmatmul.mubr.f32.gmra.mrb[26].mxu0 %v2899_v21  ;;  %v2584_v36 = vpop.f32.mrb[176].mxu1  ;;  %v4243_v27 = vld [vmem:[%s17733_s5 + $0x48] sm:$0xff]  ;;  %v4250_v21 = vld [vmem:[%s17733_s5 + $0x80] sm:$0xff] }
 0x25c   : > { %11441 = vmatmul.mubr.f32.gmra.mrb[26].mxu1 %v3350_v41  ;;  %11288 = vmatprep.mubr.msk.f32.mxu0 %vm13528_vm0, %v15048_v38  ;;  %v11096_v50 = vpop.f32.mrb[177].mxu1  ;;  %v2902_v31 = vld [vmem:[%s13704_s24 + $0xd1] sm:$0xff] }
 0x25d   : > { %v15176_v48 = vadd.f32 %v2584_v36, %v2354_v46  ;;  %11443 = vmatprep.mubr.msk.f32.mxu1 %vm13528_vm0, %v15048_v38  ;;  %4452 = vperm.xlu1 %13506, %v4243_v27   ;;  %v3353_v50 = vld [vmem:[%s13704_s24 + $0xd2] sm:$0xff] }
 0x25e   : > { %v2138_v53 = vpop.f32.mrb[178].mxu0  ;;  %4477 = vperm.xlu0 %13505, %v4248_v55  }
 0x25f   : > { %v2355_v44 = vadd.f32 %v2138_v53, %v14725_v45  ;;  %v10944_v59 = vpop.f32.mrb[179].mxu0  ;;  %11289 = vmatmul.mubr.f32.gmra.mrb[28].mxu0 %v2900_v42  ;;  %v2589_v35 = vpop.f32.mrb[178].mxu1  ;;  %v4245_v45 = vld [vmem:[%s17733_s5 + $0x58] sm:$0xff]  ;;  %v4252_v42 = vld [vmem:[%s17733_s5 + $0x90] sm:$0xff] }
 0x260   : > { %11444 = vmatmul.mubr.f32.gmra.mrb[28].mxu1 %v3351_v24  ;;  %11291 = vmatprep.mubr.msk.f32.mxu0 %vm13528_vm0, %v15048_v38  ;;  %v11099_v63 = vpop.f32.mrb[179].mxu1  ;;  %v2903_v59 = vld [vmem:[%s13704_s24 + $0xd9] sm:$0xff] }
 0x261   : > { %v15191_v5 = vadd.f32 %v2589_v35, %v2355_v44  ;;  %11446 = vmatprep.mubr.msk.f32.mxu1 %vm13528_vm0, %v15048_v38  ;;  %4462 = vperm.xlu1 %13506, %v4245_v45   ;;  %v3354_v63 = vld [vmem:[%s13704_s24 + $0xda] sm:$0xff] }
 0x262   : > { %v2143_v41 = vpop.f32.mrb[180].mxu0  ;;  %4487 = vperm.xlu0 %13505, %v4250_v21  }
 0x263   : > { %v2356_v0 = vadd.f32 %v2143_v41, %v14734_v4  ;;  %v10947_v9 = vpop.f32.mrb[181].mxu0  ;;  %11292 = vmatmul.mubr.f32.gmra.mrb[30].mxu0 %v2901_v15  ;;  %v2594_v33 = vpop.f32.mrb[180].mxu1  ;;  %v4247_v4 = vld [vmem:[%s17733_s5 + $0x68] sm:$0xff]  ;;  %v4254_v15 = vld [vmem:[%s17733_s5 + $0xa0] sm:$0xff] }
 0x264   : > { %11447 = vmatmul.mubr.f32.gmra.mrb[30].mxu1 %v3352_v13  ;;  %11294 = vmatprep.mubr.msk.f32.mxu0 %vm13528_vm0, %v15048_v38  ;;  %v11102_v46 = vpop.f32.mrb[181].mxu1  ;;  %v2904_v9 = vld [vmem:[%s13704_s24 + $0xe1] sm:$0xff] }
 0x265   : > { %v15206_v36 = vadd.f32 %v2594_v33, %v2356_v0  ;;  %11449 = vmatprep.mubr.msk.f32.mxu1 %vm13528_vm0, %v15048_v38  ;;  %4472 = vperm.xlu1 %13506, %v4247_v4   ;;  %v3355_v46 = vld [vmem:[%s13704_s24 + $0xe2] sm:$0xff] }
 0x266   : > { %v2148_v24 = vpop.f32.mrb[182].mxu0  ;;  %4497 = vperm.xlu0 %13505, %v4252_v42  }
 0x267   : > { %v2357_v27 = vadd.f32 %v2148_v24, %v14743_v60  ;;  %v10950_v55 = vpop.f32.mrb[183].mxu0  ;;  %11295 = vmatmul.mubr.f32.gmra.mrb[32].mxu0 %v2902_v31  ;;  %v2599_v53 = vpop.f32.mrb[182].mxu1  ;;  %v4249_v60 = vld [vmem:[%s17733_s5 + $0x78] sm:$0xff]  ;;  %v4256_v31 = vld [vmem:[%s17733_s5 + $0xb0] sm:$0xff] }
 0x268   : > { %11450 = vmatmul.mubr.f32.gmra.mrb[32].mxu1 %v3353_v50  ;;  %11297 = vmatprep.mubr.msk.f32.mxu0 %vm13528_vm0, %v15048_v38  ;;  %v11105_v44 = vpop.f32.mrb[183].mxu1  ;;  %v2905_v55 = vld [vmem:[%s13704_s24 + $0xe9] sm:$0xff] }
 0x269   : > { %v15221_v35 = vadd.f32 %v2599_v53, %v2357_v27  ;;  %11452 = vmatprep.mubr.msk.f32.mxu1 %vm13528_vm0, %v15048_v38  ;;  %4482 = vperm.xlu1 %13506, %v4249_v60   ;;  %v3356_v53 = vld [vmem:[%s13704_s24 + $0xea] sm:$0xff] }
 0x26a   : > { %v2153_v13 = vpop.f32.mrb[184].mxu0  ;;  %4507 = vperm.xlu0 %13505, %v4254_v15  }
 0x26b   : > { %v2358_v45 = vadd.f32 %v2153_v13, %v14752_v2  ;;  %v10953_v21 = vpop.f32.mrb[185].mxu0  ;;  %11298 = vmatmul.mubr.f32.gmra.mrb[34].mxu0 %v2903_v59  ;;  %v2604_v41 = vpop.f32.mrb[184].mxu1  ;;  %v4251_v2 = vld [vmem:[%s17733_s5 + $0x88] sm:$0xff]  ;;  %v4258_v13 = vld [vmem:[%s17733_s5 + $0xc0] sm:$0xff] }
 0x26c   : > { %11453 = vmatmul.mubr.f32.gmra.mrb[34].mxu1 %v3354_v63  ;;  %11300 = vmatprep.mubr.msk.f32.mxu0 %vm13528_vm0, %v15048_v38  ;;  %v11108_v0 = vpop.f32.mrb[185].mxu1  ;;  %v4734_v59 = vld [vmem:[%s17731_s3 + $0x8] sm:$0xff]  ;;  %v4253_v63 = vld [vmem:[%s17733_s5 + $0x98] sm:$0xff] }
 0x26d   : > { %v15236_v33 = vadd.f32 %v2604_v41, %v2358_v45  ;;  %11455 = vmatprep.mubr.msk.f32.mxu1 %vm13528_vm0, %v15048_v38  ;;  %4492 = vperm.xlu1 %13506, %v4251_v2   ;;  %v3357_v2 = vld [vmem:[%s13704_s24 + $0xf2] sm:$0xff] }
 0x26e   : > { %v2158_v50 = vpop.f32.mrb[186].mxu0  ;;  %4517 = vperm.xlu0 %13505, %v4256_v31   ;;  %v4260_v31 = vld [vmem:[%s17733_s5 + $0xd0] sm:$0xff] }
 0x26f   : > { %v2359_v4 = vadd.f32 %v2158_v50, %v14761_v10  ;;  %v10956_v42 = vpop.f32.mrb[187].mxu0  ;;  %11301 = vmatmul.mubr.f32.gmra.mrb[36].mxu0 %v2904_v9  ;;  %v2609_v24 = vpop.f32.mrb[186].mxu1  ;;  %v4733_v10 = vld [vmem:[%s17731_s3] sm:$0xff]  ;;  %v2906_v9 = vld [vmem:[%s13704_s24 + $0xf1] sm:$0xff] }
 0x270   : > { %11456 = vmatmul.mubr.f32.gmra.mrb[36].mxu1 %v3355_v46  ;;  %11303 = vmatprep.mubr.msk.f32.mxu0 %vm13528_vm0, %v15048_v38  ;;  %v11111_v27 = vpop.f32.mrb[187].mxu1  ;;  %v13276_v15 = vpack.c.bf16 %v4734_v59, %v4733_v10  ;;  %v3358_v10 = vld [vmem:[%s13704_s24 + $0xfa] sm:$0xff] }
 0x271   : > { %v15252_v44 = vadd.f32 %v2609_v24, %v2359_v4  ;;  %11458 = vmatprep.mubr.msk.f32.mxu1 %vm13528_vm0, %v15048_v38  ;;  %4502 = vperm.xlu1 %13506, %v4253_v63   ;;  %v4262_v59 = vld [vmem:[%s17733_s5 + $0xe0] sm:$0xff] }
 0x272   : > { %v2163_v60 = vpop.f32.mrb[188].mxu0  ;;  %4527 = vperm.xlu0 %13505, %v4258_v13   ;;  %13277 = vmatpush3.bf16.msra.mxu1 %v13276_v15 }
 0x273   : > { %v2360_v45 = vadd.f32 %v2163_v60, %v14770_v16  ;;  %v10959_v21 = vpop.f32.mrb[189].mxu0  ;;  %11304 = vmatmul.mubr.f32.gmra.mrb[38].mxu0 %v2905_v55  ;;  %v2614_v41 = vpop.f32.mrb[188].mxu1  ;;  %v4255_v16 = vld [vmem:[%s17733_s5 + $0xa8] sm:$0xff]  ;;  %13278 = vmatprep.subr.bf16.mxu1 %v13526_v3  ;;  %v2907_v55 = vld [vmem:[%s13704_s24 + $0xf9] sm:$0xff] }
 0x274   : > { %11459 = vmatmul.mubr.f32.gmra.mrb[38].mxu1 %v3356_v53  ;;  %11306 = vmatprep.mubr.msk.f32.mxu0 %vm13528_vm0, %v15048_v38  ;;  %v11114_v0 = vpop.f32.mrb[189].mxu1  ;;  %v2908_v21 = vld [vmem:[%s13704_s24 + $0x101] sm:$0xff] }
 0x275   : > { %v15272_v46 = vadd.f32 %v2614_v41, %v2360_v45  ;;  %11461 = vmatprep.mubr.msk.f32.mxu1 %vm13528_vm0, %v15048_v38  ;;  %4512 = vperm.xlu1 %13506, %v4255_v16   ;;  %v3359_v0 = vld [vmem:[%s13704_s24 + $0x102] sm:$0xff] }
 0x276   : > { %v2168_v50 = vpop.f32.mrb[190].mxu0  ;;  %4537 = vperm.xlu0 %13505, %v4260_v31  }
 0x277   : > { %v2361_v4 = vadd.f32 %v2168_v50, %v14779_v22  ;;  %v10962_v42 = vpop.f32.mrb[191].mxu0  ;;  %11307 = vmatmul.mubr.f32.gmra.mrb[40].mxu0 %v2906_v9  ;;  %v2619_v24 = vpop.f32.mrb[190].mxu1  ;;  %v4257_v22 = vld [vmem:[%s17733_s5 + $0xb8] sm:$0xff]  ;;  %v4264_v9 = vld [vmem:[%s17733_s5 + $0xf0] sm:$0xff] }
 0x278   : > { %11462 = vmatmul.mubr.f32.gmra.mrb[40].mxu1 %v3357_v2  ;;  %11309 = vmatprep.mubr.msk.f32.mxu0 %vm13528_vm0, %v15048_v38  ;;  %v11117_v27 = vpop.f32.mrb[191].mxu1  ;;  %v2909_v42 = vld [vmem:[%s13704_s24 + $0x109] sm:$0xff] }
 0x279   : > { %v15288_v53 = vadd.f32 %v2619_v24, %v2361_v4  ;;  %11464 = vmatprep.mubr.msk.f32.mxu1 %vm13528_vm0, %v15048_v38  ;;  %4522 = vperm.xlu1 %13506, %v4257_v22   ;;  %v3360_v27 = vld [vmem:[%s13704_s24 + $0x10a] sm:$0xff] }
 0x27a   : > { %v2173_v63 = vpop.f32.mrb[192].mxu0  ;;  %4547 = vperm.xlu0 %13505, %v4262_v59  }
 0x27b   : > { %v2362_v60 = vadd.f32 %v2173_v63, %v14788_v28  ;;  %v10965_v15 = vpop.f32.mrb[193].mxu0  ;;  %11310 = vmatmul.mubr.f32.gmra.mrb[42].mxu0 %v2907_v55  ;;  %v2624_v13 = vpop.f32.mrb[192].mxu1  ;;  %v4259_v28 = vld [vmem:[%s17733_s5 + $0xc8] sm:$0xff]  ;;  %v4266_v55 = vld [vmem:[%s17733_s5 + $0x100] sm:$0xff] }
 0x27c   : > { %11465 = vmatmul.mubr.f32.gmra.mrb[42].mxu1 %v3358_v10  ;;  %11312 = vmatprep.mubr.msk.f32.mxu0 %vm13528_vm0, %v15048_v38  ;;  %v11120_v45 = vpop.f32.mrb[193].mxu1  ;;  %v2910_v15 = vld [vmem:[%s13704_s24 + $0x111] sm:$0xff] }
 0x27d   : > { %v15303_v41 = vadd.f32 %v2624_v13, %v2362_v60  ;;  %11467 = vmatprep.mubr.msk.f32.mxu1 %vm13528_vm0, %v15048_v38  ;;  %4532 = vperm.xlu1 %13506, %v4259_v28   ;;  %v3361_v13 = vld [vmem:[%s13704_s24 + $0x112] sm:$0xff] }
 0x27e   : > { %v2178_v2 = vpop.f32.mrb[194].mxu0  ;;  %4557 = vperm.xlu0 %13505, %v4264_v9  }
 0x27f   : > { %v2363_v16 = vadd.f32 %v2178_v2, %v14797_v34  ;;  %v10968_v31 = vpop.f32.mrb[195].mxu0  ;;  %11313 = vmatmul.mubr.f32.gmra.mrb[44].mxu0 %v2908_v21  ;;  %v2629_v50 = vpop.f32.mrb[194].mxu1  ;;  %v4261_v34 = vld [vmem:[%s17733_s5 + $0xd8] sm:$0xff]  ;;  %v4268_v2 = vld [vmem:[%s17733_s5 + $0x110] sm:$0xff] }
 0x280   : > { %11468 = vmatmul.mubr.f32.gmra.mrb[44].mxu1 %v3359_v0  ;;  %11315 = vmatprep.mubr.msk.f32.mxu0 %vm13528_vm0, %v15048_v38  ;;  %v11123_v4 = vpop.f32.mrb[195].mxu1  ;;  %v4736_v21 = vld [vmem:[%s17731_s3 + $0x18] sm:$0xff]  ;;  %v4263_v0 = vld [vmem:[%s17733_s5 + $0xe8] sm:$0xff] }
 0x281   : > { %v15318_v24 = vadd.f32 %v2629_v50, %v2363_v16  ;;  %11470 = vmatprep.mubr.msk.f32.mxu1 %vm13528_vm0, %v15048_v38  ;;  %4542 = vperm.xlu1 %13506, %v4261_v34   ;;  %v3362_v34 = vld [vmem:[%s13704_s24 + $0x11a] sm:$0xff] }
 0x282   : > { %v2183_v10 = vpop.f32.mrb[196].mxu0  ;;  %4567 = vperm.xlu0 %13505, %v4266_v55   ;;  %v4270_v55 = vld [vmem:[%s17733_s5 + $0x120] sm:$0xff] }
 0x283   : > { %v2364_v22 = vadd.f32 %v2183_v10, %v14806_v40  ;;  %v10971_v59 = vpop.f32.mrb[197].mxu0  ;;  %11316 = vmatmul.mubr.f32.gmra.mrb[46].mxu0 %v2909_v42  ;;  %v2634_v63 = vpop.f32.mrb[196].mxu1  ;;  %v4735_v40 = vld [vmem:[%s17731_s3 + $0x10] sm:$0xff]  ;;  %v2911_v42 = vld [vmem:[%s13704_s24 + $0x119] sm:$0xff] }
 0x284   : > { %11471 = vmatmul.mubr.f32.gmra.mrb[46].mxu1 %v3360_v27  ;;  %11318 = vmatprep.mubr.msk.f32.mxu0 %vm13528_vm0, %v15048_v38  ;;  %v11126_v60 = vpop.f32.mrb[197].mxu1  ;;  %v13279_v9 = vpack.c.bf16 %v4736_v21, %v4735_v40  ;;  %v3363_v40 = vld [vmem:[%s13704_s24 + $0x122] sm:$0xff]  ;;  %v4272_v21 = vld [vmem:[%s17733_s5 + $0x130] sm:$0xff] }
 0x285   : > { %v15334_v45 = vadd.f32 %v2634_v63, %v2364_v22  ;;  %11473 = vmatprep.mubr.msk.f32.mxu1 %vm13528_vm0, %v15048_v38  ;;  %4552 = vperm.xlu1 %13506, %v4263_v0  }
 0x286   : > { %v2188_v28 = vpop.f32.mrb[198].mxu0  ;;  %4577 = vperm.xlu0 %13505, %v4268_v2   ;;  %13280 = vmatpush3.bf16.msra.mxu1 %v13279_v9 }
 0x287   : > { %v2365_v16 = vadd.f32 %v2188_v28, %v14815_v8  ;;  %v10974_v31 = vpop.f32.mrb[199].mxu0  ;;  %11319 = vmatmul.mubr.f32.gmra.mrb[48].mxu0 %v2910_v15  ;;  %v2639_v50 = vpop.f32.mrb[198].mxu1  ;;  %v4265_v8 = vld [vmem:[%s17733_s5 + $0xf8] sm:$0xff]  ;;  %13281 = vmatprep.subr.bf16.mxu1 %v13526_v3  ;;  %v2912_v15 = vld [vmem:[%s13704_s24 + $0x121] sm:$0xff] }
 0x288   : > { %11474 = vmatmul.mubr.f32.gmra.mrb[48].mxu1 %v3361_v13  ;;  %11321 = vmatprep.mubr.msk.f32.mxu0 %vm13528_vm0, %v15048_v38  ;;  %v11129_v4 = vpop.f32.mrb[199].mxu1  ;;  %v2913_v31 = vld [vmem:[%s13704_s24 + $0x129] sm:$0xff] }
 0x289   : > { %v15354_v27 = vadd.f32 %v2639_v50, %v2365_v16  ;;  %11476 = vmatprep.mubr.msk.f32.mxu1 %vm13528_vm0, %v15048_v38  ;;  %4562 = vperm.xlu1 %13506, %v4265_v8   ;;  %v3364_v4 = vld [vmem:[%s13704_s24 + $0x12a] sm:$0xff] }
 0x28a   : > { %v2193_v10 = vpop.f32.mrb[200].mxu0  ;;  %4587 = vperm.xlu0 %13505, %v4270_v55  }
 0x28b   : > { %v2366_v22 = vadd.f32 %v2193_v10, %v14824_v52  ;;  %v10977_v59 = vpop.f32.mrb[201].mxu0  ;;  %11322 = vmatmul.mubr.f32.gmra.mrb[50].mxu0 %v2911_v42  ;;  %v2644_v63 = vpop.f32.mrb[200].mxu1  ;;  %v4267_v52 = vld [vmem:[%s17733_s5 + $0x108] sm:$0xff]  ;;  %v4274_v42 = vld [vmem:[%s17733_s5 + $0x140] sm:$0xff] }
 0x28c   : > { %11477 = vmatmul.mubr.f32.gmra.mrb[50].mxu1 %v3362_v34  ;;  %11324 = vmatprep.mubr.msk.f32.mxu0 %vm13528_vm0, %v15048_v38  ;;  %v11132_v60 = vpop.f32.mrb[201].mxu1  ;;  %v2914_v59 = vld [vmem:[%s13704_s24 + $0x131] sm:$0xff] }
 0x28d   : > { %v15370_v13 = vadd.f32 %v2644_v63, %v2366_v22  ;;  %11479 = vmatprep.mubr.msk.f32.mxu1 %vm13528_vm0, %v15048_v38  ;;  %4572 = vperm.xlu1 %13506, %v4267_v52   ;;  %v3365_v60 = vld [vmem:[%s13704_s24 + $0x132] sm:$0xff] }
 0x28e   : > { %v2198_v0 = vpop.f32.mrb[202].mxu0  ;;  %4597 = vperm.xlu0 %13505, %v4272_v21  }
 0x28f   : > { %v2367_v28 = vadd.f32 %v2198_v0, %v14833_v58  ;;  %v10980_v9 = vpop.f32.mrb[203].mxu0  ;;  %11325 = vmatmul.mubr.f32.gmra.mrb[52].mxu0 %v2912_v15  ;;  %v2649_v2 = vpop.f32.mrb[202].mxu1  ;;  %v4269_v58 = vld [vmem:[%s17733_s5 + $0x118] sm:$0xff] }
 0x290   : > { %11480 = vmatmul.mubr.f32.gmra.mrb[52].mxu1 %v3363_v40  ;;  %11327 = vmatprep.mubr.msk.f32.mxu0 %vm13528_vm0, %v15048_v38  ;;  %v11135_v16 = vpop.f32.mrb[203].mxu1  ;;  %v3366_v9 = vld [vmem:[%s13704_s24 + $0x13a] sm:$0xff] }
 0x291   : > { %v15385_v50 = vadd.f32 %v2649_v2, %v2367_v28  ;;  %11482 = vmatprep.mubr.msk.f32.mxu1 %vm13528_vm0, %v15048_v38  ;;  %4582 = vperm.xlu1 %13506, %v4269_v58   ;;  %v2915_v28 = vld [vmem:[%s13704_s24 + $0x139] sm:$0xff]  ;;  %v4738_v16 = vld [vmem:[%s17731_s3 + $0x28] sm:$0xff] }
 0x292   : > { %v2203_v34 = vpop.f32.mrb[204].mxu0  ;;  %4607 = vperm.xlu0 %13505, %v4274_v42  }
 0x293   : > { %v2368_v8 = vadd.f32 %v2203_v34, %v14842_v1  ;;  %v10983_v55 = vpop.f32.mrb[205].mxu0  ;;  %11328 = vmatmul.mubr.f32.gmra.mrb[54].mxu0 %v2913_v31  ;;  %v2654_v10 = vpop.f32.mrb[204].mxu1  ;;  %v4271_v1 = vld [vmem:[%s17733_s5 + $0x128] sm:$0xff]  ;;  %v4273_v31 = vld [vmem:[%s17733_s5 + $0x138] sm:$0xff] }
 0x294   : > { %11483 = vmatmul.mubr.f32.gmra.mrb[54].mxu1 %v3364_v4  ;;  %11330 = vmatprep.mubr.msk.f32.mxu0 %vm13528_vm0, %v15048_v38  ;;  %v11138_v22 = vpop.f32.mrb[205].mxu1 }
 0x295   : > { %v15400_v63 = vadd.f32 %v2654_v10, %v2368_v8  ;;  %11485 = vmatprep.mubr.msk.f32.mxu1 %vm13528_vm0, %v15048_v38  ;;  %4592 = vperm.xlu1 %13506, %v4271_v1   ;;  %v2916_v10 = vld [vmem:[%s13704_s24 + $0x141] sm:$0xff] }
 0x296   : > { %v2208_v15 = vpop.f32.mrb[206].mxu0 }
 0x297   : > { %v2369_v40 = vadd.f32 %v2208_v15, %v14851_v11  ;;  %v10986_v52 = vpop.f32.mrb[207].mxu0  ;;  %11331 = vmatmul.mubr.f32.gmra.mrb[56].mxu0 %v2914_v59  ;;  %v2659_v21 = vpop.f32.mrb[206].mxu1  ;;  %v4737_v11 = vld [vmem:[%s17731_s3 + $0x20] sm:$0xff] }
 0x298   : > { %11486 = vmatmul.mubr.f32.gmra.mrb[56].mxu1 %v3365_v60  ;;  %11333 = vmatprep.mubr.msk.f32.mxu0 %vm13528_vm0, %v15048_v38  ;;  %v11141_v0 = vpop.f32.mrb[207].mxu1  ;;  %v13282_v58 = vpack.c.bf16 %v4738_v16, %v4737_v11  ;;  %v3367_v59 = vld [vmem:[%s13704_s24 + $0x142] sm:$0xff] }
 0x299   : > { %v15413_v2 = vadd.f32 %v2659_v21, %v2369_v40  ;;  %11488 = vmatprep.mubr.msk.f32.mxu1 %vm13528_vm0, %v15048_v38  ;;  %4602 = vperm.xlu1 %13506, %v4273_v31   ;;  %v2917_v52 = vld [vmem:[%s13704_s24 + $0x149] sm:$0xff]  ;;  %v2918_v31 = vld [vmem:[%s13704_s24 + $0x151] sm:$0xff] }
 0x29a   : > { %v2213_v4 = vpop.f32.mrb[208].mxu0  ;;  %13283 = vmatpush3.bf16.msra.mxu1 %v13282_v58  ;;  %v3368_v0 = vld [vmem:[%s13704_s24 + $0x14a] sm:$0xff]  ;;  %v3369_v58 = vld [vmem:[%s13704_s24 + $0x152] sm:$0xff] }
 0x29b   : > { %v2370_v42 = vadd.f32 %v2213_v4, %v14860_v18  ;;  %v10989_v34 = vpop.f32.mrb[209].mxu0  ;;  %11334 = vmatmul.mubr.f32.gmra.mrb[58].mxu0 %v2915_v28  ;;  %v2664_v8 = vpop.f32.mrb[208].mxu1  ;;  %13284 = vmatprep.subr.bf16.mxu1 %v13526_v3 }
 0x29c   : > { %11489 = vmatmul.mubr.f32.gmra.mrb[58].mxu1 %v3366_v9  ;;  %11336 = vmatprep.mubr.msk.f32.mxu0 %vm13528_vm0, %v15048_v38  ;;  %v11144_v55 = vpop.f32.mrb[209].mxu1 }
 0x29d   : > { %v15430_v22 = vadd.f32 %v2664_v8, %v2370_v42  ;;  %11491 = vmatprep.mubr.msk.f32.mxu1 %vm13528_vm0, %v15048_v38 }
 0x29e   : > { %v2218_v60 = vpop.f32.mrb[210].mxu0 }
 0x29f   : > { %v2371_v18 = vadd.f32 %v2218_v60, %v14869_v25  ;;  %v10992_v1 = vpop.f32.mrb[211].mxu0  ;;  %11337 = vmatmul.mubr.f32.gmra.mrb[60].mxu0 %v2916_v10  ;;  %v2669_v15 = vpop.f32.mrb[210].mxu1 }
 0x2a0   : > { %11492 = vmatmul.mubr.f32.gmra.mrb[60].mxu1 %v3367_v59  ;;  %11339 = vmatprep.mubr.msk.f32.mxu0 %vm13528_vm0, %v15048_v38  ;;  %v11147_v40 = vpop.f32.mrb[211].mxu1  ;;  %v3370_v59 = vld [vmem:[%s13704_s24 + $0x15a] sm:$0xff] }
 0x2a1   : > { %v15440_v21 = vadd.f32 %v2669_v15, %v2371_v18  ;;  %11494 = vmatprep.mubr.msk.f32.mxu1 %vm13528_vm0, %v15048_v38  ;;  %v13510_v1 = vld [vmem:[%s13704_s24 + $0x159] sm:$0xff] }
 0x2a2   : > { %v2223_v28 = vpop.f32.mrb[212].mxu0 }
 0x2a3   : > { %v2372_v25 = vadd.f32 %v2223_v28, %v14878_v32  ;;  %v10995_v9 = vpop.f32.mrb[213].mxu0  ;;  %11340 = vmatmul.mubr.f32.gmra.mrb[62].mxu0 %v2917_v52  ;;  %v2674_v11 = vpop.f32.mrb[212].mxu1  ;;  %v2920_v52 = vld [vmem:[%s13704_s24 + $0x161] sm:$0xff] }
 0x2a4   : > { %11495 = vmatmul.mubr.f32.gmra.mrb[62].mxu1 %v3368_v0  ;;  %11342 = vmatprep.mubr.msk.f32.mxu0 %vm13528_vm0, %v15048_v38  ;;  %v11150_v16 = vpop.f32.mrb[213].mxu1  ;;  %v3371_v28 = vld [vmem:[%s13704_s24 + $0x162] sm:$0xff] }
 0x2a5   : > { %v15449_v4 = vadd.f32 %v2674_v11, %v2372_v25  ;;  %11497 = vmatprep.mubr.msk.f32.mxu1 %vm13528_vm0, %v15048_v38  ;;  %v4739_v16 = vld [vmem:[%s17731_s3 + $0x30] sm:$0xff] }
 0x2a6   : > { %v2228_v42 = vpop.f32.mrb[214].mxu0 }
 0x2a7   : > { %v2373_v32 = vadd.f32 %v2228_v42, %v14887_v39  ;;  %v10998_v34 = vpop.f32.mrb[215].mxu0  ;;  %11343 = vmatmul.mubr.f32.gmra.mrb[64].mxu0 %v2918_v31  ;;  %v2679_v8 = vpop.f32.mrb[214].mxu1  ;;  %v4740_v31 = vld [vmem:[%s17731_s3 + $0x38] sm:$0xff]  ;;  %v2921_v42 = vld [vmem:[%s13704_s24 + $0x169] sm:$0xff] }
 0x2a8   : > { %11498 = vmatmul.mubr.f32.gmra.mrb[64].mxu1 %v3369_v58  ;;  %11345 = vmatprep.mubr.msk.f32.mxu0 %vm13528_vm0, %v15048_v38  ;;  %v11153_v55 = vpop.f32.mrb[215].mxu1  ;;  %v3372_v34 = vld [vmem:[%s13704_s24 + $0x16a] sm:$0xff] }
 0x2a9   : > { %v15457_v10 = vadd.f32 %v2679_v8, %v2373_v32  ;;  %11500 = vmatprep.mubr.msk.f32.mxu1 %vm13528_vm0, %v15048_v38  ;;  %v13285_v32 = vpack.c.bf16 %v4740_v31, %v4739_v16 }
 0x2aa   : > { %v2233_v60 = vpop.f32.mrb[216].mxu0 }
 0x2ab   : > { %v2374_v18 = vadd.f32 %v2233_v60, %v14896_v47  ;;  %v11001_v39 = vpop.f32.mrb[217].mxu0  ;;  %11346 = vmatmul.mubr.f32.gmra.mrb[66].mxu0 %v13510_v1  ;;  %v2684_v15 = vpop.f32.mrb[216].mxu1  ;;  %13286 = vmatpush3.bf16.msra.mxu1 %v13285_v32 }
 0x2ac   : > { %11501 = vmatmul.mubr.f32.gmra.mrb[66].mxu1 %v3370_v59  ;;  %11348 = vmatprep.mubr.msk.f32.mxu0 %vm13528_vm0, %v15048_v38  ;;  %v11156_v40 = vpop.f32.mrb[217].mxu1  ;;  %v3783_v39 = vld [vmem:[%s13704_s24 + $0x2b] sm:$0xff] }
 0x2ad   : > { %v15467_v0 = vadd.f32 %v2684_v15, %v2374_v18  ;;  %11503 = vmatprep.mubr.msk.f32.mxu1 %vm13528_vm0, %v15048_v38  ;;  %13287 = vmatprep.subr.bf16.mxu1 %v13526_v3 }
 0x2ae   : > { %v2238_v25 = vpop.f32.mrb[218].mxu0 }
 0x2af   : > { %v2375_v47 = vadd.f32 %v2238_v25, %v14905_v54  ;;  %v11004_v9 = vpop.f32.mrb[219].mxu0  ;;  %11349 = vmatmul.mubr.f32.gmra.mrb[68].mxu0 %v2920_v52  ;;  %v2689_v11 = vpop.f32.mrb[218].mxu1  ;;  %v3784_v25 = vld [vmem:[%s13704_s24 + $0x33] sm:$0xff] }
 0x2b0   : > { %11504 = vmatmul.mubr.f32.gmra.mrb[68].mxu1 %v3371_v28  ;;  %11351 = vmatprep.mubr.msk.f32.mxu0 %vm13528_vm0, %v15048_v38  ;;  %v11159_v58 = vpop.f32.mrb[219].mxu1 }
 0x2b1   : > { %v15482_v54 = vadd.f32 %v2689_v11, %v2375_v47  ;;  %11506 = vmatprep.mubr.msk.f32.mxu1 %vm13528_vm0, %v15048_v38  ;;  %v3785_v58 = vld [vmem:[%s13704_s24 + $0x3b] sm:$0xff] }
 0x2b2   : > { %v2243_v8 = vpop.f32.mrb[220].mxu0 }
 0x2b3   : > { %v2376_v55 = vadd.f32 %v2243_v8, %v14920_v49  ;;  %v11007_v59 = vpop.f32.mrb[221].mxu0  ;;  %11352 = vmatmul.mubr.f32.gmra.mrb[70].mxu0 %v2921_v42  ;;  %v2694_v60 = vpop.f32.mrb[220].mxu1 }
 0x2b4   : > { %11507 = vmatmul.mubr.f32.gmra.mrb[70].mxu1 %v3372_v34  ;;  %11541 = vmatprep.mubr.msk.f32.mxu0 %vm13528_vm0, %v15048_v38  ;;  %v11162_v18 = vpop.f32.mrb[221].mxu1  ;;  %v15509_v59 = vld [vmem:[#allocation3] sm:$0xff] }
 0x2b5   : > { %v15492_v1 = vadd.f32 %v2694_v60, %v2376_v55  ;;  %11696 = vmatprep.mubr.msk.f32.mxu1 %vm13528_vm0, %v15048_v38  ;;  %v3786_v60 = vld [vmem:[%s13704_s24 + $0x43] sm:$0xff] }
 0x2b6   : > { %v2248_v15 = vpop.f32.mrb[222].mxu0 }
 0x2b7   : > { %v2377_v49 = vadd.f32 %v2248_v15, %v14933_v14  ;;  %v11010_v40 = vpop.f32.mrb[223].mxu0  ;;  %11542 = vmatmul.mubr.f32.vlgmr.msra.gmra.mrb[72].mxu0 %v3783_v39  ;;  %v2699_v52 = vpop.f32.mrb[222].mxu1 }
 0x2b8   : > { %11544 = vmatprep.mubr.msk.f32.mxu0 %vm13528_vm0, %v15048_v38  ;;  %v11165_v28 = vpop.f32.mrb[223].mxu1  ;;  %v4742_v40 = vld [vmem:[%s17731_s3 + $0x48] sm:$0xff] }
 0x2b9   : > { %v15500_v47 = vadd.f32 %v2699_v52, %v2377_v49  ;;  %v3787_v28 = vld [vmem:[%s13704_s24 + $0x4b] sm:$0xff] }
 0x2ba   : > { %v2253_v9 = vpop.f32.mrb[224].mxu0 }
 0x2bb   : > { %v2378_v11 = vadd.f32 %v2253_v9, %v14951_v26  ;;  %v11013_v16 = vpop.f32.mrb[225].mxu0  ;;  %11545 = vmatmul.mubr.f32.gmra.mrb[74].mxu0 %v3784_v25  ;;  %v2704_v31 = vpop.f32.mrb[224].mxu1 }
 0x2bc   : > { %11547 = vmatprep.mubr.msk.f32.mxu0 %vm13528_vm0, %v15048_v38  ;;  %v11168_v14 = vpop.f32.mrb[225].mxu1 }
 0x2bd   : > { %v15506_v42 = vadd.f32 %v2704_v31, %v2378_v11 }
 0x2be   : > { %v2258_v32 = vpop.f32.mrb[226].mxu0 }
 0x2bf   : > { %v2379_v34 = vadd.f32 %v2258_v32, %v14967_v12  ;;  %v11016_v8 = vpop.f32.mrb[227].mxu0  ;;  %11548 = vmatmul.mubr.f32.gmra.mrb[76].mxu0 %v3785_v58  ;;  %v2709_v55 = vpop.f32.mrb[226].mxu1  ;;  %v4741_v12 = vld [vmem:[%s17731_s3 + $0x40] sm:$0xff]  ;;  %v3788_v58 = vld [vmem:[%s13704_s24 + $0x53] sm:$0xff] }
 0x2c0   : > { %11550 = vmatprep.mubr.msk.f32.mxu0 %vm13528_vm0, %v15509_v59  ;;  %v11171_v26 = vpop.f32.mrb[227].mxu1  ;;  %v13288_v25 = vpack.c.bf16 %v4742_v40, %v4741_v12  ;;  %v3790_v40 = vld [vmem:[%s13704_s24 + $0x63] sm:$0xff] }
 0x2c1   : > { %v15514_v18 = vadd.f32 %v2709_v55, %v2379_v34 }
 0x2c2   : > { %v2263_v38 = vpop.f32.mrb[228].mxu0  ;;  %13289 = vmatpush3.bf16.msra.mxu1 %v13288_v25 }
 0x2c3   : > { %v2380_v39 = vadd.f32 %v2263_v38, %v14983_v62  ;;  %v11019_v15 = vpop.f32.mrb[229].mxu0  ;;  %11551 = vmatmul.mubr.f32.gmra.mrb[78].mxu0 %v3786_v60  ;;  %v2714_v49 = vpop.f32.mrb[228].mxu1  ;;  %13290 = vmatprep.subr.bf16.mxu1 %v13526_v3  ;;  %v3789_v60 = vld [vmem:[%s13704_s24 + $0x5b] sm:$0xff] }
 0x2c4   : > { %11553 = vmatprep.mubr.msk.f32.mxu0 %vm13528_vm0, %v15509_v59  ;;  %v11174_v52 = vpop.f32.mrb[229].mxu1 }
 0x2c5   : > { %v15526_v9 = vadd.f32 %v2714_v49, %v2380_v39 }
 0x2c6   : > { %v2268_v62 = vpop.f32.mrb[230].mxu0 }
 0x2c7   : > { %v2381_v11 = vadd.f32 %v2268_v62, %v14999_v6  ;;  %v11022_v16 = vpop.f32.mrb[231].mxu0  ;;  %11554 = vmatmul.mubr.f32.gmra.mrb[80].mxu0 %v3787_v28  ;;  %v2719_v31 = vpop.f32.mrb[230].mxu1 }
 0x2c8   : > { %11556 = vmatprep.mubr.msk.f32.mxu0 %vm13528_vm0, %v15509_v59  ;;  %v11177_v14 = vpop.f32.mrb[231].mxu1  ;;  %v3791_v16 = vld [vmem:[%s13704_s24 + $0x6b] sm:$0xff] }
 0x2c9   : > { %v15533_v32 = vadd.f32 %v2719_v31, %v2381_v11 }
 0x2ca   : > { %v2273_v34 = vpop.f32.mrb[232].mxu0 }
 0x2cb   : > { %v2382_v8 = vadd.f32 %v2273_v34, %v15015_v37  ;;  %v11025_v55 = vpop.f32.mrb[233].mxu0  ;;  %11557 = vmatmul.mubr.f32.gmra.mrb[82].mxu0 %v3788_v58  ;;  %v2724_v6 = vpop.f32.mrb[232].mxu1 }
 0x2cc   : > { %11559 = vmatprep.mubr.msk.f32.mxu0 %vm13528_vm0, %v15509_v59  ;;  %v11180_v26 = vpop.f32.mrb[233].mxu1  ;;  %v4744_v55 = vld [vmem:[%s17731_s3 + $0x58] sm:$0xff] }
 0x2cd   : > { %v15539_v38 = vadd.f32 %v2724_v6, %v2382_v8  ;;  %v3792_v26 = vld [vmem:[%s13704_s24 + $0x73] sm:$0xff] }
 0x2ce   : > { %v2278_v39 = vpop.f32.mrb[234].mxu0 }
 0x2cf   : > { %v2383_v15 = vadd.f32 %v2278_v39, %v15031_v61  ;;  %v11028_v49 = vpop.f32.mrb[235].mxu0  ;;  %11560 = vmatmul.mubr.f32.gmra.mrb[84].mxu0 %v3789_v60  ;;  %v2729_v12 = vpop.f32.mrb[234].mxu1 }
 0x2d0   : > { %11562 = vmatprep.mubr.msk.f32.mxu0 %vm13528_vm0, %v15509_v59  ;;  %v11183_v37 = vpop.f32.mrb[235].mxu1 }
 0x2d1   : > { %v15545_v52 = vadd.f32 %v2729_v12, %v2383_v15 }
 0x2d2   : > { %v2283_v28 = vpop.f32.mrb[236].mxu0 }
 0x2d3   : > { %v2384_v25 = vadd.f32 %v2283_v28, %v15041_v29  ;;  %v11031_v62 = vpop.f32.mrb[237].mxu0  ;;  %11563 = vmatmul.mubr.f32.gmra.mrb[86].mxu0 %v3790_v40  ;;  %v2734_v11 = vpop.f32.mrb[236].mxu1  ;;  %v4743_v29 = vld [vmem:[%s17731_s3 + $0x50] sm:$0xff]  ;;  %v3793_v40 = vld [vmem:[%s13704_s24 + $0x7b] sm:$0xff] }
 0x2d4   : > { %11565 = vmatprep.mubr.msk.f32.mxu0 %vm13528_vm0, %v15509_v59  ;;  %v11186_v61 = vpop.f32.mrb[237].mxu1  ;;  %v13291_v60 = vpack.c.bf16 %v4744_v55, %v4743_v29  ;;  %v3795_v55 = vld [vmem:[%s13704_s24 + $0x8b] sm:$0xff] }
 0x2d5   : > { %v15551_v31 = vadd.f32 %v2734_v11, %v2384_v25 }
 0x2d6   : > { %v2288_v14 = vpop.f32.mrb[238].mxu0  ;;  %13292 = vmatpush3.bf16.msra.mxu1 %v13291_v60 }
 0x2d7   : > { %v2385_v58 = vadd.f32 %v2288_v14, %v15053_v57  ;;  %v11034_v34 = vpop.f32.mrb[239].mxu0  ;;  %11566 = vmatmul.mubr.f32.gmra.mrb[88].mxu0 %v3791_v16  ;;  %v2739_v8 = vpop.f32.mrb[238].mxu1  ;;  %13293 = vmatprep.subr.bf16.mxu1 %v13526_v3  ;;  %v3794_v16 = vld [vmem:[%s13704_s24 + $0x83] sm:$0xff] }
 0x2d8   : > { %11568 = vmatprep.mubr.msk.f32.mxu0 %vm13528_vm0, %v15509_v59  ;;  %v11189_v6 = vpop.f32.mrb[239].mxu1 }
 0x2d9   : > { %v15563_v39 = vadd.f32 %v2739_v8, %v2385_v58 }
 0x2da   : > { %v2293_v57 = vpop.f32.mrb[240].mxu0 }
 0x2db   : > { %v2386_v15 = vadd.f32 %v2293_v57, %v15062_v17  ;;  %v11037_v49 = vpop.f32.mrb[241].mxu0  ;;  %11569 = vmatmul.mubr.f32.gmra.mrb[90].mxu0 %v3792_v26  ;;  %v2744_v12 = vpop.f32.mrb[240].mxu1 }
 0x2dc   : > { %11571 = vmatprep.mubr.msk.f32.mxu0 %vm13528_vm0, %v15509_v59  ;;  %v11192_v37 = vpop.f32.mrb[241].mxu1  ;;  %v3796_v49 = vld [vmem:[%s13704_s24 + $0x93] sm:$0xff] }
 0x2dd   : > { %v15570_v28 = vadd.f32 %v2744_v12, %v2386_v15 }
 0x2de   : > { %v2298_v25 = vpop.f32.mrb[242].mxu0 }
 0x2df   : > { %v2387_v62 = vadd.f32 %v2298_v25, %v15071_v30  ;;  %v11040_v11 = vpop.f32.mrb[243].mxu0  ;;  %11572 = vmatmul.mubr.f32.gmra.mrb[92].mxu0 %v3793_v40  ;;  %v2749_v17 = vpop.f32.mrb[242].mxu1 }
 0x2e0   : > { %11574 = vmatprep.mubr.msk.f32.mxu0 %vm13528_vm0, %v15509_v59  ;;  %v11195_v61 = vpop.f32.mrb[243].mxu1  ;;  %v4746_v11 = vld [vmem:[%s17731_s3 + $0x68] sm:$0xff] }
 0x2e1   : > { %v15576_v14 = vadd.f32 %v2749_v17, %v2387_v62  ;;  %v3797_v61 = vld [vmem:[%s13704_s24 + $0x9b] sm:$0xff] }
 0x2e2   : > { %v2303_v58 = vpop.f32.mrb[244].mxu0 }
 0x2e3   : > { %v2388_v34 = vadd.f32 %v2303_v58, %v15080_v56  ;;  %v11043_v8 = vpop.f32.mrb[245].mxu0  ;;  %11575 = vmatmul.mubr.f32.gmra.mrb[94].mxu0 %v3794_v16  ;;  %v2754_v29 = vpop.f32.mrb[244].mxu1 }
 0x2e4   : > { %11577 = vmatprep.mubr.msk.f32.mxu0 %vm13528_vm0, %v15509_v59  ;;  %v11198_v30 = vpop.f32.mrb[245].mxu1 }
 0x2e5   : > { %v15582_v6 = vadd.f32 %v2754_v29, %v2388_v34 }
 0x2e6   : > { %v3005_v26 = vpop.f32.mrb[246].mxu0 }
 0x2e7   : > { %v3250_v60 = vadd.f32 %v3005_v26, %v15092_v19  ;;  %v11233_v57 = vpop.f32.mrb[247].mxu0  ;;  %11578 = vmatmul.mubr.f32.gmra.mrb[96].mxu0 %v3795_v55  ;;  %v3456_v15 = vpop.f32.mrb[246].mxu1  ;;  %v4745_v19 = vld [vmem:[%s17731_s3 + $0x60] sm:$0xff] }
 0x2e8   : > { %11580 = vmatprep.mubr.msk.f32.mxu0 %vm13528_vm0, %v15509_v59  ;;  %v11388_v56 = vpop.f32.mrb[247].mxu1  ;;  %v13294_v16 = vpack.c.bf16 %v4746_v11, %v4745_v19  ;;  %v3798_v55 = vld [vmem:[%s13704_s24 + $0xa3] sm:$0xff]  ;;  %v9115_v11 = vld [vmem:[%s17731_s3 + $0x98] sm:$0xff] }
 0x2e9   : > { %v15588_v12 = vadd.f32 %v3456_v15, %v3250_v60  ;;  %v9112_v57 = vld [vmem:[%s17731_s3 + $0x80] sm:$0xff] }
 0x2ea   : > { %v3010_v37 = vpop.f32.mrb[248].mxu0  ;;  %13295 = vmatpush3.bf16.msra.mxu1 %v13294_v16 }
 0x2eb   : > { %v3251_v40 = vadd.f32 %v3010_v37, %v15104_v51  ;;  %v11236_v25 = vpop.f32.mrb[249].mxu0  ;;  %11581 = vmatmul.mubr.f32.gmra.mrb[98].mxu0 %v3796_v49  ;;  %v3461_v62 = vpop.f32.mrb[248].mxu1  ;;  %13296 = vmatprep.subr.bf16.mxu1 %v13526_v3 }
 0x2ec   : > { %11583 = vmatprep.mubr.msk.f32.mxu0 %vm13528_vm0, %v15509_v59  ;;  %v11391_v17 = vpop.f32.mrb[249].mxu1  ;;  %v3799_v25 = vld [vmem:[%s13704_s24 + $0xab] sm:$0xff] }
 0x2ed   : > { %v15600_v58 = vadd.f32 %v3461_v62, %v3251_v40 }
 0x2ee   : > { %v3015_v51 = vpop.f32.mrb[250].mxu0 }
 0x2ef   : > { %v3252_v34 = vadd.f32 %v3015_v51, %v15116_v7  ;;  %v11239_v8 = vpop.f32.mrb[251].mxu0  ;;  %11584 = vmatmul.mubr.f32.gmra.mrb[100].mxu0 %v3797_v61  ;;  %v3466_v29 = vpop.f32.mrb[250].mxu1  ;;  %v9113_v7 = vld [vmem:[%s17731_s3 + $0x88] sm:$0xff] }
 0x2f0   : > { %11586 = vmatprep.mubr.msk.f32.mxu0 %vm13528_vm0, %v15509_v59  ;;  %v11394_v30 = vpop.f32.mrb[251].mxu1  ;;  %v13300_v37 = vpack.c.bf16 %v9113_v7, %v9112_v57  ;;  %v3800_v8 = vld [vmem:[%s13704_s24 + $0xb3] sm:$0xff] }
 0x2f1   : > { %v15607_v26 = vadd.f32 %v3466_v29, %v3252_v34 }
 0x2f2   : > { %v3020_v60 = vpop.f32.mrb[252].mxu0  ;;  %13301 = vmatpush3.bf16.msra.mxu0 %v13300_v37 }
 0x2f3   : > { %v3253_v15 = vadd.f32 %v3020_v60, %v15131_v43  ;;  %v11242_v56 = vpop.f32.mrb[253].mxu0  ;;  %11587 = vmatmul.mubr.f32.gmra.mrb[102].mxu0 %v3798_v55  ;;  %v3471_v49 = vpop.f32.mrb[252].mxu1  ;;  %13302 = vmatprep.subr.bf16.mxu0 %v13526_v3  ;;  %v9114_v43 = vld [vmem:[%s17731_s3 + $0x90] sm:$0xff]  ;;  %v9117_v55 = vld [vmem:[%s17731_s3 + $0xa8] sm:$0xff] }
 0x2f4   : > { %11589 = vmatprep.mubr.msk.f32.mxu0 %vm13528_vm0, %v15509_v59  ;;  %v11397_v40 = vpop.f32.mrb[253].mxu1  ;;  %v13303_v51 = vpack.c.bf16 %v9115_v11, %v9114_v43 }
 0x2f5   : > { %v15619_v62 = vadd.f32 %v3471_v49, %v3253_v15  ;;  %v3801_v49 = vld [vmem:[%s13704_s24 + $0xbb] sm:$0xff] }
 0x2f6   : > { %v3025_v19 = vpop.f32.mrb[254].mxu0  ;;  %13304 = vmatpush3.bf16.msra.mxu0 %v13303_v51 }
 0x2f7   : > { %v3254_v17 = vadd.f32 %v3025_v19, %v15146_v23  ;;  %v11245_v61 = vpop.f32.mrb[255].mxu0  ;;  %11590 = vmatmul.mubr.f32.gmra.mrb[104].mxu0 %v3799_v25  ;;  %v3476_v16 = vpop.f32.mrb[254].mxu1  ;;  %13305 = vmatprep.subr.bf16.mxu0 %v13526_v3  ;;  %v9116_v23 = vld [vmem:[%s17731_s3 + $0xa0] sm:$0xff]  ;;  %v9119_v25 = vld [vmem:[%s17731_s3 + $0xb8] sm:$0xff] }
 0x2f8   : > { %11592 = vmatprep.mubr.msk.f32.mxu0 %vm13528_vm0, %v15509_v59  ;;  %v11400_v34 = vpop.f32.mrb[255].mxu1  ;;  %v13306_v15 = vpack.c.bf16 %v9117_v55, %v9116_v23  ;;  %v9120_v23 = vld [vmem:[%s17731_s3 + $0xc0] sm:$0xff]  ;;  %v9121_v55 = vld [vmem:[%s17731_s3 + $0xc8] sm:$0xff] }
 0x2f9   : > { %v15632_v29 = vadd.f32 %v3476_v16, %v3254_v17  ;;  %v3802_v16 = vld [vmem:[%s13704_s24 + $0xc3] sm:$0xff]  ;;  %v4747_v34 = vld [vmem:[%s17731_s3 + $0x70] sm:$0xff] }
 0x2fa   : > { %v3030_v30 = vpop.f32.mrb[0].mxu0  ;;  %13307 = vmatpush3.bf16.msra.mxu0 %v13306_v15  ;;  %v13312_v15 = vpack.c.bf16 %v9121_v55, %v9120_v23 }
 0x2fb   : > { %v3255_v60 = vadd.f32 %v3030_v30, %v15161_v20  ;;  %v11248_v57 = vpop.f32.mrb[1].mxu0  ;;  %11593 = vmatmul.mubr.f32.gmra.mrb[106].mxu0 %v3800_v8  ;;  %v3481_v7 = vpop.f32.mrb[0].mxu1  ;;  %13308 = vmatprep.subr.bf16.mxu0 %v13526_v3  ;;  %v9118_v20 = vld [vmem:[%s17731_s3 + $0xb0] sm:$0xff] }
 0x2fc   : > { %11595 = vmatprep.mubr.msk.f32.mxu0 %vm13528_vm0, %v15509_v59  ;;  %v11403_v56 = vpop.f32.mrb[1].mxu1  ;;  %v13309_v17 = vpack.c.bf16 %v9119_v25, %v9118_v20  ;;  %v9123_v25 = vld [vmem:[%s17731_s3 + $0xd8] sm:$0xff] }
 0x2fd   : > { %v15645_v37 = vadd.f32 %v3481_v7, %v3255_v60 }
 0x2fe   : > { %v3035_v40 = vpop.f32.mrb[2].mxu0  ;;  %13310 = vmatpush3.bf16.msra.mxu0 %v13309_v17 }
 0x2ff   : > { %v3256_v19 = vadd.f32 %v3035_v40, %v15176_v48  ;;  %v11251_v43 = vpop.f32.mrb[3].mxu0  ;;  %11596 = vmatmul.mubr.f32.gmra.mrb[108].mxu0 %v3801_v49  ;;  %v3486_v11 = vpop.f32.mrb[2].mxu1  ;;  %v4748_v48 = vld [vmem:[%s17731_s3 + $0x78] sm:$0xff]  ;;  %13311 = vmatprep.subr.bf16.mxu0 %v13526_v3  ;;  %v3803_v49 = vld [vmem:[%s13704_s24 + $0xcb] sm:$0xff] }
 0x300   : > { %11598 = vmatprep.mubr.msk.f32.mxu0 %vm13528_vm0, %v15509_v59  ;;  %v11406_v61 = vpop.f32.mrb[3].mxu1  ;;  %v13297_v30 = vpack.c.bf16 %v4748_v48, %v4747_v34 }
 0x301   : > { %v15658_v51 = vadd.f32 %v3486_v11, %v3256_v19 }
 0x302   : > { %v3040_v8 = vpop.f32.mrb[4].mxu0  ;;  %13298 = vmatpush3.bf16.msra.mxu1 %v13297_v30  ;;  %13313 = vmatpush3.bf16.msra.mxu0 %v13312_v15 }
 0x303   : > { %v3257_v60 = vadd.f32 %v3040_v8, %v15191_v5  ;;  %v11254_v57 = vpop.f32.mrb[5].mxu0  ;;  %11599 = vmatmul.mubr.f32.gmra.mrb[110].mxu0 %v3802_v16  ;;  %v3491_v7 = vpop.f32.mrb[4].mxu1  ;;  %13323 = vmatprep.subr.bf16.mxu1 %v13526_v3  ;;  %v9122_v5 = vld [vmem:[%s17731_s3 + $0xd0] sm:$0xff]  ;;  %v9125_v8 = vld [vmem:[%s17731_s3 + $0xe8] sm:$0xff] }
 0x304   : > { %11601 = vmatprep.mubr.msk.f32.mxu0 %vm13528_vm0, %v15509_v59  ;;  %v11409_v56 = vpop.f32.mrb[5].mxu1  ;;  %13314 = vmatprep.subr.bf16.mxu0 %v13526_v3  ;;  %v13315_v17 = vpack.c.bf16 %v9123_v25, %v9122_v5  ;;  %v3804_v16 = vld [vmem:[%s13704_s24 + $0xd3] sm:$0xff] }
 0x305   : > { %v15677_v40 = vadd.f32 %v3491_v7, %v3257_v60  ;;  %v3805_v7 = vld [vmem:[%s13704_s24 + $0xdb] sm:$0xff] }
 0x306   : > { %v3045_v20 = vpop.f32.mrb[6].mxu0  ;;  %13316 = vmatpush3.bf16.msra.mxu0 %v13315_v17 }
 0x307   : > { %v3258_v19 = vadd.f32 %v3045_v20, %v15206_v36  ;;  %v11257_v43 = vpop.f32.mrb[7].mxu0  ;;  %11602 = vmatmul.mubr.f32.gmra.mrb[112].mxu0 %v3803_v49  ;;  %v3496_v11 = vpop.f32.mrb[6].mxu1  ;;  %13317 = vmatprep.subr.bf16.mxu0 %v13526_v3  ;;  %v9124_v36 = vld [vmem:[%s17731_s3 + $0xe0] sm:$0xff]  ;;  %v9127_v49 = vld [vmem:[%s17731_s3 + $0xf8] sm:$0xff] }
 0x308   : > { %11604 = vmatprep.mubr.msk.f32.mxu0 %vm13528_vm0, %v15509_v59  ;;  %v11412_v61 = vpop.f32.mrb[7].mxu1  ;;  %v13318_v60 = vpack.c.bf16 %v9125_v8, %v9124_v36 }
 0x309   : > { %v15691_v34 = vadd.f32 %v3496_v11, %v3258_v19  ;;  %v3806_v11 = vld [vmem:[%s13704_s24 + $0xe3] sm:$0xff] }
 0x30a   : > { %v3050_v48 = vpop.f32.mrb[8].mxu0  ;;  %13319 = vmatpush3.bf16.msra.mxu0 %v13318_v60  ;;  %v4693_v60 = vld [vmem:[#allocation3 + $0xd] sm:$0xff] }
 0x30b   : > { %v3259_v30 = vadd.f32 %v3050_v48, %v15221_v35  ;;  %v11260_v23 = vpop.f32.mrb[9].mxu0  ;;  %11605 = vmatmul.mubr.f32.gmra.mrb[114].mxu0 %v3804_v16  ;;  %v3501_v55 = vpop.f32.mrb[8].mxu1  ;;  %13320 = vmatprep.subr.bf16.mxu0 %v13526_v3  ;;  %v9126_v35 = vld [vmem:[%s17731_s3 + $0xf0] sm:$0xff]  ;;  %v4692_v16 = vld [vmem:[#allocation3 + $0x5] sm:$0xff] }
 0x30c   : > { %11607 = vmatprep.mubr.msk.f32.mxu0 %vm13528_vm0, %v15509_v59  ;;  %v11415_v57 = vpop.f32.mrb[9].mxu1  ;;  %v13321_v19 = vpack.c.bf16 %v9127_v49, %v9126_v35  ;;  %11697 = vmatmul.mubr.f32.vlgmr.msra.gmra.mrb[72].mxu1 %v4692_v16  ;;  %v3808_v35 = vld [vmem:[%s13704_s24 + $0xf3] sm:$0xff] }
 0x30d   : > { %v15704_v15 = vadd.f32 %v3501_v55, %v3259_v30  ;;  %v3807_v30 = vld [vmem:[%s13704_s24 + $0xeb] sm:$0xff]  ;;  %11699 = vmatprep.mubr.msk.f32.mxu1 %vm13528_vm0, %v15509_v59 }
 0x30e   : > { %v3055_v56 = vpop.f32.mrb[10].mxu0  ;;  %13322 = vmatpush3.bf16.msra.mxu0 %v13321_v19  ;;  %v9128_v19 = vld [vmem:[%s17731_s3 + $0x100] sm:$0xff] }
 0x30f   : > { %v3260_v20 = vadd.f32 %v3055_v56, %v15236_v33  ;;  %v11263_v5 = vpop.f32.mrb[11].mxu0  ;;  %11608 = vmatmul.mubr.f32.gmra.mrb[116].mxu0 %v3805_v7  ;;  %v3506_v25 = vpop.f32.mrb[10].mxu1  ;;  %13347 = vmatprep.subr.bf16.mxu0 %v13526_v3 }
 0x310   : > { %11610 = vmatprep.mubr.msk.f32.mxu0 %vm13528_vm0, %v15509_v59  ;;  %v11418_v43 = vpop.f32.mrb[11].mxu1  ;;  %11700 = vmatmul.mubr.f32.gmra.mrb[74].mxu1 %v4693_v60 }
 0x311   : > { %v15717_v17 = vadd.f32 %v3506_v25, %v3260_v20  ;;  %11702 = vmatprep.mubr.msk.f32.mxu1 %vm13528_vm0, %v15509_v59  ;;  %v9129_v43 = vld [vmem:[%s17731_s3 + $0x108] sm:$0xff] }
 0x312   : > { %v3060_v61 = vpop.f32.mrb[12].mxu0  ;;  %v13324_v16 = vpack.c.bf16 %v9129_v43, %v9128_v19  ;;  %v3812_v43 = vld [vmem:[%s13704_s24 + $0x113] sm:$0xff] }
 0x313   : > { %v3261_v48 = vadd.f32 %v3060_v61, %v15252_v44  ;;  %v11266_v33 = vpop.f32.mrb[13].mxu0  ;;  %11611 = vmatmul.mubr.f32.gmra.mrb[118].mxu0 %v3806_v11  ;;  %v3511_v36 = vpop.f32.mrb[12].mxu1  ;;  %v3809_v61 = vld [vmem:[%s13704_s24 + $0xfb] sm:$0xff] }
 0x314   : > { %11613 = vmatprep.mubr.msk.f32.mxu0 %vm13528_vm0, %v15509_v59  ;;  %v11421_v8 = vpop.f32.mrb[13].mxu1  ;;  %13325 = vmatpush3.bf16.msra.mxu1 %v13324_v16 }
 0x315   : > { %v15726_v23 = vadd.f32 %v3511_v36, %v3261_v48  ;;  %13326 = vmatprep.subr.bf16.mxu1 %v13526_v3 }
 0x316   : > { %v3065_v55 = vpop.f32.mrb[14].mxu0 }
 0x317   : > { %v3262_v57 = vadd.f32 %v3065_v55, %v15272_v46  ;;  %v11269_v44 = vpop.f32.mrb[15].mxu0  ;;  %11614 = vmatmul.mubr.f32.gmra.mrb[120].mxu0 %v3807_v30  ;;  %v3516_v7 = vpop.f32.mrb[14].mxu1  ;;  %v3810_v55 = vld [vmem:[%s13704_s24 + $0x103] sm:$0xff] }
 0x318   : > { %11616 = vmatprep.mubr.msk.f32.mxu0 %vm13528_vm0, %v15509_v59  ;;  %v11424_v56 = vpop.f32.mrb[15].mxu1 }
 0x319   : > { %v15734_v49 = vadd.f32 %v3516_v7, %v3262_v57 }
 0x31a   : > { %v3070_v20 = vpop.f32.mrb[16].mxu0 }
 0x31b   : > { %v3263_v5 = vadd.f32 %v3070_v20, %v15288_v53  ;;  %v11272_v25 = vpop.f32.mrb[17].mxu0  ;;  %11617 = vmatmul.mubr.f32.gmra.mrb[122].mxu0 %v3808_v35  ;;  %v3521_v46 = vpop.f32.mrb[16].mxu1  ;;  %v3811_v35 = vld [vmem:[%s13704_s24 + $0x10b] sm:$0xff] }
 0x31c   : > { %11619 = vmatprep.mubr.msk.f32.mxu0 %vm13528_vm0, %v15509_v59  ;;  %v11427_v11 = vpop.f32.mrb[17].mxu1 }
 0x31d   : > { %v15746_v48 = vadd.f32 %v3521_v46, %v3263_v5 }
 0x31e   : > { %v3075_v53 = vpop.f32.mrb[18].mxu0 }
 0x31f   : > { %v3264_v33 = vadd.f32 %v3075_v53, %v15303_v41  ;;  %v11275_v36 = vpop.f32.mrb[19].mxu0  ;;  %11620 = vmatmul.mubr.f32.gmra.mrb[124].mxu0 %v3809_v61  ;;  %v3526_v8 = vpop.f32.mrb[18].mxu1 }
 0x320   : > { %11622 = vmatprep.mubr.msk.f32.mxu0 %vm13528_vm0, %v15509_v59  ;;  %v11430_v30 = vpop.f32.mrb[19].mxu1  ;;  %v3813_v36 = vld [vmem:[%s13704_s24 + $0x11b] sm:$0xff] }
 0x321   : > { %v15753_v60 = vadd.f32 %v3526_v8, %v3264_v33 }
 0x322   : > { %v3080_v57 = vpop.f32.mrb[20].mxu0 }
 0x323   : > { %v3265_v44 = vadd.f32 %v3080_v57, %v15318_v24  ;;  %v11278_v7 = vpop.f32.mrb[21].mxu0  ;;  %11623 = vmatmul.mubr.f32.gmra.mrb[126].mxu0 %v3810_v55  ;;  %v3531_v41 = vpop.f32.mrb[20].mxu1 }
 0x324   : > { %11625 = vmatprep.mubr.msk.f32.mxu0 %vm13528_vm0, %v15509_v59  ;;  %v11433_v56 = vpop.f32.mrb[21].mxu1  ;;  %v9131_v7 = vld [vmem:[%s17731_s3 + $0x118] sm:$0xff] }
 0x325   : > { %v15759_v20 = vadd.f32 %v3531_v41, %v3265_v44  ;;  %v3814_v56 = vld [vmem:[%s13704_s24 + $0x123] sm:$0xff] }
 0x326   : > { %v3085_v5 = vpop.f32.mrb[22].mxu0 }
 0x327   : > { %v3266_v25 = vadd.f32 %v3085_v5, %v15334_v45  ;;  %v11281_v46 = vpop.f32.mrb[23].mxu0  ;;  %11626 = vmatmul.mubr.f32.gmra.mrb[128].mxu0 %v3811_v35  ;;  %v3536_v19 = vpop.f32.mrb[22].mxu1 }
 0x328   : > { %11628 = vmatprep.mubr.msk.f32.mxu0 %vm13528_vm0, %v15509_v59  ;;  %v11436_v24 = vpop.f32.mrb[23].mxu1 }
 0x329   : > { %v15765_v11 = vadd.f32 %v3536_v19, %v3266_v25 }
 0x32a   : > { %v3090_v61 = vpop.f32.mrb[24].mxu0 }
 0x32b   : > { %v3267_v16 = vadd.f32 %v3090_v61, %v15354_v27  ;;  %v11284_v53 = vpop.f32.mrb[25].mxu0  ;;  %11629 = vmatmul.mubr.f32.gmra.mrb[130].mxu0 %v3812_v43  ;;  %v3541_v33 = vpop.f32.mrb[24].mxu1  ;;  %v9130_v27 = vld [vmem:[%s17731_s3 + $0x110] sm:$0xff] }
 0x32c   : > { %11631 = vmatprep.mubr.msk.f32.mxu0 %vm13528_vm0, %v15509_v59  ;;  %v11439_v45 = vpop.f32.mrb[25].mxu1  ;;  %v13327_v35 = vpack.c.bf16 %v9131_v7, %v9130_v27  ;;  %v3815_v43 = vld [vmem:[%s13704_s24 + $0x12b] sm:$0xff]  ;;  %v3817_v7 = vld [vmem:[%s13704_s24 + $0x13b] sm:$0xff] }
 0x32d   : > { %v15771_v8 = vadd.f32 %v3541_v33, %v3267_v16 }
 0x32e   : > { %v3095_v30 = vpop.f32.mrb[26].mxu0  ;;  %13328 = vmatpush3.bf16.msra.mxu1 %v13327_v35 }
 0x32f   : > { %v3268_v55 = vadd.f32 %v3095_v30, %v15370_v13  ;;  %v11287_v57 = vpop.f32.mrb[27].mxu0  ;;  %11632 = vmatmul.mubr.f32.gmra.mrb[132].mxu0 %v3813_v36  ;;  %v3546_v44 = vpop.f32.mrb[26].mxu1  ;;  %13329 = vmatprep.subr.bf16.mxu1 %v13526_v3  ;;  %v3816_v36 = vld [vmem:[%s13704_s24 + $0x133] sm:$0xff] }
 0x330   : > { %11634 = vmatprep.mubr.msk.f32.mxu0 %vm13528_vm0, %v15509_v59  ;;  %v11442_v41 = vpop.f32.mrb[27].mxu1 }
 0x331   : > { %v15783_v5 = vadd.f32 %v3546_v44, %v3268_v55 }
 0x332   : > { %v3100_v13 = vpop.f32.mrb[28].mxu0 }
 0x333   : > { %v3269_v25 = vadd.f32 %v3100_v13, %v15385_v50  ;;  %v11290_v46 = vpop.f32.mrb[29].mxu0  ;;  %11635 = vmatmul.mubr.f32.gmra.mrb[134].mxu0 %v3814_v56  ;;  %v3551_v19 = vpop.f32.mrb[28].mxu1 }
 0x334   : > { %11637 = vmatprep.mubr.msk.f32.mxu0 %vm13528_vm0, %v15509_v59  ;;  %v11445_v24 = vpop.f32.mrb[29].mxu1  ;;  %v3818_v46 = vld [vmem:[%s13704_s24 + $0x143] sm:$0xff] }
 0x335   : > { %v15790_v61 = vadd.f32 %v3551_v19, %v3269_v25 }
 0x336   : > { %v3105_v16 = vpop.f32.mrb[30].mxu0 }
 0x337   : > { %v3270_v53 = vadd.f32 %v3105_v16, %v15400_v63  ;;  %v11293_v33 = vpop.f32.mrb[31].mxu0  ;;  %11638 = vmatmul.mubr.f32.gmra.mrb[136].mxu0 %v3815_v43  ;;  %v3556_v50 = vpop.f32.mrb[30].mxu1 }
 0x338   : > { %11640 = vmatprep.mubr.msk.f32.mxu0 %vm13528_vm0, %v15509_v59  ;;  %v11448_v45 = vpop.f32.mrb[31].mxu1  ;;  %v9133_v33 = vld [vmem:[%s17731_s3 + $0x128] sm:$0xff] }
 0x339   : > { %v15796_v30 = vadd.f32 %v3556_v50, %v3270_v53  ;;  %v3819_v45 = vld [vmem:[%s13704_s24 + $0x14b] sm:$0xff] }
 0x33a   : > { %v3110_v55 = vpop.f32.mrb[32].mxu0 }
 0x33b   : > { %v3271_v57 = vadd.f32 %v3110_v55, %v15413_v2  ;;  %v11296_v44 = vpop.f32.mrb[33].mxu0  ;;  %11641 = vmatmul.mubr.f32.gmra.mrb[138].mxu0 %v3816_v36  ;;  %v3561_v27 = vpop.f32.mrb[32].mxu1 }
 0x33c   : > { %11643 = vmatprep.mubr.msk.f32.mxu0 %vm13528_vm0, %v15509_v59  ;;  %v11451_v63 = vpop.f32.mrb[33].mxu1 }
 0x33d   : > { %v15802_v41 = vadd.f32 %v3561_v27, %v3271_v57 }
 0x33e   : > { %v3115_v56 = vpop.f32.mrb[34].mxu0 }
 0x33f   : > { %v3272_v35 = vadd.f32 %v3115_v56, %v15430_v22  ;;  %v11299_v13 = vpop.f32.mrb[35].mxu0  ;;  %11644 = vmatmul.mubr.f32.gmra.mrb[140].mxu0 %v3817_v7  ;;  %v3566_v25 = vpop.f32.mrb[34].mxu1  ;;  %v9132_v22 = vld [vmem:[%s17731_s3 + $0x120] sm:$0xff]  ;;  %v3820_v7 = vld [vmem:[%s13704_s24 + $0x153] sm:$0xff] }
 0x340   : > { %11646 = vmatprep.mubr.msk.f32.mxu0 %vm13528_vm0, %v15509_v59  ;;  %v11454_v2 = vpop.f32.mrb[35].mxu1  ;;  %v13330_v36 = vpack.c.bf16 %v9133_v33, %v9132_v22  ;;  %v3822_v33 = vld [vmem:[%s13704_s24 + $0x163] sm:$0xff] }
 0x341   : > { %v15808_v19 = vadd.f32 %v3566_v25, %v3272_v35 }
 0x342   : > { %v3120_v24 = vpop.f32.mrb[36].mxu0  ;;  %13331 = vmatpush3.bf16.msra.mxu1 %v13330_v36 }
 0x343   : > { %v3273_v43 = vadd.f32 %v3120_v24, %v15440_v21  ;;  %v11302_v16 = vpop.f32.mrb[37].mxu0  ;;  %11647 = vmatmul.mubr.f32.gmra.mrb[142].mxu0 %v3818_v46  ;;  %v3571_v53 = vpop.f32.mrb[36].mxu1  ;;  %13332 = vmatprep.subr.bf16.mxu1 %v13526_v3  ;;  %v3821_v46 = vld [vmem:[%s13704_s24 + $0x15b] sm:$0xff] }
 0x344   : > { %11649 = vmatprep.mubr.msk.f32.mxu0 %vm13528_vm0, %v15509_v59  ;;  %v11457_v50 = vpop.f32.mrb[37].mxu1 }
 0x345   : > { %v15820_v55 = vadd.f32 %v3571_v53, %v3273_v43 }
 0x346   : > { %v3125_v21 = vpop.f32.mrb[38].mxu0 }
 0x347   : > { %v3274_v57 = vadd.f32 %v3125_v21, %v15449_v4  ;;  %v11305_v44 = vpop.f32.mrb[39].mxu0  ;;  %11650 = vmatmul.mubr.f32.gmra.mrb[144].mxu0 %v3819_v45  ;;  %v3576_v27 = vpop.f32.mrb[38].mxu1 }
 0x348   : > { %11652 = vmatprep.mubr.msk.f32.mxu0 %vm13528_vm0, %v15509_v59  ;;  %v11460_v63 = vpop.f32.mrb[39].mxu1  ;;  %v3823_v44 = vld [vmem:[%s13704_s24 + $0x16b] sm:$0xff] }
 0x349   : > { %v15827_v56 = vadd.f32 %v3576_v27, %v3274_v57 }
 0x34a   : > { %v3130_v35 = vpop.f32.mrb[40].mxu0 }
 0x34b   : > { %v3275_v13 = vadd.f32 %v3130_v35, %v15457_v10  ;;  %v11308_v25 = vpop.f32.mrb[41].mxu0  ;;  %11653 = vmatmul.mubr.f32.gmra.mrb[146].mxu0 %v3820_v7  ;;  %v3581_v4 = vpop.f32.mrb[40].mxu1 }
 0x34c   : > { %11655 = vmatprep.mubr.msk.f32.mxu0 %vm13528_vm0, %v15509_v59  ;;  %v11463_v2 = vpop.f32.mrb[41].mxu1 }
 0x34d   : > { %v15833_v24 = vadd.f32 %v3581_v4, %v3275_v13 }
 0x34e   : > { %v3135_v43 = vpop.f32.mrb[42].mxu0 }
 0x34f   : > { %v3276_v16 = vadd.f32 %v3135_v43, %v15467_v0  ;;  %v11311_v53 = vpop.f32.mrb[43].mxu0  ;;  %11656 = vmatmul.mubr.f32.gmra.mrb[148].mxu0 %v3821_v46  ;;  %v3586_v22 = vpop.f32.mrb[42].mxu1 }
 0x350   : > { %11658 = vmatprep.mubr.msk.f32.mxu0 %vm13528_vm0, %v15509_v59  ;;  %v11466_v10 = vpop.f32.mrb[43].mxu1  ;;  %v9135_v53 = vld [vmem:[%s17731_s3 + $0x138] sm:$0xff] }
 0x351   : > { %v15839_v50 = vadd.f32 %v3586_v22, %v3276_v16  ;;  %v5061_v10 = vld [vmem:[#allocation3 + $0xe] sm:$0xff] }
 0x352   : > { %v3140_v45 = vpop.f32.mrb[44].mxu0 }
 0x353   : > { %v3277_v36 = vadd.f32 %v3140_v45, %v15482_v54  ;;  %v11314_v21 = vpop.f32.mrb[45].mxu0  ;;  %11659 = vmatmul.mubr.f32.gmra.mrb[150].mxu0 %v3822_v33  ;;  %v3591_v57 = vpop.f32.mrb[44].mxu1  ;;  %v5060_v54 = vld [vmem:[#allocation3 + $0x6] sm:$0xff] }
 0x354   : > { %11661 = vmatprep.mubr.msk.f32.mxu0 %vm13528_vm0, %v15509_v59  ;;  %v11469_v0 = vpop.f32.mrb[45].mxu1 }
 0x355   : > { %v15845_v27 = vadd.f32 %v3591_v57, %v3277_v36 }
 0x356   : > { %v3145_v63 = vpop.f32.mrb[46].mxu0 }
 0x357   : > { %v3278_v7 = vadd.f32 %v3145_v63, %v15492_v1  ;;  %v11317_v35 = vpop.f32.mrb[47].mxu0  ;;  %11662 = vmatmul.mubr.f32.gmra.mrb[152].mxu0 %v3823_v44  ;;  %v3596_v13 = vpop.f32.mrb[46].mxu1  ;;  %v9134_v1 = vld [vmem:[%s17731_s3 + $0x130] sm:$0xff] }
 0x358   : > { %v11472_v25 = vpop.f32.mrb[47].mxu1  ;;  %11851 = vmatprep.mubr.msk.f32.mxu0 %vm13528_vm0, %v15509_v59  ;;  %v13333_v33 = vpack.c.bf16 %v9135_v53, %v9134_v1 }
 0x359   : > { %v15850_v4 = vadd.f32 %v3596_v13, %v3278_v7 }
 0x35a   : > { %v3150_v2 = vpop.f32.mrb[48].mxu0  ;;  %13334 = vmatpush3.bf16.msra.mxu1 %v13333_v33 }
 0x35b   : > { %v3279_v46 = vadd.f32 %v3150_v2, %v15500_v47  ;;  %v11320_v43 = vpop.f32.mrb[49].mxu0  ;;  %v3601_v16 = vpop.f32.mrb[48].mxu1  ;;  %11852 = vmatmul.mubr.f32.vlgmr.msra.gmra.mrb[154].mxu0 %v5060_v54  ;;  %13335 = vmatprep.subr.bf16.mxu1 %v13526_v3 }
 0x35c   : > { %v11475_v22 = vpop.f32.mrb[49].mxu1  ;;  %11854 = vmatprep.mubr.msk.f32.mxu0 %vm13528_vm0, %v15509_v59 }
 0x35d   : > { %v15861_v45 = vadd.f32 %v3601_v16, %v3279_v46 }
 0x35e   : > { %v3155_v47 = vpop.f32.mrb[50].mxu0 }
 0x35f   : > { %v3280_v36 = vadd.f32 %v3155_v47, %v15506_v42  ;;  %v11323_v21 = vpop.f32.mrb[51].mxu0  ;;  %v3606_v57 = vpop.f32.mrb[50].mxu1  ;;  %11855 = vmatmul.mubr.f32.gmra.mrb[156].mxu0 %v5061_v10 }
 0x360   : > { %v11478_v0 = vpop.f32.mrb[51].mxu1  ;;  %11857 = vmatprep.mubr.msk.f32.mxu0 %vm13528_vm0, %v15509_v59 }
 0x361   : > { %v15867_v44 = vadd.f32 %v3606_v57, %v3280_v36  ;;  %v9137_v0 = vld [vmem:[%s17731_s3 + $0x148] sm:$0xff] }
 0x362   : > { %v3160_v63 = vpop.f32.mrb[52].mxu0 }
 0x363   : > { %v3281_v7 = vadd.f32 %v3160_v63, %v15514_v18  ;;  %v11326_v35 = vpop.f32.mrb[53].mxu0  ;;  %v3611_v13 = vpop.f32.mrb[52].mxu1 }
 0x364   : > { %v11481_v25 = vpop.f32.mrb[53].mxu1 }
 0x365   : > { %v15870_v54 = vadd.f32 %v3611_v13, %v3281_v7 }
 0x366   : > { %v3165_v42 = vpop.f32.mrb[54].mxu0 }
 0x367   : > { %v3282_v2 = vadd.f32 %v3165_v42, %v15526_v9  ;;  %v11329_v46 = vpop.f32.mrb[55].mxu0  ;;  %v3616_v43 = vpop.f32.mrb[54].mxu1  ;;  %v9136_v9 = vld [vmem:[%s17731_s3 + $0x140] sm:$0xff] }
 0x368   : > { %v11484_v16 = vpop.f32.mrb[55].mxu1 }
 0x369   : > { %v15873_v1 = vadd.f32 %v3616_v43, %v3282_v2 }
 0x36a   : > { %v3170_v53 = vpop.f32.mrb[56].mxu0 }
 0x36b   : > { %v3283_v59 = vadd.f32 %v3170_v53, %v15533_v32  ;;  %v11332_v22 = vpop.f32.mrb[57].mxu0  ;;  %v3621_v10 = vpop.f32.mrb[56].mxu1  ;;  %v13336_v32 = vpack.c.bf16 %v9137_v0, %v9136_v9 }
 0x36c   : > { %v11487_v33 = vpop.f32.mrb[57].mxu1 }
 0x36d   : > { %v15876_v18 = vadd.f32 %v3621_v10, %v3283_v59  ;;  %13337 = vmatpush3.bf16.msra.mxu1 %v13336_v32 }
 0x36e   : > { %v3175_v47 = vpop.f32.mrb[58].mxu0  ;;  %13338 = vmatprep.subr.bf16.mxu1 %v13526_v3 }
 0x36f   : > { %v3284_v36 = vadd.f32 %v3175_v47, %v15539_v38  ;;  %v11335_v21 = vpop.f32.mrb[59].mxu0  ;;  %v3626_v57 = vpop.f32.mrb[58].mxu1 }
 0x370   : > { %v11490_v63 = vpop.f32.mrb[59].mxu1 }
 0x371   : > { %v15885_v7 = vadd.f32 %v3626_v57, %v3284_v36 }
 0x372   : > { %v3180_v35 = vpop.f32.mrb[60].mxu0 }
 0x373   : > { %v3285_v13 = vadd.f32 %v3180_v35, %v15545_v52  ;;  %v11338_v25 = vpop.f32.mrb[61].mxu0  ;;  %v3631_v38 = vpop.f32.mrb[60].mxu1 }
 0x374   : > { %v11493_v42 = vpop.f32.mrb[61].mxu1 }
 0x375   : > { %v15889_v2 = vadd.f32 %v3631_v38, %v3285_v13  ;;  %v9139_v42 = vld [vmem:[%s17731_s3 + $0x158] sm:$0xff] }
 0x376   : > { %v3185_v46 = vpop.f32.mrb[62].mxu0 }
 0x377   : > { %v3286_v43 = vadd.f32 %v3185_v46, %v15551_v31  ;;  %v11341_v16 = vpop.f32.mrb[63].mxu0  ;;  %v3636_v53 = vpop.f32.mrb[62].mxu1 }
 0x378   : > { %v11496_v59 = vpop.f32.mrb[63].mxu1 }
 0x379   : > { %v15892_v22 = vadd.f32 %v3636_v53, %v3286_v43 }
 0x37a   : > { %v3190_v10 = vpop.f32.mrb[64].mxu0 }
 0x37b   : > { %v3287_v33 = vadd.f32 %v3190_v10, %v15563_v39  ;;  %v11344_v47 = vpop.f32.mrb[65].mxu0  ;;  %v3641_v52 = vpop.f32.mrb[64].mxu1  ;;  %v9138_v39 = vld [vmem:[%s17731_s3 + $0x150] sm:$0xff] }
 0x37c   : > { %v11499_v36 = vpop.f32.mrb[65].mxu1 }
 0x37d   : > { %v15895_v21 = vadd.f32 %v3641_v52, %v3287_v33  ;;  %v15916_v52 = vld [vmem:[%s17730_s2] ss:$0 sm:$0xff] }
 0x37e   : > { %v3195_v57 = vpop.f32.mrb[66].mxu0 }
 0x37f   : > { %v3288_v9 = vadd.f32 %v3195_v57, %v15570_v28  ;;  %v11347_v0 = vpop.f32.mrb[67].mxu0  ;;  %v3646_v63 = vpop.f32.mrb[66].mxu1  ;;  %v13339_v28 = vpack.c.bf16 %v9139_v42, %v9138_v39 }
 0x380   : > { %v11502_v32 = vpop.f32.mrb[67].mxu1  ;;  %v4408_v0 = vpop.permute.xlu0 %4407 }
 0x381   : > { %v15898_v31 = vadd.f32 %v3646_v63, %v3288_v9  ;;  %13340 = vmatpush3.bf16.msra.mxu1 %v13339_v28 }
 0x382   : > { %v3200_v35 = vpop.f32.mrb[68].mxu0  ;;  %13341 = vmatprep.subr.bf16.mxu1 %v13526_v3 }
 0x383   : > { %v3289_v13 = vadd.f32 %v3200_v35, %v15576_v14  ;;  %v11350_v25 = vpop.f32.mrb[69].mxu0  ;;  %v3651_v38 = vpop.f32.mrb[68].mxu1 }
 0x384   : > { %v11505_v46 = vpop.f32.mrb[69].mxu1  ;;  %v4413_v28 = vpop.permute.xlu0 %4412 }
 0x385   : > { %v15907_v43 = vadd.f32 %v3651_v38, %v3289_v13 }
 0x386   : > { %v3205_v16 = vpop.f32.mrb[70].mxu0 }
 0x387   : > { %v3290_v53 = vadd.f32 %v3205_v16, %v15582_v6  ;;  %v11353_v59 = vpop.f32.mrb[71].mxu0  ;;  %v3656_v14 = vpop.f32.mrb[70].mxu1 }
 0x388   : > { %v11508_v10 = vpop.f32.mrb[71].mxu1 }
 0x389   : > { %v15911_v33 = vadd.f32 %v3656_v14, %v3290_v53  ;;  %v4418_v53 = vpop.permute.xlu1 %4417  ;;  %v9145_v14 = vld [vmem:[%s17731_s3 + $0x188] sm:$0xff] }
 0x38a   : > { %v3907_v47 = vpop.f32.mrb[72].mxu0 }
 0x38b   : > { %v4152_v36 = vadd.f32 %v3907_v47, %v15588_v12  ;;  %v11543_v57 = vpop.f32.mrb[73].mxu0 }
 0x38c   : > { %v9141_v57 = vld [vmem:[%s17731_s3 + $0x168] sm:$0xff] }
 0x38d   : > { %v4323_v9 = vadd.f32 %v15916_v52, %v4152_v36  ;;  %v9140_v36 = vld [vmem:[%s17731_s3 + $0x160] sm:$0xff] }
 0x38e   : > { %v3912_v6 = vpop.f32.mrb[74].mxu0 }
 0x38f   : > { %v4364_v63 = vmax.f32 %v4323_v9, 0.0  ;;  %v4153_v32 = vadd.f32 %v3912_v6, %v15600_v58  ;;  %v11546_v35 = vpop.f32.mrb[75].mxu0  ;;  %v9144_v58 = vld [vmem:[%s17731_s3 + $0x180] sm:$0xff] }
 0x390   : > { %v13348_v9 = vpack.c.bf16 %v9145_v14, %v9144_v58  ;;  %v9148_v14 = vld [vmem:[%s17731_s3 + $0x1a0] sm:$0xff] }
 0x391   : > { %v4610_v13 = vmul.f32 %v4408_v0, %v4364_v63  ;;  %v4324_v25 = vadd.f32 %v15916_v52, %v4153_v32  ;;  %v13342_v0 = vpack.c.bf16 %v9141_v57, %v9140_v36  ;;  %v9149_v36 = vld [vmem:[%s17731_s3 + $0x1a8] sm:$0xff]  ;;  %v4428_v57 = vpop.permute.xlu0 %4427 }
 0x392   : > { %v3917_v38 = vpop.f32.mrb[76].mxu0  ;;  %13349 = vmatpush3.bf16.msra.mxu0 %v13348_v9  ;;  %v13354_v9 = vpack.c.bf16 %v9149_v36, %v9148_v14 }
 0x393   : > { %4651 = vst [vmem:[#allocation3 + $0x18] sm:$0xff] %v4610_v13  ;;  %v4365_v39 = vmax.f32 %v4324_v25, 0.0  ;;  %v4154_v42 = vadd.f32 %v3917_v38, %v15607_v26  ;;  %v11549_v46 = vpop.f32.mrb[77].mxu0  ;;  %13343 = vmatpush3.bf16.msra.mxu1 %v13342_v0  ;;  %13350 = vmatprep.subr.bf16.mxu0 %v13526_v3 }
 0x394   : > { %v4423_v46 = vpop.permute.xlu1 %4422  ;;  %13344 = vmatprep.subr.bf16.mxu1 %v13526_v3 }
 0x395   : > { %v4611_v12 = vmul.f32 %v4413_v28, %v4365_v39  ;;  %v4325_v16 = vadd.f32 %v15916_v52, %v4154_v42  ;;  %v9147_v42 = vld [vmem:[%s17731_s3 + $0x198] sm:$0xff]  ;;  %v15946_v28 = vld [vmem:[#allocation3] sm:$0xff] }
 0x396   : > { %v3922_v59 = vpop.f32.mrb[78].mxu0 }
 0x397   : > { %4652 = vst [vmem:[#allocation3 + $0x20] sm:$0xff] %v4611_v12  ;;  %v4366_v10 = vmax.f32 %v4325_v16, 0.0  ;;  %v4155_v47 = vadd.f32 %v3922_v59, %v15619_v62  ;;  %v11552_v26 = vpop.f32.mrb[79].mxu0  ;;  %v9146_v62 = vld [vmem:[%s17731_s3 + $0x190] sm:$0xff] }
 0x398   : > { %v13351_v12 = vpack.c.bf16 %v9147_v42, %v9146_v62 }
 0x399   : > { %v4612_v6 = vmul.f32 %v4418_v53, %v4366_v10  ;;  %v4326_v63 = vadd.f32 %v15916_v52, %v4155_v47 }
 0x39a   : > { %v3927_v32 = vpop.f32.mrb[80].mxu0  ;;  %v4694_v35 = vld [vmem:[#allocation3 + $0x15] sm:$0xff]  ;;  %13352 = vmatpush3.bf16.msra.mxu0 %v13351_v12 }
 0x39b   : > { %v5062_v13 = vld [vmem:[#allocation3 + $0x16] sm:$0xff]  ;;  %4653 = vst [vmem:[#allocation3 + $0x28] sm:$0xff] %v4612_v6  ;;  %v4367_v25 = vmax.f32 %v4326_v63, 0.0  ;;  %v4156_v38 = vadd.f32 %v3927_v32, %v15632_v29  ;;  %v11555_v39 = vpop.f32.mrb[81].mxu0  ;;  %11703 = vmatmul.mubr.f32.gmra.mrb[76].mxu1 %v4694_v35  ;;  %13353 = vmatprep.subr.bf16.mxu0 %v13526_v3 }
 0x39c   : > { %11858 = vmatmul.mubr.f32.gmra.mrb[158].mxu0 %v5062_v13  ;;  %11705 = vmatprep.mubr.msk.f32.mxu1 %vm13528_vm0, %v15946_v28  ;;  %v9150_v35 = vld [vmem:[%s17731_s3 + $0x1b0] sm:$0xff]  ;;  %v4433_v39 = vpop.permute.xlu1 %4432 }
 0x39d   : > { %11860 = vmatprep.mubr.msk.f32.mxu0 %vm13528_vm0, %v15946_v28  ;;  %v4613_v16 = vmul.f32 %v4423_v46, %v4367_v25  ;;  %v4327_v29 = vadd.f32 %v15916_v52, %v4156_v38  ;;  %v9151_v38 = vld [vmem:[%s17731_s3 + $0x1b8] sm:$0xff] }
 0x39e   : > { %v3932_v53 = vpop.f32.mrb[82].mxu0  ;;  %v4695_v59 = vld [vmem:[#allocation3 + $0x1d] sm:$0xff]  ;;  %13355 = vmatpush3.bf16.msra.mxu0 %v13354_v9  ;;  %v13357_v42 = vpack.c.bf16 %v9151_v38, %v9150_v35  ;;  %v9142_v35 = vld [vmem:[%s17731_s3 + $0x170] sm:$0xff] }
 0x39f   : > { %v5063_v58 = vld [vmem:[#allocation3 + $0x1e] sm:$0xff]  ;;  %4654 = vst [vmem:[#allocation3 + $0x30] sm:$0xff] %v4613_v16  ;;  %v4368_v10 = vmax.f32 %v4327_v29, 0.0  ;;  %v4157_v47 = vadd.f32 %v3932_v53, %v15645_v37  ;;  %v11558_v26 = vpop.f32.mrb[83].mxu0  ;;  %11706 = vmatmul.mubr.f32.gmra.mrb[78].mxu1 %v4695_v59  ;;  %13356 = vmatprep.subr.bf16.mxu0 %v13526_v3 }
 0x3a0   : > { %11861 = vmatmul.mubr.f32.gmra.mrb[160].mxu0 %v5063_v58  ;;  %11708 = vmatprep.mubr.msk.f32.mxu1 %vm13528_vm0, %v15946_v28  ;;  %v9152_v53 = vld [vmem:[%s17731_s3 + $0x1c0] sm:$0xff] }
 0x3a1   : > { %11863 = vmatprep.mubr.msk.f32.mxu0 %vm13528_vm0, %v15946_v28  ;;  %v4614_v0 = vmul.f32 %v4428_v57, %v4368_v10  ;;  %v4328_v6 = vadd.f32 %v15916_v52, %v4157_v47  ;;  %v9153_v10 = vld [vmem:[%s17731_s3 + $0x1c8] sm:$0xff]  ;;  %v4438_v47 = vpop.permute.xlu0 %4437 }
 0x3a2   : > { %v3937_v37 = vpop.f32.mrb[84].mxu0  ;;  %v4696_v63 = vld [vmem:[#allocation3 + $0x25] sm:$0xff]  ;;  %13358 = vmatpush3.bf16.msra.mxu0 %v13357_v42  ;;  %v13360_v26 = vpack.c.bf16 %v9153_v10, %v9152_v53 }
 0x3a3   : > { %v5064_v32 = vld [vmem:[#allocation3 + $0x26] sm:$0xff]  ;;  %4655 = vst [vmem:[#allocation3 + $0x38] sm:$0xff] %v4614_v0  ;;  %v4369_v13 = vmax.f32 %v4328_v6, 0.0  ;;  %v4158_v62 = vadd.f32 %v3937_v37, %v15658_v51  ;;  %v11561_v25 = vpop.f32.mrb[85].mxu0  ;;  %11709 = vmatmul.mubr.f32.gmra.mrb[80].mxu1 %v4696_v63  ;;  %13359 = vmatprep.subr.bf16.mxu0 %v13526_v3  ;;  %v9154_v6 = vld [vmem:[%s17731_s3 + $0x1d0] sm:$0xff] }
 0x3a4   : > { %11864 = vmatmul.mubr.f32.gmra.mrb[162].mxu0 %v5064_v32  ;;  %11711 = vmatprep.mubr.msk.f32.mxu1 %vm13528_vm0, %v15946_v28  ;;  %v4443_v25 = vpop.permute.xlu1 %4442 }
 0x3a5   : > { %11866 = vmatprep.mubr.msk.f32.mxu0 %vm13528_vm0, %v15946_v28  ;;  %v4615_v46 = vmul.f32 %v4433_v39, %v4369_v13  ;;  %v4329_v12 = vadd.f32 %v15916_v52, %v4158_v62  ;;  %v9143_v13 = vld [vmem:[%s17731_s3 + $0x178] sm:$0xff] }
 0x3a6   : > { %v3942_v51 = vpop.f32.mrb[86].mxu0  ;;  %v4697_v16 = vld [vmem:[#allocation3 + $0x2d] sm:$0xff]  ;;  %13361 = vmatpush3.bf16.msra.mxu0 %v13360_v26  ;;  %v9155_v62 = vld [vmem:[%s17731_s3 + $0x1d8] sm:$0xff] }
 0x3a7   : > { %v5065_v29 = vld [vmem:[#allocation3 + $0x2e] sm:$0xff]  ;;  %4656 = vst [vmem:[#allocation3 + $0x40] sm:$0xff] %v4615_v46  ;;  %v4370_v59 = vmax.f32 %v4329_v12, 0.0  ;;  %v4159_v58 = vadd.f32 %v3942_v51, %v15677_v40  ;;  %v11564_v14 = vpop.f32.mrb[87].mxu0  ;;  %11712 = vmatmul.mubr.f32.gmra.mrb[82].mxu1 %v4697_v16  ;;  %v13363_v38 = vpack.c.bf16 %v9155_v62, %v9154_v6  ;;  %13362 = vmatprep.subr.bf16.mxu0 %v13526_v3  ;;  %v9156_v16 = vld [vmem:[%s17731_s3 + $0x1e0] sm:$0xff] }
 0x3a8   : > { %11867 = vmatmul.mubr.f32.gmra.mrb[164].mxu0 %v5065_v29  ;;  %11714 = vmatprep.mubr.msk.f32.mxu1 %vm13528_vm0, %v15946_v28  ;;  %v4448_v14 = vpop.permute.xlu0 %4447 }
 0x3a9   : > { %11869 = vmatprep.mubr.msk.f32.mxu0 %vm13528_vm0, %v15946_v28  ;;  %v4616_v36 = vmul.f32 %v4438_v47, %v4370_v59  ;;  %v4330_v57 = vadd.f32 %v15916_v52, %v4159_v58  ;;  %v9157_v58 = vld [vmem:[%s17731_s3 + $0x1e8] sm:$0xff] }
 0x3aa   : > { %v3947_v40 = vpop.f32.mrb[88].mxu0  ;;  %v4698_v9 = vld [vmem:[#allocation3 + $0x35] sm:$0xff]  ;;  %13364 = vmatpush3.bf16.msra.mxu0 %v13363_v38  ;;  %v13366_v10 = vpack.c.bf16 %v9157_v58, %v9156_v16 }
 0x3ab   : > { %v5066_v0 = vld [vmem:[#allocation3 + $0x36] sm:$0xff]  ;;  %4657 = vst [vmem:[#allocation3 + $0x48] sm:$0xff] %v4616_v36  ;;  %v4371_v37 = vmax.f32 %v4330_v57, 0.0  ;;  %v4160_v63 = vadd.f32 %v3947_v40, %v15691_v34  ;;  %v11567_v32 = vpop.f32.mrb[89].mxu0  ;;  %11715 = vmatmul.mubr.f32.gmra.mrb[84].mxu1 %v4698_v9  ;;  %v13345_v34 = vpack.c.bf16 %v9143_v13, %v9142_v35  ;;  %13365 = vmatprep.subr.bf16.mxu0 %v13526_v3 }
 0x3ac   : > { %11870 = vmatmul.mubr.f32.gmra.mrb[166].mxu0 %v5066_v0  ;;  %11717 = vmatprep.mubr.msk.f32.mxu1 %vm13528_vm0, %v15946_v28  ;;  %v9158_v40 = vld [vmem:[%s17731_s3 + $0x1f0] sm:$0xff] }
 0x3ad   : > { %11872 = vmatprep.mubr.msk.f32.mxu0 %vm13528_vm0, %v15946_v28  ;;  %v4617_v39 = vmul.f32 %v4443_v25, %v4371_v37  ;;  %v4331_v42 = vadd.f32 %v15916_v52, %v4160_v63  ;;  %13346 = vmatpush3.bf16.msra.mxu1 %v13345_v34  ;;  %v9159_v37 = vld [vmem:[%s17731_s3 + $0x1f8] sm:$0xff]  ;;  %v4453_v63 = vpop.permute.xlu1 %4452 }
 0x3ae   : > { %v3952_v46 = vpop.f32.mrb[90].mxu0  ;;  %v4699_v12 = vld [vmem:[#allocation3 + $0x3d] sm:$0xff]  ;;  %13371 = vmatprep.subr.bf16.mxu1 %v13526_v3  ;;  %13367 = vmatpush3.bf16.msra.mxu0 %v13366_v10  ;;  %v13369_v32 = vpack.c.bf16 %v9159_v37, %v9158_v40 }
 0x3af   : > { %v5067_v51 = vld [vmem:[#allocation3 + $0x3e] sm:$0xff]  ;;  %4658 = vst [vmem:[#allocation3 + $0x50] sm:$0xff] %v4617_v39  ;;  %v4372_v29 = vmax.f32 %v4331_v42, 0.0  ;;  %v4161_v53 = vadd.f32 %v3952_v46, %v15704_v15  ;;  %v11570_v59 = vpop.f32.mrb[91].mxu0  ;;  %11718 = vmatmul.mubr.f32.gmra.mrb[86].mxu1 %v4699_v12  ;;  %13368 = vmatprep.subr.bf16.mxu0 %v13526_v3  ;;  %v4458_v42 = vpop.permute.xlu0 %4457 }
 0x3b0   : > { %11873 = vmatmul.mubr.f32.gmra.mrb[168].mxu0 %v5067_v51  ;;  %11720 = vmatprep.mubr.msk.f32.mxu1 %vm13528_vm0, %v15946_v28 }
 0x3b1   : > { %11875 = vmatprep.mubr.msk.f32.mxu0 %vm13528_vm0, %v15946_v28  ;;  %v4618_v47 = vmul.f32 %v4448_v14, %v4372_v29  ;;  %v4332_v26 = vadd.f32 %v15916_v52, %v4161_v53  ;;  %v4463_v58 = vpop.permute.xlu1 %4462 }
 0x3b2   : > { %v3957_v15 = vpop.f32.mrb[92].mxu0  ;;  %v4700_v36 = vld [vmem:[#allocation3 + $0x45] sm:$0xff]  ;;  %13370 = vmatpush3.bf16.msra.mxu0 %v13369_v32 }
 0x3b3   : > { %v5068_v57 = vld [vmem:[#allocation3 + $0x46] sm:$0xff]  ;;  %4659 = vst [vmem:[#allocation3 + $0x58] sm:$0xff] %v4618_v47  ;;  %v4373_v9 = vmax.f32 %v4332_v26, 0.0  ;;  %v4162_v0 = vadd.f32 %v3957_v15, %v15717_v17  ;;  %v11573_v6 = vpop.f32.mrb[93].mxu0  ;;  %11721 = vmatmul.mubr.f32.gmra.mrb[88].mxu1 %v4700_v36  ;;  %13395 = vmatprep.subr.bf16.mxu0 %v13526_v3  ;;  %v4468_v40 = vpop.permute.xlu0 %4467 }
 0x3b4   : > { %11876 = vmatmul.mubr.f32.gmra.mrb[170].mxu0 %v5068_v57  ;;  %11723 = vmatprep.mubr.msk.f32.mxu1 %vm13528_vm0, %v15946_v28 }
 0x3b5   : > { %11878 = vmatprep.mubr.msk.f32.mxu0 %vm13528_vm0, %v15946_v28  ;;  %v4619_v35 = vmul.f32 %v4453_v63, %v4373_v9  ;;  %v4333_v13 = vadd.f32 %v15916_v52, %v4162_v0 }
 0x3b6   : > { %v3962_v17 = vpop.f32.mrb[94].mxu0  ;;  %v4701_v62 = vld [vmem:[#allocation3 + $0x4d] sm:$0xff] }
 0x3b7   : > { %v5069_v25 = vld [vmem:[#allocation3 + $0x4e] sm:$0xff]  ;;  %4660 = vst [vmem:[#allocation3 + $0x60] sm:$0xff] %v4619_v35  ;;  %v4374_v34 = vmax.f32 %v4333_v13, 0.0  ;;  %v4163_v38 = vadd.f32 %v3962_v17, %v15726_v23  ;;  %v11576_v39 = vpop.f32.mrb[95].mxu0  ;;  %11724 = vmatmul.mubr.f32.gmra.mrb[90].mxu1 %v4701_v62  ;;  %v4473_v13 = vpop.permute.xlu1 %4472 }
 0x3b8   : > { %11879 = vmatmul.mubr.f32.gmra.mrb[172].mxu0 %v5069_v25  ;;  %11726 = vmatprep.mubr.msk.f32.mxu1 %vm13528_vm0, %v15946_v28 }
 0x3b9   : > { %11881 = vmatprep.mubr.msk.f32.mxu0 %vm13528_vm0, %v15946_v28  ;;  %v4620_v46 = vmul.f32 %v4458_v42, %v4374_v34  ;;  %v4334_v12 = vadd.f32 %v15916_v52, %v4163_v38 }
 0x3ba   : > { %v3967_v51 = vpop.f32.mrb[96].mxu0  ;;  %v4702_v16 = vld [vmem:[#allocation3 + $0x55] sm:$0xff] }
 0x3bb   : > { %v5070_v29 = vld [vmem:[#allocation3 + $0x56] sm:$0xff]  ;;  %4661 = vst [vmem:[#allocation3 + $0x68] sm:$0xff] %v4620_v46  ;;  %v4375_v23 = vmax.f32 %v4334_v12, 0.0  ;;  %v4164_v53 = vadd.f32 %v3967_v51, %v15734_v49  ;;  %v11579_v59 = vpop.f32.mrb[97].mxu0  ;;  %11727 = vmatmul.mubr.f32.gmra.mrb[92].mxu1 %v4702_v16  ;;  %v4478_v46 = vpop.permute.xlu0 %4477 }
 0x3bc   : > { %11882 = vmatmul.mubr.f32.gmra.mrb[174].mxu0 %v5070_v29  ;;  %11729 = vmatprep.mubr.msk.f32.mxu1 %vm13528_vm0, %v15946_v28 }
 0x3bd   : > { %11884 = vmatprep.mubr.msk.f32.mxu0 %vm13528_vm0, %v15946_v28  ;;  %v4621_v14 = vmul.f32 %v4463_v58, %v4375_v23  ;;  %v4335_v10 = vadd.f32 %v15916_v52, %v4164_v53  ;;  %v4483_v58 = vpop.permute.xlu1 %4482 }
 0x3be   : > { %v3972_v47 = vpop.f32.mrb[98].mxu0  ;;  %v4703_v26 = vld [vmem:[#allocation3 + $0x5d] sm:$0xff] }
 0x3bf   : > { %v5071_v15 = vld [vmem:[#allocation3 + $0x5e] sm:$0xff]  ;;  %4662 = vst [vmem:[#allocation3 + $0x70] sm:$0xff] %v4621_v14  ;;  %v4376_v36 = vmax.f32 %v4335_v10, 0.0  ;;  %v4165_v49 = vadd.f32 %v3972_v47, %v15746_v48  ;;  %v11582_v57 = vpop.f32.mrb[99].mxu0  ;;  %11730 = vmatmul.mubr.f32.gmra.mrb[94].mxu1 %v4703_v26 }
 0x3c0   : > { %11885 = vmatmul.mubr.f32.gmra.mrb[176].mxu0 %v5071_v15  ;;  %11732 = vmatprep.mubr.msk.f32.mxu1 %vm13528_vm0, %v15946_v28  ;;  %v4488_v57 = vpop.permute.xlu0 %4487 }
 0x3c1   : > { %11887 = vmatprep.mubr.msk.f32.mxu0 %vm13528_vm0, %v15946_v28  ;;  %v4622_v9 = vmul.f32 %v4468_v40, %v4376_v36  ;;  %v4336_v0 = vadd.f32 %v15916_v52, %v4165_v49 }
 0x3c2   : > { %v3977_v6 = vpop.f32.mrb[100].mxu0  ;;  %v4704_v37 = vld [vmem:[#allocation3 + $0x65] sm:$0xff] }
 0x3c3   : > { %v5072_v63 = vld [vmem:[#allocation3 + $0x66] sm:$0xff]  ;;  %4663 = vst [vmem:[#allocation3 + $0x78] sm:$0xff] %v4622_v9  ;;  %v4377_v32 = vmax.f32 %v4336_v0, 0.0  ;;  %v4166_v48 = vadd.f32 %v3977_v6, %v15753_v60  ;;  %v11585_v35 = vpop.f32.mrb[101].mxu0  ;;  %11733 = vmatmul.mubr.f32.gmra.mrb[96].mxu1 %v4704_v37 }
 0x3c4   : > { %11888 = vmatmul.mubr.f32.gmra.mrb[178].mxu0 %v5072_v63  ;;  %11735 = vmatprep.mubr.msk.f32.mxu1 %vm13528_vm0, %v15946_v28 }
 0x3c5   : > { %11890 = vmatprep.mubr.msk.f32.mxu0 %vm13528_vm0, %v15946_v28  ;;  %v4623_v17 = vmul.f32 %v4473_v13, %v4377_v32  ;;  %v4337_v62 = vadd.f32 %v15916_v52, %v4166_v48  ;;  %v4493_v48 = vpop.permute.xlu1 %4492 }
 0x3c6   : > { %v3982_v25 = vpop.f32.mrb[102].mxu0  ;;  %v4705_v34 = vld [vmem:[#allocation3 + $0x6d] sm:$0xff] }
 0x3c7   : > { %v5073_v38 = vld [vmem:[#allocation3 + $0x6e] sm:$0xff]  ;;  %4664 = vst [vmem:[#allocation3 + $0x80] sm:$0xff] %v4623_v17  ;;  %v4378_v39 = vmax.f32 %v4337_v62, 0.0  ;;  %v4167_v60 = vadd.f32 %v3982_v25, %v15759_v20  ;;  %v11588_v42 = vpop.f32.mrb[103].mxu0  ;;  %11736 = vmatmul.mubr.f32.gmra.mrb[98].mxu1 %v4705_v34 }
 0x3c8   : > { %11891 = vmatmul.mubr.f32.gmra.mrb[180].mxu0 %v5073_v38  ;;  %11738 = vmatprep.mubr.msk.f32.mxu1 %vm13528_vm0, %v15946_v28 }
 0x3c9   : > { %11893 = vmatprep.mubr.msk.f32.mxu0 %vm13528_vm0, %v15946_v28  ;;  %v4624_v12 = vmul.f32 %v4478_v46, %v4378_v39  ;;  %v4338_v51 = vadd.f32 %v15916_v52, %v4167_v60  ;;  %v4498_v39 = vpop.permute.xlu0 %4497 }
 0x3ca   : > { %v3987_v16 = vpop.f32.mrb[104].mxu0  ;;  %v4706_v29 = vld [vmem:[#allocation3 + $0x75] sm:$0xff] }
 0x3cb   : > { %v5074_v23 = vld [vmem:[#allocation3 + $0x76] sm:$0xff]  ;;  %4665 = vst [vmem:[#allocation3 + $0x88] sm:$0xff] %v4624_v12  ;;  %v4379_v53 = vmax.f32 %v4338_v51, 0.0  ;;  %v4168_v20 = vadd.f32 %v3987_v16, %v15765_v11  ;;  %v11591_v59 = vpop.f32.mrb[105].mxu0  ;;  %11739 = vmatmul.mubr.f32.gmra.mrb[100].mxu1 %v4706_v29 }
 0x3cc   : > { %11894 = vmatmul.mubr.f32.gmra.mrb[182].mxu0 %v5074_v23  ;;  %11741 = vmatprep.mubr.msk.f32.mxu1 %vm13528_vm0, %v15946_v28  ;;  %v4503_v23 = vpop.permute.xlu1 %4502 }
 0x3cd   : > { %11896 = vmatprep.mubr.msk.f32.mxu0 %vm13528_vm0, %v15946_v28  ;;  %v4625_v14 = vmul.f32 %v4483_v58, %v4379_v53  ;;  %v4339_v10 = vadd.f32 %v15916_v52, %v4168_v20 }
 0x3ce   : > { %v3992_v47 = vpop.f32.mrb[106].mxu0  ;;  %v4707_v26 = vld [vmem:[#allocation3 + $0x7d] sm:$0xff] }
 0x3cf   : > { %v5075_v15 = vld [vmem:[#allocation3 + $0x7e] sm:$0xff]  ;;  %4666 = vst [vmem:[#allocation3 + $0x90] sm:$0xff] %v4625_v14  ;;  %v4380_v36 = vmax.f32 %v4339_v10, 0.0  ;;  %v4169_v11 = vadd.f32 %v3992_v47, %v15771_v8  ;;  %v11594_v49 = vpop.f32.mrb[107].mxu0  ;;  %11742 = vmatmul.mubr.f32.gmra.mrb[102].mxu1 %v4707_v26  ;;  %v4508_v26 = vpop.permute.xlu0 %4507 }
 0x3d0   : > { %11897 = vmatmul.mubr.f32.gmra.mrb[184].mxu0 %v5075_v15  ;;  %11744 = vmatprep.mubr.msk.f32.mxu1 %vm13528_vm0, %v15946_v28 }
 0x3d1   : > { %11899 = vmatprep.mubr.msk.f32.mxu0 %vm13528_vm0, %v15946_v28  ;;  %v4626_v40 = vmul.f32 %v4488_v57, %v4380_v36  ;;  %v4340_v9 = vadd.f32 %v15916_v52, %v4169_v11 }
 0x3d2   : > { %v3997_v0 = vpop.f32.mrb[108].mxu0  ;;  %v4708_v6 = vld [vmem:[#allocation3 + $0x85] sm:$0xff] }
 0x3d3   : > { %v5076_v37 = vld [vmem:[#allocation3 + $0x86] sm:$0xff]  ;;  %4667 = vst [vmem:[#allocation3 + $0x98] sm:$0xff] %v4626_v40  ;;  %v4381_v63 = vmax.f32 %v4340_v9, 0.0  ;;  %v4170_v8 = vadd.f32 %v3997_v0, %v15783_v5  ;;  %v11597_v32 = vpop.f32.mrb[109].mxu0  ;;  %11745 = vmatmul.mubr.f32.gmra.mrb[104].mxu1 %v4708_v6  ;;  %v4513_v0 = vpop.permute.xlu1 %4512 }
 0x3d4   : > { %11900 = vmatmul.mubr.f32.gmra.mrb[186].mxu0 %v5076_v37  ;;  %11747 = vmatprep.mubr.msk.f32.mxu1 %vm13528_vm0, %v15946_v28 }
 0x3d5   : > { %11902 = vmatprep.mubr.msk.f32.mxu0 %vm13528_vm0, %v15946_v28  ;;  %v4627_v35 = vmul.f32 %v4493_v48, %v4381_v63  ;;  %v4341_v13 = vadd.f32 %v15916_v52, %v4170_v8 }
 0x3d6   : > { %v4002_v17 = vpop.f32.mrb[110].mxu0  ;;  %v4709_v62 = vld [vmem:[#allocation3 + $0x8d] sm:$0xff] }
 0x3d7   : > { %v5077_v25 = vld [vmem:[#allocation3 + $0x8e] sm:$0xff]  ;;  %4668 = vst [vmem:[#allocation3 + $0xa0] sm:$0xff] %v4627_v35  ;;  %v4382_v34 = vmax.f32 %v4341_v13, 0.0  ;;  %v4171_v5 = vadd.f32 %v4002_v17, %v15790_v61  ;;  %v11600_v38 = vpop.f32.mrb[111].mxu0  ;;  %11748 = vmatmul.mubr.f32.gmra.mrb[106].mxu1 %v4709_v62  ;;  %v4518_v62 = vpop.permute.xlu0 %4517 }
 0x3d8   : > { %11903 = vmatmul.mubr.f32.gmra.mrb[188].mxu0 %v5077_v25  ;;  %11750 = vmatprep.mubr.msk.f32.mxu1 %vm13528_vm0, %v15946_v28 }
 0x3d9   : > { %11905 = vmatprep.mubr.msk.f32.mxu0 %vm13528_vm0, %v15946_v28  ;;  %v4628_v60 = vmul.f32 %v4498_v39, %v4382_v34  ;;  %v4342_v42 = vadd.f32 %v15916_v52, %v4171_v5 }
 0x3da   : > { %v4007_v46 = vpop.f32.mrb[112].mxu0  ;;  %v4710_v12 = vld [vmem:[#allocation3 + $0x95] sm:$0xff] }
 0x3db   : > { %v5078_v51 = vld [vmem:[#allocation3 + $0x96] sm:$0xff]  ;;  %4669 = vst [vmem:[#allocation3 + $0xa8] sm:$0xff] %v4628_v60  ;;  %v4383_v16 = vmax.f32 %v4342_v42, 0.0  ;;  %v4172_v61 = vadd.f32 %v4007_v46, %v15796_v30  ;;  %v11603_v29 = vpop.f32.mrb[113].mxu0  ;;  %11751 = vmatmul.mubr.f32.gmra.mrb[108].mxu1 %v4710_v12 }
 0x3dc   : > { %11906 = vmatmul.mubr.f32.gmra.mrb[190].mxu0 %v5078_v51  ;;  %11753 = vmatprep.mubr.msk.f32.mxu1 %vm13528_vm0, %v15946_v28  ;;  %v4523_v51 = vpop.permute.xlu1 %4522 }
 0x3dd   : > { %11908 = vmatprep.mubr.msk.f32.mxu0 %vm13528_vm0, %v15946_v28  ;;  %v4629_v53 = vmul.f32 %v4503_v23, %v4383_v16  ;;  %v4343_v20 = vadd.f32 %v15916_v52, %v4172_v61 }
 0x3de   : > { %v4012_v59 = vpop.f32.mrb[114].mxu0  ;;  %v4711_v58 = vld [vmem:[#allocation3 + $0x9d] sm:$0xff] }
 0x3df   : > { %v5079_v14 = vld [vmem:[#allocation3 + $0x9e] sm:$0xff]  ;;  %4670 = vst [vmem:[#allocation3 + $0xb0] sm:$0xff] %v4629_v53  ;;  %v4384_v10 = vmax.f32 %v4343_v20, 0.0  ;;  %v4173_v30 = vadd.f32 %v4012_v59, %v15802_v41  ;;  %v11606_v47 = vpop.f32.mrb[115].mxu0  ;;  %11754 = vmatmul.mubr.f32.gmra.mrb[110].mxu1 %v4711_v58  ;;  %v16112_v48 = vpop.f32.mrb[72].mxu1 }
 0x3e0   : > { %11909 = vmatmul.mubr.f32.gmra.mrb[192].mxu0 %v5079_v14  ;;  %11756 = vmatprep.mubr.msk.f32.mxu1 %vm13528_vm0, %v15946_v28  ;;  %v11698_v17 = vpop.f32.mrb[73].mxu1  ;;  %v4528_v58 = vpop.permute.xlu0 %4527 }
 0x3e1   : > { %11911 = vmatprep.mubr.msk.f32.mxu0 %vm13528_vm0, %v15946_v28  ;;  %v4630_v15 = vmul.f32 %v4508_v26, %v4384_v10  ;;  %v4344_v36 = vadd.f32 %v15916_v52, %v4173_v30 }
 0x3e2   : > { %v4017_v11 = vpop.f32.mrb[116].mxu0  ;;  %v4712_v49 = vld [vmem:[#allocation3 + $0xa5] sm:$0xff] }
 0x3e3   : > { %v5080_v57 = vld [vmem:[#allocation3 + $0xa6] sm:$0xff]  ;;  %4671 = vst [vmem:[#allocation3 + $0xb8] sm:$0xff] %v4630_v15  ;;  %v4385_v40 = vmax.f32 %v4344_v36, 0.0  ;;  %v4174_v41 = vadd.f32 %v4017_v11, %v15808_v19  ;;  %v11609_v9 = vpop.f32.mrb[117].mxu0  ;;  %11757 = vmatmul.mubr.f32.gmra.mrb[112].mxu1 %v4712_v49  ;;  %v16120_v60 = vpop.f32.mrb[74].mxu1 }
 0x3e4   : > { %11912 = vmatmul.mubr.f32.gmra.mrb[194].mxu0 %v5080_v57  ;;  %11759 = vmatprep.mubr.msk.f32.mxu1 %vm13528_vm0, %v15946_v28  ;;  %v11701_v12 = vpop.f32.mrb[75].mxu1  ;;  %v4533_v11 = vpop.permute.xlu1 %4532 }
 0x3e5   : > { %11914 = vmatprep.mubr.msk.f32.mxu0 %vm13528_vm0, %v15946_v28  ;;  %v4631_v6 = vmul.f32 %v4513_v0, %v4385_v40  ;;  %v4345_v37 = vadd.f32 %v15916_v52, %v4174_v41 }
 0x3e6   : > { %v4022_v63 = vpop.f32.mrb[118].mxu0  ;;  %v4713_v8 = vld [vmem:[#allocation3 + $0xad] sm:$0xff] }
 0x3e7   : > { %v5081_v32 = vld [vmem:[#allocation3 + $0xae] sm:$0xff]  ;;  %4672 = vst [vmem:[#allocation3 + $0xc0] sm:$0xff] %v4631_v6  ;;  %v4386_v19 = vmax.f32 %v4345_v37, 0.0  ;;  %v4175_v35 = vadd.f32 %v4022_v63, %v15820_v55  ;;  %v11612_v13 = vpop.f32.mrb[119].mxu0  ;;  %11760 = vmatmul.mubr.f32.gmra.mrb[114].mxu1 %v4713_v8  ;;  %v4538_v37 = vpop.permute.xlu0 %4537 }
 0x3e8   : > { %11915 = vmatmul.mubr.f32.gmra.mrb[196].mxu0 %v5081_v32  ;;  %11762 = vmatprep.mubr.msk.f32.mxu1 %vm13528_vm0, %v15946_v28 }
 0x3e9   : > { %11917 = vmatprep.mubr.msk.f32.mxu0 %vm13528_vm0, %v15946_v28  ;;  %v4632_v25 = vmul.f32 %v4518_v62, %v4386_v19  ;;  %v4346_v34 = vadd.f32 %v15916_v52, %v4175_v35  ;;  %v4543_v62 = vpop.permute.xlu1 %4542 }
 0x3ea   : > { %v4027_v5 = vpop.f32.mrb[120].mxu0  ;;  %v4714_v38 = vld [vmem:[#allocation3 + $0xb5] sm:$0xff] }
 0x3eb   : > { %v5082_v39 = vld [vmem:[#allocation3 + $0xb6] sm:$0xff]  ;;  %4673 = vst [vmem:[#allocation3 + $0xc8] sm:$0xff] %v4632_v25  ;;  %v4387_v55 = vmax.f32 %v4346_v34, 0.0  ;;  %v4176_v42 = vadd.f32 %v4027_v5, %v15827_v56  ;;  %v11615_v46 = vpop.f32.mrb[121].mxu0  ;;  %11763 = vmatmul.mubr.f32.gmra.mrb[116].mxu1 %v4714_v38 }
 0x3ec   : > { %11918 = vmatmul.mubr.f32.gmra.mrb[198].mxu0 %v5082_v39  ;;  %11765 = vmatprep.mubr.msk.f32.mxu1 %vm13528_vm0, %v15946_v28  ;;  %v4548_v46 = vpop.permute.xlu0 %4547 }
 0x3ed   : > { %11920 = vmatprep.mubr.msk.f32.mxu0 %vm13528_vm0, %v15946_v28  ;;  %v4633_v16 = vmul.f32 %v4523_v51, %v4387_v55  ;;  %v4347_v61 = vadd.f32 %v15916_v52, %v4176_v42 }
 0x3ee   : > { %v4032_v29 = vpop.f32.mrb[122].mxu0  ;;  %v4715_v23 = vld [vmem:[#allocation3 + $0xbd] sm:$0xff] }
 0x3ef   : > { %v5083_v53 = vld [vmem:[#allocation3 + $0xbe] sm:$0xff]  ;;  %4674 = vst [vmem:[#allocation3 + $0xd0] sm:$0xff] %v4633_v16  ;;  %v4388_v20 = vmax.f32 %v4347_v61, 0.0  ;;  %v4177_v56 = vadd.f32 %v4032_v29, %v15833_v24  ;;  %v11618_v59 = vpop.f32.mrb[123].mxu0  ;;  %11766 = vmatmul.mubr.f32.gmra.mrb[118].mxu1 %v4715_v23 }
 0x3f0   : > { %11921 = vmatmul.mubr.f32.gmra.mrb[200].mxu0 %v5083_v53  ;;  %11768 = vmatprep.mubr.msk.f32.mxu1 %vm13528_vm0, %v15946_v28 }
 0x3f1   : > { %11923 = vmatprep.mubr.msk.f32.mxu0 %vm13528_vm0, %v15946_v28  ;;  %v4634_v14 = vmul.f32 %v4528_v58, %v4388_v20  ;;  %v4348_v10 = vadd.f32 %v15916_v52, %v4177_v56  ;;  %v4553_v20 = vpop.permute.xlu1 %4552 }
 0x3f2   : > { %v4037_v30 = vpop.f32.mrb[124].mxu0  ;;  %v4716_v47 = vld [vmem:[#allocation3 + $0xc5] sm:$0xff] }
 0x3f3   : > { %v5084_v26 = vld [vmem:[#allocation3 + $0xc6] sm:$0xff]  ;;  %4675 = vst [vmem:[#allocation3 + $0xd8] sm:$0xff] %v4634_v14  ;;  %v4389_v15 = vmax.f32 %v4348_v10, 0.0  ;;  %v4178_v24 = vadd.f32 %v4037_v30, %v15839_v50  ;;  %v11621_v36 = vpop.f32.mrb[125].mxu0  ;;  %11769 = vmatmul.mubr.f32.gmra.mrb[120].mxu1 %v4716_v47 }
 0x3f4   : > { %11924 = vmatmul.mubr.f32.gmra.mrb[202].mxu0 %v5084_v26  ;;  %11771 = vmatprep.mubr.msk.f32.mxu1 %vm13528_vm0, %v15946_v28  ;;  %v4558_v26 = vpop.permute.xlu0 %4557 }
 0x3f5   : > { %11926 = vmatprep.mubr.msk.f32.mxu0 %vm13528_vm0, %v15946_v28  ;;  %v4635_v49 = vmul.f32 %v4533_v11, %v4389_v15  ;;  %v4349_v57 = vadd.f32 %v15916_v52, %v4178_v24 }
 0x3f6   : > { %v4042_v40 = vpop.f32.mrb[126].mxu0  ;;  %v4717_v41 = vld [vmem:[#allocation3 + $0xcd] sm:$0xff] }
 0x3f7   : > { %v5085_v9 = vld [vmem:[#allocation3 + $0xce] sm:$0xff]  ;;  %4676 = vst [vmem:[#allocation3 + $0xe0] sm:$0xff] %v4635_v49  ;;  %v4390_v0 = vmax.f32 %v4349_v57, 0.0  ;;  %v4179_v50 = vadd.f32 %v4042_v40, %v15845_v27  ;;  %v11624_v6 = vpop.f32.mrb[127].mxu0  ;;  %11772 = vmatmul.mubr.f32.gmra.mrb[122].mxu1 %v4717_v41  ;;  %v4563_v41 = vpop.permute.xlu1 %4562 }
 0x3f8   : > { %11927 = vmatmul.mubr.f32.gmra.mrb[204].mxu0 %v5085_v9  ;;  %11774 = vmatprep.mubr.msk.f32.mxu1 %vm13528_vm0, %v15946_v28 }
 0x3f9   : > { %11929 = vmatprep.mubr.msk.f32.mxu0 %vm13528_vm0, %v15946_v28  ;;  %v4636_v63 = vmul.f32 %v4538_v37, %v4390_v0  ;;  %v4350_v8 = vadd.f32 %v15916_v52, %v4179_v50 }
 0x3fa   : > { %v4047_v32 = vpop.f32.mrb[128].mxu0  ;;  %v4718_v19 = vld [vmem:[#allocation3 + $0xd5] sm:$0xff] }
 0x3fb   : > { %v5086_v35 = vld [vmem:[#allocation3 + $0xd6] sm:$0xff]  ;;  %4677 = vst [vmem:[#allocation3 + $0xe8] sm:$0xff] %v4636_v63  ;;  %v4391_v13 = vmax.f32 %v4350_v8, 0.0  ;;  %v4180_v27 = vadd.f32 %v4047_v32, %v15850_v4  ;;  %v11627_v17 = vpop.f32.mrb[129].mxu0  ;;  %11775 = vmatmul.mubr.f32.gmra.mrb[124].mxu1 %v4718_v19  ;;  %v4568_v32 = vpop.permute.xlu0 %4567 }
 0x3fc   : > { %11930 = vmatmul.mubr.f32.gmra.mrb[206].mxu0 %v5086_v35  ;;  %11777 = vmatprep.mubr.msk.f32.mxu1 %vm13528_vm0, %v15946_v28 }
 0x3fd   : > { %11932 = vmatprep.mubr.msk.f32.mxu0 %vm13528_vm0, %v15946_v28  ;;  %v4637_v25 = vmul.f32 %v4543_v62, %v4391_v13  ;;  %v4351_v34 = vadd.f32 %v15916_v52, %v4180_v27 }
 0x3fe   : > { %v4052_v5 = vpop.f32.mrb[130].mxu0  ;;  %v4719_v38 = vld [vmem:[#allocation3 + $0xdd] sm:$0xff] }
 0x3ff   : > { %v5087_v39 = vld [vmem:[#allocation3 + $0xde] sm:$0xff]  ;;  %4678 = vst [vmem:[#allocation3 + $0xf0] sm:$0xff] %v4637_v25  ;;  %v4392_v55 = vmax.f32 %v4351_v34, 0.0  ;;  %v4181_v4 = vadd.f32 %v4052_v5, %v15861_v45  ;;  %v11630_v42 = vpop.f32.mrb[131].mxu0  ;;  %11778 = vmatmul.mubr.f32.gmra.mrb[126].mxu1 %v4719_v38  ;;  %v4573_v34 = vpop.permute.xlu1 %4572 }
 0x400   : > { %11933 = vmatmul.mubr.f32.gmra.mrb[208].mxu0 %v5087_v39  ;;  %11780 = vmatprep.mubr.msk.f32.mxu1 %vm13528_vm0, %v15946_v28 }
 0x401   : > { %11935 = vmatprep.mubr.msk.f32.mxu0 %vm13528_vm0, %v15946_v28  ;;  %v4638_v12 = vmul.f32 %v4548_v46, %v4392_v55  ;;  %v4352_v51 = vadd.f32 %v15916_v52, %v4181_v4 }
 0x402   : > { %v4057_v16 = vpop.f32.mrb[132].mxu0  ;;  %v4720_v61 = vld [vmem:[#allocation3 + $0xe5] sm:$0xff] }
 0x403   : > { %v5088_v29 = vld [vmem:[#allocation3 + $0xe6] sm:$0xff]  ;;  %4679 = vst [vmem:[#allocation3 + $0xf8] sm:$0xff] %v4638_v12  ;;  %v4393_v23 = vmax.f32 %v4352_v51, 0.0  ;;  %v4182_v45 = vadd.f32 %v4057_v16, %v15867_v44  ;;  %v11633_v53 = vpop.f32.mrb[133].mxu0  ;;  %11781 = vmatmul.mubr.f32.gmra.mrb[128].mxu1 %v4720_v61  ;;  %v4578_v12 = vpop.permute.xlu0 %4577 }
 0x404   : > { %11936 = vmatmul.mubr.f32.gmra.mrb[210].mxu0 %v5088_v29  ;;  %11783 = vmatprep.mubr.msk.f32.mxu1 %vm13528_vm0, %v15946_v28 }
 0x405   : > { %11938 = vmatprep.mubr.msk.f32.mxu0 %vm13528_vm0, %v15946_v28  ;;  %v4639_v56 = vmul.f32 %v4553_v20, %v4393_v23  ;;  %v4353_v59 = vadd.f32 %v15916_v52, %v4182_v45  ;;  %v4583_v20 = vpop.permute.xlu1 %4582 }
 0x406   : > { %v4062_v58 = vpop.f32.mrb[134].mxu0  ;;  %v4721_v14 = vld [vmem:[#allocation3 + $0xed] sm:$0xff] }
 0x407   : > { %v5089_v10 = vld [vmem:[#allocation3 + $0xee] sm:$0xff]  ;;  %4680 = vst [vmem:[#allocation3 + $0x100] sm:$0xff] %v4639_v56  ;;  %v4394_v30 = vmax.f32 %v4353_v59, 0.0  ;;  %v4183_v44 = vadd.f32 %v4062_v58, %v15870_v54  ;;  %v11636_v47 = vpop.f32.mrb[135].mxu0  ;;  %11784 = vmatmul.mubr.f32.gmra.mrb[130].mxu1 %v4721_v14 }
 0x408   : > { %11939 = vmatmul.mubr.f32.gmra.mrb[212].mxu0 %v5089_v10  ;;  %11786 = vmatprep.mubr.msk.f32.mxu1 %vm13528_vm0, %v15946_v28  ;;  %v4588_v47 = vpop.permute.xlu0 %4587 }
 0x409   : > { %11941 = vmatprep.mubr.msk.f32.mxu0 %vm13528_vm0, %v15946_v28  ;;  %v4640_v15 = vmul.f32 %v4558_v26, %v4394_v30  ;;  %v4354_v24 = vadd.f32 %v15916_v52, %v4183_v44 }
 0x40a   : > { %v4067_v36 = vpop.f32.mrb[136].mxu0  ;;  %v4722_v11 = vld [vmem:[#allocation3 + $0xf5] sm:$0xff] }
 0x40b   : > { %v5090_v49 = vld [vmem:[#allocation3 + $0xf6] sm:$0xff]  ;;  %4681 = vst [vmem:[#allocation3 + $0x108] sm:$0xff] %v4640_v15  ;;  %v4395_v57 = vmax.f32 %v4354_v24, 0.0  ;;  %v4184_v54 = vadd.f32 %v4067_v36, %v15873_v1  ;;  %v11639_v40 = vpop.f32.mrb[137].mxu0  ;;  %11787 = vmatmul.mubr.f32.gmra.mrb[132].mxu1 %v4722_v11 }
 0x40c   : > { %11942 = vmatmul.mubr.f32.gmra.mrb[214].mxu0 %v5090_v49  ;;  %11789 = vmatprep.mubr.msk.f32.mxu1 %vm13528_vm0, %v15946_v28  ;;  %v16212_v40 = vld [vmem:[#allocation3] sm:$0xff] }
 0x40d   : > { %11944 = vmatprep.mubr.msk.f32.mxu0 %vm13528_vm0, %v15946_v28  ;;  %v4641_v9 = vmul.f32 %v4563_v41, %v4395_v57  ;;  %v4355_v0 = vadd.f32 %v15916_v52, %v4184_v54  ;;  %v4593_v54 = vpop.permute.xlu1 %4592 }
 0x40e   : > { %v4072_v50 = vpop.f32.mrb[138].mxu0  ;;  %v4723_v6 = vld [vmem:[#allocation3 + $0xfd] sm:$0xff] }
 0x40f   : > { %v5091_v37 = vld [vmem:[#allocation3 + $0xfe] sm:$0xff]  ;;  %4682 = vst [vmem:[#allocation3 + $0x110] sm:$0xff] %v4641_v9  ;;  %v4396_v63 = vmax.f32 %v4355_v0, 0.0  ;;  %v4185_v1 = vadd.f32 %v4072_v50, %v15876_v18  ;;  %v11642_v8 = vpop.f32.mrb[139].mxu0  ;;  %11790 = vmatmul.mubr.f32.gmra.mrb[134].mxu1 %v4723_v6 }
 0x410   : > { %11945 = vmatmul.mubr.f32.gmra.mrb[216].mxu0 %v5091_v37  ;;  %11792 = vmatprep.mubr.msk.f32.mxu1 %vm13528_vm0, %v15946_v28 }
 0x411   : > { %11947 = vmatprep.mubr.msk.f32.mxu0 %vm13528_vm0, %v15946_v28  ;;  %v4642_v19 = vmul.f32 %v4568_v32, %v4396_v63  ;;  %v4356_v35 = vadd.f32 %v15916_v52, %v4185_v1  ;;  %v16190_v52 = vld [vmem:[%s17730_s2] ss:$0 sm:$0xff]  ;;  %v4598_v63 = vpop.permute.xlu0 %4597 }
 0x412   : > { %v4077_v13 = vpop.f32.mrb[140].mxu0  ;;  %v4724_v27 = vld [vmem:[#allocation3 + $0x105] sm:$0xff] }
 0x413   : > { %v5092_v17 = vld [vmem:[#allocation3 + $0x106] sm:$0xff]  ;;  %4683 = vst [vmem:[#allocation3 + $0x118] sm:$0xff] %v4642_v19  ;;  %v4397_v62 = vmax.f32 %v4356_v35, 0.0  ;;  %v4186_v18 = vadd.f32 %v4077_v13, %v15885_v7  ;;  %v11645_v25 = vpop.f32.mrb[141].mxu0  ;;  %11793 = vmatmul.mubr.f32.gmra.mrb[136].mxu1 %v4724_v27 }
 0x414   : > { %11948 = vmatmul.mubr.f32.gmra.mrb[218].mxu0 %v5092_v17  ;;  %11795 = vmatprep.mubr.msk.f32.mxu1 %vm13528_vm0, %v15946_v28  ;;  %v4603_v17 = vpop.permute.xlu1 %4602 }
 0x415   : > { %11950 = vmatprep.mubr.msk.f32.mxu0 %vm13528_vm0, %v15946_v28  ;;  %v4643_v5 = vmul.f32 %v4573_v34, %v4397_v62  ;;  %v4357_v38 = vadd.f32 %v16190_v52, %v4186_v18 }
 0x416   : > { %v4082_v39 = vpop.f32.mrb[142].mxu0  ;;  %v4725_v7 = vld [vmem:[#allocation3 + $0x10d] sm:$0xff] }
 0x417   : > { %v5093_v55 = vld [vmem:[#allocation3 + $0x10e] sm:$0xff]  ;;  %4684 = vst [vmem:[#allocation3 + $0x120] sm:$0xff] %v4643_v5  ;;  %v4398_v4 = vmax.f32 %v4357_v38, 0.0  ;;  %v4187_v42 = vadd.f32 %v4082_v39, %v15889_v2  ;;  %v11648_v46 = vpop.f32.mrb[143].mxu0  ;;  %11796 = vmatmul.mubr.f32.gmra.mrb[138].mxu1 %v4725_v7  ;;  %v4608_v7 = vpop.permute.xlu0 %4607 }
 0x418   : > { %11951 = vmatmul.mubr.f32.gmra.mrb[220].mxu0 %v5093_v55  ;;  %11798 = vmatprep.mubr.msk.f32.mxu1 %vm13528_vm0, %v15946_v28 }
 0x419   : > { %11953 = vmatprep.mubr.msk.f32.mxu0 %vm13528_vm0, %v15946_v28  ;;  %v4644_v51 = vmul.f32 %v4578_v12, %v4398_v4  ;;  %v4358_v16 = vadd.f32 %v16190_v52, %v4187_v42  ;;  %v9161_v4 = vld [vmem:[%s17731_s3 + $0x208] sm:$0xff] }
 0x41a   : > { %v4087_v61 = vpop.f32.mrb[144].mxu0  ;;  %v4726_v29 = vld [vmem:[#allocation3 + $0x115] sm:$0xff] }
 0x41b   : > { %v5094_v23 = vld [vmem:[#allocation3 + $0x116] sm:$0xff]  ;;  %4685 = vst [vmem:[#allocation3 + $0x128] sm:$0xff] %v4644_v51  ;;  %v4399_v45 = vmax.f32 %v4358_v16, 0.0  ;;  %v4188_v2 = vadd.f32 %v4087_v61, %v15892_v22  ;;  %v11651_v53 = vpop.f32.mrb[145].mxu0  ;;  %11799 = vmatmul.mubr.f32.gmra.mrb[140].mxu1 %v4726_v29  ;;  %v5511_v16 = vld [vmem:[#allocation3 + $0x7] sm:$0xff] }
 0x41c   : > { %11954 = vmatmul.mubr.f32.gmra.mrb[222].mxu0 %v5094_v23  ;;  %11801 = vmatprep.mubr.msk.f32.mxu1 %vm13528_vm0, %v15946_v28  ;;  %v5962_v29 = vld [vmem:[#allocation3 + $0x17] sm:$0xff]  ;;  %v5963_v53 = vld [vmem:[#allocation3 + $0x1f] sm:$0xff] }
 0x41d   : > { %11956 = vmatprep.mubr.msk.f32.mxu0 %vm13528_vm0, %v15946_v28  ;;  %v4645_v56 = vmul.f32 %v4583_v20, %v4399_v45  ;;  %v4359_v59 = vadd.f32 %v16190_v52, %v4188_v2  ;;  %v9162_v23 = vld [vmem:[%s17731_s3 + $0x210] sm:$0xff]  ;;  %v9163_v45 = vld [vmem:[%s17731_s3 + $0x218] sm:$0xff]  ;;  %v9164_v20 = vld [vmem:[%s17731_s3 + $0x220] sm:$0xff] }
 0x41e   : > { %v4092_v58 = vpop.f32.mrb[146].mxu0  ;;  %v4727_v14 = vld [vmem:[#allocation3 + $0x11d] sm:$0xff]  ;;  %v13375_v2 = vpack.c.bf16 %v9163_v45, %v9162_v23  ;;  %v5976_v45 = vld [vmem:[#allocation3 + $0x87] sm:$0xff] }
 0x41f   : > { %v5095_v10 = vld [vmem:[#allocation3 + $0x11e] sm:$0xff]  ;;  %4686 = vst [vmem:[#allocation3 + $0x130] sm:$0xff] %v4645_v56  ;;  %v4400_v30 = vmax.f32 %v4359_v59, 0.0  ;;  %v4189_v22 = vadd.f32 %v4092_v58, %v15895_v21  ;;  %v11654_v44 = vpop.f32.mrb[147].mxu0  ;;  %11802 = vmatmul.mubr.f32.gmra.mrb[142].mxu1 %v4727_v14  ;;  %v9165_v56 = vld [vmem:[%s17731_s3 + $0x228] sm:$0xff] }
 0x420   : > { %11957 = vmatmul.mubr.f32.gmra.mrb[224].mxu0 %v5095_v10  ;;  %11804 = vmatprep.mubr.msk.f32.mxu1 %vm13528_vm0, %v15946_v28  ;;  %v9176_v59 = vld [vmem:[%s17731_s3 + $0x280] sm:$0xff]  ;;  %v9177_v58 = vld [vmem:[%s17731_s3 + $0x288] sm:$0xff]  ;;  %v13378_v10 = vpack.c.bf16 %v9165_v56, %v9164_v20  ;;  %v9167_v44 = vld [vmem:[%s17731_s3 + $0x238] sm:$0xff] }
 0x421   : > { %11959 = vmatprep.mubr.msk.f32.mxu0 %vm13528_vm0, %v15946_v28  ;;  %v4646_v26 = vmul.f32 %v4588_v47, %v4400_v30  ;;  %v4360_v15 = vadd.f32 %v16190_v52, %v4189_v22  ;;  %v13396_v14 = vpack.c.bf16 %v9177_v58, %v9176_v59  ;;  %v5964_v30 = vld [vmem:[#allocation3 + $0x27] sm:$0xff]  ;;  %v9166_v22 = vld [vmem:[%s17731_s3 + $0x230] sm:$0xff] }
 0x422   : > { %v4097_v24 = vpop.f32.mrb[148].mxu0  ;;  %v4728_v36 = vld [vmem:[#allocation3 + $0x125] sm:$0xff]  ;;  %v9178_v47 = vld [vmem:[%s17731_s3 + $0x290] sm:$0xff] }
 0x423   : > { %v5096_v11 = vld [vmem:[#allocation3 + $0x126] sm:$0xff]  ;;  %4687 = vst [vmem:[#allocation3 + $0x138] sm:$0xff] %v4646_v26  ;;  %v4401_v49 = vmax.f32 %v4360_v15, 0.0  ;;  %v4190_v21 = vadd.f32 %v4097_v24, %v15898_v31  ;;  %v11657_v57 = vpop.f32.mrb[149].mxu0  ;;  %11805 = vmatmul.mubr.f32.gmra.mrb[144].mxu1 %v4728_v36  ;;  %v9179_v26 = vld [vmem:[%s17731_s3 + $0x298] sm:$0xff]  ;;  %v13381_v24 = vpack.c.bf16 %v9167_v44, %v9166_v22  ;;  %v5965_v36 = vld [vmem:[#allocation3 + $0x2f] sm:$0xff] }
 0x424   : > { %11960 = vmatmul.mubr.f32.gmra.mrb[226].mxu0 %v5096_v11  ;;  %11807 = vmatprep.mubr.msk.f32.mxu1 %vm13528_vm0, %v16212_v40  ;;  %v13399_v15 = vpack.c.bf16 %v9179_v26, %v9178_v47  ;;  %v9168_v11 = vld [vmem:[%s17731_s3 + $0x240] sm:$0xff]  ;;  %v9181_v57 = vld [vmem:[%s17731_s3 + $0x2a8] sm:$0xff]  ;;  %v5978_v44 = vld [vmem:[#allocation3 + $0x97] sm:$0xff] }
 0x425   : > { %11962 = vmatprep.mubr.msk.f32.mxu0 %vm13528_vm0, %v16212_v40  ;;  %v4647_v28 = vmul.f32 %v4593_v54, %v4401_v49  ;;  %v4361_v41 = vadd.f32 %v16190_v52, %v4190_v21  ;;  %v9169_v49 = vld [vmem:[%s17731_s3 + $0x248] sm:$0xff]  ;;  %v9180_v21 = vld [vmem:[%s17731_s3 + $0x2a0] sm:$0xff] }
 0x426   : > { %v4102_v9 = vpop.f32.mrb[150].mxu0  ;;  %v4729_v0 = vld [vmem:[#allocation3 + $0x12d] sm:$0xff]  ;;  %v13402_v54 = vpack.c.bf16 %v9181_v57, %v9180_v21 }
 0x427   : > { %v5097_v50 = vld [vmem:[#allocation3 + $0x12e] sm:$0xff]  ;;  %4688 = vst [vmem:[#allocation3 + $0x140] sm:$0xff] %v4647_v28  ;;  %v4402_v31 = vmax.f32 %v4361_v41, 0.0  ;;  %v4191_v6 = vadd.f32 %v4102_v9, %v15907_v43  ;;  %11808 = vmatmul.mubr.f32.gmra.mrb[146].mxu1 %v4729_v0  ;;  %v11660_v37 = vpop.f32.mrb[151].mxu0  ;;  %v13384_v28 = vpack.c.bf16 %v9169_v49, %v9168_v11  ;;  %v5966_v41 = vld [vmem:[#allocation3 + $0x37] sm:$0xff]  ;;  %v5979_v11 = vld [vmem:[#allocation3 + $0x9f] sm:$0xff] }
 0x428   : > { %11963 = vmatmul.mubr.f32.gmra.mrb[228].mxu0 %v5097_v50  ;;  %11810 = vmatprep.mubr.msk.f32.mxu1 %vm13528_vm0, %v16212_v40  ;;  %v9170_v9 = vld [vmem:[%s17731_s3 + $0x250] sm:$0xff]  ;;  %v9171_v0 = vld [vmem:[%s17731_s3 + $0x258] sm:$0xff] }
 0x429   : > { %11965 = vmatprep.mubr.msk.f32.mxu0 %vm13528_vm0, %v16212_v40  ;;  %v4648_v1 = vmul.f32 %v4598_v63, %v4402_v31  ;;  %v4362_v8 = vadd.f32 %v16190_v52, %v4191_v6  ;;  %v9182_v50 = vld [vmem:[%s17731_s3 + $0x2b0] sm:$0xff]  ;;  %v9183_v31 = vld [vmem:[%s17731_s3 + $0x2b8] sm:$0xff]  ;;  %v13387_v6 = vpack.c.bf16 %v9171_v0, %v9170_v9 }
 0x42a   : > { %v4107_v32 = vpop.f32.mrb[152].mxu0  ;;  %v4730_v19 = vld [vmem:[#allocation3 + $0x135] sm:$0xff]  ;;  %v13405_v37 = vpack.c.bf16 %v9183_v31, %v9182_v50  ;;  %v5967_v63 = vld [vmem:[#allocation3 + $0x3f] sm:$0xff] }
 0x42b   : > { %v5098_v35 = vld [vmem:[#allocation3 + $0x136] sm:$0xff]  ;;  %4689 = vst [vmem:[#allocation3 + $0x148] sm:$0xff] %v4648_v1  ;;  %v4403_v13 = vmax.f32 %v4362_v8, 0.0  ;;  %v4192_v43 = vadd.f32 %v4107_v32, %v15911_v33  ;;  %11811 = vmatmul.mubr.f32.gmra.mrb[148].mxu1 %v4730_v19  ;;  %v11663_v27 = vpop.f32.mrb[153].mxu0  ;;  %v9172_v1 = vld [vmem:[%s17731_s3 + $0x260] sm:$0xff]  ;;  %v9173_v8 = vld [vmem:[%s17731_s3 + $0x268] sm:$0xff] }
 0x42c   : > { %11966 = vmatmul.mubr.f32.gmra.mrb[230].mxu0 %v5098_v35  ;;  %11813 = vmatprep.mubr.msk.f32.mxu1 %vm13528_vm0, %v16212_v40  ;;  %v9184_v32 = vld [vmem:[%s17731_s3 + $0x2c0] sm:$0xff]  ;;  %v9185_v19 = vld [vmem:[%s17731_s3 + $0x2c8] sm:$0xff]  ;;  %v13390_v35 = vpack.c.bf16 %v9173_v8, %v9172_v1  ;;  %v9174_v27 = vld [vmem:[%s17731_s3 + $0x270] sm:$0xff] }
 0x42d   : > { %11968 = vmatprep.mubr.msk.f32.mxu0 %vm13528_vm0, %v16212_v40  ;;  %v4649_v62 = vmul.f32 %v4603_v17, %v4403_v13  ;;  %v4363_v18 = vadd.f32 %v16190_v52, %v4192_v43  ;;  %v9160_v52 = vld [vmem:[%s17731_s3 + $0x200] sm:$0xff]  ;;  %v13408_v13 = vpack.c.bf16 %v9185_v19, %v9184_v32  ;;  %v9175_v17 = vld [vmem:[%s17731_s3 + $0x278] sm:$0xff]  ;;  %v5977_v59 = vld [vmem:[#allocation3 + $0x8f] sm:$0xff] }
 0x42e   : > { %v4731_v25 = vld [vmem:[#allocation3 + $0x13d] sm:$0xff]  ;;  %v5184_v5 = vpop.f32.mrb[154].mxu0  ;;  %v13372_v61 = vpack.c.bf16 %v9161_v4, %v9160_v52  ;;  %v5968_v43 = vld [vmem:[#allocation3 + $0x47] sm:$0xff]  ;;  %v9190_v52 = vld [vmem:[%s17731_s3 + $0x2f0] sm:$0xff] }
 0x42f   : > { %v5099_v34 = vld [vmem:[#allocation3 + $0x13e] sm:$0xff]  ;;  %4690 = vst [vmem:[#allocation3 + $0x150] sm:$0xff] %v4649_v62  ;;  %v4404_v38 = vmax.f32 %v4363_v18, 0.0  ;;  %11814 = vmatmul.mubr.f32.gmra.mrb[150].mxu1 %v4731_v25  ;;  %v16232_v33 = vadd.f32 %v5184_v5, %v16112_v48  ;;  %v11853_v39 = vpop.f32.mrb[155].mxu0  ;;  %v9186_v62 = vld [vmem:[%s17731_s3 + $0x2d0] sm:$0xff]  ;;  %v13393_v25 = vpack.c.bf16 %v9175_v17, %v9174_v27 }
 0x430   : > { %11969 = vmatmul.mubr.f32.gmra.mrb[232].mxu0 %v5099_v34  ;;  %11816 = vmatprep.mubr.msk.f32.mxu1 %vm13528_vm0, %v16212_v40  ;;  %v9187_v18 = vld [vmem:[%s17731_s3 + $0x2d8] sm:$0xff]  ;;  %v5969_v5 = vld [vmem:[#allocation3 + $0x4f] sm:$0xff] }
 0x431   : > { %11971 = vmatprep.mubr.msk.f32.mxu0 %vm13528_vm0, %v16212_v40  ;;  %v4650_v55 = vmul.f32 %v4608_v7, %v4404_v38  ;;  %v13411_v34 = vpack.c.bf16 %v9187_v18, %v9186_v62  ;;  %v9188_v38 = vld [vmem:[%s17731_s3 + $0x2e0] sm:$0xff]  ;;  %v9189_v39 = vld [vmem:[%s17731_s3 + $0x2e8] sm:$0xff]  ;;  %v9191_v4 = vld [vmem:[%s17731_s3 + $0x2f8] sm:$0xff] }
 0x432   : > { %v4732_v42 = vld [vmem:[#allocation3 + $0x145] sm:$0xff]  ;;  %v5189_v46 = vpop.f32.mrb[156].mxu0  ;;  %v13414_v7 = vpack.c.bf16 %v9189_v39, %v9188_v38 }
 0x433   : > { %v5100_v48 = vld [vmem:[#allocation3 + $0x146] sm:$0xff]  ;;  %4691 = vst [vmem:[#allocation3 + $0x158] sm:$0xff] %v4650_v55  ;;  %11817 = vmatmul.mubr.f32.gmra.mrb[152].mxu1 %v4732_v42  ;;  %v16245_v12 = vadd.f32 %v5189_v46, %v16120_v60  ;;  %v11856_v51 = vpop.f32.mrb[157].mxu0  ;;  %v5512_v60 = vld [vmem:[#allocation3 + $0xf] sm:$0xff]  ;;  %v5970_v55 = vld [vmem:[#allocation3 + $0x57] sm:$0xff]  ;;  %v13417_v42 = vpack.c.bf16 %v9191_v4, %v9190_v52 }
 0x434   : > { %11972 = vmatmul.mubr.f32.gmra.mrb[234].mxu0 %v5100_v48  ;;  %12006 = vmatprep.mubr.msk.f32.mxu1 %vm13528_vm0, %v16212_v40  ;;  %v5971_v48 = vld [vmem:[#allocation3 + $0x5f] sm:$0xff]  ;;  %v5972_v46 = vld [vmem:[#allocation3 + $0x67] sm:$0xff]  ;;  %v5973_v51 = vld [vmem:[#allocation3 + $0x6f] sm:$0xff] }
 0x435   : > { %12161 = vmatprep.mubr.msk.f32.mxu0 %vm13528_vm0, %v16212_v40  ;;  %v5983_v18 = vld [vmem:[#allocation3 + $0xbf] sm:$0xff] }
 0x437   : > { %12007 = vmatmul.mubr.f32.vlgmr.msra.gmra.mrb[154].mxu1 %v5511_v16  ;;  %v5974_v16 = vld [vmem:[#allocation3 + $0x77] sm:$0xff] }
 0x438   : > { %12162 = vmatmul.mubr.f32.vlgmr.msra.gmra.mrb[236].mxu0 %v5962_v29  ;;  %13373 = vmatpush3.bf16.msra.mxu1 %v13372_v61  ;;  %v5975_v61 = vld [vmem:[#allocation3 + $0x7f] sm:$0xff] }
 0x439   : > { %12009 = vmatprep.mubr.msk.f32.mxu1 %vm13528_vm0, %v16212_v40  ;;  %12164 = vmatprep.mubr.msk.f32.mxu0 %vm13528_vm0, %v16212_v40 }
 0x43a   : > { %13374 = vmatprep.subr.bf16.mxu1 %v13526_v3  ;;  %13397 = vmatpush3.bf16.msra.mxu0 %v13396_v14 }
 0x43b   : > { %12010 = vmatmul.mubr.f32.gmra.mrb[156].mxu1 %v5512_v60  ;;  %13398 = vmatprep.subr.bf16.mxu0 %v13526_v3 }
 0x43c   : > { %12165 = vmatmul.mubr.f32.gmra.mrb[238].mxu0 %v5963_v53  ;;  %12012 = vmatprep.mubr.msk.f32.mxu1 %vm13528_vm0, %v16212_v40 }
 0x43d   : > { %12167 = vmatprep.mubr.msk.f32.mxu0 %vm13528_vm0, %v16212_v40  ;;  %13376 = vmatpush3.bf16.msra.mxu1 %v13375_v2 }
 0x43e   : > { %13377 = vmatprep.subr.bf16.mxu1 %v13526_v3  ;;  %13400 = vmatpush3.bf16.msra.mxu0 %v13399_v15 }
 0x43f   : > { %12013 = vmatmul.mubr.f32.gmra.mrb[158].mxu1 %v5962_v29  ;;  %13401 = vmatprep.subr.bf16.mxu0 %v13526_v3 }
 0x440   : > { %12168 = vmatmul.mubr.f32.gmra.mrb[240].mxu0 %v5964_v30  ;;  %12015 = vmatprep.mubr.msk.f32.mxu1 %vm13528_vm0, %v16212_v40 }
 0x441   : > { %12170 = vmatprep.mubr.msk.f32.mxu0 %vm13528_vm0, %v16212_v40  ;;  %13379 = vmatpush3.bf16.msra.mxu1 %v13378_v10 }
 0x442   : > { %13380 = vmatprep.subr.bf16.mxu1 %v13526_v3  ;;  %13403 = vmatpush3.bf16.msra.mxu0 %v13402_v54 }
 0x443   : > { %12016 = vmatmul.mubr.f32.gmra.mrb[160].mxu1 %v5963_v53  ;;  %13404 = vmatprep.subr.bf16.mxu0 %v13526_v3 }
 0x444   : > { %12171 = vmatmul.mubr.f32.gmra.mrb[242].mxu0 %v5965_v36  ;;  %12018 = vmatprep.mubr.msk.f32.mxu1 %vm13528_vm0, %v16212_v40 }
 0x445   : > { %12173 = vmatprep.mubr.msk.f32.mxu0 %vm13528_vm0, %v16212_v40  ;;  %13382 = vmatpush3.bf16.msra.mxu1 %v13381_v24 }
 0x446   : > { %13383 = vmatprep.subr.bf16.mxu1 %v13526_v3  ;;  %13406 = vmatpush3.bf16.msra.mxu0 %v13405_v37  ;;  %v5981_v37 = vld [vmem:[#allocation3 + $0xaf] sm:$0xff] }
 0x447   : > { %12019 = vmatmul.mubr.f32.gmra.mrb[162].mxu1 %v5964_v30  ;;  %13407 = vmatprep.subr.bf16.mxu0 %v13526_v3 }
 0x448   : > { %12174 = vmatmul.mubr.f32.gmra.mrb[244].mxu0 %v5966_v41  ;;  %12021 = vmatprep.mubr.msk.f32.mxu1 %vm13528_vm0, %v16212_v40 }
 0x449   : > { %12176 = vmatprep.mubr.msk.f32.mxu0 %vm13528_vm0, %v16212_v40  ;;  %13385 = vmatpush3.bf16.msra.mxu1 %v13384_v28 }
 0x44a   : > { %13386 = vmatprep.subr.bf16.mxu1 %v13526_v3  ;;  %13409 = vmatpush3.bf16.msra.mxu0 %v13408_v13 }
 0x44b   : > { %12022 = vmatmul.mubr.f32.gmra.mrb[164].mxu1 %v5965_v36  ;;  %13410 = vmatprep.subr.bf16.mxu0 %v13526_v3 }
 0x44c   : > { %12177 = vmatmul.mubr.f32.gmra.mrb[246].mxu0 %v5967_v63  ;;  %12024 = vmatprep.mubr.msk.f32.mxu1 %vm13528_vm0, %v16212_v40 }
 0x44d   : > { %12179 = vmatprep.mubr.msk.f32.mxu0 %vm13528_vm0, %v16212_v40  ;;  %13388 = vmatpush3.bf16.msra.mxu1 %v13387_v6 }
 0x44e   : > { %13389 = vmatprep.subr.bf16.mxu1 %v13526_v3  ;;  %13412 = vmatpush3.bf16.msra.mxu0 %v13411_v34 }
 0x44f   : > { %12025 = vmatmul.mubr.f32.gmra.mrb[166].mxu1 %v5966_v41  ;;  %13413 = vmatprep.subr.bf16.mxu0 %v13526_v3  ;;  %v5980_v41 = vld [vmem:[#allocation3 + $0xa7] sm:$0xff] }
 0x450   : > { %12180 = vmatmul.mubr.f32.gmra.mrb[248].mxu0 %v5968_v43  ;;  %12027 = vmatprep.mubr.msk.f32.mxu1 %vm13528_vm0, %v16212_v40 }
 0x451   : > { %12182 = vmatprep.mubr.msk.f32.mxu0 %vm13528_vm0, %v16212_v40  ;;  %13391 = vmatpush3.bf16.msra.mxu1 %v13390_v35  ;;  %v5982_v35 = vld [vmem:[#allocation3 + $0xb7] sm:$0xff] }
 0x452   : > { %13392 = vmatprep.subr.bf16.mxu1 %v13526_v3  ;;  %13415 = vmatpush3.bf16.msra.mxu0 %v13414_v7  ;;  %v5984_v7 = vld [vmem:[#allocation3 + $0xc7] sm:$0xff] }
 0x453   : > { %12028 = vmatmul.mubr.f32.gmra.mrb[168].mxu1 %v5967_v63  ;;  %13416 = vmatprep.subr.bf16.mxu0 %v13526_v3 }
 0x454   : > { %12183 = vmatmul.mubr.f32.gmra.mrb[250].mxu0 %v5969_v5  ;;  %12030 = vmatprep.mubr.msk.f32.mxu1 %vm13528_vm0, %v16212_v40 }
 0x455   : > { %12185 = vmatprep.mubr.msk.f32.mxu0 %vm13528_vm0, %v16212_v40  ;;  %13394 = vmatpush3.bf16.msra.mxu1 %v13393_v25 }
 0x456   : > { %13419 = vmatprep.subr.bf16.mxu1 %v13526_v3  ;;  %13418 = vmatpush3.bf16.msra.mxu0 %v13417_v42 }
 0x457   : > { %12031 = vmatmul.mubr.f32.gmra.mrb[170].mxu1 %v5968_v43  ;;  %13443 = vmatprep.subr.bf16.mxu0 %v13526_v3 }
 0x458   : > { %12186 = vmatmul.mubr.f32.gmra.mrb[252].mxu0 %v5970_v55  ;;  %12033 = vmatprep.mubr.msk.f32.mxu1 %vm13528_vm0, %v16212_v40 }
 0x459   : > { %12188 = vmatprep.mubr.msk.f32.mxu0 %vm13528_vm0, %v16212_v40 }
 0x45b   : > { %12034 = vmatmul.mubr.f32.gmra.mrb[172].mxu1 %v5969_v5 }
 0x45c   : > { %12189 = vmatmul.mubr.f32.gmra.mrb[254].mxu0 %v5971_v48  ;;  %12036 = vmatprep.mubr.msk.f32.mxu1 %vm13528_vm0, %v16212_v40 }
 0x45d   : > { %12191 = vmatprep.mubr.msk.f32.mxu0 %vm13528_vm0, %v16212_v40 }
 0x45f   : > { %12037 = vmatmul.mubr.f32.gmra.mrb[174].mxu1 %v5970_v55 }
 0x460   : > { %12192 = vmatmul.mubr.f32.gmra.mrb[0].mxu0 %v5972_v46  ;;  %12039 = vmatprep.mubr.msk.f32.mxu1 %vm13528_vm0, %v16212_v40 }
 0x461   : > { %12194 = vmatprep.mubr.msk.f32.mxu0 %vm13528_vm0, %v16212_v40 }
 0x463   : > { %12040 = vmatmul.mubr.f32.gmra.mrb[176].mxu1 %v5971_v48 }
 0x464   : > { %12195 = vmatmul.mubr.f32.gmra.mrb[2].mxu0 %v5973_v51  ;;  %12042 = vmatprep.mubr.msk.f32.mxu1 %vm13528_vm0, %v16212_v40 }
 0x465   : > { %12197 = vmatprep.mubr.msk.f32.mxu0 %vm13528_vm0, %v16212_v40 }
 0x467   : > { %12043 = vmatmul.mubr.f32.gmra.mrb[178].mxu1 %v5972_v46  ;;  %v5985_v46 = vld [vmem:[#allocation3 + $0xcf] sm:$0xff] }
 0x468   : > { %12198 = vmatmul.mubr.f32.gmra.mrb[4].mxu0 %v5974_v16  ;;  %12045 = vmatprep.mubr.msk.f32.mxu1 %vm13528_vm0, %v16212_v40 }
 0x469   : > { %12200 = vmatprep.mubr.msk.f32.mxu0 %vm13528_vm0, %v16212_v40 }
 0x46b   : > { %12046 = vmatmul.mubr.f32.gmra.mrb[180].mxu1 %v5973_v51 }
 0x46c   : > { %12201 = vmatmul.mubr.f32.gmra.mrb[6].mxu0 %v5975_v61  ;;  %12048 = vmatprep.mubr.msk.f32.mxu1 %vm13528_vm0, %v16212_v40 }
 0x46d   : > { %12203 = vmatprep.mubr.msk.f32.mxu0 %vm13528_vm0, %v16212_v40 }
 0x46e   : > { %v4825_v29 = vpop.f32.mrb[76].mxu1 }
 0x46f   : > { %v5194_v23 = vpop.f32.mrb[158].mxu0  ;;  %v11704_v2 = vpop.f32.mrb[77].mxu1  ;;  %12049 = vmatmul.mubr.f32.gmra.mrb[182].mxu1 %v5974_v16 }
 0x470   : > { %v16413_v60 = vadd.f32 %v5194_v23, %v4825_v29  ;;  %v11859_v53 = vpop.f32.mrb[159].mxu0  ;;  %12204 = vmatmul.mubr.f32.gmra.mrb[8].mxu0 %v5976_v45  ;;  %12051 = vmatprep.mubr.msk.f32.mxu1 %vm13528_vm0, %v16212_v40 }
 0x471   : > { %12206 = vmatprep.mubr.msk.f32.mxu0 %vm13528_vm0, %v16212_v40 }
 0x472   : > { %v4830_v20 = vpop.f32.mrb[78].mxu1 }
 0x473   : > { %v5199_v56 = vpop.f32.mrb[160].mxu0  ;;  %v11707_v14 = vpop.f32.mrb[79].mxu1  ;;  %12052 = vmatmul.mubr.f32.gmra.mrb[184].mxu1 %v5975_v61 }
 0x474   : > { %v16419_v58 = vadd.f32 %v5199_v56, %v4830_v20  ;;  %v11862_v10 = vpop.f32.mrb[161].mxu0  ;;  %12207 = vmatmul.mubr.f32.gmra.mrb[10].mxu0 %v5977_v59  ;;  %12054 = vmatprep.mubr.msk.f32.mxu1 %vm13528_vm0, %v16212_v40  ;;  %v5987_v14 = vld [vmem:[#allocation3 + $0xdf] sm:$0xff] }
 0x475   : > { %12209 = vmatprep.mubr.msk.f32.mxu0 %vm13528_vm0, %v16212_v40 }
 0x476   : > { %v4835_v30 = vpop.f32.mrb[80].mxu1 }
 0x477   : > { %v5204_v22 = vpop.f32.mrb[162].mxu0  ;;  %v11710_v26 = vpop.f32.mrb[81].mxu1  ;;  %12055 = vmatmul.mubr.f32.gmra.mrb[186].mxu1 %v5976_v45  ;;  %v5986_v45 = vld [vmem:[#allocation3 + $0xd7] sm:$0xff] }
 0x478   : > { %v16425_v47 = vadd.f32 %v5204_v22, %v4835_v30  ;;  %v11865_v15 = vpop.f32.mrb[163].mxu0  ;;  %12210 = vmatmul.mubr.f32.gmra.mrb[12].mxu0 %v5978_v44  ;;  %12057 = vmatprep.mubr.msk.f32.mxu1 %vm13528_vm0, %v16212_v40 }
 0x479   : > { %12212 = vmatprep.mubr.msk.f32.mxu0 %vm13528_vm0, %v16212_v40  ;;  %v5988_v15 = vld [vmem:[#allocation3 + $0xe7] sm:$0xff] }
 0x47a   : > { %v4840_v24 = vpop.f32.mrb[82].mxu1 }
 0x47b   : > { %v5209_v36 = vpop.f32.mrb[164].mxu0  ;;  %v11713_v21 = vpop.f32.mrb[83].mxu1  ;;  %12058 = vmatmul.mubr.f32.gmra.mrb[188].mxu1 %v5977_v59 }
 0x47c   : > { %v16431_v49 = vadd.f32 %v5209_v36, %v4840_v24  ;;  %v11868_v57 = vpop.f32.mrb[165].mxu0  ;;  %12213 = vmatmul.mubr.f32.gmra.mrb[14].mxu0 %v5979_v11  ;;  %12060 = vmatprep.mubr.msk.f32.mxu1 %vm13528_vm0, %v16212_v40 }
 0x47d   : > { %12215 = vmatprep.mubr.msk.f32.mxu0 %vm13528_vm0, %v16212_v40 }
 0x47e   : > { %v4845_v54 = vpop.f32.mrb[84].mxu1 }
 0x47f   : > { %v5214_v28 = vpop.f32.mrb[166].mxu0  ;;  %v11716_v0 = vpop.f32.mrb[85].mxu1  ;;  %12061 = vmatmul.mubr.f32.gmra.mrb[190].mxu1 %v5978_v44 }
 0x480   : > { %v16437_v9 = vadd.f32 %v5214_v28, %v4845_v54  ;;  %v11871_v50 = vpop.f32.mrb[167].mxu0  ;;  %12216 = vmatmul.mubr.f32.gmra.mrb[16].mxu0 %v5980_v41  ;;  %12063 = vmatprep.mubr.msk.f32.mxu1 %vm13528_vm0, %v16212_v40  ;;  %v5989_v54 = vld [vmem:[#allocation3 + $0xef] sm:$0xff] }
 0x481   : > { %12218 = vmatprep.mubr.msk.f32.mxu0 %vm13528_vm0, %v16212_v40 }
 0x482   : > { %v4850_v31 = vpop.f32.mrb[86].mxu1 }
 0x483   : > { %v5219_v6 = vpop.f32.mrb[168].mxu0  ;;  %v11719_v1 = vpop.f32.mrb[87].mxu1  ;;  %12064 = vmatmul.mubr.f32.gmra.mrb[192].mxu1 %v5979_v11 }
 0x484   : > { %v16443_v63 = vadd.f32 %v5219_v6, %v4850_v31  ;;  %v11874_v8 = vpop.f32.mrb[169].mxu0  ;;  %12219 = vmatmul.mubr.f32.gmra.mrb[18].mxu0 %v5981_v37  ;;  %12066 = vmatprep.mubr.msk.f32.mxu1 %vm13528_vm0, %v16212_v40  ;;  %v5990_v6 = vld [vmem:[#allocation3 + $0xf7] sm:$0xff] }
 0x485   : > { %12221 = vmatprep.mubr.msk.f32.mxu0 %vm13528_vm0, %v16212_v40 }
 0x486   : > { %v4855_v32 = vpop.f32.mrb[88].mxu1 }
 0x487   : > { %v5224_v19 = vpop.f32.mrb[170].mxu0  ;;  %v11722_v43 = vpop.f32.mrb[89].mxu1  ;;  %12067 = vmatmul.mubr.f32.gmra.mrb[194].mxu1 %v5980_v41 }
 0x488   : > { %v16449_v13 = vadd.f32 %v5224_v19, %v4855_v32  ;;  %v11877_v27 = vpop.f32.mrb[171].mxu0  ;;  %12222 = vmatmul.mubr.f32.gmra.mrb[20].mxu0 %v5982_v35  ;;  %12069 = vmatprep.mubr.msk.f32.mxu1 %vm13528_vm0, %v16212_v40 }
 0x489   : > { %12224 = vmatprep.mubr.msk.f32.mxu0 %vm13528_vm0, %v16212_v40 }
 0x48a   : > { %v4860_v17 = vpop.f32.mrb[90].mxu1 }
 0x48b   : > { %v5229_v62 = vpop.f32.mrb[172].mxu0  ;;  %v11725_v34 = vpop.f32.mrb[91].mxu1  ;;  %12070 = vmatmul.mubr.f32.gmra.mrb[196].mxu1 %v5981_v37 }
 0x48c   : > { %v16455_v25 = vadd.f32 %v5229_v62, %v4860_v17  ;;  %v11880_v5 = vpop.f32.mrb[173].mxu0  ;;  %12225 = vmatmul.mubr.f32.gmra.mrb[22].mxu0 %v5983_v18  ;;  %12072 = vmatprep.mubr.msk.f32.mxu1 %vm13528_vm0, %v16212_v40  ;;  %v5992_v34 = vld [vmem:[#allocation3 + $0x107] sm:$0xff] }
 0x48d   : > { %12227 = vmatprep.mubr.msk.f32.mxu0 %vm13528_vm0, %v16212_v40 }
 0x48e   : > { %v4865_v38 = vpop.f32.mrb[92].mxu1 }
 0x48f   : > { %v5234_v39 = vpop.f32.mrb[174].mxu0  ;;  %v11728_v52 = vpop.f32.mrb[93].mxu1  ;;  %12073 = vmatmul.mubr.f32.gmra.mrb[198].mxu1 %v5982_v35  ;;  %v5991_v35 = vld [vmem:[#allocation3 + $0xff] sm:$0xff] }
 0x490   : > { %v16461_v55 = vadd.f32 %v5234_v39, %v4865_v38  ;;  %v11883_v4 = vpop.f32.mrb[175].mxu0  ;;  %12228 = vmatmul.mubr.f32.gmra.mrb[24].mxu0 %v5984_v7  ;;  %12075 = vmatprep.mubr.msk.f32.mxu1 %vm13528_vm0, %v16212_v40 }
 0x491   : > { %12230 = vmatprep.mubr.msk.f32.mxu0 %vm13528_vm0, %v16212_v40  ;;  %v5993_v4 = vld [vmem:[#allocation3 + $0x10f] sm:$0xff] }
 0x492   : > { %v4870_v42 = vpop.f32.mrb[94].mxu1 }
 0x493   : > { %v5239_v48 = vpop.f32.mrb[176].mxu0  ;;  %v11731_v16 = vpop.f32.mrb[95].mxu1  ;;  %12076 = vmatmul.mubr.f32.gmra.mrb[200].mxu1 %v5983_v18 }
 0x494   : > { %v16467_v51 = vadd.f32 %v5239_v48, %v4870_v42  ;;  %v11886_v61 = vpop.f32.mrb[177].mxu0  ;;  %12231 = vmatmul.mubr.f32.gmra.mrb[26].mxu0 %v5985_v46  ;;  %12078 = vmatprep.mubr.msk.f32.mxu1 %vm13528_vm0, %v16212_v40 }
 0x495   : > { %12233 = vmatprep.mubr.msk.f32.mxu0 %vm13528_vm0, %v16212_v40 }
 0x496   : > { %v4875_v29 = vpop.f32.mrb[96].mxu1 }
 0x497   : > { %v5244_v23 = vpop.f32.mrb[178].mxu0  ;;  %v11734_v53 = vpop.f32.mrb[97].mxu1  ;;  %12079 = vmatmul.mubr.f32.gmra.mrb[202].mxu1 %v5984_v7 }
 0x498   : > { %v16473_v2 = vadd.f32 %v5244_v23, %v4875_v29  ;;  %v11889_v20 = vpop.f32.mrb[179].mxu0  ;;  %12234 = vmatmul.mubr.f32.gmra.mrb[28].mxu0 %v5986_v45  ;;  %12081 = vmatprep.mubr.msk.f32.mxu1 %vm13528_vm0, %v16212_v40  ;;  %v5994_v29 = vld [vmem:[#allocation3 + $0x117] sm:$0xff] }
 0x499   : > { %12236 = vmatprep.mubr.msk.f32.mxu0 %vm13528_vm0, %v16212_v40 }
 0x49a   : > { %v4880_v56 = vpop.f32.mrb[98].mxu1 }
 0x49b   : > { %v5249_v59 = vpop.f32.mrb[180].mxu0  ;;  %v11737_v30 = vpop.f32.mrb[99].mxu1  ;;  %12082 = vmatmul.mubr.f32.gmra.mrb[204].mxu1 %v5985_v46 }
 0x49c   : > { %v16479_v10 = vadd.f32 %v5249_v59, %v4880_v56  ;;  %v11892_v22 = vpop.f32.mrb[181].mxu0  ;;  %12237 = vmatmul.mubr.f32.gmra.mrb[30].mxu0 %v5987_v14  ;;  %12084 = vmatprep.mubr.msk.f32.mxu1 %vm13528_vm0, %v16212_v40  ;;  %v5995_v59 = vld [vmem:[#allocation3 + $0x11f] sm:$0xff] }
 0x49d   : > { %12239 = vmatprep.mubr.msk.f32.mxu0 %vm13528_vm0, %v16212_v40 }
 0x49e   : > { %v4885_v44 = vpop.f32.mrb[100].mxu1 }
 0x49f   : > { %v5254_v26 = vpop.f32.mrb[182].mxu0  ;;  %v11740_v36 = vpop.f32.mrb[101].mxu1  ;;  %12085 = vmatmul.mubr.f32.gmra.mrb[206].mxu1 %v5986_v45 }
 0x4a0   : > { %v16485_v24 = vadd.f32 %v5254_v26, %v4885_v44  ;;  %v11895_v11 = vpop.f32.mrb[183].mxu0  ;;  %12240 = vmatmul.mubr.f32.gmra.mrb[32].mxu0 %v5988_v15  ;;  %12087 = vmatprep.mubr.msk.f32.mxu1 %vm13528_vm0, %v16212_v40 }
 0x4a1   : > { %12242 = vmatprep.mubr.msk.f32.mxu0 %vm13528_vm0, %v16212_v40 }
 0x4a2   : > { %v4890_v21 = vpop.f32.mrb[102].mxu1 }
 0x4a3   : > { %v5259_v57 = vpop.f32.mrb[184].mxu0  ;;  %v11743_v41 = vpop.f32.mrb[103].mxu1  ;;  %12088 = vmatmul.mubr.f32.gmra.mrb[208].mxu1 %v5987_v14 }
 0x4a4   : > { %v16491_v28 = vadd.f32 %v5259_v57, %v4890_v21  ;;  %v11898_v0 = vpop.f32.mrb[185].mxu0  ;;  %12243 = vmatmul.mubr.f32.gmra.mrb[34].mxu0 %v5989_v54  ;;  %12090 = vmatprep.mubr.msk.f32.mxu1 %vm13528_vm0, %v16212_v40  ;;  %v5997_v41 = vld [vmem:[#allocation3 + $0x12f] sm:$0xff] }
 0x4a5   : > { %12245 = vmatprep.mubr.msk.f32.mxu0 %vm13528_vm0, %v16212_v40 }
 0x4a6   : > { %v4895_v50 = vpop.f32.mrb[104].mxu1 }
 0x4a7   : > { %v5264_v31 = vpop.f32.mrb[186].mxu0  ;;  %v11746_v1 = vpop.f32.mrb[105].mxu1  ;;  %12091 = vmatmul.mubr.f32.gmra.mrb[210].mxu1 %v5988_v15  ;;  %v5996_v15 = vld [vmem:[#allocation3 + $0x127] sm:$0xff] }
 0x4a8   : > { %v16497_v37 = vadd.f32 %v5264_v31, %v4895_v50  ;;  %v11901_v8 = vpop.f32.mrb[187].mxu0  ;;  %12246 = vmatmul.mubr.f32.gmra.mrb[36].mxu0 %v5990_v6  ;;  %12093 = vmatprep.mubr.msk.f32.mxu1 %vm13528_vm0, %v16212_v40 }
 0x4a9   : > { %12248 = vmatprep.mubr.msk.f32.mxu0 %vm13528_vm0, %v16212_v40  ;;  %v5998_v8 = vld [vmem:[#allocation3 + $0x137] sm:$0xff] }
 0x4aa   : > { %v4900_v32 = vpop.f32.mrb[106].mxu1 }
 0x4ab   : > { %v5269_v19 = vpop.f32.mrb[188].mxu0  ;;  %v11749_v27 = vpop.f32.mrb[107].mxu1  ;;  %12094 = vmatmul.mubr.f32.gmra.mrb[212].mxu1 %v5989_v54 }
 0x4ac   : > { %v16503_v43 = vadd.f32 %v5269_v19, %v4900_v32  ;;  %v11904_v17 = vpop.f32.mrb[189].mxu0  ;;  %12249 = vmatmul.mubr.f32.gmra.mrb[38].mxu0 %v5991_v35  ;;  %12096 = vmatprep.mubr.msk.f32.mxu1 %vm13528_vm0, %v16212_v40 }
 0x4ad   : > { %12251 = vmatprep.mubr.msk.f32.mxu0 %vm13528_vm0, %v16212_v40 }
 0x4ae   : > { %v4905_v62 = vpop.f32.mrb[108].mxu1 }
 0x4af   : > { %v5274_v18 = vpop.f32.mrb[190].mxu0  ;;  %v11752_v38 = vpop.f32.mrb[109].mxu1  ;;  %12097 = vmatmul.mubr.f32.gmra.mrb[214].mxu1 %v5990_v6 }
 0x4b0   : > { %v16509_v5 = vadd.f32 %v5274_v18, %v4905_v62  ;;  %v11907_v39 = vpop.f32.mrb[191].mxu0  ;;  %12252 = vmatmul.mubr.f32.gmra.mrb[40].mxu0 %v5992_v34  ;;  %12099 = vmatprep.mubr.msk.f32.mxu1 %vm13528_vm0, %v16212_v40  ;;  %v5999_v62 = vld [vmem:[#allocation3 + $0x13f] sm:$0xff] }
 0x4b1   : > { %12254 = vmatprep.mubr.msk.f32.mxu0 %vm13528_vm0, %v16212_v40 }
 0x4b2   : > { %v4910_v7 = vpop.f32.mrb[110].mxu1 }
 0x4b3   : > { %v5279_v52 = vpop.f32.mrb[192].mxu0  ;;  %v11755_v48 = vpop.f32.mrb[111].mxu1  ;;  %12100 = vmatmul.mubr.f32.gmra.mrb[216].mxu1 %v5991_v35 }
 0x4b4   : > { %v16515_v42 = vadd.f32 %v5279_v52, %v4910_v7  ;;  %v11910_v46 = vpop.f32.mrb[193].mxu0  ;;  %12255 = vmatmul.mubr.f32.gmra.mrb[42].mxu0 %v5993_v4  ;;  %12102 = vmatprep.mubr.msk.f32.mxu1 %vm13528_vm0, %v16212_v40  ;;  %v6000_v52 = vld [vmem:[#allocation3 + $0x147] sm:$0xff] }
 0x4b5   : > { %12257 = vmatprep.mubr.msk.f32.mxu0 %vm13528_vm0, %v16212_v40 }
 0x4b6   : > { %v4915_v16 = vpop.f32.mrb[112].mxu1 }
 0x4b7   : > { %v5284_v61 = vpop.f32.mrb[194].mxu0  ;;  %v11758_v45 = vpop.f32.mrb[113].mxu1  ;;  %12103 = vmatmul.mubr.f32.gmra.mrb[218].mxu1 %v5992_v34 }
 0x4b8   : > { %v16521_v23 = vadd.f32 %v5284_v61, %v4915_v16  ;;  %v11913_v53 = vpop.f32.mrb[195].mxu0  ;;  %12258 = vmatmul.mubr.f32.gmra.mrb[44].mxu0 %v5994_v29  ;;  %12105 = vmatprep.mubr.msk.f32.mxu1 %vm13528_vm0, %v16212_v40 }
 0x4b9   : > { %12260 = vmatprep.mubr.msk.f32.mxu0 %vm13528_vm0, %v16212_v40 }
 0x4ba   : > { %v4920_v20 = vpop.f32.mrb[114].mxu1 }
 0x4bb   : > { %v5289_v56 = vpop.f32.mrb[196].mxu0  ;;  %v11761_v30 = vpop.f32.mrb[115].mxu1  ;;  %12106 = vmatmul.mubr.f32.gmra.mrb[220].mxu1 %v5993_v4 }
 0x4bc   : > { %v16527_v14 = vadd.f32 %v5289_v56, %v4920_v20  ;;  %v11916_v22 = vpop.f32.mrb[197].mxu0  ;;  %12261 = vmatmul.mubr.f32.gmra.mrb[46].mxu0 %v5995_v59  ;;  %12108 = vmatprep.mubr.msk.f32.mxu1 %vm13528_vm0, %v16212_v40  ;;  %v9192_v56 = vld [vmem:[%s17731_s3 + $0x300] sm:$0xff] }
 0x4bd   : > { %12263 = vmatprep.mubr.msk.f32.mxu0 %vm13528_vm0, %v16212_v40 }
 0x4be   : > { %v4925_v44 = vpop.f32.mrb[116].mxu1 }
 0x4bf   : > { %v5294_v26 = vpop.f32.mrb[198].mxu0  ;;  %v11764_v11 = vpop.f32.mrb[117].mxu1  ;;  %12109 = vmatmul.mubr.f32.gmra.mrb[222].mxu1 %v5994_v29  ;;  %v6001_v29 = vld [vmem:[#allocation3 + $0x14f] sm:$0xff] }
 0x4c0   : > { %v16533_v36 = vadd.f32 %v5294_v26, %v4925_v44  ;;  %v11919_v21 = vpop.f32.mrb[199].mxu0  ;;  %12264 = vmatmul.mubr.f32.gmra.mrb[48].mxu0 %v5996_v15  ;;  %12111 = vmatprep.mubr.msk.f32.mxu1 %vm13528_vm0, %v16212_v40  ;;  %v6002_v44 = vld [vmem:[#allocation3 + $0x157] sm:$0xff] }
 0x4c1   : > { %12266 = vmatprep.mubr.msk.f32.mxu0 %vm13528_vm0, %v16212_v40 }
 0x4c2   : > { %v4930_v57 = vpop.f32.mrb[118].mxu1 }
 0x4c3   : > { %v5299_v54 = vpop.f32.mrb[200].mxu0  ;;  %v11767_v50 = vpop.f32.mrb[119].mxu1  ;;  %12112 = vmatmul.mubr.f32.gmra.mrb[224].mxu1 %v5995_v59  ;;  %v9193_v59 = vld [vmem:[%s17731_s3 + $0x308] sm:$0xff] }
 0x4c4   : > { %v16539_v0 = vadd.f32 %v5299_v54, %v4930_v57  ;;  %v11922_v31 = vpop.f32.mrb[201].mxu0  ;;  %12267 = vmatmul.mubr.f32.gmra.mrb[50].mxu0 %v5997_v41  ;;  %12114 = vmatprep.mubr.msk.f32.mxu1 %vm13528_vm0, %v16212_v40  ;;  %v13420_v21 = vpack.c.bf16 %v9193_v59, %v9192_v56  ;;  %v6413_v57 = vld [vmem:[#allocation3 + $0x18] sm:$0xff]  ;;  %v6866_v59 = vld [vmem:[#allocation3 + $0x29] sm:$0xff] }
 0x4c5   : > { %12269 = vmatprep.mubr.msk.f32.mxu0 %vm13528_vm0, %v16212_v40  ;;  %v6864_v50 = vld [vmem:[#allocation3 + $0x19] sm:$0xff]  ;;  %v9194_v31 = vld [vmem:[%s17731_s3 + $0x310] sm:$0xff] }
 0x4c6   : > { %v4935_v6 = vpop.f32.mrb[120].mxu1 }
 0x4c7   : > { %v5304_v1 = vpop.f32.mrb[202].mxu0  ;;  %v11770_v19 = vpop.f32.mrb[121].mxu1  ;;  %12115 = vmatmul.mubr.f32.gmra.mrb[226].mxu1 %v5996_v15 }
 0x4c8   : > { %v16545_v32 = vadd.f32 %v5304_v1, %v4935_v6  ;;  %v11925_v35 = vpop.f32.mrb[203].mxu0  ;;  %12270 = vmatmul.mubr.f32.gmra.mrb[52].mxu0 %v5998_v8  ;;  %12117 = vmatprep.mubr.msk.f32.mxu1 %vm13528_vm0, %v16212_v40  ;;  %v9195_v6 = vld [vmem:[%s17731_s3 + $0x318] sm:$0xff] }
 0x4c9   : > { %12272 = vmatprep.mubr.msk.f32.mxu0 %vm13528_vm0, %v16212_v40  ;;  %v6414_v35 = vld [vmem:[#allocation3 + $0x20] sm:$0xff] }
 0x4ca   : > { %v4940_v27 = vpop.f32.mrb[122].mxu1 }
 0x4cb   : > { %v5309_v17 = vpop.f32.mrb[204].mxu0  ;;  %v11773_v34 = vpop.f32.mrb[123].mxu1  ;;  %12118 = vmatmul.mubr.f32.gmra.mrb[228].mxu1 %v5997_v41 }
 0x4cc   : > { %v16551_v18 = vadd.f32 %v5309_v17, %v4940_v27  ;;  %v11928_v38 = vpop.f32.mrb[205].mxu0  ;;  %12273 = vmatmul.mubr.f32.gmra.mrb[54].mxu0 %v5999_v62  ;;  %12120 = vmatprep.mubr.msk.f32.mxu1 %vm13528_vm0, %v16212_v40  ;;  %v13423_v27 = vpack.c.bf16 %v9195_v6, %v9194_v31  ;;  %v6865_v34 = vld [vmem:[#allocation3 + $0x21] sm:$0xff] }
 0x4cd   : > { %12275 = vmatprep.mubr.msk.f32.mxu0 %vm13528_vm0, %v16212_v40  ;;  %v9196_v38 = vld [vmem:[%s17731_s3 + $0x320] sm:$0xff] }
 0x4ce   : > { %v4945_v39 = vpop.f32.mrb[124].mxu1 }
 0x4cf   : > { %v5314_v7 = vpop.f32.mrb[206].mxu0  ;;  %v11776_v48 = vpop.f32.mrb[125].mxu1  ;;  %12121 = vmatmul.mubr.f32.gmra.mrb[230].mxu1 %v5998_v8 }
 0x4d0   : > { %v16557_v4 = vadd.f32 %v5314_v7, %v4945_v39  ;;  %v11931_v46 = vpop.f32.mrb[207].mxu0  ;;  %12276 = vmatmul.mubr.f32.gmra.mrb[56].mxu0 %v6000_v52  ;;  %12123 = vmatprep.mubr.msk.f32.mxu1 %vm13528_vm0, %v16212_v40  ;;  %v9197_v39 = vld [vmem:[%s17731_s3 + $0x328] sm:$0xff] }
 0x4d1   : > { %12278 = vmatprep.mubr.msk.f32.mxu0 %vm13528_vm0, %v16212_v40  ;;  %v9208_v46 = vld [vmem:[%s17731_s3 + $0x380] sm:$0xff] }
 0x4d2   : > { %v4950_v16 = vpop.f32.mrb[126].mxu1 }
 0x4d3   : > { %v5319_v61 = vpop.f32.mrb[208].mxu0  ;;  %v11779_v53 = vpop.f32.mrb[127].mxu1  ;;  %12124 = vmatmul.mubr.f32.gmra.mrb[232].mxu1 %v5999_v62 }
 0x4d4   : > { %v16563_v45 = vadd.f32 %v5319_v61, %v4950_v16  ;;  %v11934_v20 = vpop.f32.mrb[209].mxu0  ;;  %12279 = vmatmul.mubr.f32.gmra.mrb[58].mxu0 %v6001_v29  ;;  %12126 = vmatprep.mubr.msk.f32.mxu1 %vm13528_vm0, %v16212_v40  ;;  %v9209_v16 = vld [vmem:[%s17731_s3 + $0x388] sm:$0xff]  ;;  %v13426_v53 = vpack.c.bf16 %v9197_v39, %v9196_v38 }
 0x4d5   : > { %12281 = vmatprep.mubr.msk.f32.mxu0 %vm13528_vm0, %v16212_v40  ;;  %v13444_v61 = vpack.c.bf16 %v9209_v16, %v9208_v46  ;;  %v6415_v29 = vld [vmem:[#allocation3 + $0x28] sm:$0xff] }
 0x4d6   : > { %v4955_v30 = vpop.f32.mrb[128].mxu1  ;;  %v9213_v38 = vld [vmem:[%s17731_s3 + $0x3a8] sm:$0xff] }
 0x4d7   : > { %v5324_v22 = vpop.f32.mrb[210].mxu0  ;;  %v11782_v15 = vpop.f32.mrb[129].mxu1  ;;  %12127 = vmatmul.mubr.f32.gmra.mrb[234].mxu1 %v6000_v52 }
 0x4d8   : > { %v16575_v26 = vadd.f32 %v5324_v22, %v4955_v30  ;;  %v11937_v11 = vpop.f32.mrb[211].mxu0  ;;  %12282 = vmatmul.mubr.f32.gmra.mrb[60].mxu0 %v6002_v44  ;;  %12316 = vmatprep.mubr.msk.f32.mxu1 %vm13528_vm0, %v16212_v40  ;;  %v9198_v30 = vld [vmem:[%s17731_s3 + $0x330] sm:$0xff]  ;;  %v9199_v22 = vld [vmem:[%s17731_s3 + $0x338] sm:$0xff] }
 0x4d9   : > { %12471 = vmatprep.mubr.msk.f32.mxu0 %vm13528_vm0, %v16212_v40  ;;  %v9210_v11 = vld [vmem:[%s17731_s3 + $0x390] sm:$0xff] }
 0x4da   : > { %v4960_v54 = vpop.f32.mrb[130].mxu1 }
 0x4db   : > { %v5329_v41 = vpop.f32.mrb[212].mxu0  ;;  %v11785_v8 = vpop.f32.mrb[131].mxu1  ;;  %12317 = vmatmul.mubr.f32.vlgmr.msra.gmra.mrb[236].mxu1 %v6413_v57  ;;  %v16627_v57 = vld [vmem:[#allocation3] sm:$0xff] }
 0x4dc   : > { %v16587_v1 = vadd.f32 %v5329_v41, %v4960_v54  ;;  %v11940_v19 = vpop.f32.mrb[213].mxu0  ;;  %12472 = vmatmul.mubr.f32.vlgmr.msra.gmra.mrb[62].mxu0 %v6864_v50  ;;  %13421 = vmatpush3.bf16.msra.mxu1 %v13420_v21  ;;  %v9211_v21 = vld [vmem:[%s17731_s3 + $0x398] sm:$0xff]  ;;  %v6416_v41 = vld [vmem:[#allocation3 + $0x30] sm:$0xff]  ;;  %v13429_v50 = vpack.c.bf16 %v9199_v22, %v9198_v30 }
 0x4dd   : > { %12319 = vmatprep.mubr.msk.f32.mxu1 %vm13528_vm0, %v16212_v40  ;;  %12474 = vmatprep.mubr.msk.f32.mxu0 %vm13528_vm0, %v16212_v40  ;;  %v13447_v54 = vpack.c.bf16 %v9211_v21, %v9210_v11  ;;  %v6867_v8 = vld [vmem:[#allocation3 + $0x31] sm:$0xff]  ;;  %v9200_v19 = vld [vmem:[%s17731_s3 + $0x340] sm:$0xff] }
 0x4de   : > { %13422 = vmatprep.subr.bf16.mxu1 %v13526_v3  ;;  %v4965_v17 = vpop.f32.mrb[132].mxu1  ;;  %13445 = vmatpush3.bf16.msra.mxu0 %v13444_v61  ;;  %v6868_v61 = vld [vmem:[#allocation3 + $0x39] sm:$0xff]  ;;  %v9214_v30 = vld [vmem:[%s17731_s3 + $0x3b0] sm:$0xff] }
 0x4df   : > { %v5334_v62 = vpop.f32.mrb[214].mxu0  ;;  %v11788_v52 = vpop.f32.mrb[133].mxu1  ;;  %12320 = vmatmul.mubr.f32.gmra.mrb[238].mxu1 %v6414_v35  ;;  %13446 = vmatprep.subr.bf16.mxu0 %v13526_v3  ;;  %v9201_v35 = vld [vmem:[%s17731_s3 + $0x348] sm:$0xff]  ;;  %v9215_v22 = vld [vmem:[%s17731_s3 + $0x3b8] sm:$0xff] }
 0x4e0   : > { %v16600_v7 = vadd.f32 %v5334_v62, %v4965_v17  ;;  %v11943_v48 = vpop.f32.mrb[215].mxu0  ;;  %12475 = vmatmul.mubr.f32.gmra.mrb[64].mxu0 %v6865_v34  ;;  %12322 = vmatprep.mubr.msk.f32.mxu1 %vm13528_vm0, %v16212_v40  ;;  %v9212_v34 = vld [vmem:[%s17731_s3 + $0x3a0] sm:$0xff]  ;;  %v6417_v52 = vld [vmem:[#allocation3 + $0x38] sm:$0xff] }
 0x4e1   : > { %12477 = vmatprep.mubr.msk.f32.mxu0 %vm13528_vm0, %v16212_v40  ;;  %13424 = vmatpush3.bf16.msra.mxu1 %v13423_v27  ;;  %v13450_v39 = vpack.c.bf16 %v9213_v38, %v9212_v34  ;;  %v13432_v48 = vpack.c.bf16 %v9201_v35, %v9200_v19  ;;  %v9216_v35 = vld [vmem:[%s17731_s3 + $0x3c0] sm:$0xff]  ;;  %v6419_v34 = vld [vmem:[#allocation3 + $0x48] sm:$0xff] }
 0x4e2   : > { %v4970_v20 = vpop.f32.mrb[134].mxu1  ;;  %13425 = vmatprep.subr.bf16.mxu1 %v13526_v3  ;;  %13448 = vmatpush3.bf16.msra.mxu0 %v13447_v54 }
 0x4e3   : > { %v5339_v56 = vpop.f32.mrb[216].mxu0  ;;  %v11791_v40 = vpop.f32.mrb[135].mxu1  ;;  %12323 = vmatmul.mubr.f32.gmra.mrb[240].mxu1 %v6415_v29  ;;  %13449 = vmatprep.subr.bf16.mxu0 %v13526_v3  ;;  %v9202_v29 = vld [vmem:[%s17731_s3 + $0x350] sm:$0xff] }
 0x4e4   : > { %v16619_v44 = vadd.f32 %v5339_v56, %v4970_v20  ;;  %v11946_v15 = vpop.f32.mrb[217].mxu0  ;;  %12478 = vmatmul.mubr.f32.gmra.mrb[66].mxu0 %v6866_v59  ;;  %12325 = vmatprep.mubr.msk.f32.mxu1 %vm13528_vm0, %v16627_v57  ;;  %v13453_v40 = vpack.c.bf16 %v9215_v22, %v9214_v30 }
 0x4e5   : > { %12480 = vmatprep.mubr.msk.f32.mxu0 %vm13528_vm0, %v16627_v57  ;;  %13427 = vmatpush3.bf16.msra.mxu1 %v13426_v53  ;;  %v9203_v53 = vld [vmem:[%s17731_s3 + $0x358] sm:$0xff]  ;;  %v6418_v15 = vld [vmem:[#allocation3 + $0x40] sm:$0xff] }
 0x4e6   : > { %v4975_v31 = vpop.f32.mrb[136].mxu1  ;;  %13428 = vmatprep.subr.bf16.mxu1 %v13526_v3  ;;  %13451 = vmatpush3.bf16.msra.mxu0 %v13450_v39  ;;  %v13435_v11 = vpack.c.bf16 %v9203_v53, %v9202_v29 }
 0x4e7   : > { %v5344_v6 = vpop.f32.mrb[218].mxu0  ;;  %v11794_v17 = vpop.f32.mrb[137].mxu1  ;;  %12326 = vmatmul.mubr.f32.gmra.mrb[242].mxu1 %v6416_v41  ;;  %13452 = vmatprep.subr.bf16.mxu0 %v13526_v3  ;;  %v6869_v41 = vld [vmem:[#allocation3 + $0x41] sm:$0xff] }
 0x4e8   : > { %v16641_v27 = vadd.f32 %v5344_v6, %v4975_v31  ;;  %v11949_v62 = vpop.f32.mrb[219].mxu0  ;;  %12481 = vmatmul.mubr.f32.gmra.mrb[68].mxu0 %v6867_v8  ;;  %12328 = vmatprep.mubr.msk.f32.mxu1 %vm13528_vm0, %v16627_v57  ;;  %v9205_v31 = vld [vmem:[%s17731_s3 + $0x368] sm:$0xff] }
 0x4e9   : > { %12483 = vmatprep.mubr.msk.f32.mxu0 %vm13528_vm0, %v16627_v57  ;;  %13430 = vmatpush3.bf16.msra.mxu1 %v13429_v50  ;;  %v9204_v50 = vld [vmem:[%s17731_s3 + $0x360] sm:$0xff]  ;;  %v9217_v17 = vld [vmem:[%s17731_s3 + $0x3c8] sm:$0xff] }
 0x4ea   : > { %v4980_v46 = vpop.f32.mrb[138].mxu1  ;;  %13431 = vmatprep.subr.bf16.mxu1 %v13526_v3  ;;  %13454 = vmatpush3.bf16.msra.mxu0 %v13453_v40  ;;  %v13456_v62 = vpack.c.bf16 %v9217_v17, %v9216_v35  ;;  %v13438_v38 = vpack.c.bf16 %v9205_v31, %v9204_v50  ;;  %v9220_v31 = vld [vmem:[%s17731_s3 + $0x3e0] sm:$0xff] }
 0x4eb   : > { %v5349_v16 = vpop.f32.mrb[220].mxu0  ;;  %v11797_v56 = vpop.f32.mrb[139].mxu1  ;;  %12329 = vmatmul.mubr.f32.gmra.mrb[244].mxu1 %v6417_v52  ;;  %13455 = vmatprep.subr.bf16.mxu0 %v13526_v3 }
 0x4ec   : > { %v16661_v20 = vadd.f32 %v5349_v16, %v4980_v46  ;;  %v11952_v59 = vpop.f32.mrb[221].mxu0  ;;  %12484 = vmatmul.mubr.f32.gmra.mrb[70].mxu0 %v6868_v61  ;;  %12331 = vmatprep.mubr.msk.f32.mxu1 %vm13528_vm0, %v16627_v57  ;;  %v9206_v46 = vld [vmem:[%s17731_s3 + $0x370] sm:$0xff]  ;;  %v9207_v16 = vld [vmem:[%s17731_s3 + $0x378] sm:$0xff] }
 0x4ed   : > { %12486 = vmatprep.mubr.msk.f32.mxu0 %vm13528_vm0, %v16627_v57  ;;  %13433 = vmatpush3.bf16.msra.mxu1 %v13432_v48  ;;  %v6870_v48 = vld [vmem:[#allocation3 + $0x49] sm:$0xff]  ;;  %v9219_v59 = vld [vmem:[%s17731_s3 + $0x3d8] sm:$0xff]  ;;  %v13441_v22 = vpack.c.bf16 %v9207_v16, %v9206_v46 }
 0x4ee   : > { %v4985_v21 = vpop.f32.mrb[140].mxu1  ;;  %13434 = vmatprep.subr.bf16.mxu1 %v13526_v3  ;;  %13457 = vmatpush3.bf16.msra.mxu0 %v13456_v62  ;;  %v9218_v56 = vld [vmem:[%s17731_s3 + $0x3d0] sm:$0xff]  ;;  %v6421_v62 = vld [vmem:[#allocation3 + $0x58] sm:$0xff] }
 0x4ef   : > { %v5354_v54 = vpop.f32.mrb[222].mxu0  ;;  %v11800_v8 = vpop.f32.mrb[141].mxu1  ;;  %12332 = vmatmul.mubr.f32.gmra.mrb[246].mxu1 %v6418_v15  ;;  %v13459_v30 = vpack.c.bf16 %v9219_v59, %v9218_v56  ;;  %13458 = vmatprep.subr.bf16.mxu0 %v13526_v3  ;;  %v9223_v46 = vld [vmem:[%s17731_s3 + $0x3f8] sm:$0xff]  ;;  %v6422_v56 = vld [vmem:[#allocation3 + $0x60] sm:$0xff] }
 0x4f0   : > { %v16681_v6 = vadd.f32 %v5354_v54, %v4985_v21  ;;  %v11955_v19 = vpop.f32.mrb[223].mxu0  ;;  %12487 = vmatmul.mubr.f32.gmra.mrb[72].mxu0 %v6869_v41  ;;  %12334 = vmatprep.mubr.msk.f32.mxu1 %vm13528_vm0, %v16627_v57  ;;  %v6871_v21 = vld [vmem:[#allocation3 + $0x51] sm:$0xff]  ;;  %v9221_v8 = vld [vmem:[%s17731_s3 + $0x3e8] sm:$0xff] }
 0x4f1   : > { %12489 = vmatprep.mubr.msk.f32.mxu0 %vm13528_vm0, %v16627_v57  ;;  %13436 = vmatpush3.bf16.msra.mxu1 %v13435_v11  ;;  %v6420_v11 = vld [vmem:[#allocation3 + $0x50] sm:$0xff]  ;;  %v13462_v19 = vpack.c.bf16 %v9221_v8, %v9220_v31  ;;  %v6873_v59 = vld [vmem:[#allocation3 + $0x61] sm:$0xff] }
 0x4f2   : > { %v4990_v39 = vpop.f32.mrb[142].mxu1  ;;  %13437 = vmatprep.subr.bf16.mxu1 %v13526_v3  ;;  %13460 = vmatpush3.bf16.msra.mxu0 %v13459_v30 }
 0x4f3   : > { %v5359_v52 = vpop.f32.mrb[224].mxu0  ;;  %v11803_v29 = vpop.f32.mrb[143].mxu1  ;;  %12335 = vmatmul.mubr.f32.gmra.mrb[248].mxu1 %v6419_v34  ;;  %13461 = vmatprep.subr.bf16.mxu0 %v13526_v3  ;;  %v6872_v34 = vld [vmem:[#allocation3 + $0x59] sm:$0xff] }
 0x4f4   : > { %v16701_v61 = vadd.f32 %v5359_v52, %v4990_v39  ;;  %v11958_v53 = vpop.f32.mrb[225].mxu0  ;;  %12490 = vmatmul.mubr.f32.gmra.mrb[74].mxu0 %v6870_v48  ;;  %12337 = vmatprep.mubr.msk.f32.mxu1 %vm13528_vm0, %v16627_v57  ;;  %v9222_v48 = vld [vmem:[%s17731_s3 + $0x3f0] sm:$0xff] }
 0x4f5   : > { %12492 = vmatprep.mubr.msk.f32.mxu0 %vm13528_vm0, %v16627_v57  ;;  %13439 = vmatpush3.bf16.msra.mxu1 %v13438_v38  ;;  %v13465_v16 = vpack.c.bf16 %v9223_v46, %v9222_v48 }
 0x4f6   : > { %v4995_v40 = vpop.f32.mrb[144].mxu1  ;;  %13440 = vmatprep.subr.bf16.mxu1 %v13526_v3  ;;  %13463 = vmatpush3.bf16.msra.mxu0 %v13462_v19 }
 0x4f7   : > { %v5364_v15 = vpop.f32.mrb[226].mxu0  ;;  %v11806_v41 = vpop.f32.mrb[145].mxu1  ;;  %12338 = vmatmul.mubr.f32.gmra.mrb[250].mxu1 %v6420_v11  ;;  %13464 = vmatprep.subr.bf16.mxu0 %v13526_v3 }
 0x4f8   : > { %v16715_v54 = vadd.f32 %v5364_v15, %v4995_v40  ;;  %v11961_v50 = vpop.f32.mrb[227].mxu0  ;;  %12493 = vmatmul.mubr.f32.gmra.mrb[76].mxu0 %v6871_v21  ;;  %12340 = vmatprep.mubr.msk.f32.mxu1 %vm13528_vm0, %v16627_v57  ;;  %v6423_v21 = vld [vmem:[#allocation3 + $0x68] sm:$0xff] }
 0x4f9   : > { %12495 = vmatprep.mubr.msk.f32.mxu0 %vm13528_vm0, %v16627_v57  ;;  %13442 = vmatpush3.bf16.msra.mxu1 %v13441_v22  ;;  %v6874_v41 = vld [vmem:[#allocation3 + $0x69] sm:$0xff] }
 0x4fa   : > { %v5000_v35 = vpop.f32.mrb[146].mxu1  ;;  %13467 = vmatprep.subr.bf16.mxu1 %v13526_v3  ;;  %13466 = vmatpush3.bf16.msra.mxu0 %v13465_v16  ;;  %v6425_v16 = vld [vmem:[#allocation3 + $0x78] sm:$0xff] }
 0x4fb   : > { %v5369_v17 = vpop.f32.mrb[228].mxu0  ;;  %v11809_v39 = vpop.f32.mrb[147].mxu1  ;;  %12341 = vmatmul.mubr.f32.gmra.mrb[252].mxu1 %v6421_v62  ;;  %v6875_v62 = vld [vmem:[#allocation3 + $0x71] sm:$0xff] }
 0x4fc   : > { %v16729_v38 = vadd.f32 %v5369_v17, %v5000_v35  ;;  %v11964_v52 = vpop.f32.mrb[229].mxu0  ;;  %12496 = vmatmul.mubr.f32.gmra.mrb[78].mxu0 %v6872_v34  ;;  %12343 = vmatprep.mubr.msk.f32.mxu1 %vm13528_vm0, %v16627_v57  ;;  %v6424_v17 = vld [vmem:[#allocation3 + $0x70] sm:$0xff] }
 0x4fd   : > { %12498 = vmatprep.mubr.msk.f32.mxu0 %vm13528_vm0, %v16627_v57 }
 0x4fe   : > { %v5005_v29 = vpop.f32.mrb[148].mxu1 }
 0x4ff   : > { %v5374_v53 = vpop.f32.mrb[230].mxu0  ;;  %v11812_v22 = vpop.f32.mrb[149].mxu1  ;;  %12344 = vmatmul.mubr.f32.gmra.mrb[254].mxu1 %v6422_v56 }
 0x500   : > { %v16742_v30 = vadd.f32 %v5374_v53, %v5005_v29  ;;  %v11967_v40 = vpop.f32.mrb[231].mxu0  ;;  %12499 = vmatmul.mubr.f32.gmra.mrb[80].mxu0 %v6873_v59  ;;  %12346 = vmatprep.mubr.msk.f32.mxu1 %vm13528_vm0, %v16627_v57  ;;  %v6876_v29 = vld [vmem:[#allocation3 + $0x79] sm:$0xff] }
 0x501   : > { %12501 = vmatprep.mubr.msk.f32.mxu0 %vm13528_vm0, %v16627_v57 }
 0x502   : > { %v5010_v15 = vpop.f32.mrb[150].mxu1 }
 0x503   : > { %v5379_v11 = vpop.f32.mrb[232].mxu0  ;;  %v11815_v31 = vpop.f32.mrb[151].mxu1  ;;  %12347 = vmatmul.mubr.f32.gmra.mrb[0].mxu1 %v6423_v21  ;;  %v6877_v21 = vld [vmem:[#allocation3 + $0x81] sm:$0xff] }
 0x504   : > { %v16748_v50 = vadd.f32 %v5379_v11, %v5010_v15  ;;  %v11970_v8 = vpop.f32.mrb[233].mxu0  ;;  %12502 = vmatmul.mubr.f32.gmra.mrb[82].mxu0 %v6874_v41  ;;  %12349 = vmatprep.mubr.msk.f32.mxu1 %vm13528_vm0, %v16627_v57  ;;  %v6426_v11 = vld [vmem:[#allocation3 + $0x80] sm:$0xff] }
 0x505   : > { %12504 = vmatprep.mubr.msk.f32.mxu0 %vm13528_vm0, %v16627_v57 }
 0x506   : > { %v5015_v19 = vpop.f32.mrb[152].mxu1 }
 0x507   : > { %v5384_v35 = vpop.f32.mrb[234].mxu0  ;;  %v11818_v39 = vpop.f32.mrb[153].mxu1  ;;  %12350 = vmatmul.mubr.f32.gmra.mrb[2].mxu1 %v6424_v17  ;;  %v6427_v17 = vld [vmem:[#allocation3 + $0x88] sm:$0xff] }
 0x508   : > { %v16754_v34 = vadd.f32 %v5384_v35, %v5015_v19  ;;  %v11973_v52 = vpop.f32.mrb[235].mxu0  ;;  %12505 = vmatmul.mubr.f32.gmra.mrb[84].mxu0 %v6875_v62  ;;  %12352 = vmatprep.mubr.msk.f32.mxu1 %vm13528_vm0, %v16627_v57  ;;  %v6878_v62 = vld [vmem:[#allocation3 + $0x89] sm:$0xff] }
 0x509   : > { %12507 = vmatprep.mubr.msk.f32.mxu0 %vm13528_vm0, %v16627_v57 }
 0x50a   : > { %v5635_v48 = vpop.f32.mrb[154].mxu1 }
 0x50b   : > { %v6086_v46 = vpop.f32.mrb[236].mxu0  ;;  %v5880_v53 = vadd.f32 %v5635_v48, %v16232_v33  ;;  %v12008_v56 = vpop.f32.mrb[155].mxu1  ;;  %12353 = vmatmul.mubr.f32.gmra.mrb[4].mxu1 %v6425_v16 }
 0x50c   : > { %v12163_v59 = vpop.f32.mrb[237].mxu0  ;;  %12508 = vmatmul.mubr.f32.gmra.mrb[86].mxu0 %v6876_v29  ;;  %12355 = vmatprep.mubr.msk.f32.mxu1 %vm13528_vm0, %v16627_v57  ;;  %v6428_v29 = vld [vmem:[#allocation3 + $0x90] sm:$0xff] }
 0x50d   : > { %12510 = vmatprep.mubr.msk.f32.mxu0 %vm13528_vm0, %v16627_v57  ;;  %v16765_v22 = vadd.f32 %v6086_v46, %v5880_v53  ;;  %v6879_v53 = vld [vmem:[#allocation3 + $0x91] sm:$0xff] }
 0x50e   : > { %v5640_v40 = vpop.f32.mrb[156].mxu1 }
 0x50f   : > { %v6091_v15 = vpop.f32.mrb[238].mxu0  ;;  %v5881_v41 = vadd.f32 %v5640_v40, %v16245_v12  ;;  %v12011_v31 = vpop.f32.mrb[157].mxu1  ;;  %12356 = vmatmul.mubr.f32.gmra.mrb[6].mxu1 %v6426_v11 }
 0x510   : > { %v12166_v33 = vpop.f32.mrb[239].mxu0  ;;  %12511 = vmatmul.mubr.f32.gmra.mrb[88].mxu0 %v6877_v21  ;;  %12358 = vmatprep.mubr.msk.f32.mxu1 %vm13528_vm0, %v16627_v57  ;;  %v6429_v21 = vld [vmem:[#allocation3 + $0x98] sm:$0xff] }
 0x511   : > { %12513 = vmatprep.mubr.msk.f32.mxu0 %vm13528_vm0, %v16627_v57  ;;  %v16772_v8 = vadd.f32 %v6091_v15, %v5881_v41  ;;  %v6880_v41 = vld [vmem:[#allocation3 + $0x99] sm:$0xff] }
 0x512   : > { %v5645_v19 = vpop.f32.mrb[158].mxu1 }
 0x513   : > { %v6096_v35 = vpop.f32.mrb[240].mxu0  ;;  %v5882_v39 = vadd.f32 %v5645_v19, %v16413_v60  ;;  %v12014_v52 = vpop.f32.mrb[159].mxu1  ;;  %12359 = vmatmul.mubr.f32.gmra.mrb[8].mxu1 %v6427_v17 }
 0x514   : > { %v12169_v12 = vpop.f32.mrb[241].mxu0  ;;  %12514 = vmatmul.mubr.f32.gmra.mrb[90].mxu0 %v6878_v62  ;;  %12361 = vmatprep.mubr.msk.f32.mxu1 %vm13528_vm0, %v16627_v57  ;;  %v6430_v62 = vld [vmem:[#allocation3 + $0xa0] sm:$0xff] }
 0x515   : > { %12516 = vmatprep.mubr.msk.f32.mxu0 %vm13528_vm0, %v16627_v57  ;;  %v16779_v48 = vadd.f32 %v6096_v35, %v5882_v39  ;;  %v6881_v39 = vld [vmem:[#allocation3 + $0xa1] sm:$0xff] }
 0x516   : > { %v5650_v46 = vpop.f32.mrb[160].mxu1 }
 0x517   : > { %v6101_v16 = vpop.f32.mrb[242].mxu0  ;;  %v5883_v56 = vadd.f32 %v5650_v46, %v16419_v58  ;;  %v12017_v59 = vpop.f32.mrb[161].mxu1  ;;  %12362 = vmatmul.mubr.f32.gmra.mrb[10].mxu1 %v6428_v29 }
 0x518   : > { %v12172_v60 = vpop.f32.mrb[243].mxu0  ;;  %12517 = vmatmul.mubr.f32.gmra.mrb[92].mxu0 %v6879_v53  ;;  %12364 = vmatprep.mubr.msk.f32.mxu1 %vm13528_vm0, %v16627_v57  ;;  %v6431_v53 = vld [vmem:[#allocation3 + $0xa8] sm:$0xff] }
 0x519   : > { %12519 = vmatprep.mubr.msk.f32.mxu0 %vm13528_vm0, %v16627_v57  ;;  %v16786_v40 = vadd.f32 %v6101_v16, %v5883_v56  ;;  %v6882_v56 = vld [vmem:[#allocation3 + $0xa9] sm:$0xff] }
 0x51a   : > { %v5655_v15 = vpop.f32.mrb[162].mxu1 }
 0x51b   : > { %v6106_v11 = vpop.f32.mrb[244].mxu0  ;;  %v5884_v31 = vadd.f32 %v5655_v15, %v16425_v47  ;;  %v12020_v33 = vpop.f32.mrb[163].mxu1  ;;  %12365 = vmatmul.mubr.f32.gmra.mrb[12].mxu1 %v6429_v21 }
 0x51c   : > { %v12175_v58 = vpop.f32.mrb[245].mxu0  ;;  %12520 = vmatmul.mubr.f32.gmra.mrb[94].mxu0 %v6880_v41  ;;  %12367 = vmatprep.mubr.msk.f32.mxu1 %vm13528_vm0, %v16627_v57  ;;  %v6432_v41 = vld [vmem:[#allocation3 + $0xb0] sm:$0xff] }
 0x51d   : > { %12522 = vmatprep.mubr.msk.f32.mxu0 %vm13528_vm0, %v16627_v57  ;;  %v16793_v19 = vadd.f32 %v6106_v11, %v5884_v31  ;;  %v6883_v31 = vld [vmem:[#allocation3 + $0xb1] sm:$0xff] }
 0x51e   : > { %v5660_v35 = vpop.f32.mrb[164].mxu1 }
 0x51f   : > { %v6111_v17 = vpop.f32.mrb[246].mxu0  ;;  %v5885_v52 = vadd.f32 %v5660_v35, %v16431_v49  ;;  %v12023_v12 = vpop.f32.mrb[165].mxu1  ;;  %12368 = vmatmul.mubr.f32.gmra.mrb[14].mxu1 %v6430_v62 }
 0x520   : > { %v12178_v47 = vpop.f32.mrb[247].mxu0  ;;  %12523 = vmatmul.mubr.f32.gmra.mrb[96].mxu0 %v6881_v39  ;;  %12370 = vmatprep.mubr.msk.f32.mxu1 %vm13528_vm0, %v16627_v57  ;;  %v6433_v39 = vld [vmem:[#allocation3 + $0xb8] sm:$0xff] }
 0x521   : > { %12525 = vmatprep.mubr.msk.f32.mxu0 %vm13528_vm0, %v16627_v57  ;;  %v16800_v46 = vadd.f32 %v6111_v17, %v5885_v52  ;;  %v6884_v52 = vld [vmem:[#allocation3 + $0xb9] sm:$0xff] }
 0x522   : > { %v5665_v16 = vpop.f32.mrb[166].mxu1 }
 0x523   : > { %v6116_v29 = vpop.f32.mrb[248].mxu0  ;;  %v5886_v59 = vadd.f32 %v5665_v16, %v16437_v9  ;;  %v12026_v60 = vpop.f32.mrb[167].mxu1  ;;  %12371 = vmatmul.mubr.f32.gmra.mrb[16].mxu1 %v6431_v53 }
 0x524   : > { %v12181_v49 = vpop.f32.mrb[249].mxu0  ;;  %12526 = vmatmul.mubr.f32.gmra.mrb[98].mxu0 %v6882_v56  ;;  %12373 = vmatprep.mubr.msk.f32.mxu1 %vm13528_vm0, %v16627_v57  ;;  %v6434_v56 = vld [vmem:[#allocation3 + $0xc0] sm:$0xff] }
 0x525   : > { %12528 = vmatprep.mubr.msk.f32.mxu0 %vm13528_vm0, %v16627_v57  ;;  %v16807_v15 = vadd.f32 %v6116_v29, %v5886_v59  ;;  %v6885_v59 = vld [vmem:[#allocation3 + $0xc1] sm:$0xff] }
 0x526   : > { %v5670_v11 = vpop.f32.mrb[168].mxu1 }
 0x527   : > { %v6121_v21 = vpop.f32.mrb[250].mxu0  ;;  %v5887_v33 = vadd.f32 %v5670_v11, %v16443_v63  ;;  %v12029_v58 = vpop.f32.mrb[169].mxu1  ;;  %12374 = vmatmul.mubr.f32.gmra.mrb[18].mxu1 %v6432_v41 }
 0x528   : > { %v12184_v9 = vpop.f32.mrb[251].mxu0  ;;  %12529 = vmatmul.mubr.f32.gmra.mrb[100].mxu0 %v6883_v31  ;;  %12376 = vmatprep.mubr.msk.f32.mxu1 %vm13528_vm0, %v16627_v57  ;;  %v6435_v31 = vld [vmem:[#allocation3 + $0xc8] sm:$0xff] }
 0x529   : > { %12531 = vmatprep.mubr.msk.f32.mxu0 %vm13528_vm0, %v16627_v57  ;;  %v16814_v35 = vadd.f32 %v6121_v21, %v5887_v33  ;;  %v6886_v33 = vld [vmem:[#allocation3 + $0xc9] sm:$0xff] }
 0x52a   : > { %v5675_v17 = vpop.f32.mrb[170].mxu1 }
 0x52b   : > { %v6126_v62 = vpop.f32.mrb[252].mxu0  ;;  %v5888_v12 = vadd.f32 %v5675_v17, %v16449_v13  ;;  %v12032_v47 = vpop.f32.mrb[171].mxu1  ;;  %12377 = vmatmul.mubr.f32.gmra.mrb[20].mxu1 %v6433_v39 }
 0x52c   : > { %v12187_v63 = vpop.f32.mrb[253].mxu0  ;;  %12532 = vmatmul.mubr.f32.gmra.mrb[102].mxu0 %v6884_v52  ;;  %12379 = vmatprep.mubr.msk.f32.mxu1 %vm13528_vm0, %v16627_v57  ;;  %v6436_v52 = vld [vmem:[#allocation3 + $0xd0] sm:$0xff] }
 0x52d   : > { %12534 = vmatprep.mubr.msk.f32.mxu0 %vm13528_vm0, %v16627_v57  ;;  %v16821_v16 = vadd.f32 %v6126_v62, %v5888_v12  ;;  %v6887_v12 = vld [vmem:[#allocation3 + $0xd1] sm:$0xff] }
 0x52e   : > { %v5680_v29 = vpop.f32.mrb[172].mxu1 }
 0x52f   : > { %v6131_v53 = vpop.f32.mrb[254].mxu0  ;;  %v5889_v60 = vadd.f32 %v5680_v29, %v16455_v25  ;;  %v12035_v49 = vpop.f32.mrb[173].mxu1  ;;  %12380 = vmatmul.mubr.f32.gmra.mrb[22].mxu1 %v6434_v56 }
 0x530   : > { %v12190_v13 = vpop.f32.mrb[255].mxu0  ;;  %12535 = vmatmul.mubr.f32.gmra.mrb[104].mxu0 %v6885_v59  ;;  %12382 = vmatprep.mubr.msk.f32.mxu1 %vm13528_vm0, %v16627_v57  ;;  %v6437_v59 = vld [vmem:[#allocation3 + $0xd8] sm:$0xff] }
 0x531   : > { %12537 = vmatprep.mubr.msk.f32.mxu0 %vm13528_vm0, %v16627_v57  ;;  %v16828_v11 = vadd.f32 %v6131_v53, %v5889_v60  ;;  %v6888_v60 = vld [vmem:[#allocation3 + $0xd9] sm:$0xff] }
 0x532   : > { %v5685_v21 = vpop.f32.mrb[174].mxu1 }
 0x533   : > { %v6136_v41 = vpop.f32.mrb[0].mxu0  ;;  %v5890_v58 = vadd.f32 %v5685_v21, %v16461_v55  ;;  %v12038_v9 = vpop.f32.mrb[175].mxu1  ;;  %12383 = vmatmul.mubr.f32.gmra.mrb[24].mxu1 %v6435_v31 }
 0x534   : > { %v12193_v25 = vpop.f32.mrb[1].mxu0  ;;  %12538 = vmatmul.mubr.f32.gmra.mrb[106].mxu0 %v6886_v33  ;;  %12385 = vmatprep.mubr.msk.f32.mxu1 %vm13528_vm0, %v16627_v57  ;;  %v6438_v33 = vld [vmem:[#allocation3 + $0xe0] sm:$0xff] }
 0x535   : > { %12540 = vmatprep.mubr.msk.f32.mxu0 %vm13528_vm0, %v16627_v57  ;;  %v16835_v17 = vadd.f32 %v6136_v41, %v5890_v58  ;;  %v6889_v58 = vld [vmem:[#allocation3 + $0xe1] sm:$0xff] }
 0x536   : > { %v5690_v62 = vpop.f32.mrb[176].mxu1 }
 0x537   : > { %v6141_v39 = vpop.f32.mrb[2].mxu0  ;;  %v5891_v47 = vadd.f32 %v5690_v62, %v16467_v51  ;;  %v12041_v63 = vpop.f32.mrb[177].mxu1  ;;  %12386 = vmatmul.mubr.f32.gmra.mrb[26].mxu1 %v6436_v52 }
 0x538   : > { %v12196_v55 = vpop.f32.mrb[3].mxu0  ;;  %12541 = vmatmul.mubr.f32.gmra.mrb[108].mxu0 %v6887_v12  ;;  %12388 = vmatprep.mubr.msk.f32.mxu1 %vm13528_vm0, %v16627_v57  ;;  %v6439_v12 = vld [vmem:[#allocation3 + $0xe8] sm:$0xff] }
 0x539   : > { %12543 = vmatprep.mubr.msk.f32.mxu0 %vm13528_vm0, %v16627_v57  ;;  %v16842_v29 = vadd.f32 %v6141_v39, %v5891_v47  ;;  %v6890_v47 = vld [vmem:[#allocation3 + $0xe9] sm:$0xff] }
 0x53a   : > { %v5695_v53 = vpop.f32.mrb[178].mxu1 }
 0x53b   : > { %v6146_v56 = vpop.f32.mrb[4].mxu0  ;;  %v5892_v49 = vadd.f32 %v5695_v53, %v16473_v2  ;;  %v12044_v13 = vpop.f32.mrb[179].mxu1  ;;  %12389 = vmatmul.mubr.f32.gmra.mrb[28].mxu1 %v6437_v59 }
 0x53c   : > { %v12199_v51 = vpop.f32.mrb[5].mxu0  ;;  %12544 = vmatmul.mubr.f32.gmra.mrb[110].mxu0 %v6888_v60  ;;  %12391 = vmatprep.mubr.msk.f32.mxu1 %vm13528_vm0, %v16627_v57  ;;  %v6440_v60 = vld [vmem:[#allocation3 + $0xf0] sm:$0xff] }
 0x53d   : > { %12546 = vmatprep.mubr.msk.f32.mxu0 %vm13528_vm0, %v16627_v57  ;;  %v16849_v21 = vadd.f32 %v6146_v56, %v5892_v49  ;;  %v6891_v49 = vld [vmem:[#allocation3 + $0xf1] sm:$0xff] }
 0x53e   : > { %v5700_v41 = vpop.f32.mrb[180].mxu1 }
 0x53f   : > { %v6151_v31 = vpop.f32.mrb[6].mxu0  ;;  %v5893_v9 = vadd.f32 %v5700_v41, %v16479_v10  ;;  %v12047_v25 = vpop.f32.mrb[181].mxu1  ;;  %12392 = vmatmul.mubr.f32.gmra.mrb[30].mxu1 %v6438_v33 }
 0x540   : > { %v12202_v2 = vpop.f32.mrb[7].mxu0  ;;  %12547 = vmatmul.mubr.f32.gmra.mrb[112].mxu0 %v6889_v58  ;;  %12394 = vmatprep.mubr.msk.f32.mxu1 %vm13528_vm0, %v16627_v57  ;;  %v6441_v58 = vld [vmem:[#allocation3 + $0xf8] sm:$0xff] }
 0x541   : > { %12549 = vmatprep.mubr.msk.f32.mxu0 %vm13528_vm0, %v16627_v57  ;;  %v16856_v62 = vadd.f32 %v6151_v31, %v5893_v9  ;;  %v6892_v9 = vld [vmem:[#allocation3 + $0xf9] sm:$0xff] }
 0x542   : > { %v5705_v39 = vpop.f32.mrb[182].mxu1 }
 0x543   : > { %v6156_v52 = vpop.f32.mrb[8].mxu0  ;;  %v5894_v63 = vadd.f32 %v5705_v39, %v16485_v24  ;;  %v12050_v55 = vpop.f32.mrb[183].mxu1  ;;  %12395 = vmatmul.mubr.f32.gmra.mrb[32].mxu1 %v6439_v12 }
 0x544   : > { %v12205_v10 = vpop.f32.mrb[9].mxu0  ;;  %12550 = vmatmul.mubr.f32.gmra.mrb[114].mxu0 %v6890_v47  ;;  %12397 = vmatprep.mubr.msk.f32.mxu1 %vm13528_vm0, %v16627_v57  ;;  %v6442_v47 = vld [vmem:[#allocation3 + $0x100] sm:$0xff] }
 0x545   : > { %12552 = vmatprep.mubr.msk.f32.mxu0 %vm13528_vm0, %v16627_v57  ;;  %v16863_v53 = vadd.f32 %v6156_v52, %v5894_v63  ;;  %v6893_v63 = vld [vmem:[#allocation3 + $0x101] sm:$0xff] }
 0x546   : > { %v5710_v56 = vpop.f32.mrb[184].mxu1 }
 0x547   : > { %v6161_v59 = vpop.f32.mrb[10].mxu0  ;;  %v5895_v13 = vadd.f32 %v5710_v56, %v16491_v28  ;;  %v12053_v51 = vpop.f32.mrb[185].mxu1  ;;  %12398 = vmatmul.mubr.f32.gmra.mrb[34].mxu1 %v6440_v60 }
 0x548   : > { %v12208_v24 = vpop.f32.mrb[11].mxu0  ;;  %12553 = vmatmul.mubr.f32.gmra.mrb[116].mxu0 %v6891_v49  ;;  %12400 = vmatprep.mubr.msk.f32.mxu1 %vm13528_vm0, %v16627_v57  ;;  %v6443_v49 = vld [vmem:[#allocation3 + $0x108] sm:$0xff] }
 0x549   : > { %12555 = vmatprep.mubr.msk.f32.mxu0 %vm13528_vm0, %v16627_v57  ;;  %v16870_v41 = vadd.f32 %v6161_v59, %v5895_v13  ;;  %v6894_v13 = vld [vmem:[#allocation3 + $0x109] sm:$0xff] }
 0x54a   : > { %v5715_v31 = vpop.f32.mrb[186].mxu1 }
 0x54b   : > { %v6166_v33 = vpop.f32.mrb[12].mxu0  ;;  %v5896_v25 = vadd.f32 %v5715_v31, %v16497_v37  ;;  %v12056_v2 = vpop.f32.mrb[187].mxu1  ;;  %12401 = vmatmul.mubr.f32.gmra.mrb[36].mxu1 %v6441_v58 }
 0x54c   : > { %v12211_v28 = vpop.f32.mrb[13].mxu0  ;;  %12556 = vmatmul.mubr.f32.gmra.mrb[118].mxu0 %v6892_v9  ;;  %12403 = vmatprep.mubr.msk.f32.mxu1 %vm13528_vm0, %v16627_v57  ;;  %v6444_v9 = vld [vmem:[#allocation3 + $0x110] sm:$0xff] }
 0x54d   : > { %12558 = vmatprep.mubr.msk.f32.mxu0 %vm13528_vm0, %v16627_v57  ;;  %v16877_v39 = vadd.f32 %v6166_v33, %v5896_v25  ;;  %v6895_v25 = vld [vmem:[#allocation3 + $0x111] sm:$0xff] }
 0x54e   : > { %v5720_v52 = vpop.f32.mrb[188].mxu1 }
 0x54f   : > { %v6171_v12 = vpop.f32.mrb[14].mxu0  ;;  %v5897_v55 = vadd.f32 %v5720_v52, %v16503_v43  ;;  %v12059_v10 = vpop.f32.mrb[189].mxu1  ;;  %12404 = vmatmul.mubr.f32.gmra.mrb[38].mxu1 %v6442_v47 }
 0x550   : > { %v12214_v37 = vpop.f32.mrb[15].mxu0  ;;  %12559 = vmatmul.mubr.f32.gmra.mrb[120].mxu0 %v6893_v63  ;;  %12406 = vmatprep.mubr.msk.f32.mxu1 %vm13528_vm0, %v16627_v57  ;;  %v6445_v63 = vld [vmem:[#allocation3 + $0x118] sm:$0xff] }
 0x551   : > { %12561 = vmatprep.mubr.msk.f32.mxu0 %vm13528_vm0, %v16627_v57  ;;  %v16884_v56 = vadd.f32 %v6171_v12, %v5897_v55  ;;  %v6896_v55 = vld [vmem:[#allocation3 + $0x119] sm:$0xff] }
 0x552   : > { %v5725_v59 = vpop.f32.mrb[190].mxu1 }
 0x553   : > { %v6176_v60 = vpop.f32.mrb[16].mxu0  ;;  %v5898_v51 = vadd.f32 %v5725_v59, %v16509_v5  ;;  %v12062_v24 = vpop.f32.mrb[191].mxu1  ;;  %12407 = vmatmul.mubr.f32.gmra.mrb[40].mxu1 %v6443_v49 }
 0x554   : > { %v12217_v43 = vpop.f32.mrb[17].mxu0  ;;  %12562 = vmatmul.mubr.f32.gmra.mrb[122].mxu0 %v6894_v13  ;;  %12409 = vmatprep.mubr.msk.f32.mxu1 %vm13528_vm0, %v16627_v57  ;;  %v6446_v13 = vld [vmem:[#allocation3 + $0x120] sm:$0xff] }
 0x555   : > { %12564 = vmatprep.mubr.msk.f32.mxu0 %vm13528_vm0, %v16627_v57  ;;  %v16891_v31 = vadd.f32 %v6176_v60, %v5898_v51  ;;  %v6897_v51 = vld [vmem:[#allocation3 + $0x121] sm:$0xff] }
 0x556   : > { %v5730_v33 = vpop.f32.mrb[192].mxu1 }
 0x557   : > { %v6181_v58 = vpop.f32.mrb[18].mxu0  ;;  %v5899_v2 = vadd.f32 %v5730_v33, %v16515_v42  ;;  %v12065_v28 = vpop.f32.mrb[193].mxu1  ;;  %12410 = vmatmul.mubr.f32.gmra.mrb[42].mxu1 %v6444_v9 }
 0x558   : > { %v12220_v5 = vpop.f32.mrb[19].mxu0  ;;  %12565 = vmatmul.mubr.f32.gmra.mrb[124].mxu0 %v6895_v25  ;;  %12412 = vmatprep.mubr.msk.f32.mxu1 %vm13528_vm0, %v16627_v57  ;;  %v6447_v25 = vld [vmem:[#allocation3 + $0x128] sm:$0xff] }
 0x559   : > { %12567 = vmatprep.mubr.msk.f32.mxu0 %vm13528_vm0, %v16627_v57  ;;  %v16898_v52 = vadd.f32 %v6181_v58, %v5899_v2  ;;  %v6898_v2 = vld [vmem:[#allocation3 + $0x129] sm:$0xff] }
 0x55a   : > { %v5735_v12 = vpop.f32.mrb[194].mxu1 }
 0x55b   : > { %v6186_v47 = vpop.f32.mrb[20].mxu0  ;;  %v5900_v10 = vadd.f32 %v5735_v12, %v16521_v23  ;;  %v12068_v37 = vpop.f32.mrb[195].mxu1  ;;  %12413 = vmatmul.mubr.f32.gmra.mrb[44].mxu1 %v6445_v63 }
 0x55c   : > { %v12223_v42 = vpop.f32.mrb[21].mxu0  ;;  %12568 = vmatmul.mubr.f32.gmra.mrb[126].mxu0 %v6896_v55  ;;  %12415 = vmatprep.mubr.msk.f32.mxu1 %vm13528_vm0, %v16627_v57  ;;  %v6448_v55 = vld [vmem:[#allocation3 + $0x130] sm:$0xff] }
 0x55d   : > { %12570 = vmatprep.mubr.msk.f32.mxu0 %vm13528_vm0, %v16627_v57  ;;  %v16905_v59 = vadd.f32 %v6186_v47, %v5900_v10  ;;  %v6899_v10 = vld [vmem:[#allocation3 + $0x131] sm:$0xff] }
 0x55e   : > { %v5740_v60 = vpop.f32.mrb[196].mxu1 }
 0x55f   : > { %v6191_v49 = vpop.f32.mrb[22].mxu0  ;;  %v5901_v24 = vadd.f32 %v5740_v60, %v16527_v14  ;;  %v12071_v43 = vpop.f32.mrb[197].mxu1  ;;  %12416 = vmatmul.mubr.f32.gmra.mrb[46].mxu1 %v6446_v13 }
 0x560   : > { %v12226_v23 = vpop.f32.mrb[23].mxu0  ;;  %12571 = vmatmul.mubr.f32.gmra.mrb[128].mxu0 %v6897_v51  ;;  %12418 = vmatprep.mubr.msk.f32.mxu1 %vm13528_vm0, %v16627_v57  ;;  %v6449_v51 = vld [vmem:[#allocation3 + $0x138] sm:$0xff] }
 0x561   : > { %12573 = vmatprep.mubr.msk.f32.mxu0 %vm13528_vm0, %v16627_v57  ;;  %v16912_v33 = vadd.f32 %v6191_v49, %v5901_v24  ;;  %v6900_v24 = vld [vmem:[#allocation3 + $0x139] sm:$0xff] }
 0x562   : > { %v5745_v58 = vpop.f32.mrb[198].mxu1 }
 0x563   : > { %v6196_v9 = vpop.f32.mrb[24].mxu0  ;;  %v5902_v28 = vadd.f32 %v5745_v58, %v16533_v36  ;;  %v12074_v5 = vpop.f32.mrb[199].mxu1  ;;  %12419 = vmatmul.mubr.f32.gmra.mrb[48].mxu1 %v6447_v25 }
 0x564   : > { %v12229_v14 = vpop.f32.mrb[25].mxu0  ;;  %12574 = vmatmul.mubr.f32.gmra.mrb[130].mxu0 %v6898_v2  ;;  %12421 = vmatprep.mubr.msk.f32.mxu1 %vm13528_vm0, %v16627_v57  ;;  %v6450_v2 = vld [vmem:[#allocation3 + $0x140] sm:$0xff] }
 0x565   : > { %12576 = vmatprep.mubr.msk.f32.mxu0 %vm13528_vm0, %v16627_v57  ;;  %v16919_v12 = vadd.f32 %v6196_v9, %v5902_v28  ;;  %v6901_v28 = vld [vmem:[#allocation3 + $0x141] sm:$0xff] }
 0x566   : > { %v5750_v47 = vpop.f32.mrb[200].mxu1 }
 0x567   : > { %v6201_v63 = vpop.f32.mrb[26].mxu0  ;;  %v5903_v37 = vadd.f32 %v5750_v47, %v16539_v0  ;;  %v12077_v42 = vpop.f32.mrb[201].mxu1  ;;  %12422 = vmatmul.mubr.f32.gmra.mrb[50].mxu1 %v6448_v55 }
 0x568   : > { %v12232_v36 = vpop.f32.mrb[27].mxu0  ;;  %12577 = vmatmul.mubr.f32.gmra.mrb[132].mxu0 %v6899_v10  ;;  %12424 = vmatprep.mubr.msk.f32.mxu1 %vm13528_vm0, %v16627_v57  ;;  %v6451_v10 = vld [vmem:[#allocation3 + $0x148] sm:$0xff] }
 0x569   : > { %12579 = vmatprep.mubr.msk.f32.mxu0 %vm13528_vm0, %v16627_v57  ;;  %v16926_v60 = vadd.f32 %v6201_v63, %v5903_v37  ;;  %v6902_v37 = vld [vmem:[#allocation3 + $0x149] sm:$0xff] }
 0x56a   : > { %v5755_v49 = vpop.f32.mrb[202].mxu1 }
 0x56b   : > { %v6206_v13 = vpop.f32.mrb[28].mxu0  ;;  %v5904_v43 = vadd.f32 %v5755_v49, %v16545_v32  ;;  %v12080_v23 = vpop.f32.mrb[203].mxu1  ;;  %12425 = vmatmul.mubr.f32.gmra.mrb[52].mxu1 %v6449_v51 }
 0x56c   : > { %v12235_v0 = vpop.f32.mrb[29].mxu0  ;;  %12580 = vmatmul.mubr.f32.gmra.mrb[134].mxu0 %v6900_v24  ;;  %12427 = vmatprep.mubr.msk.f32.mxu1 %vm13528_vm0, %v16627_v57  ;;  %v6452_v24 = vld [vmem:[#allocation3 + $0x150] sm:$0xff] }
 0x56d   : > { %12582 = vmatprep.mubr.msk.f32.mxu0 %vm13528_vm0, %v16627_v57  ;;  %v16933_v58 = vadd.f32 %v6206_v13, %v5904_v43  ;;  %v6903_v43 = vld [vmem:[#allocation3 + $0x151] sm:$0xff] }
 0x56e   : > { %v5760_v9 = vpop.f32.mrb[204].mxu1 }
 0x56f   : > { %v6211_v25 = vpop.f32.mrb[30].mxu0  ;;  %v5905_v5 = vadd.f32 %v5760_v9, %v16551_v18  ;;  %v12083_v14 = vpop.f32.mrb[205].mxu1  ;;  %12428 = vmatmul.mubr.f32.gmra.mrb[54].mxu1 %v6450_v2 }
 0x570   : > { %v12238_v32 = vpop.f32.mrb[31].mxu0  ;;  %12583 = vmatmul.mubr.f32.gmra.mrb[136].mxu0 %v6901_v28  ;;  %12430 = vmatprep.mubr.msk.f32.mxu1 %vm13528_vm0, %v16627_v57  ;;  %v16962_v14 = vld [vmem:[#allocation3 + $0x159] sm:$0xff] }
 0x571   : > { %12585 = vmatprep.mubr.msk.f32.mxu0 %vm13528_vm0, %v16627_v57  ;;  %v16940_v47 = vadd.f32 %v6211_v25, %v5905_v5  ;;  %v9224_v25 = vld [vmem:[%s17731_s3 + $0x400] sm:$0xff]  ;;  %v6453_v5 = vld [vmem:[#allocation3 + $0x158] sm:$0xff] }
 0x572   : > { %v5765_v63 = vpop.f32.mrb[206].mxu1 }
 0x573   : > { %v6216_v55 = vpop.f32.mrb[32].mxu0  ;;  %v5906_v42 = vadd.f32 %v5765_v63, %v16557_v4  ;;  %v12086_v36 = vpop.f32.mrb[207].mxu1  ;;  %12431 = vmatmul.mubr.f32.gmra.mrb[56].mxu1 %v6451_v10 }
 0x574   : > { %v12241_v18 = vpop.f32.mrb[33].mxu0  ;;  %12586 = vmatmul.mubr.f32.gmra.mrb[138].mxu0 %v6902_v37  ;;  %12433 = vmatprep.mubr.msk.f32.mxu1 %vm13528_vm0, %v16627_v57 }
 0x575   : > { %12588 = vmatprep.mubr.msk.f32.mxu0 %vm13528_vm0, %v16627_v57  ;;  %v16947_v49 = vadd.f32 %v6216_v55, %v5906_v42  ;;  %v7315_v42 = vld [vmem:[#allocation3 + $0x29] sm:$0xff] }
 0x576   : > { %v5770_v13 = vpop.f32.mrb[208].mxu1 }
 0x577   : > { %v6221_v51 = vpop.f32.mrb[34].mxu0  ;;  %v5907_v23 = vadd.f32 %v5770_v13, %v16563_v45  ;;  %v12089_v0 = vpop.f32.mrb[209].mxu1  ;;  %12434 = vmatmul.mubr.f32.gmra.mrb[58].mxu1 %v6452_v24  ;;  %v9225_v45 = vld [vmem:[%s17731_s3 + $0x408] sm:$0xff] }
 0x578   : > { %v12244_v4 = vpop.f32.mrb[35].mxu0  ;;  %12589 = vmatmul.mubr.f32.gmra.mrb[140].mxu0 %v6903_v43  ;;  %12436 = vmatprep.mubr.msk.f32.mxu1 %vm13528_vm0, %v16627_v57  ;;  %v13468_v10 = vpack.c.bf16 %v9225_v45, %v9224_v25  ;;  %v7766_v13 = vld [vmem:[#allocation3 + $0x2a] sm:$0xff] }
 0x579   : > { %12591 = vmatprep.mubr.msk.f32.mxu0 %vm13528_vm0, %v16627_v57  ;;  %v16954_v9 = vadd.f32 %v6221_v51, %v5907_v23  ;;  %v9227_v51 = vld [vmem:[%s17731_s3 + $0x418] sm:$0xff] }
 0x57a   : > { %v5775_v2 = vpop.f32.mrb[210].mxu1  ;;  %v7316_v4 = vld [vmem:[#allocation3 + $0x31] sm:$0xff] }
 0x57b   : > { %v6226_v28 = vpop.f32.mrb[36].mxu0  ;;  %v5908_v32 = vadd.f32 %v5775_v2, %v16575_v26  ;;  %v12092_v63 = vpop.f32.mrb[211].mxu1  ;;  %12437 = vmatmul.mubr.f32.gmra.mrb[60].mxu1 %v6453_v5  ;;  %v9226_v26 = vld [vmem:[%s17731_s3 + $0x410] sm:$0xff]  ;;  %v9229_v5 = vld [vmem:[%s17731_s3 + $0x428] sm:$0xff] }
 0x57c   : > { %v12247_v55 = vpop.f32.mrb[37].mxu0  ;;  %12592 = vmatmul.mubr.f32.gmra.mrb[142].mxu0 %v16962_v14  ;;  %12626 = vmatprep.mubr.msk.f32.mxu1 %vm13528_vm0, %v16627_v57  ;;  %v13471_v25 = vpack.c.bf16 %v9227_v51, %v9226_v26  ;;  %v7767_v2 = vld [vmem:[#allocation3 + $0x32] sm:$0xff]  ;;  %v7768_v26 = vld [vmem:[#allocation3 + $0x3a] sm:$0xff] }
 0x57d   : > { %12781 = vmatprep.mubr.msk.f32.mxu0 %vm13528_vm0, %v16627_v57  ;;  %v16970_v37 = vadd.f32 %v6226_v28, %v5908_v32  ;;  %v16979_v57 = vld [vmem:[#allocation3] sm:$0xff]  ;;  %v9231_v51 = vld [vmem:[%s17731_s3 + $0x438] sm:$0xff] }
 0x57e   : > { %v5780_v36 = vpop.f32.mrb[212].mxu1  ;;  %v9228_v28 = vld [vmem:[%s17731_s3 + $0x420] sm:$0xff] }
 0x57f   : > { %v6231_v18 = vpop.f32.mrb[38].mxu0  ;;  %v5909_v24 = vadd.f32 %v5780_v36, %v16587_v1  ;;  %v12095_v43 = vpop.f32.mrb[213].mxu1  ;;  %12627 = vmatmul.mubr.f32.vlgmr.msra.gmra.mrb[62].mxu1 %v7315_v42  ;;  %v7317_v42 = vld [vmem:[#allocation3 + $0x39] sm:$0xff]  ;;  %v13474_v36 = vpack.c.bf16 %v9229_v5, %v9228_v28  ;;  %v7769_v28 = vld [vmem:[#allocation3 + $0x42] sm:$0xff] }
 0x580   : > { %v12250_v23 = vpop.f32.mrb[39].mxu0  ;;  %12782 = vmatmul.mubr.f32.vlgmr.msra.gmra.mrb[144].mxu0 %v7766_v13  ;;  %13469 = vmatpush3.bf16.msra.mxu1 %v13468_v10  ;;  %v9233_v5 = vld [vmem:[%s17731_s3 + $0x448] sm:$0xff] }
 0x581   : > { %12629 = vmatprep.mubr.msk.f32.mxu1 %vm13528_vm0, %v16979_v57  ;;  %v16983_v0 = vadd.f32 %v6231_v18, %v5909_v24  ;;  %12784 = vmatprep.mubr.msk.f32.mxu0 %vm13528_vm0, %v16979_v57 }
 0x582   : > { %13470 = vmatprep.subr.bf16.mxu1 %v13526_v3  ;;  %v5785_v1 = vpop.f32.mrb[214].mxu1 }
 0x583   : > { %v6236_v45 = vpop.f32.mrb[40].mxu0  ;;  %v5910_v32 = vadd.f32 %v5785_v1, %v16600_v7  ;;  %v12098_v63 = vpop.f32.mrb[215].mxu1  ;;  %12630 = vmatmul.mubr.f32.gmra.mrb[64].mxu1 %v7316_v4  ;;  %v9230_v7 = vld [vmem:[%s17731_s3 + $0x430] sm:$0xff] }
 0x584   : > { %v12253_v55 = vpop.f32.mrb[41].mxu0  ;;  %12785 = vmatmul.mubr.f32.gmra.mrb[146].mxu0 %v7767_v2  ;;  %12632 = vmatprep.mubr.msk.f32.mxu1 %vm13528_vm0, %v16979_v57  ;;  %v13477_v1 = vpack.c.bf16 %v9231_v51, %v9230_v7  ;;  %v7770_v7 = vld [vmem:[#allocation3 + $0x4a] sm:$0xff]  ;;  %v9235_v51 = vld [vmem:[%s17731_s3 + $0x458] sm:$0xff] }
 0x585   : > { %12787 = vmatprep.mubr.msk.f32.mxu0 %vm13528_vm0, %v16979_v57  ;;  %v16999_v10 = vadd.f32 %v6236_v45, %v5910_v32  ;;  %13472 = vmatpush3.bf16.msra.mxu1 %v13471_v25  ;;  %v7318_v25 = vld [vmem:[#allocation3 + $0x41] sm:$0xff] }
 0x586   : > { %v5790_v18 = vpop.f32.mrb[216].mxu1  ;;  %13473 = vmatprep.subr.bf16.mxu1 %v13526_v3 }
 0x587   : > { %v6241_v13 = vpop.f32.mrb[42].mxu0  ;;  %v5911_v24 = vadd.f32 %v5790_v18, %v16619_v44  ;;  %v12101_v43 = vpop.f32.mrb[217].mxu1  ;;  %12633 = vmatmul.mubr.f32.gmra.mrb[66].mxu1 %v7317_v42  ;;  %v9232_v44 = vld [vmem:[%s17731_s3 + $0x440] sm:$0xff] }
 0x588   : > { %v12256_v23 = vpop.f32.mrb[43].mxu0  ;;  %12788 = vmatmul.mubr.f32.gmra.mrb[148].mxu0 %v7768_v26  ;;  %12635 = vmatprep.mubr.msk.f32.mxu1 %vm13528_vm0, %v16979_v57  ;;  %v13480_v18 = vpack.c.bf16 %v9233_v5, %v9232_v44  ;;  %v7771_v44 = vld [vmem:[#allocation3 + $0x52] sm:$0xff]  ;;  %v9237_v5 = vld [vmem:[%s17731_s3 + $0x468] sm:$0xff] }
 0x589   : > { %12790 = vmatprep.mubr.msk.f32.mxu0 %vm13528_vm0, %v16979_v57  ;;  %v17013_v4 = vadd.f32 %v6241_v13, %v5911_v24  ;;  %13475 = vmatpush3.bf16.msra.mxu1 %v13474_v36  ;;  %v7319_v36 = vld [vmem:[#allocation3 + $0x49] sm:$0xff] }
 0x58a   : > { %v5795_v45 = vpop.f32.mrb[218].mxu1  ;;  %13476 = vmatprep.subr.bf16.mxu1 %v13526_v3 }
 0x58b   : > { %v6246_v2 = vpop.f32.mrb[44].mxu0  ;;  %v5912_v32 = vadd.f32 %v5795_v45, %v16641_v27  ;;  %v12104_v63 = vpop.f32.mrb[219].mxu1  ;;  %12636 = vmatmul.mubr.f32.gmra.mrb[68].mxu1 %v7318_v25  ;;  %v9234_v27 = vld [vmem:[%s17731_s3 + $0x450] sm:$0xff] }
 0x58c   : > { %v12259_v55 = vpop.f32.mrb[45].mxu0  ;;  %12791 = vmatmul.mubr.f32.gmra.mrb[150].mxu0 %v7769_v28  ;;  %12638 = vmatprep.mubr.msk.f32.mxu1 %vm13528_vm0, %v16979_v57  ;;  %v13483_v45 = vpack.c.bf16 %v9235_v51, %v9234_v27  ;;  %v7772_v27 = vld [vmem:[#allocation3 + $0x5a] sm:$0xff] }
 0x58d   : > { %12793 = vmatprep.mubr.msk.f32.mxu0 %vm13528_vm0, %v16979_v57  ;;  %v17027_v42 = vadd.f32 %v6246_v2, %v5912_v32  ;;  %13478 = vmatpush3.bf16.msra.mxu1 %v13477_v1  ;;  %v7320_v1 = vld [vmem:[#allocation3 + $0x51] sm:$0xff] }
 0x58e   : > { %v5800_v13 = vpop.f32.mrb[220].mxu1  ;;  %13479 = vmatprep.subr.bf16.mxu1 %v13526_v3  ;;  %v9239_v51 = vld [vmem:[%s17731_s3 + $0x478] sm:$0xff] }
 0x58f   : > { %v6251_v26 = vpop.f32.mrb[46].mxu0  ;;  %v5913_v24 = vadd.f32 %v5800_v13, %v16661_v20  ;;  %v12107_v43 = vpop.f32.mrb[221].mxu1  ;;  %12639 = vmatmul.mubr.f32.gmra.mrb[70].mxu1 %v7319_v36  ;;  %v9236_v20 = vld [vmem:[%s17731_s3 + $0x460] sm:$0xff] }
 0x590   : > { %v12262_v23 = vpop.f32.mrb[47].mxu0  ;;  %12794 = vmatmul.mubr.f32.gmra.mrb[152].mxu0 %v7770_v7  ;;  %12641 = vmatprep.mubr.msk.f32.mxu1 %vm13528_vm0, %v16979_v57  ;;  %v13486_v13 = vpack.c.bf16 %v9237_v5, %v9236_v20  ;;  %v7773_v20 = vld [vmem:[#allocation3 + $0x62] sm:$0xff] }
 0x591   : > { %12796 = vmatprep.mubr.msk.f32.mxu0 %vm13528_vm0, %v16979_v57  ;;  %v17041_v25 = vadd.f32 %v6251_v26, %v5913_v24  ;;  %13481 = vmatpush3.bf16.msra.mxu1 %v13480_v18  ;;  %v7321_v18 = vld [vmem:[#allocation3 + $0x59] sm:$0xff] }
 0x592   : > { %v5805_v2 = vpop.f32.mrb[222].mxu1  ;;  %13482 = vmatprep.subr.bf16.mxu1 %v13526_v3 }
 0x593   : > { %v6256_v28 = vpop.f32.mrb[48].mxu0  ;;  %v5914_v32 = vadd.f32 %v5805_v2, %v16681_v6  ;;  %v12110_v63 = vpop.f32.mrb[223].mxu1  ;;  %12642 = vmatmul.mubr.f32.gmra.mrb[72].mxu1 %v7320_v1  ;;  %v9238_v6 = vld [vmem:[%s17731_s3 + $0x470] sm:$0xff] }
 0x594   : > { %v12265_v55 = vpop.f32.mrb[49].mxu0  ;;  %12797 = vmatmul.mubr.f32.gmra.mrb[154].mxu0 %v7771_v44  ;;  %12644 = vmatprep.mubr.msk.f32.mxu1 %vm13528_vm0, %v16979_v57  ;;  %v7322_v44 = vld [vmem:[#allocation3 + $0x61] sm:$0xff] }
 0x595   : > { %12799 = vmatprep.mubr.msk.f32.mxu0 %vm13528_vm0, %v16979_v57  ;;  %v17055_v36 = vadd.f32 %v6256_v28, %v5914_v32  ;;  %13484 = vmatpush3.bf16.msra.mxu1 %v13483_v45  ;;  %v13489_v45 = vpack.c.bf16 %v9239_v51, %v9238_v6 }
 0x596   : > { %v5810_v26 = vpop.f32.mrb[224].mxu1  ;;  %13485 = vmatprep.subr.bf16.mxu1 %v13526_v3 }
 0x597   : > { %v6261_v7 = vpop.f32.mrb[50].mxu0  ;;  %v5915_v24 = vadd.f32 %v5810_v26, %v16701_v61  ;;  %v12113_v43 = vpop.f32.mrb[225].mxu1  ;;  %12645 = vmatmul.mubr.f32.gmra.mrb[74].mxu1 %v7321_v18  ;;  %v7774_v26 = vld [vmem:[#allocation3 + $0x6a] sm:$0xff] }
 0x598   : > { %v12268_v23 = vpop.f32.mrb[51].mxu0  ;;  %12800 = vmatmul.mubr.f32.gmra.mrb[156].mxu0 %v7772_v27  ;;  %12647 = vmatprep.mubr.msk.f32.mxu1 %vm13528_vm0, %v16979_v57  ;;  %v7775_v43 = vld [vmem:[#allocation3 + $0x72] sm:$0xff] }
 0x599   : > { %12802 = vmatprep.mubr.msk.f32.mxu0 %vm13528_vm0, %v16979_v57  ;;  %v17069_v1 = vadd.f32 %v6261_v7, %v5915_v24  ;;  %13487 = vmatpush3.bf16.msra.mxu1 %v13486_v13  ;;  %v7323_v13 = vld [vmem:[#allocation3 + $0x69] sm:$0xff]  ;;  %v7324_v24 = vld [vmem:[#allocation3 + $0x71] sm:$0xff] }
 0x59a   : > { %v5815_v2 = vpop.f32.mrb[226].mxu1  ;;  %13488 = vmatprep.subr.bf16.mxu1 %v13526_v3 }
 0x59b   : > { %v6266_v28 = vpop.f32.mrb[52].mxu0  ;;  %v5916_v61 = vadd.f32 %v5815_v2, %v16715_v54  ;;  %v12116_v5 = vpop.f32.mrb[227].mxu1  ;;  %12648 = vmatmul.mubr.f32.gmra.mrb[76].mxu1 %v7322_v44 }
 0x59c   : > { %v12271_v32 = vpop.f32.mrb[53].mxu0  ;;  %12803 = vmatmul.mubr.f32.gmra.mrb[158].mxu0 %v7773_v20  ;;  %12650 = vmatprep.mubr.msk.f32.mxu1 %vm13528_vm0, %v16979_v57  ;;  %v7325_v20 = vld [vmem:[#allocation3 + $0x79] sm:$0xff] }
 0x59d   : > { %12805 = vmatprep.mubr.msk.f32.mxu0 %vm13528_vm0, %v16979_v57  ;;  %v17077_v63 = vadd.f32 %v6266_v28, %v5916_v61  ;;  %13490 = vmatpush3.bf16.msra.mxu1 %v13489_v45  ;;  %v7776_v61 = vld [vmem:[#allocation3 + $0x7a] sm:$0xff] }
 0x59e   : > { %v5820_v55 = vpop.f32.mrb[228].mxu1 }
 0x59f   : > { %v6271_v18 = vpop.f32.mrb[54].mxu0  ;;  %v5917_v3 = vadd.f32 %v5820_v55, %v16729_v38  ;;  %v12119_v54 = vpop.f32.mrb[229].mxu1  ;;  %12651 = vmatmul.mubr.f32.gmra.mrb[78].mxu1 %v7323_v13 }
 0x5a0   : > { %v12274_v7 = vpop.f32.mrb[55].mxu0  ;;  %12806 = vmatmul.mubr.f32.gmra.mrb[160].mxu0 %v7774_v26  ;;  %12653 = vmatprep.mubr.msk.f32.mxu1 %vm13528_vm0, %v16979_v57  ;;  %v7326_v26 = vld [vmem:[#allocation3 + $0x81] sm:$0xff] }
 0x5a1   : > { %12808 = vmatprep.mubr.msk.f32.mxu0 %vm13528_vm0, %v16979_v57  ;;  %v17084_v27 = vadd.f32 %v6271_v18, %v5917_v3  ;;  %v7777_v3 = vld [vmem:[#allocation3 + $0x82] sm:$0xff] }
 0x5a2   : > { %v5825_v6 = vpop.f32.mrb[230].mxu1 }
 0x5a3   : > { %v6276_v51 = vpop.f32.mrb[56].mxu0  ;;  %v5918_v23 = vadd.f32 %v5825_v6, %v16742_v30  ;;  %v12122_v45 = vpop.f32.mrb[231].mxu1  ;;  %12654 = vmatmul.mubr.f32.gmra.mrb[80].mxu1 %v7324_v24 }
 0x5a4   : > { %v12277_v38 = vpop.f32.mrb[57].mxu0  ;;  %12809 = vmatmul.mubr.f32.gmra.mrb[162].mxu0 %v7775_v43  ;;  %12656 = vmatprep.mubr.msk.f32.mxu1 %vm13528_vm0, %v16979_v57  ;;  %v7327_v43 = vld [vmem:[#allocation3 + $0x89] sm:$0xff] }
 0x5a5   : > { %12811 = vmatprep.mubr.msk.f32.mxu0 %vm13528_vm0, %v16979_v57  ;;  %v17091_v2 = vadd.f32 %v6276_v51, %v5918_v23  ;;  %v7778_v23 = vld [vmem:[#allocation3 + $0x8a] sm:$0xff] }
 0x5a6   : > { %v5830_v28 = vpop.f32.mrb[232].mxu1 }
 0x5a7   : > { %v6281_v44 = vpop.f32.mrb[58].mxu0  ;;  %v5919_v5 = vadd.f32 %v5830_v28, %v16748_v50  ;;  %v12125_v32 = vpop.f32.mrb[233].mxu1  ;;  %12657 = vmatmul.mubr.f32.gmra.mrb[82].mxu1 %v7325_v20 }
 0x5a8   : > { %v12280_v30 = vpop.f32.mrb[59].mxu0  ;;  %12812 = vmatmul.mubr.f32.gmra.mrb[164].mxu0 %v7776_v61  ;;  %12659 = vmatprep.mubr.msk.f32.mxu1 %vm13528_vm0, %v16979_v57  ;;  %v7328_v61 = vld [vmem:[#allocation3 + $0x91] sm:$0xff] }
 0x5a9   : > { %12814 = vmatprep.mubr.msk.f32.mxu0 %vm13528_vm0, %v16979_v57  ;;  %v17098_v55 = vadd.f32 %v6281_v44, %v5919_v5  ;;  %v7779_v5 = vld [vmem:[#allocation3 + $0x92] sm:$0xff] }
 0x5aa   : > { %v5835_v18 = vpop.f32.mrb[234].mxu1 }
 0x5ab   : > { %v6286_v13 = vpop.f32.mrb[60].mxu0  ;;  %v5920_v54 = vadd.f32 %v5835_v18, %v16754_v34  ;;  %v12128_v7 = vpop.f32.mrb[235].mxu1  ;;  %12660 = vmatmul.mubr.f32.gmra.mrb[84].mxu1 %v7326_v26 }
 0x5ac   : > { %v12283_v50 = vpop.f32.mrb[61].mxu0  ;;  %12815 = vmatmul.mubr.f32.gmra.mrb[166].mxu0 %v7777_v3  ;;  %12662 = vmatprep.mubr.msk.f32.mxu1 %vm13528_vm0, %v16979_v57  ;;  %v7329_v3 = vld [vmem:[#allocation3 + $0x99] sm:$0xff] }
 0x5ad   : > { %12817 = vmatprep.mubr.msk.f32.mxu0 %vm13528_vm0, %v16979_v57  ;;  %v17105_v6 = vadd.f32 %v6286_v13, %v5920_v54  ;;  %v7780_v54 = vld [vmem:[#allocation3 + $0x9a] sm:$0xff] }
 0x5ae   : > { %v6537_v51 = vpop.f32.mrb[236].mxu1 }
 0x5af   : > { %v6988_v24 = vpop.f32.mrb[62].mxu0  ;;  %v6782_v45 = vadd.f32 %v6537_v51, %v16765_v22  ;;  %v12318_v38 = vpop.f32.mrb[237].mxu1  ;;  %12663 = vmatmul.mubr.f32.gmra.mrb[86].mxu1 %v7327_v43 }
 0x5b0   : > { %v12473_v34 = vpop.f32.mrb[63].mxu0  ;;  %12818 = vmatmul.mubr.f32.gmra.mrb[168].mxu0 %v7778_v23  ;;  %12665 = vmatprep.mubr.msk.f32.mxu1 %vm13528_vm0, %v16979_v57  ;;  %v7330_v23 = vld [vmem:[#allocation3 + $0xa1] sm:$0xff] }
 0x5b1   : > { %12820 = vmatprep.mubr.msk.f32.mxu0 %vm13528_vm0, %v16979_v57  ;;  %v17112_v28 = vadd.f32 %v6988_v24, %v6782_v45  ;;  %v7781_v45 = vld [vmem:[#allocation3 + $0xa2] sm:$0xff] }
 0x5b2   : > { %v6542_v44 = vpop.f32.mrb[238].mxu1 }
 0x5b3   : > { %v6993_v20 = vpop.f32.mrb[64].mxu0  ;;  %v6783_v32 = vadd.f32 %v6542_v44, %v16772_v8  ;;  %v12321_v30 = vpop.f32.mrb[239].mxu1  ;;  %12666 = vmatmul.mubr.f32.gmra.mrb[88].mxu1 %v7328_v61 }
 0x5b4   : > { %v12476_v22 = vpop.f32.mrb[65].mxu0  ;;  %12821 = vmatmul.mubr.f32.gmra.mrb[170].mxu0 %v7779_v5  ;;  %12668 = vmatprep.mubr.msk.f32.mxu1 %vm13528_vm0, %v16979_v57  ;;  %v7331_v5 = vld [vmem:[#allocation3 + $0xa9] sm:$0xff] }
 0x5b5   : > { %12823 = vmatprep.mubr.msk.f32.mxu0 %vm13528_vm0, %v16979_v57  ;;  %v17119_v18 = vadd.f32 %v6993_v20, %v6783_v32  ;;  %v7782_v32 = vld [vmem:[#allocation3 + $0xaa] sm:$0xff] }
 0x5b6   : > { %v6547_v13 = vpop.f32.mrb[240].mxu1 }
 0x5b7   : > { %v6998_v26 = vpop.f32.mrb[66].mxu0  ;;  %v6784_v7 = vadd.f32 %v6547_v13, %v16779_v48  ;;  %v12324_v50 = vpop.f32.mrb[241].mxu1  ;;  %12669 = vmatmul.mubr.f32.gmra.mrb[90].mxu1 %v7329_v3 }
 0x5b8   : > { %v12479_v8 = vpop.f32.mrb[67].mxu0  ;;  %12824 = vmatmul.mubr.f32.gmra.mrb[172].mxu0 %v7780_v54  ;;  %12671 = vmatprep.mubr.msk.f32.mxu1 %vm13528_vm0, %v16979_v57  ;;  %v7332_v54 = vld [vmem:[#allocation3 + $0xb1] sm:$0xff] }
 0x5b9   : > { %12826 = vmatprep.mubr.msk.f32.mxu0 %vm13528_vm0, %v16979_v57  ;;  %v17126_v51 = vadd.f32 %v6998_v26, %v6784_v7  ;;  %v7783_v7 = vld [vmem:[#allocation3 + $0xb2] sm:$0xff] }
 0x5ba   : > { %v6552_v24 = vpop.f32.mrb[242].mxu1 }
 0x5bb   : > { %v7003_v43 = vpop.f32.mrb[68].mxu0  ;;  %v6785_v38 = vadd.f32 %v6552_v24, %v16786_v40  ;;  %v12327_v34 = vpop.f32.mrb[243].mxu1  ;;  %12672 = vmatmul.mubr.f32.gmra.mrb[92].mxu1 %v7330_v23 }
 0x5bc   : > { %v12482_v48 = vpop.f32.mrb[69].mxu0  ;;  %12827 = vmatmul.mubr.f32.gmra.mrb[174].mxu0 %v7781_v45  ;;  %12674 = vmatprep.mubr.msk.f32.mxu1 %vm13528_vm0, %v16979_v57  ;;  %v7333_v45 = vld [vmem:[#allocation3 + $0xb9] sm:$0xff] }
 0x5bd   : > { %12829 = vmatprep.mubr.msk.f32.mxu0 %vm13528_vm0, %v16979_v57  ;;  %v17133_v44 = vadd.f32 %v7003_v43, %v6785_v38  ;;  %v7784_v38 = vld [vmem:[#allocation3 + $0xba] sm:$0xff] }
 0x5be   : > { %v6557_v20 = vpop.f32.mrb[244].mxu1 }
 0x5bf   : > { %v7008_v61 = vpop.f32.mrb[70].mxu0  ;;  %v6786_v30 = vadd.f32 %v6557_v20, %v16793_v19  ;;  %v12330_v22 = vpop.f32.mrb[245].mxu1  ;;  %12675 = vmatmul.mubr.f32.gmra.mrb[94].mxu1 %v7331_v5 }
 0x5c0   : > { %v12485_v40 = vpop.f32.mrb[71].mxu0  ;;  %12830 = vmatmul.mubr.f32.gmra.mrb[176].mxu0 %v7782_v32  ;;  %12677 = vmatprep.mubr.msk.f32.mxu1 %vm13528_vm0, %v16979_v57  ;;  %v7334_v32 = vld [vmem:[#allocation3 + $0xc1] sm:$0xff] }
 0x5c1   : > { %12832 = vmatprep.mubr.msk.f32.mxu0 %vm13528_vm0, %v16979_v57  ;;  %v17140_v13 = vadd.f32 %v7008_v61, %v6786_v30  ;;  %v7785_v30 = vld [vmem:[#allocation3 + $0xc2] sm:$0xff] }
 0x5c2   : > { %v6562_v26 = vpop.f32.mrb[246].mxu1 }
 0x5c3   : > { %v7013_v3 = vpop.f32.mrb[72].mxu0  ;;  %v6787_v50 = vadd.f32 %v6562_v26, %v16800_v46  ;;  %v12333_v8 = vpop.f32.mrb[247].mxu1  ;;  %12678 = vmatmul.mubr.f32.gmra.mrb[96].mxu1 %v7332_v54 }
 0x5c4   : > { %v12488_v19 = vpop.f32.mrb[73].mxu0  ;;  %12833 = vmatmul.mubr.f32.gmra.mrb[178].mxu0 %v7783_v7  ;;  %12680 = vmatprep.mubr.msk.f32.mxu1 %vm13528_vm0, %v16979_v57  ;;  %v7335_v7 = vld [vmem:[#allocation3 + $0xc9] sm:$0xff] }
 0x5c5   : > { %12835 = vmatprep.mubr.msk.f32.mxu0 %vm13528_vm0, %v16979_v57  ;;  %v17147_v24 = vadd.f32 %v7013_v3, %v6787_v50  ;;  %v7786_v50 = vld [vmem:[#allocation3 + $0xca] sm:$0xff] }
 0x5c6   : > { %v6567_v43 = vpop.f32.mrb[248].mxu1 }
 0x5c7   : > { %v7018_v23 = vpop.f32.mrb[74].mxu0  ;;  %v6788_v34 = vadd.f32 %v6567_v43, %v16807_v15  ;;  %v12336_v48 = vpop.f32.mrb[249].mxu1  ;;  %12681 = vmatmul.mubr.f32.gmra.mrb[98].mxu1 %v7333_v45 }
 0x5c8   : > { %v12491_v46 = vpop.f32.mrb[75].mxu0  ;;  %12836 = vmatmul.mubr.f32.gmra.mrb[180].mxu0 %v7784_v38  ;;  %12683 = vmatprep.mubr.msk.f32.mxu1 %vm13528_vm0, %v16979_v57  ;;  %v7336_v38 = vld [vmem:[#allocation3 + $0xd1] sm:$0xff] }
 0x5c9   : > { %12838 = vmatprep.mubr.msk.f32.mxu0 %vm13528_vm0, %v16979_v57  ;;  %v17154_v20 = vadd.f32 %v7018_v23, %v6788_v34  ;;  %v7787_v34 = vld [vmem:[#allocation3 + $0xd2] sm:$0xff] }
 0x5ca   : > { %v6572_v61 = vpop.f32.mrb[250].mxu1 }
 0x5cb   : > { %v7023_v5 = vpop.f32.mrb[76].mxu0  ;;  %v6789_v22 = vadd.f32 %v6572_v61, %v16814_v35  ;;  %v12339_v40 = vpop.f32.mrb[251].mxu1  ;;  %12684 = vmatmul.mubr.f32.gmra.mrb[100].mxu1 %v7334_v32 }
 0x5cc   : > { %v12494_v15 = vpop.f32.mrb[77].mxu0  ;;  %12839 = vmatmul.mubr.f32.gmra.mrb[182].mxu0 %v7785_v30  ;;  %12686 = vmatprep.mubr.msk.f32.mxu1 %vm13528_vm0, %v16979_v57  ;;  %v7337_v30 = vld [vmem:[#allocation3 + $0xd9] sm:$0xff] }
 0x5cd   : > { %12841 = vmatprep.mubr.msk.f32.mxu0 %vm13528_vm0, %v16979_v57  ;;  %v17161_v26 = vadd.f32 %v7023_v5, %v6789_v22  ;;  %v7788_v22 = vld [vmem:[#allocation3 + $0xda] sm:$0xff] }
 0x5ce   : > { %v6577_v3 = vpop.f32.mrb[252].mxu1 }
 0x5cf   : > { %v7028_v54 = vpop.f32.mrb[78].mxu0  ;;  %v6790_v8 = vadd.f32 %v6577_v3, %v16821_v16  ;;  %v12342_v19 = vpop.f32.mrb[253].mxu1  ;;  %12687 = vmatmul.mubr.f32.gmra.mrb[102].mxu1 %v7335_v7 }
 0x5d0   : > { %v12497_v35 = vpop.f32.mrb[79].mxu0  ;;  %12842 = vmatmul.mubr.f32.gmra.mrb[184].mxu0 %v7786_v50  ;;  %12689 = vmatprep.mubr.msk.f32.mxu1 %vm13528_vm0, %v16979_v57  ;;  %v7338_v50 = vld [vmem:[#allocation3 + $0xe1] sm:$0xff] }
 0x5d1   : > { %12844 = vmatprep.mubr.msk.f32.mxu0 %vm13528_vm0, %v16979_v57  ;;  %v17168_v43 = vadd.f32 %v7028_v54, %v6790_v8  ;;  %v7789_v8 = vld [vmem:[#allocation3 + $0xe2] sm:$0xff] }
 0x5d2   : > { %v6582_v23 = vpop.f32.mrb[254].mxu1 }
 0x5d3   : > { %v7033_v45 = vpop.f32.mrb[80].mxu0  ;;  %v6791_v48 = vadd.f32 %v6582_v23, %v16828_v11  ;;  %v12345_v46 = vpop.f32.mrb[255].mxu1  ;;  %12690 = vmatmul.mubr.f32.gmra.mrb[104].mxu1 %v7336_v38 }
 0x5d4   : > { %v12500_v16 = vpop.f32.mrb[81].mxu0  ;;  %12845 = vmatmul.mubr.f32.gmra.mrb[186].mxu0 %v7787_v34  ;;  %12692 = vmatprep.mubr.msk.f32.mxu1 %vm13528_vm0, %v16979_v57  ;;  %v7339_v34 = vld [vmem:[#allocation3 + $0xe9] sm:$0xff] }
 0x5d5   : > { %12847 = vmatprep.mubr.msk.f32.mxu0 %vm13528_vm0, %v16979_v57  ;;  %v17175_v61 = vadd.f32 %v7033_v45, %v6791_v48  ;;  %v7790_v48 = vld [vmem:[#allocation3 + $0xea] sm:$0xff] }
 0x5d6   : > { %v6587_v5 = vpop.f32.mrb[0].mxu1 }
 0x5d7   : > { %v7038_v32 = vpop.f32.mrb[82].mxu0  ;;  %v6792_v40 = vadd.f32 %v6587_v5, %v16835_v17  ;;  %v12348_v15 = vpop.f32.mrb[1].mxu1  ;;  %12693 = vmatmul.mubr.f32.gmra.mrb[106].mxu1 %v7337_v30 }
 0x5d8   : > { %v12503_v11 = vpop.f32.mrb[83].mxu0  ;;  %12848 = vmatmul.mubr.f32.gmra.mrb[188].mxu0 %v7788_v22  ;;  %12695 = vmatprep.mubr.msk.f32.mxu1 %vm13528_vm0, %v16979_v57  ;;  %v7340_v22 = vld [vmem:[#allocation3 + $0xf1] sm:$0xff] }
 0x5d9   : > { %12850 = vmatprep.mubr.msk.f32.mxu0 %vm13528_vm0, %v16979_v57  ;;  %v17182_v3 = vadd.f32 %v7038_v32, %v6792_v40  ;;  %v7791_v40 = vld [vmem:[#allocation3 + $0xf2] sm:$0xff] }
 0x5da   : > { %v6592_v54 = vpop.f32.mrb[2].mxu1 }
 0x5db   : > { %v7043_v7 = vpop.f32.mrb[84].mxu0  ;;  %v6793_v19 = vadd.f32 %v6592_v54, %v16842_v29  ;;  %v12351_v35 = vpop.f32.mrb[3].mxu1  ;;  %12696 = vmatmul.mubr.f32.gmra.mrb[108].mxu1 %v7338_v50 }
 0x5dc   : > { %v12506_v17 = vpop.f32.mrb[85].mxu0  ;;  %12851 = vmatmul.mubr.f32.gmra.mrb[190].mxu0 %v7789_v8  ;;  %12698 = vmatprep.mubr.msk.f32.mxu1 %vm13528_vm0, %v16979_v57  ;;  %v7341_v8 = vld [vmem:[#allocation3 + $0xf9] sm:$0xff] }
 0x5dd   : > { %12853 = vmatprep.mubr.msk.f32.mxu0 %vm13528_vm0, %v16979_v57  ;;  %v17189_v23 = vadd.f32 %v7043_v7, %v6793_v19  ;;  %v7792_v19 = vld [vmem:[#allocation3 + $0xfa] sm:$0xff] }
 0x5de   : > { %v6597_v45 = vpop.f32.mrb[4].mxu1 }
 0x5df   : > { %v7048_v38 = vpop.f32.mrb[86].mxu0  ;;  %v6794_v46 = vadd.f32 %v6597_v45, %v16849_v21  ;;  %v12354_v16 = vpop.f32.mrb[5].mxu1  ;;  %12699 = vmatmul.mubr.f32.gmra.mrb[110].mxu1 %v7339_v34 }
 0x5e0   : > { %v12509_v29 = vpop.f32.mrb[87].mxu0  ;;  %12854 = vmatmul.mubr.f32.gmra.mrb[192].mxu0 %v7790_v48  ;;  %12701 = vmatprep.mubr.msk.f32.mxu1 %vm13528_vm0, %v16979_v57  ;;  %v7342_v48 = vld [vmem:[#allocation3 + $0x101] sm:$0xff] }
 0x5e1   : > { %12856 = vmatprep.mubr.msk.f32.mxu0 %vm13528_vm0, %v16979_v57  ;;  %v17196_v5 = vadd.f32 %v7048_v38, %v6794_v46  ;;  %v7793_v46 = vld [vmem:[#allocation3 + $0x102] sm:$0xff] }
 0x5e2   : > { %v6602_v32 = vpop.f32.mrb[6].mxu1 }
 0x5e3   : > { %v7053_v30 = vpop.f32.mrb[88].mxu0  ;;  %v6795_v15 = vadd.f32 %v6602_v32, %v16856_v62  ;;  %v12357_v11 = vpop.f32.mrb[7].mxu1  ;;  %12702 = vmatmul.mubr.f32.gmra.mrb[112].mxu1 %v7340_v22 }
 0x5e4   : > { %v12512_v21 = vpop.f32.mrb[89].mxu0  ;;  %12857 = vmatmul.mubr.f32.gmra.mrb[194].mxu0 %v7791_v40  ;;  %12704 = vmatprep.mubr.msk.f32.mxu1 %vm13528_vm0, %v16979_v57  ;;  %v7343_v40 = vld [vmem:[#allocation3 + $0x109] sm:$0xff] }
 0x5e5   : > { %12859 = vmatprep.mubr.msk.f32.mxu0 %vm13528_vm0, %v16979_v57  ;;  %v17203_v54 = vadd.f32 %v7053_v30, %v6795_v15  ;;  %v7794_v15 = vld [vmem:[#allocation3 + $0x10a] sm:$0xff] }
 0x5e6   : > { %v6607_v7 = vpop.f32.mrb[8].mxu1 }
 0x5e7   : > { %v7058_v50 = vpop.f32.mrb[90].mxu0  ;;  %v6796_v35 = vadd.f32 %v6607_v7, %v16863_v53  ;;  %v12360_v17 = vpop.f32.mrb[9].mxu1  ;;  %12705 = vmatmul.mubr.f32.gmra.mrb[114].mxu1 %v7341_v8 }
 0x5e8   : > { %v12515_v62 = vpop.f32.mrb[91].mxu0  ;;  %12860 = vmatmul.mubr.f32.gmra.mrb[196].mxu0 %v7792_v19  ;;  %12707 = vmatprep.mubr.msk.f32.mxu1 %vm13528_vm0, %v16979_v57  ;;  %v7344_v19 = vld [vmem:[#allocation3 + $0x111] sm:$0xff] }
 0x5e9   : > { %12862 = vmatprep.mubr.msk.f32.mxu0 %vm13528_vm0, %v16979_v57  ;;  %v17210_v45 = vadd.f32 %v7058_v50, %v6796_v35  ;;  %v7795_v35 = vld [vmem:[#allocation3 + $0x112] sm:$0xff] }
 0x5ea   : > { %v6612_v38 = vpop.f32.mrb[10].mxu1 }
 0x5eb   : > { %v7063_v34 = vpop.f32.mrb[92].mxu0  ;;  %v6797_v16 = vadd.f32 %v6612_v38, %v16870_v41  ;;  %v12363_v29 = vpop.f32.mrb[11].mxu1  ;;  %12708 = vmatmul.mubr.f32.gmra.mrb[116].mxu1 %v7342_v48 }
 0x5ec   : > { %v12518_v53 = vpop.f32.mrb[93].mxu0  ;;  %12863 = vmatmul.mubr.f32.gmra.mrb[198].mxu0 %v7793_v46  ;;  %12710 = vmatprep.mubr.msk.f32.mxu1 %vm13528_vm0, %v16979_v57  ;;  %v7345_v46 = vld [vmem:[#allocation3 + $0x119] sm:$0xff] }
 0x5ed   : > { %12865 = vmatprep.mubr.msk.f32.mxu0 %vm13528_vm0, %v16979_v57  ;;  %v17217_v32 = vadd.f32 %v7063_v34, %v6797_v16  ;;  %v7796_v16 = vld [vmem:[#allocation3 + $0x11a] sm:$0xff] }
 0x5ee   : > { %v6617_v30 = vpop.f32.mrb[12].mxu1 }
 0x5ef   : > { %v7068_v22 = vpop.f32.mrb[94].mxu0  ;;  %v6798_v11 = vadd.f32 %v6617_v30, %v16877_v39  ;;  %v12366_v21 = vpop.f32.mrb[13].mxu1  ;;  %12711 = vmatmul.mubr.f32.gmra.mrb[118].mxu1 %v7343_v40 }
 0x5f0   : > { %v12521_v41 = vpop.f32.mrb[95].mxu0  ;;  %12866 = vmatmul.mubr.f32.gmra.mrb[200].mxu0 %v7794_v15  ;;  %12713 = vmatprep.mubr.msk.f32.mxu1 %vm13528_vm0, %v16979_v57  ;;  %v7346_v15 = vld [vmem:[#allocation3 + $0x121] sm:$0xff] }
 0x5f1   : > { %12868 = vmatprep.mubr.msk.f32.mxu0 %vm13528_vm0, %v16979_v57  ;;  %v17224_v7 = vadd.f32 %v7068_v22, %v6798_v11  ;;  %v7797_v11 = vld [vmem:[#allocation3 + $0x122] sm:$0xff] }
 0x5f2   : > { %v6622_v50 = vpop.f32.mrb[14].mxu1 }
 0x5f3   : > { %v7073_v8 = vpop.f32.mrb[96].mxu0  ;;  %v6799_v17 = vadd.f32 %v6622_v50, %v16884_v56  ;;  %v12369_v62 = vpop.f32.mrb[15].mxu1  ;;  %12714 = vmatmul.mubr.f32.gmra.mrb[120].mxu1 %v7344_v19 }
 0x5f4   : > { %v12524_v39 = vpop.f32.mrb[97].mxu0  ;;  %12869 = vmatmul.mubr.f32.gmra.mrb[202].mxu0 %v7795_v35  ;;  %12716 = vmatprep.mubr.msk.f32.mxu1 %vm13528_vm0, %v16979_v57  ;;  %v7347_v35 = vld [vmem:[#allocation3 + $0x129] sm:$0xff] }
 0x5f5   : > { %12871 = vmatprep.mubr.msk.f32.mxu0 %vm13528_vm0, %v16979_v57  ;;  %v17231_v38 = vadd.f32 %v7073_v8, %v6799_v17  ;;  %v7798_v17 = vld [vmem:[#allocation3 + $0x12a] sm:$0xff] }
 0x5f6   : > { %v6627_v34 = vpop.f32.mrb[16].mxu1 }
 0x5f7   : > { %v7078_v48 = vpop.f32.mrb[98].mxu0  ;;  %v6800_v29 = vadd.f32 %v6627_v34, %v16891_v31  ;;  %v12372_v53 = vpop.f32.mrb[17].mxu1  ;;  %12717 = vmatmul.mubr.f32.gmra.mrb[122].mxu1 %v7345_v46 }
 0x5f8   : > { %v12527_v56 = vpop.f32.mrb[99].mxu0  ;;  %12872 = vmatmul.mubr.f32.gmra.mrb[204].mxu0 %v7796_v16  ;;  %12719 = vmatprep.mubr.msk.f32.mxu1 %vm13528_vm0, %v16979_v57  ;;  %v7348_v16 = vld [vmem:[#allocation3 + $0x131] sm:$0xff] }
 0x5f9   : > { %12874 = vmatprep.mubr.msk.f32.mxu0 %vm13528_vm0, %v16979_v57  ;;  %v17238_v30 = vadd.f32 %v7078_v48, %v6800_v29  ;;  %v7799_v29 = vld [vmem:[#allocation3 + $0x132] sm:$0xff] }
 0x5fa   : > { %v6632_v22 = vpop.f32.mrb[18].mxu1 }
 0x5fb   : > { %v7083_v40 = vpop.f32.mrb[100].mxu0  ;;  %v6801_v21 = vadd.f32 %v6632_v22, %v16898_v52  ;;  %v12375_v41 = vpop.f32.mrb[19].mxu1  ;;  %12720 = vmatmul.mubr.f32.gmra.mrb[124].mxu1 %v7346_v15 }
 0x5fc   : > { %v12530_v31 = vpop.f32.mrb[101].mxu0  ;;  %12875 = vmatmul.mubr.f32.gmra.mrb[206].mxu0 %v7797_v11  ;;  %12722 = vmatprep.mubr.msk.f32.mxu1 %vm13528_vm0, %v16979_v57  ;;  %v7349_v11 = vld [vmem:[#allocation3 + $0x139] sm:$0xff] }
 0x5fd   : > { %12877 = vmatprep.mubr.msk.f32.mxu0 %vm13528_vm0, %v16979_v57  ;;  %v17245_v50 = vadd.f32 %v7083_v40, %v6801_v21  ;;  %v7800_v21 = vld [vmem:[#allocation3 + $0x13a] sm:$0xff] }
 0x5fe   : > { %v6637_v8 = vpop.f32.mrb[20].mxu1 }
 0x5ff   : > { %v7088_v19 = vpop.f32.mrb[102].mxu0  ;;  %v6802_v62 = vadd.f32 %v6637_v8, %v16905_v59  ;;  %v12378_v39 = vpop.f32.mrb[21].mxu1  ;;  %12723 = vmatmul.mubr.f32.gmra.mrb[126].mxu1 %v7347_v35 }
 0x600   : > { %v12533_v52 = vpop.f32.mrb[103].mxu0  ;;  %12878 = vmatmul.mubr.f32.gmra.mrb[208].mxu0 %v7798_v17  ;;  %12725 = vmatprep.mubr.msk.f32.mxu1 %vm13528_vm0, %v16979_v57  ;;  %v7350_v17 = vld [vmem:[#allocation3 + $0x141] sm:$0xff] }
 0x601   : > { %12880 = vmatprep.mubr.msk.f32.mxu0 %vm13528_vm0, %v16979_v57  ;;  %v17252_v34 = vadd.f32 %v7088_v19, %v6802_v62  ;;  %v7801_v62 = vld [vmem:[#allocation3 + $0x142] sm:$0xff] }
 0x602   : > { %v6642_v48 = vpop.f32.mrb[22].mxu1 }
 0x603   : > { %v7093_v46 = vpop.f32.mrb[104].mxu0  ;;  %v6803_v53 = vadd.f32 %v6642_v48, %v16912_v33  ;;  %v12381_v56 = vpop.f32.mrb[23].mxu1  ;;  %12726 = vmatmul.mubr.f32.gmra.mrb[128].mxu1 %v7348_v16 }
 0x604   : > { %v12536_v59 = vpop.f32.mrb[105].mxu0  ;;  %12881 = vmatmul.mubr.f32.gmra.mrb[210].mxu0 %v7799_v29  ;;  %12728 = vmatprep.mubr.msk.f32.mxu1 %vm13528_vm0, %v16979_v57  ;;  %v7351_v29 = vld [vmem:[#allocation3 + $0x149] sm:$0xff] }
 0x605   : > { %12883 = vmatprep.mubr.msk.f32.mxu0 %vm13528_vm0, %v16979_v57  ;;  %v17259_v22 = vadd.f32 %v7093_v46, %v6803_v53  ;;  %v7802_v53 = vld [vmem:[#allocation3 + $0x14a] sm:$0xff] }
 0x606   : > { %v6647_v40 = vpop.f32.mrb[24].mxu1 }
 0x607   : > { %v7098_v15 = vpop.f32.mrb[106].mxu0  ;;  %v6804_v41 = vadd.f32 %v6647_v40, %v16919_v12  ;;  %v12384_v31 = vpop.f32.mrb[25].mxu1  ;;  %12729 = vmatmul.mubr.f32.gmra.mrb[130].mxu1 %v7349_v11 }
 0x608   : > { %v12539_v33 = vpop.f32.mrb[107].mxu0  ;;  %12884 = vmatmul.mubr.f32.gmra.mrb[212].mxu0 %v7800_v21  ;;  %12731 = vmatprep.mubr.msk.f32.mxu1 %vm13528_vm0, %v16979_v57  ;;  %v7352_v21 = vld [vmem:[#allocation3 + $0x151] sm:$0xff] }
 0x609   : > { %12886 = vmatprep.mubr.msk.f32.mxu0 %vm13528_vm0, %v16979_v57  ;;  %v17266_v8 = vadd.f32 %v7098_v15, %v6804_v41  ;;  %v7803_v41 = vld [vmem:[#allocation3 + $0x152] sm:$0xff] }
 0x60a   : > { %v6652_v19 = vpop.f32.mrb[26].mxu1 }
 0x60b   : > { %v7103_v35 = vpop.f32.mrb[108].mxu0  ;;  %v6805_v39 = vadd.f32 %v6652_v19, %v16926_v60  ;;  %v12387_v52 = vpop.f32.mrb[27].mxu1  ;;  %12732 = vmatmul.mubr.f32.gmra.mrb[132].mxu1 %v7350_v17 }
 0x60c   : > { %v12542_v12 = vpop.f32.mrb[109].mxu0  ;;  %12887 = vmatmul.mubr.f32.gmra.mrb[214].mxu0 %v7801_v62  ;;  %12734 = vmatprep.mubr.msk.f32.mxu1 %vm13528_vm0, %v16979_v57  ;;  %v7804_v62 = vld [vmem:[#allocation3 + $0x15a] sm:$0xff] }
 0x60d   : > { %12889 = vmatprep.mubr.msk.f32.mxu0 %vm13528_vm0, %v16979_v57  ;;  %v17273_v48 = vadd.f32 %v7103_v35, %v6805_v39 }
 0x60e   : > { %v6657_v46 = vpop.f32.mrb[28].mxu1 }
 0x60f   : > { %v7108_v16 = vpop.f32.mrb[110].mxu0  ;;  %v6806_v56 = vadd.f32 %v6657_v46, %v16933_v58  ;;  %v12390_v59 = vpop.f32.mrb[29].mxu1  ;;  %12735 = vmatmul.mubr.f32.gmra.mrb[134].mxu1 %v7351_v29  ;;  %v7805_v46 = vld [vmem:[#allocation3 + $0x162] sm:$0xff] }
 0x610   : > { %v12545_v60 = vpop.f32.mrb[111].mxu0  ;;  %12890 = vmatmul.mubr.f32.gmra.mrb[216].mxu0 %v7802_v53  ;;  %12737 = vmatprep.mubr.msk.f32.mxu1 %vm13528_vm0, %v16979_v57 }
 0x611   : > { %12892 = vmatprep.mubr.msk.f32.mxu0 %vm13528_vm0, %v16979_v57  ;;  %v17280_v40 = vadd.f32 %v7108_v16, %v6806_v56  ;;  %v7806_v60 = vld [vmem:[#allocation3 + $0x16a] sm:$0xff] }
 0x612   : > { %v6662_v15 = vpop.f32.mrb[30].mxu1 }
 0x613   : > { %v7113_v11 = vpop.f32.mrb[112].mxu0  ;;  %v6807_v31 = vadd.f32 %v6662_v15, %v16940_v47  ;;  %v12393_v33 = vpop.f32.mrb[31].mxu1  ;;  %12738 = vmatmul.mubr.f32.gmra.mrb[136].mxu1 %v7352_v21  ;;  %v7354_v47 = vld [vmem:[#allocation3 + $0x161] sm:$0xff] }
 0x614   : > { %v12548_v58 = vpop.f32.mrb[113].mxu0  ;;  %12893 = vmatmul.mubr.f32.gmra.mrb[218].mxu0 %v7803_v41  ;;  %12740 = vmatprep.mubr.msk.f32.mxu1 %vm13528_vm0, %v16979_v57  ;;  %v17305_v33 = vld [vmem:[#allocation3] sm:$0xff] }
 0x615   : > { %12895 = vmatprep.mubr.msk.f32.mxu0 %vm13528_vm0, %v16979_v57  ;;  %v17287_v19 = vadd.f32 %v7113_v11, %v6807_v31 }
 0x616   : > { %v6667_v35 = vpop.f32.mrb[32].mxu1 }
 0x617   : > { %v7118_v17 = vpop.f32.mrb[114].mxu0  ;;  %v6808_v39 = vadd.f32 %v6667_v35, %v16947_v49  ;;  %v12396_v52 = vpop.f32.mrb[33].mxu1  ;;  %12741 = vmatmul.mubr.f32.gmra.mrb[138].mxu1 %v16962_v14  ;;  %v7355_v14 = vld [vmem:[#allocation3 + $0x169] sm:$0xff] }
 0x618   : > { %v12551_v12 = vpop.f32.mrb[115].mxu0  ;;  %12896 = vmatmul.mubr.f32.gmra.mrb[220].mxu0 %v7804_v62  ;;  %12743 = vmatprep.mubr.msk.f32.mxu1 %vm13528_vm0, %v16979_v57 }
 0x619   : > { %12898 = vmatprep.mubr.msk.f32.mxu0 %vm13528_vm0, %v16979_v57  ;;  %v17295_v16 = vadd.f32 %v7118_v17, %v6808_v39  ;;  %v8217_v17 = vld [vmem:[#allocation3 + $0x2b] sm:$0xff] }
 0x61a   : > { %v6672_v29 = vpop.f32.mrb[34].mxu1 }
 0x61b   : > { %v7123_v53 = vpop.f32.mrb[116].mxu0  ;;  %v6809_v56 = vadd.f32 %v6672_v29, %v16954_v9  ;;  %v12399_v49 = vpop.f32.mrb[35].mxu1  ;;  %12744 = vmatmul.mubr.f32.gmra.mrb[140].mxu1 %v7354_v47 }
 0x61c   : > { %v12554_v59 = vpop.f32.mrb[117].mxu0  ;;  %12899 = vmatmul.mubr.f32.gmra.mrb[222].mxu0 %v7805_v46  ;;  %12746 = vmatprep.mubr.msk.f32.mxu1 %vm13528_vm0, %v16979_v57  ;;  %v8218_v46 = vld [vmem:[#allocation3 + $0x33] sm:$0xff] }
 0x61d   : > { %12901 = vmatprep.mubr.msk.f32.mxu0 %vm13528_vm0, %v16979_v57  ;;  %v17302_v15 = vadd.f32 %v7123_v53, %v6809_v56 }
 0x61e   : > { %v6677_v11 = vpop.f32.mrb[36].mxu1 }
 0x61f   : > { %v7128_v21 = vpop.f32.mrb[118].mxu0  ;;  %v6810_v41 = vadd.f32 %v6677_v11, %v16970_v37  ;;  %v12402_v31 = vpop.f32.mrb[37].mxu1  ;;  %12747 = vmatmul.mubr.f32.gmra.mrb[142].mxu1 %v7355_v14  ;;  %v8219_v14 = vld [vmem:[#allocation3 + $0x3b] sm:$0xff] }
 0x620   : > { %v12557_v9 = vpop.f32.mrb[119].mxu0  ;;  %12902 = vmatmul.mubr.f32.gmra.mrb[224].mxu0 %v7806_v60  ;;  %12936 = vmatprep.mubr.msk.f32.mxu1 %vm13528_vm0, %v17305_v33 }
 0x621   : > { %v17309_v58 = vadd.f32 %v7128_v21, %v6810_v41  ;;  %v8220_v9 = vld [vmem:[#allocation3 + $0x43] sm:$0xff] }
 0x622   : > { %v6682_v35 = vpop.f32.mrb[38].mxu1 }
 0x623   : > { %v7133_v57 = vpop.f32.mrb[120].mxu0  ;;  %v6811_v62 = vadd.f32 %v6682_v35, %v16983_v0  ;;  %v12405_v39 = vpop.f32.mrb[39].mxu1  ;;  %12937 = vmatmul.mubr.f32.vlgmr.msra.gmra.mrb[144].mxu1 %v8217_v17 }
 0x624   : > { %v12560_v52 = vpop.f32.mrb[121].mxu0  ;;  %12939 = vmatprep.mubr.msk.f32.mxu1 %vm13528_vm0, %v17305_v33 }
 0x625   : > { %v17314_v37 = vadd.f32 %v7133_v57, %v6811_v62  ;;  %v8221_v52 = vld [vmem:[#allocation3 + $0x4b] sm:$0xff] }
 0x626   : > { %v6687_v12 = vpop.f32.mrb[40].mxu1 }
 0x627   : > { %v7138_v47 = vpop.f32.mrb[122].mxu0  ;;  %v6812_v29 = vadd.f32 %v6687_v12, %v16999_v10  ;;  %v12408_v53 = vpop.f32.mrb[41].mxu1  ;;  %12940 = vmatmul.mubr.f32.gmra.mrb[146].mxu1 %v8218_v46 }
 0x628   : > { %v12563_v56 = vpop.f32.mrb[123].mxu0  ;;  %12942 = vmatprep.mubr.msk.f32.mxu1 %vm13528_vm0, %v17305_v33 }
 0x629   : > { %v17319_v0 = vadd.f32 %v7138_v47, %v6812_v29  ;;  %v8222_v56 = vld [vmem:[#allocation3 + $0x53] sm:$0xff] }
 0x62a   : > { %v6692_v49 = vpop.f32.mrb[42].mxu1 }
 0x62b   : > { %v7143_v59 = vpop.f32.mrb[124].mxu0  ;;  %v6813_v60 = vadd.f32 %v6692_v49, %v17013_v4  ;;  %v12411_v11 = vpop.f32.mrb[43].mxu1  ;;  %12943 = vmatmul.mubr.f32.gmra.mrb[148].mxu1 %v8219_v14 }
 0x62c   : > { %v12566_v21 = vpop.f32.mrb[125].mxu0  ;;  %12945 = vmatprep.mubr.msk.f32.mxu1 %vm13528_vm0, %v17305_v33 }
 0x62d   : > { %v17324_v10 = vadd.f32 %v7143_v59, %v6813_v60  ;;  %v8223_v21 = vld [vmem:[#allocation3 + $0x5b] sm:$0xff] }
 0x62e   : > { %v6697_v41 = vpop.f32.mrb[44].mxu1 }
 0x62f   : > { %v7148_v31 = vpop.f32.mrb[126].mxu0  ;;  %v6814_v35 = vadd.f32 %v6697_v41, %v17027_v42  ;;  %v12414_v57 = vpop.f32.mrb[45].mxu1  ;;  %12946 = vmatmul.mubr.f32.gmra.mrb[150].mxu1 %v8220_v9 }
 0x630   : > { %v12569_v17 = vpop.f32.mrb[127].mxu0  ;;  %12948 = vmatprep.mubr.msk.f32.mxu1 %vm13528_vm0, %v17305_v33 }
 0x631   : > { %v17329_v4 = vadd.f32 %v7148_v31, %v6814_v35  ;;  %v8224_v17 = vld [vmem:[#allocation3 + $0x63] sm:$0xff] }
 0x632   : > { %v6702_v62 = vpop.f32.mrb[46].mxu1 }
 0x633   : > { %v7153_v39 = vpop.f32.mrb[128].mxu0  ;;  %v6815_v12 = vadd.f32 %v6702_v62, %v17041_v25  ;;  %v12417_v47 = vpop.f32.mrb[47].mxu1  ;;  %12949 = vmatmul.mubr.f32.gmra.mrb[152].mxu1 %v8221_v52 }
 0x634   : > { %v12572_v46 = vpop.f32.mrb[129].mxu0  ;;  %12951 = vmatprep.mubr.msk.f32.mxu1 %vm13528_vm0, %v17305_v33 }
 0x635   : > { %v17334_v42 = vadd.f32 %v7153_v39, %v6815_v12  ;;  %v8225_v46 = vld [vmem:[#allocation3 + $0x6b] sm:$0xff] }
 0x636   : > { %v6707_v29 = vpop.f32.mrb[48].mxu1 }
 0x637   : > { %v7158_v53 = vpop.f32.mrb[130].mxu0  ;;  %v6816_v49 = vadd.f32 %v6707_v29, %v17055_v36  ;;  %v12420_v59 = vpop.f32.mrb[49].mxu1  ;;  %12952 = vmatmul.mubr.f32.gmra.mrb[154].mxu1 %v8222_v56 }
 0x638   : > { %v12575_v14 = vpop.f32.mrb[131].mxu0  ;;  %12954 = vmatprep.mubr.msk.f32.mxu1 %vm13528_vm0, %v17305_v33 }
 0x639   : > { %v17339_v25 = vadd.f32 %v7158_v53, %v6816_v49  ;;  %v8226_v14 = vld [vmem:[#allocation3 + $0x73] sm:$0xff] }
 0x63a   : > { %v6712_v60 = vpop.f32.mrb[50].mxu1 }
 0x63b   : > { %v7163_v11 = vpop.f32.mrb[132].mxu0  ;;  %v6817_v41 = vadd.f32 %v6712_v60, %v17069_v1  ;;  %v12423_v31 = vpop.f32.mrb[51].mxu1  ;;  %12955 = vmatmul.mubr.f32.gmra.mrb[156].mxu1 %v8223_v21 }
 0x63c   : > { %v12578_v9 = vpop.f32.mrb[133].mxu0  ;;  %12957 = vmatprep.mubr.msk.f32.mxu1 %vm13528_vm0, %v17305_v33 }
 0x63d   : > { %v17344_v36 = vadd.f32 %v7163_v11, %v6817_v41  ;;  %v8227_v9 = vld [vmem:[#allocation3 + $0x7b] sm:$0xff] }
 0x63e   : > { %v6717_v35 = vpop.f32.mrb[52].mxu1 }
 0x63f   : > { %v7168_v57 = vpop.f32.mrb[134].mxu0  ;;  %v6818_v62 = vadd.f32 %v6717_v35, %v17077_v63  ;;  %v12426_v39 = vpop.f32.mrb[53].mxu1  ;;  %12958 = vmatmul.mubr.f32.gmra.mrb[158].mxu1 %v8224_v17 }
 0x640   : > { %v12581_v52 = vpop.f32.mrb[135].mxu0  ;;  %12960 = vmatprep.mubr.msk.f32.mxu1 %vm13528_vm0, %v17305_v33 }
 0x641   : > { %v17349_v1 = vadd.f32 %v7168_v57, %v6818_v62  ;;  %v8228_v52 = vld [vmem:[#allocation3 + $0x83] sm:$0xff] }
 0x642   : > { %v6722_v12 = vpop.f32.mrb[54].mxu1 }
 0x643   : > { %v7173_v47 = vpop.f32.mrb[136].mxu0  ;;  %v6819_v29 = vadd.f32 %v6722_v12, %v17084_v27  ;;  %v12429_v53 = vpop.f32.mrb[55].mxu1  ;;  %12961 = vmatmul.mubr.f32.gmra.mrb[160].mxu1 %v8225_v46 }
 0x644   : > { %v12584_v56 = vpop.f32.mrb[137].mxu0  ;;  %12963 = vmatprep.mubr.msk.f32.mxu1 %vm13528_vm0, %v17305_v33 }
 0x645   : > { %v17354_v63 = vadd.f32 %v7173_v47, %v6819_v29  ;;  %v8229_v56 = vld [vmem:[#allocation3 + $0x8b] sm:$0xff] }
 0x646   : > { %v6727_v49 = vpop.f32.mrb[56].mxu1 }
 0x647   : > { %v7178_v59 = vpop.f32.mrb[138].mxu0  ;;  %v6820_v60 = vadd.f32 %v6727_v49, %v17091_v2  ;;  %v12432_v11 = vpop.f32.mrb[57].mxu1  ;;  %12964 = vmatmul.mubr.f32.gmra.mrb[162].mxu1 %v8226_v14 }
 0x648   : > { %v12587_v21 = vpop.f32.mrb[139].mxu0  ;;  %12966 = vmatprep.mubr.msk.f32.mxu1 %vm13528_vm0, %v17305_v33 }
 0x649   : > { %v17359_v27 = vadd.f32 %v7178_v59, %v6820_v60  ;;  %v8230_v21 = vld [vmem:[#allocation3 + $0x93] sm:$0xff] }
 0x64a   : > { %v6732_v41 = vpop.f32.mrb[58].mxu1 }
 0x64b   : > { %v7183_v31 = vpop.f32.mrb[140].mxu0  ;;  %v6821_v35 = vadd.f32 %v6732_v41, %v17098_v55  ;;  %v12435_v57 = vpop.f32.mrb[59].mxu1  ;;  %12967 = vmatmul.mubr.f32.gmra.mrb[164].mxu1 %v8227_v9 }
 0x64c   : > { %v12590_v17 = vpop.f32.mrb[141].mxu0  ;;  %12969 = vmatprep.mubr.msk.f32.mxu1 %vm13528_vm0, %v17305_v33 }
 0x64d   : > { %v17364_v2 = vadd.f32 %v7183_v31, %v6821_v35  ;;  %v8231_v17 = vld [vmem:[#allocation3 + $0x9b] sm:$0xff] }
 0x64e   : > { %v6737_v62 = vpop.f32.mrb[60].mxu1 }
 0x64f   : > { %v7188_v39 = vpop.f32.mrb[142].mxu0  ;;  %v6822_v12 = vadd.f32 %v6737_v62, %v17105_v6  ;;  %v12438_v47 = vpop.f32.mrb[61].mxu1  ;;  %12970 = vmatmul.mubr.f32.gmra.mrb[166].mxu1 %v8228_v52 }
 0x650   : > { %v12593_v46 = vpop.f32.mrb[143].mxu0  ;;  %12972 = vmatprep.mubr.msk.f32.mxu1 %vm13528_vm0, %v17305_v33 }
 0x651   : > { %v17369_v55 = vadd.f32 %v7188_v39, %v6822_v12  ;;  %v8232_v46 = vld [vmem:[#allocation3 + $0xa3] sm:$0xff] }
 0x652   : > { %v7439_v29 = vpop.f32.mrb[62].mxu1 }
 0x653   : > { %v7890_v53 = vpop.f32.mrb[144].mxu0  ;;  %v7684_v49 = vadd.f32 %v7439_v29, %v17112_v28  ;;  %v12628_v59 = vpop.f32.mrb[63].mxu1  ;;  %12973 = vmatmul.mubr.f32.gmra.mrb[168].mxu1 %v8229_v56 }
 0x654   : > { %v12783_v14 = vpop.f32.mrb[145].mxu0  ;;  %12975 = vmatprep.mubr.msk.f32.mxu1 %vm13528_vm0, %v17305_v33 }
 0x655   : > { %v17374_v6 = vadd.f32 %v7890_v53, %v7684_v49  ;;  %v8233_v14 = vld [vmem:[#allocation3 + $0xab] sm:$0xff] }
 0x656   : > { %v7444_v60 = vpop.f32.mrb[64].mxu1 }
 0x657   : > { %v7895_v11 = vpop.f32.mrb[146].mxu0  ;;  %v7685_v41 = vadd.f32 %v7444_v60, %v17119_v18  ;;  %v12631_v31 = vpop.f32.mrb[65].mxu1  ;;  %12976 = vmatmul.mubr.f32.gmra.mrb[170].mxu1 %v8230_v21 }
 0x658   : > { %v12786_v9 = vpop.f32.mrb[147].mxu0  ;;  %12978 = vmatprep.mubr.msk.f32.mxu1 %vm13528_vm0, %v17305_v33 }
 0x659   : > { %v17379_v28 = vadd.f32 %v7895_v11, %v7685_v41  ;;  %v8234_v9 = vld [vmem:[#allocation3 + $0xb3] sm:$0xff] }
 0x65a   : > { %v7449_v35 = vpop.f32.mrb[66].mxu1 }
 0x65b   : > { %v7900_v57 = vpop.f32.mrb[148].mxu0  ;;  %v7686_v62 = vadd.f32 %v7449_v35, %v17126_v51  ;;  %v12634_v39 = vpop.f32.mrb[67].mxu1  ;;  %12979 = vmatmul.mubr.f32.gmra.mrb[172].mxu1 %v8231_v17 }
 0x65c   : > { %v12789_v52 = vpop.f32.mrb[149].mxu0  ;;  %12981 = vmatprep.mubr.msk.f32.mxu1 %vm13528_vm0, %v17305_v33 }
 0x65d   : > { %v17384_v18 = vadd.f32 %v7900_v57, %v7686_v62  ;;  %v8235_v52 = vld [vmem:[#allocation3 + $0xbb] sm:$0xff] }
 0x65e   : > { %v7454_v12 = vpop.f32.mrb[68].mxu1 }
 0x65f   : > { %v7905_v47 = vpop.f32.mrb[150].mxu0  ;;  %v7687_v29 = vadd.f32 %v7454_v12, %v17133_v44  ;;  %v12637_v53 = vpop.f32.mrb[69].mxu1  ;;  %12982 = vmatmul.mubr.f32.gmra.mrb[174].mxu1 %v8232_v46 }
 0x660   : > { %v12792_v56 = vpop.f32.mrb[151].mxu0  ;;  %12984 = vmatprep.mubr.msk.f32.mxu1 %vm13528_vm0, %v17305_v33 }
 0x661   : > { %v17389_v51 = vadd.f32 %v7905_v47, %v7687_v29  ;;  %v8236_v56 = vld [vmem:[#allocation3 + $0xc3] sm:$0xff] }
 0x662   : > { %v7459_v49 = vpop.f32.mrb[70].mxu1 }
 0x663   : > { %v7910_v59 = vpop.f32.mrb[152].mxu0  ;;  %v7688_v60 = vadd.f32 %v7459_v49, %v17140_v13  ;;  %v12640_v11 = vpop.f32.mrb[71].mxu1  ;;  %12985 = vmatmul.mubr.f32.gmra.mrb[176].mxu1 %v8233_v14 }
 0x664   : > { %v12795_v21 = vpop.f32.mrb[153].mxu0  ;;  %12987 = vmatprep.mubr.msk.f32.mxu1 %vm13528_vm0, %v17305_v33 }
 0x665   : > { %v17394_v44 = vadd.f32 %v7910_v59, %v7688_v60  ;;  %v8237_v21 = vld [vmem:[#allocation3 + $0xcb] sm:$0xff] }
 0x666   : > { %v7464_v41 = vpop.f32.mrb[72].mxu1 }
 0x667   : > { %v7915_v31 = vpop.f32.mrb[154].mxu0  ;;  %v7689_v35 = vadd.f32 %v7464_v41, %v17147_v24  ;;  %v12643_v57 = vpop.f32.mrb[73].mxu1  ;;  %12988 = vmatmul.mubr.f32.gmra.mrb[178].mxu1 %v8234_v9 }
 0x668   : > { %v12798_v17 = vpop.f32.mrb[155].mxu0  ;;  %12990 = vmatprep.mubr.msk.f32.mxu1 %vm13528_vm0, %v17305_v33 }
 0x669   : > { %v17399_v13 = vadd.f32 %v7915_v31, %v7689_v35  ;;  %v8238_v17 = vld [vmem:[#allocation3 + $0xd3] sm:$0xff] }
 0x66a   : > { %v7469_v62 = vpop.f32.mrb[74].mxu1 }
 0x66b   : > { %v7920_v39 = vpop.f32.mrb[156].mxu0  ;;  %v7690_v12 = vadd.f32 %v7469_v62, %v17154_v20  ;;  %v12646_v47 = vpop.f32.mrb[75].mxu1  ;;  %12991 = vmatmul.mubr.f32.gmra.mrb[180].mxu1 %v8235_v52 }
 0x66c   : > { %v12801_v46 = vpop.f32.mrb[157].mxu0  ;;  %12993 = vmatprep.mubr.msk.f32.mxu1 %vm13528_vm0, %v17305_v33 }
 0x66d   : > { %v17404_v24 = vadd.f32 %v7920_v39, %v7690_v12  ;;  %v8239_v46 = vld [vmem:[#allocation3 + $0xdb] sm:$0xff] }
 0x66e   : > { %v7474_v29 = vpop.f32.mrb[76].mxu1 }
 0x66f   : > { %v7925_v53 = vpop.f32.mrb[158].mxu0  ;;  %v7691_v49 = vadd.f32 %v7474_v29, %v17161_v26  ;;  %v12649_v59 = vpop.f32.mrb[77].mxu1  ;;  %12994 = vmatmul.mubr.f32.gmra.mrb[182].mxu1 %v8236_v56 }
 0x670   : > { %v12804_v14 = vpop.f32.mrb[159].mxu0  ;;  %12996 = vmatprep.mubr.msk.f32.mxu1 %vm13528_vm0, %v17305_v33 }
 0x671   : > { %v17409_v20 = vadd.f32 %v7925_v53, %v7691_v49  ;;  %v8240_v14 = vld [vmem:[#allocation3 + $0xe3] sm:$0xff] }
 0x672   : > { %v7479_v60 = vpop.f32.mrb[78].mxu1 }
 0x673   : > { %v7930_v11 = vpop.f32.mrb[160].mxu0  ;;  %v7692_v41 = vadd.f32 %v7479_v60, %v17168_v43  ;;  %v12652_v31 = vpop.f32.mrb[79].mxu1  ;;  %12997 = vmatmul.mubr.f32.gmra.mrb[184].mxu1 %v8237_v21 }
 0x674   : > { %v12807_v9 = vpop.f32.mrb[161].mxu0  ;;  %12999 = vmatprep.mubr.msk.f32.mxu1 %vm13528_vm0, %v17305_v33 }
 0x675   : > { %v17414_v26 = vadd.f32 %v7930_v11, %v7692_v41  ;;  %v8241_v9 = vld [vmem:[#allocation3 + $0xeb] sm:$0xff] }
 0x676   : > { %v7484_v35 = vpop.f32.mrb[80].mxu1 }
 0x677   : > { %v7935_v57 = vpop.f32.mrb[162].mxu0  ;;  %v7693_v62 = vadd.f32 %v7484_v35, %v17175_v61  ;;  %v12655_v39 = vpop.f32.mrb[81].mxu1  ;;  %13000 = vmatmul.mubr.f32.gmra.mrb[186].mxu1 %v8238_v17 }
 0x678   : > { %v12810_v52 = vpop.f32.mrb[163].mxu0  ;;  %13002 = vmatprep.mubr.msk.f32.mxu1 %vm13528_vm0, %v17305_v33 }
 0x679   : > { %v17419_v43 = vadd.f32 %v7935_v57, %v7693_v62  ;;  %v8242_v52 = vld [vmem:[#allocation3 + $0xf3] sm:$0xff] }
 0x67a   : > { %v7489_v12 = vpop.f32.mrb[82].mxu1 }
 0x67b   : > { %v7940_v47 = vpop.f32.mrb[164].mxu0  ;;  %v7694_v29 = vadd.f32 %v7489_v12, %v17182_v3  ;;  %v12658_v53 = vpop.f32.mrb[83].mxu1  ;;  %13003 = vmatmul.mubr.f32.gmra.mrb[188].mxu1 %v8239_v46 }
 0x67c   : > { %v12813_v56 = vpop.f32.mrb[165].mxu0  ;;  %13005 = vmatprep.mubr.msk.f32.mxu1 %vm13528_vm0, %v17305_v33 }
 0x67d   : > { %v17424_v61 = vadd.f32 %v7940_v47, %v7694_v29  ;;  %v8243_v56 = vld [vmem:[#allocation3 + $0xfb] sm:$0xff] }
 0x67e   : > { %v7494_v49 = vpop.f32.mrb[84].mxu1 }
 0x67f   : > { %v7945_v59 = vpop.f32.mrb[166].mxu0  ;;  %v7695_v60 = vadd.f32 %v7494_v49, %v17189_v23  ;;  %v12661_v11 = vpop.f32.mrb[85].mxu1  ;;  %13006 = vmatmul.mubr.f32.gmra.mrb[190].mxu1 %v8240_v14 }
 0x680   : > { %v12816_v21 = vpop.f32.mrb[167].mxu0  ;;  %13008 = vmatprep.mubr.msk.f32.mxu1 %vm13528_vm0, %v17305_v33 }
 0x681   : > { %v17429_v3 = vadd.f32 %v7945_v59, %v7695_v60  ;;  %v8244_v21 = vld [vmem:[#allocation3 + $0x103] sm:$0xff] }
 0x682   : > { %v7499_v41 = vpop.f32.mrb[86].mxu1 }
 0x683   : > { %v7950_v31 = vpop.f32.mrb[168].mxu0  ;;  %v7696_v35 = vadd.f32 %v7499_v41, %v17196_v5  ;;  %v12664_v57 = vpop.f32.mrb[87].mxu1  ;;  %13009 = vmatmul.mubr.f32.gmra.mrb[192].mxu1 %v8241_v9 }
 0x684   : > { %v12819_v17 = vpop.f32.mrb[169].mxu0  ;;  %13011 = vmatprep.mubr.msk.f32.mxu1 %vm13528_vm0, %v17305_v33 }
 0x685   : > { %v17434_v23 = vadd.f32 %v7950_v31, %v7696_v35  ;;  %v8245_v17 = vld [vmem:[#allocation3 + $0x10b] sm:$0xff] }
 0x686   : > { %v7504_v62 = vpop.f32.mrb[88].mxu1 }
 0x687   : > { %v7955_v39 = vpop.f32.mrb[170].mxu0  ;;  %v7697_v12 = vadd.f32 %v7504_v62, %v17203_v54  ;;  %v12667_v47 = vpop.f32.mrb[89].mxu1  ;;  %13012 = vmatmul.mubr.f32.gmra.mrb[194].mxu1 %v8242_v52 }
 0x688   : > { %v12822_v46 = vpop.f32.mrb[171].mxu0  ;;  %13014 = vmatprep.mubr.msk.f32.mxu1 %vm13528_vm0, %v17305_v33 }
 0x689   : > { %v17439_v5 = vadd.f32 %v7955_v39, %v7697_v12  ;;  %v8246_v46 = vld [vmem:[#allocation3 + $0x113] sm:$0xff] }
 0x68a   : > { %v7509_v29 = vpop.f32.mrb[90].mxu1 }
 0x68b   : > { %v7960_v53 = vpop.f32.mrb[172].mxu0  ;;  %v7698_v49 = vadd.f32 %v7509_v29, %v17210_v45  ;;  %v12670_v59 = vpop.f32.mrb[91].mxu1  ;;  %13015 = vmatmul.mubr.f32.gmra.mrb[196].mxu1 %v8243_v56 }
 0x68c   : > { %v12825_v14 = vpop.f32.mrb[173].mxu0  ;;  %13017 = vmatprep.mubr.msk.f32.mxu1 %vm13528_vm0, %v17305_v33 }
 0x68d   : > { %v17444_v54 = vadd.f32 %v7960_v53, %v7698_v49  ;;  %v8247_v14 = vld [vmem:[#allocation3 + $0x11b] sm:$0xff] }
 0x68e   : > { %v7514_v60 = vpop.f32.mrb[92].mxu1 }
 0x68f   : > { %v7965_v11 = vpop.f32.mrb[174].mxu0  ;;  %v7699_v41 = vadd.f32 %v7514_v60, %v17217_v32  ;;  %v12673_v31 = vpop.f32.mrb[93].mxu1  ;;  %13018 = vmatmul.mubr.f32.gmra.mrb[198].mxu1 %v8244_v21 }
 0x690   : > { %v12828_v9 = vpop.f32.mrb[175].mxu0  ;;  %13020 = vmatprep.mubr.msk.f32.mxu1 %vm13528_vm0, %v17305_v33 }
 0x691   : > { %v17449_v45 = vadd.f32 %v7965_v11, %v7699_v41  ;;  %v8248_v9 = vld [vmem:[#allocation3 + $0x123] sm:$0xff] }
 0x692   : > { %v7519_v35 = vpop.f32.mrb[94].mxu1 }
 0x693   : > { %v7970_v57 = vpop.f32.mrb[176].mxu0  ;;  %v7700_v62 = vadd.f32 %v7519_v35, %v17224_v7  ;;  %v12676_v39 = vpop.f32.mrb[95].mxu1  ;;  %13021 = vmatmul.mubr.f32.gmra.mrb[200].mxu1 %v8245_v17 }
 0x694   : > { %v12831_v52 = vpop.f32.mrb[177].mxu0  ;;  %13023 = vmatprep.mubr.msk.f32.mxu1 %vm13528_vm0, %v17305_v33 }
 0x695   : > { %v17454_v32 = vadd.f32 %v7970_v57, %v7700_v62  ;;  %v8249_v52 = vld [vmem:[#allocation3 + $0x12b] sm:$0xff] }
 0x696   : > { %v7524_v12 = vpop.f32.mrb[96].mxu1 }
 0x697   : > { %v7975_v47 = vpop.f32.mrb[178].mxu0  ;;  %v7701_v29 = vadd.f32 %v7524_v12, %v17231_v38  ;;  %v12679_v53 = vpop.f32.mrb[97].mxu1  ;;  %13024 = vmatmul.mubr.f32.gmra.mrb[202].mxu1 %v8246_v46 }
 0x698   : > { %v12834_v56 = vpop.f32.mrb[179].mxu0  ;;  %13026 = vmatprep.mubr.msk.f32.mxu1 %vm13528_vm0, %v17305_v33 }
 0x699   : > { %v17459_v7 = vadd.f32 %v7975_v47, %v7701_v29  ;;  %v8250_v56 = vld [vmem:[#allocation3 + $0x133] sm:$0xff] }
 0x69a   : > { %v7529_v49 = vpop.f32.mrb[98].mxu1 }
 0x69b   : > { %v7980_v59 = vpop.f32.mrb[180].mxu0  ;;  %v7702_v60 = vadd.f32 %v7529_v49, %v17238_v30  ;;  %v12682_v11 = vpop.f32.mrb[99].mxu1  ;;  %13027 = vmatmul.mubr.f32.gmra.mrb[204].mxu1 %v8247_v14 }
 0x69c   : > { %v12837_v21 = vpop.f32.mrb[181].mxu0  ;;  %13029 = vmatprep.mubr.msk.f32.mxu1 %vm13528_vm0, %v17305_v33 }
 0x69d   : > { %v17464_v38 = vadd.f32 %v7980_v59, %v7702_v60  ;;  %v8251_v21 = vld [vmem:[#allocation3 + $0x13b] sm:$0xff] }
 0x69e   : > { %v7534_v41 = vpop.f32.mrb[100].mxu1 }
 0x69f   : > { %v7985_v31 = vpop.f32.mrb[182].mxu0  ;;  %v7703_v35 = vadd.f32 %v7534_v41, %v17245_v50  ;;  %v12685_v57 = vpop.f32.mrb[101].mxu1  ;;  %13030 = vmatmul.mubr.f32.gmra.mrb[206].mxu1 %v8248_v9 }
 0x6a0   : > { %v12840_v17 = vpop.f32.mrb[183].mxu0  ;;  %13032 = vmatprep.mubr.msk.f32.mxu1 %vm13528_vm0, %v17305_v33 }
 0x6a1   : > { %v17469_v30 = vadd.f32 %v7985_v31, %v7703_v35  ;;  %v8252_v17 = vld [vmem:[#allocation3 + $0x143] sm:$0xff] }
 0x6a2   : > { %v7539_v62 = vpop.f32.mrb[102].mxu1 }
 0x6a3   : > { %v7990_v39 = vpop.f32.mrb[184].mxu0  ;;  %v7704_v12 = vadd.f32 %v7539_v62, %v17252_v34  ;;  %v12688_v47 = vpop.f32.mrb[103].mxu1  ;;  %13033 = vmatmul.mubr.f32.gmra.mrb[208].mxu1 %v8249_v52 }
 0x6a4   : > { %v12843_v46 = vpop.f32.mrb[185].mxu0  ;;  %13035 = vmatprep.mubr.msk.f32.mxu1 %vm13528_vm0, %v17305_v33 }
 0x6a5   : > { %v17474_v50 = vadd.f32 %v7990_v39, %v7704_v12  ;;  %v8253_v46 = vld [vmem:[#allocation3 + $0x14b] sm:$0xff] }
 0x6a6   : > { %v7544_v29 = vpop.f32.mrb[104].mxu1 }
 0x6a7   : > { %v7995_v53 = vpop.f32.mrb[186].mxu0  ;;  %v7705_v49 = vadd.f32 %v7544_v29, %v17259_v22  ;;  %v12691_v59 = vpop.f32.mrb[105].mxu1  ;;  %13036 = vmatmul.mubr.f32.gmra.mrb[210].mxu1 %v8250_v56 }
 0x6a8   : > { %v12846_v14 = vpop.f32.mrb[187].mxu0  ;;  %13038 = vmatprep.mubr.msk.f32.mxu1 %vm13528_vm0, %v17305_v33 }
 0x6a9   : > { %v17479_v34 = vadd.f32 %v7995_v53, %v7705_v49  ;;  %v8254_v14 = vld [vmem:[#allocation3 + $0x153] sm:$0xff] }
 0x6aa   : > { %v7549_v60 = vpop.f32.mrb[106].mxu1 }
 0x6ab   : > { %v8000_v11 = vpop.f32.mrb[188].mxu0  ;;  %v7706_v41 = vadd.f32 %v7549_v60, %v17266_v8  ;;  %v12694_v31 = vpop.f32.mrb[107].mxu1  ;;  %13039 = vmatmul.mubr.f32.gmra.mrb[212].mxu1 %v8251_v21 }
 0x6ac   : > { %v12849_v9 = vpop.f32.mrb[189].mxu0  ;;  %13041 = vmatprep.mubr.msk.f32.mxu1 %vm13528_vm0, %v17305_v33 }
 0x6ad   : > { %v17484_v22 = vadd.f32 %v8000_v11, %v7706_v41  ;;  %v8255_v9 = vld [vmem:[#allocation3 + $0x15b] sm:$0xff] }
 0x6ae   : > { %v7554_v35 = vpop.f32.mrb[108].mxu1 }
 0x6af   : > { %v8005_v57 = vpop.f32.mrb[190].mxu0  ;;  %v7707_v62 = vadd.f32 %v7554_v35, %v17273_v48  ;;  %v12697_v39 = vpop.f32.mrb[109].mxu1  ;;  %13042 = vmatmul.mubr.f32.gmra.mrb[214].mxu1 %v8252_v17 }
 0x6b0   : > { %v12852_v52 = vpop.f32.mrb[191].mxu0  ;;  %13044 = vmatprep.mubr.msk.f32.mxu1 %vm13528_vm0, %v17305_v33 }
 0x6b1   : > { %v17489_v8 = vadd.f32 %v8005_v57, %v7707_v62 }
 0x6b2   : > { %v7559_v12 = vpop.f32.mrb[110].mxu1 }
 0x6b3   : > { %v8010_v47 = vpop.f32.mrb[192].mxu0  ;;  %v7708_v29 = vadd.f32 %v7559_v12, %v17280_v40  ;;  %v12700_v53 = vpop.f32.mrb[111].mxu1  ;;  %13045 = vmatmul.mubr.f32.gmra.mrb[216].mxu1 %v8253_v46 }
 0x6b4   : > { %v12855_v56 = vpop.f32.mrb[193].mxu0  ;;  %13047 = vmatprep.mubr.msk.f32.mxu1 %vm13528_vm0, %v17305_v33 }
 0x6b5   : > { %v17494_v48 = vadd.f32 %v8010_v47, %v7708_v29 }
 0x6b6   : > { %v7564_v49 = vpop.f32.mrb[112].mxu1 }
 0x6b7   : > { %v8015_v59 = vpop.f32.mrb[194].mxu0  ;;  %v7709_v60 = vadd.f32 %v7564_v49, %v17287_v19  ;;  %v12703_v11 = vpop.f32.mrb[113].mxu1  ;;  %13048 = vmatmul.mubr.f32.gmra.mrb[218].mxu1 %v8254_v14  ;;  %v8256_v19 = vld [vmem:[#allocation3 + $0x163] sm:$0xff] }
 0x6b8   : > { %v12858_v21 = vpop.f32.mrb[195].mxu0  ;;  %13050 = vmatprep.mubr.msk.f32.mxu1 %vm13528_vm0, %v17305_v33 }
 0x6b9   : > { %v17499_v40 = vadd.f32 %v8015_v59, %v7709_v60 }
 0x6ba   : > { %v7569_v41 = vpop.f32.mrb[114].mxu1 }
 0x6bb   : > { %v8020_v31 = vpop.f32.mrb[196].mxu0  ;;  %v7710_v35 = vadd.f32 %v7569_v41, %v17295_v16  ;;  %v12706_v57 = vpop.f32.mrb[115].mxu1  ;;  %13051 = vmatmul.mubr.f32.gmra.mrb[220].mxu1 %v8255_v9  ;;  %v8257_v16 = vld [vmem:[#allocation3 + $0x16b] sm:$0xff] }
 0x6bc   : > { %v12861_v17 = vpop.f32.mrb[197].mxu0  ;;  %13053 = vmatprep.mubr.msk.f32.mxu1 %vm13528_vm0, %v17305_v33 }
 0x6bd   : > { %v17504_v62 = vadd.f32 %v8020_v31, %v7710_v35 }
 0x6be   : > { %v7574_v39 = vpop.f32.mrb[116].mxu1 }
 0x6bf   : > { %v8025_v52 = vpop.f32.mrb[198].mxu0  ;;  %v7711_v12 = vadd.f32 %v7574_v39, %v17302_v15  ;;  %v12709_v47 = vpop.f32.mrb[117].mxu1  ;;  %13054 = vmatmul.mubr.f32.gmra.mrb[222].mxu1 %v8256_v19 }
 0x6c0   : > { %v12864_v46 = vpop.f32.mrb[199].mxu0  ;;  %13056 = vmatprep.mubr.msk.f32.mxu1 %vm13528_vm0, %v17305_v33 }
 0x6c1   : > { %v17509_v29 = vadd.f32 %v8025_v52, %v7711_v12 }
 0x6c2   : > { %v7579_v53 = vpop.f32.mrb[118].mxu1 }
 0x6c3   : > { %v8030_v56 = vpop.f32.mrb[200].mxu0  ;;  %v7712_v49 = vadd.f32 %v7579_v53, %v17309_v58  ;;  %v12712_v59 = vpop.f32.mrb[119].mxu1  ;;  %13057 = vmatmul.mubr.f32.gmra.mrb[224].mxu1 %v8257_v16 }
 0x6c4   : > { %v12867_v14 = vpop.f32.mrb[201].mxu0 }
 0x6c5   : > { %v17512_v60 = vadd.f32 %v8030_v56, %v7712_v49 }
 0x6c6   : > { %v7584_v11 = vpop.f32.mrb[120].mxu1 }
 0x6c7   : > { %v8035_v15 = vpop.f32.mrb[202].mxu0  ;;  %v7713_v21 = vadd.f32 %v7584_v11, %v17314_v37  ;;  %v12715_v41 = vpop.f32.mrb[121].mxu1 }
 0x6c8   : > { %v12870_v31 = vpop.f32.mrb[203].mxu0 }
 0x6c9   : > { %v17515_v9 = vadd.f32 %v8035_v15, %v7713_v21 }
 0x6ca   : > { %v7589_v33 = vpop.f32.mrb[122].mxu1 }
 0x6cb   : > { %v8040_v35 = vpop.f32.mrb[204].mxu0  ;;  %v7714_v57 = vadd.f32 %v7589_v33, %v17319_v0  ;;  %v12718_v17 = vpop.f32.mrb[123].mxu1 }
 0x6cc   : > { %v12873_v19 = vpop.f32.mrb[205].mxu0 }
 0x6cd   : > { %v17518_v58 = vadd.f32 %v8040_v35, %v7714_v57 }
 0x6ce   : > { %v7594_v39 = vpop.f32.mrb[124].mxu1 }
 0x6cf   : > { %v8045_v52 = vpop.f32.mrb[206].mxu0  ;;  %v7715_v12 = vadd.f32 %v7594_v39, %v17324_v10  ;;  %v12721_v47 = vpop.f32.mrb[125].mxu1 }
 0x6d0   : > { %v12876_v46 = vpop.f32.mrb[207].mxu0 }
 0x6d1   : > { %v17521_v16 = vadd.f32 %v8045_v52, %v7715_v12 }
 0x6d2   : > { %v7599_v37 = vpop.f32.mrb[126].mxu1 }
 0x6d3   : > { %v8050_v53 = vpop.f32.mrb[208].mxu0  ;;  %v7716_v56 = vadd.f32 %v7599_v37, %v17329_v4  ;;  %v12724_v49 = vpop.f32.mrb[127].mxu1 }
 0x6d4   : > { %v12879_v59 = vpop.f32.mrb[209].mxu0 }
 0x6d5   : > { %v17524_v14 = vadd.f32 %v8050_v53, %v7716_v56 }
 0x6d6   : > { %v7604_v0 = vpop.f32.mrb[128].mxu1 }
 0x6d7   : > { %v8055_v11 = vpop.f32.mrb[210].mxu0  ;;  %v7717_v15 = vadd.f32 %v7604_v0, %v17334_v42  ;;  %v12727_v21 = vpop.f32.mrb[129].mxu1 }
 0x6d8   : > { %v12882_v41 = vpop.f32.mrb[211].mxu0 }
 0x6d9   : > { %v17527_v31 = vadd.f32 %v8055_v11, %v7717_v15 }
 0x6da   : > { %v7609_v10 = vpop.f32.mrb[130].mxu1 }
 0x6db   : > { %v8060_v33 = vpop.f32.mrb[212].mxu0  ;;  %v7718_v35 = vadd.f32 %v7609_v10, %v17339_v25  ;;  %v12730_v57 = vpop.f32.mrb[131].mxu1 }
 0x6dc   : > { %v12885_v17 = vpop.f32.mrb[213].mxu0 }
 0x6dd   : > { %v17530_v19 = vadd.f32 %v8060_v33, %v7718_v35 }
 0x6de   : > { %v7614_v4 = vpop.f32.mrb[132].mxu1 }
 0x6df   : > { %v8065_v39 = vpop.f32.mrb[214].mxu0  ;;  %v7719_v52 = vadd.f32 %v7614_v4, %v17344_v36  ;;  %v12733_v12 = vpop.f32.mrb[133].mxu1 }
 0x6e0   : > { %v12888_v47 = vpop.f32.mrb[215].mxu0 }
 0x6e1   : > { %v17533_v46 = vadd.f32 %v8065_v39, %v7719_v52 }
 0x6e2   : > { %v7619_v42 = vpop.f32.mrb[134].mxu1 }
 0x6e3   : > { %v8070_v37 = vpop.f32.mrb[216].mxu0  ;;  %v7720_v53 = vadd.f32 %v7619_v42, %v17349_v1  ;;  %v12736_v56 = vpop.f32.mrb[135].mxu1 }
 0x6e4   : > { %v12891_v49 = vpop.f32.mrb[217].mxu0 }
 0x6e5   : > { %v17536_v59 = vadd.f32 %v8070_v37, %v7720_v53 }
 0x6e6   : > { %v7624_v25 = vpop.f32.mrb[136].mxu1 }
 0x6e7   : > { %v8075_v0 = vpop.f32.mrb[218].mxu0  ;;  %v7721_v11 = vadd.f32 %v7624_v25, %v17354_v63  ;;  %v12739_v15 = vpop.f32.mrb[137].mxu1  ;;  %v17553_v25 = vld [vmem:[%s17732_s4] ss:$0 sm:$0xff] }
 0x6e8   : > { %v12894_v21 = vpop.f32.mrb[219].mxu0 }
 0x6e9   : > { %v17539_v41 = vadd.f32 %v8075_v0, %v7721_v11  ;;  %v8668_v11 = vld [vmem:[%s13704_s24 + $0x18] sm:$0xff] }
 0x6ea   : > { %v7629_v36 = vpop.f32.mrb[138].mxu1 }
 0x6eb   : > { %v8080_v10 = vpop.f32.mrb[220].mxu0  ;;  %v7722_v33 = vadd.f32 %v7629_v36, %v17359_v27  ;;  %v12742_v35 = vpop.f32.mrb[139].mxu1 }
 0x6ec   : > { %v12897_v57 = vpop.f32.mrb[221].mxu0 }
 0x6ed   : > { %v17542_v17 = vadd.f32 %v8080_v10, %v7722_v33  ;;  %v8669_v33 = vld [vmem:[%s13704_s24 + $0x20] sm:$0xff] }
 0x6ee   : > { %v7634_v1 = vpop.f32.mrb[140].mxu1 }
 0x6ef   : > { %v8085_v4 = vpop.f32.mrb[222].mxu0  ;;  %v7723_v39 = vadd.f32 %v7634_v1, %v17364_v2  ;;  %v12745_v52 = vpop.f32.mrb[141].mxu1 }
 0x6f0   : > { %v12900_v63 = vpop.f32.mrb[223].mxu0 }
 0x6f1   : > { %v17545_v12 = vadd.f32 %v8085_v4, %v7723_v39  ;;  %v8670_v39 = vld [vmem:[%s13704_s24 + $0x28] sm:$0xff] }
 0x6f2   : > { %v7639_v47 = vpop.f32.mrb[142].mxu1 }
 0x6f3   : > { %v8090_v42 = vpop.f32.mrb[224].mxu0  ;;  %v7724_v37 = vadd.f32 %v7639_v47, %v17369_v55  ;;  %v12748_v27 = vpop.f32.mrb[143].mxu1 }
 0x6f4   : > { %v12903_v53 = vpop.f32.mrb[225].mxu0 }
 0x6f5   : > { %v17548_v56 = vadd.f32 %v8090_v42, %v7724_v37  ;;  %v8671_v53 = vld [vmem:[%s13704_s24 + $0x30] sm:$0xff] }
 0x6f6   : > { %v8341_v49 = vpop.f32.mrb[144].mxu1 }
 0x6f7   : > { %v8586_v2 = vadd.f32 %v8341_v49, %v17374_v6  ;;  %v12938_v0 = vpop.f32.mrb[145].mxu1 }
 0x6f9   : > { %v8757_v15 = vadd.f32 %v17553_v25, %v8586_v2 }
 0x6fa   : > { %v8346_v55 = vpop.f32.mrb[146].mxu1 }
 0x6fb   : > { %v8798_v21 = vadd.f32 %v8757_v15, %v8668_v11  ;;  %v8587_v36 = vadd.f32 %v8346_v55, %v17379_v28  ;;  %v12941_v10 = vpop.f32.mrb[147].mxu1  ;;  %v8672_v55 = vld [vmem:[%s13704_s24 + $0x38] sm:$0xff] }
 0x6fd   : > { %v8839_v6 = vmax.f32 %v8798_v21, 0.0  ;;  %v8758_v35 = vadd.f32 %v17553_v25, %v8587_v36 }
 0x6fe   : > { %v8351_v57 = vpop.f32.mrb[148].mxu1 }
 0x6ff   : > { %8880 = vst [vmem:[%s17563_s16] sm:$0xff] %v8839_v6  ;;  %v8799_v1 = vadd.f32 %v8758_v35, %v8669_v33  ;;  %v8588_v4 = vadd.f32 %v8351_v57, %v17384_v18  ;;  %v12944_v28 = vpop.f32.mrb[149].mxu1  ;;  %v8673_v35 = vld [vmem:[%s13704_s24 + $0x40] sm:$0xff] }
 0x701   : > { %v8840_v52 = vmax.f32 %v8799_v1, 0.0  ;;  %v8759_v63 = vadd.f32 %v17553_v25, %v8588_v4 }
 0x702   : > { %v8356_v47 = vpop.f32.mrb[150].mxu1 }
 0x703   : > { %8881 = vst [vmem:[%s17563_s16 + $0x8] sm:$0xff] %v8840_v52  ;;  %v8800_v42 = vadd.f32 %v8759_v63, %v8670_v39  ;;  %v8589_v37 = vadd.f32 %v8356_v47, %v17389_v51  ;;  %v12947_v27 = vpop.f32.mrb[151].mxu1  ;;  %v8674_v52 = vld [vmem:[%s13704_s24 + $0x48] sm:$0xff] }
 0x705   : > { %v8841_v49 = vmax.f32 %v8800_v42, 0.0  ;;  %v8760_v2 = vadd.f32 %v17553_v25, %v8589_v37 }
 0x706   : > { %v8361_v0 = vpop.f32.mrb[152].mxu1 }
 0x707   : > { %8882 = vst [vmem:[%s17563_s16 + $0x10] sm:$0xff] %v8841_v49  ;;  %v8801_v18 = vadd.f32 %v8760_v2, %v8671_v53  ;;  %v8590_v11 = vadd.f32 %v8361_v0, %v17394_v44  ;;  %v12950_v15 = vpop.f32.mrb[153].mxu1  ;;  %v8675_v53 = vld [vmem:[%s13704_s24 + $0x50] sm:$0xff] }
 0x708   : > { %v8676_v15 = vld [vmem:[%s13704_s24 + $0x58] sm:$0xff] }
 0x709   : > { %v8842_v21 = vmax.f32 %v8801_v18, 0.0  ;;  %v8761_v36 = vadd.f32 %v17553_v25, %v8590_v11 }
 0x70a   : > { %v8366_v10 = vpop.f32.mrb[154].mxu1 }
 0x70b   : > { %8883 = vst [vmem:[%s17563_s16 + $0x18] sm:$0xff] %v8842_v21  ;;  %v8802_v51 = vadd.f32 %v8761_v36, %v8672_v55  ;;  %v8591_v33 = vadd.f32 %v8366_v10, %v17399_v13  ;;  %v12953_v6 = vpop.f32.mrb[155].mxu1 }
 0x70d   : > { %v8843_v57 = vmax.f32 %v8802_v51, 0.0  ;;  %v8762_v1 = vadd.f32 %v17553_v25, %v8591_v33  ;;  %v8677_v33 = vld [vmem:[%s13704_s24 + $0x60] sm:$0xff] }
 0x70e   : > { %v8371_v4 = vpop.f32.mrb[156].mxu1 }
 0x70f   : > { %8884 = vst [vmem:[%s17563_s16 + $0x20] sm:$0xff] %v8843_v57  ;;  %v8803_v44 = vadd.f32 %v8762_v1, %v8673_v35  ;;  %v8592_v28 = vadd.f32 %v8371_v4, %v17404_v24  ;;  %v12956_v39 = vpop.f32.mrb[157].mxu1 }
 0x711   : > { %v8844_v63 = vmax.f32 %v8803_v44, 0.0  ;;  %v8763_v47 = vadd.f32 %v17553_v25, %v8592_v28  ;;  %v8678_v44 = vld [vmem:[%s13704_s24 + $0x68] sm:$0xff] }
 0x712   : > { %v8376_v42 = vpop.f32.mrb[158].mxu1 }
 0x713   : > { %8885 = vst [vmem:[%s17563_s16 + $0x28] sm:$0xff] %v8844_v63  ;;  %v8804_v13 = vadd.f32 %v8763_v47, %v8674_v52  ;;  %v8593_v37 = vadd.f32 %v8376_v42, %v17409_v20  ;;  %v12959_v27 = vpop.f32.mrb[159].mxu1  ;;  %v8679_v42 = vld [vmem:[%s13704_s24 + $0x70] sm:$0xff] }
 0x715   : > { %v8845_v49 = vmax.f32 %v8804_v13, 0.0  ;;  %v8764_v2 = vadd.f32 %v17553_v25, %v8593_v37 }
 0x716   : > { %v8381_v0 = vpop.f32.mrb[160].mxu1 }
 0x717   : > { %8886 = vst [vmem:[%s17563_s16 + $0x30] sm:$0xff] %v8845_v49  ;;  %v8805_v24 = vadd.f32 %v8764_v2, %v8675_v53  ;;  %v8594_v18 = vadd.f32 %v8381_v0, %v17414_v26  ;;  %v12962_v11 = vpop.f32.mrb[161].mxu1  ;;  %v8680_v2 = vld [vmem:[%s13704_s24 + $0x78] sm:$0xff] }
 0x719   : > { %v8846_v55 = vmax.f32 %v8805_v24, 0.0  ;;  %v8765_v21 = vadd.f32 %v17553_v25, %v8594_v18 }
 0x71a   : > { %v8386_v36 = vpop.f32.mrb[162].mxu1 }
 0x71b   : > { %8887 = vst [vmem:[%s17563_s16 + $0x38] sm:$0xff] %v8846_v55  ;;  %v8806_v20 = vadd.f32 %v8765_v21, %v8676_v15  ;;  %v8595_v10 = vadd.f32 %v8386_v36, %v17419_v43  ;;  %v12965_v51 = vpop.f32.mrb[163].mxu1  ;;  %v8681_v55 = vld [vmem:[%s13704_s24 + $0x80] sm:$0xff] }
 0x71d   : > { %v8847_v6 = vmax.f32 %v8806_v20, 0.0  ;;  %v8766_v35 = vadd.f32 %v17553_v25, %v8595_v10 }
 0x71e   : > { %v8391_v57 = vpop.f32.mrb[164].mxu1 }
 0x71f   : > { %8888 = vst [vmem:[%s17563_s16 + $0x40] sm:$0xff] %v8847_v6  ;;  %v8807_v26 = vadd.f32 %v8766_v35, %v8677_v33  ;;  %v8596_v1 = vadd.f32 %v8391_v57, %v17424_v61  ;;  %v12968_v4 = vpop.f32.mrb[165].mxu1  ;;  %v8682_v33 = vld [vmem:[%s13704_s24 + $0x88] sm:$0xff] }
 0x720   : > { %v8683_v4 = vld [vmem:[%s13704_s24 + $0x90] sm:$0xff] }
 0x721   : > { %v8848_v28 = vmax.f32 %v8807_v26, 0.0  ;;  %v8767_v39 = vadd.f32 %v17553_v25, %v8596_v1 }
 0x722   : > { %v8396_v52 = vpop.f32.mrb[166].mxu1 }
 0x723   : > { %8889 = vst [vmem:[%s17563_s16 + $0x48] sm:$0xff] %v8848_v28  ;;  %v8808_v43 = vadd.f32 %v8767_v39, %v8678_v44  ;;  %v8597_v63 = vadd.f32 %v8396_v52, %v17429_v3  ;;  %v12971_v47 = vpop.f32.mrb[167].mxu1 }
 0x725   : > { %v8849_v13 = vmax.f32 %v8808_v43, 0.0  ;;  %v8768_v37 = vadd.f32 %v17553_v25, %v8597_v63  ;;  %v8684_v63 = vld [vmem:[%s13704_s24 + $0x98] sm:$0xff] }
 0x726   : > { %v8401_v27 = vpop.f32.mrb[168].mxu1 }
 0x727   : > { %8890 = vst [vmem:[%s17563_s16 + $0x50] sm:$0xff] %v8849_v13  ;;  %v8809_v61 = vadd.f32 %v8768_v37, %v8679_v42  ;;  %v8598_v53 = vadd.f32 %v8401_v27, %v17434_v23  ;;  %v12974_v49 = vpop.f32.mrb[169].mxu1 }
 0x729   : > { %v8850_v0 = vmax.f32 %v8809_v61, 0.0  ;;  %v8769_v24 = vadd.f32 %v17553_v25, %v8598_v53  ;;  %v8685_v61 = vld [vmem:[%s13704_s24 + $0xa0] sm:$0xff] }
 0x72a   : > { %v8406_v18 = vpop.f32.mrb[170].mxu1 }
 0x72b   : > { %8891 = vst [vmem:[%s17563_s16 + $0x58] sm:$0xff] %v8850_v0  ;;  %v8810_v3 = vadd.f32 %v8769_v24, %v8680_v2  ;;  %v8599_v11 = vadd.f32 %v8406_v18, %v17439_v5  ;;  %v12977_v15 = vpop.f32.mrb[171].mxu1  ;;  %v8686_v18 = vld [vmem:[%s13704_s24 + $0xa8] sm:$0xff] }
 0x72d   : > { %v8851_v21 = vmax.f32 %v8810_v3, 0.0  ;;  %v8770_v36 = vadd.f32 %v17553_v25, %v8599_v11 }
 0x72e   : > { %v8411_v20 = vpop.f32.mrb[172].mxu1 }
 0x72f   : > { %8892 = vst [vmem:[%s17563_s16 + $0x60] sm:$0xff] %v8851_v21  ;;  %v8811_v23 = vadd.f32 %v8770_v36, %v8681_v55  ;;  %v8600_v10 = vadd.f32 %v8411_v20, %v17444_v54  ;;  %v12980_v51 = vpop.f32.mrb[173].mxu1  ;;  %v8687_v36 = vld [vmem:[%s13704_s24 + $0xb0] sm:$0xff] }
 0x731   : > { %v8852_v6 = vmax.f32 %v8811_v23, 0.0  ;;  %v8771_v35 = vadd.f32 %v17553_v25, %v8600_v10 }
 0x732   : > { %v8416_v57 = vpop.f32.mrb[174].mxu1 }
 0x733   : > { %8893 = vst [vmem:[%s17563_s16 + $0x68] sm:$0xff] %v8852_v6  ;;  %v8812_v5 = vadd.f32 %v8771_v35, %v8682_v33  ;;  %v8601_v26 = vadd.f32 %v8416_v57, %v17449_v45  ;;  %v12983_v1 = vpop.f32.mrb[175].mxu1  ;;  %v8688_v6 = vld [vmem:[%s13704_s24 + $0xb8] sm:$0xff] }
 0x735   : > { %v8853_v44 = vmax.f32 %v8812_v5, 0.0  ;;  %v8772_v28 = vadd.f32 %v17553_v25, %v8601_v26 }
 0x736   : > { %v8421_v39 = vpop.f32.mrb[176].mxu1 }
 0x737   : > { %8894 = vst [vmem:[%s17563_s16 + $0x70] sm:$0xff] %v8853_v44  ;;  %v8813_v54 = vadd.f32 %v8772_v28, %v8683_v4  ;;  %v8602_v52 = vadd.f32 %v8421_v39, %v17454_v32  ;;  %v12986_v43 = vpop.f32.mrb[177].mxu1  ;;  %v8689_v4 = vld [vmem:[%s13704_s24 + $0xc0] sm:$0xff] }
 0x738   : > { %v8690_v43 = vld [vmem:[%s13704_s24 + $0xc8] sm:$0xff] }
 0x739   : > { %v8854_v47 = vmax.f32 %v8813_v54, 0.0  ;;  %v8773_v42 = vadd.f32 %v17553_v25, %v8602_v52 }
 0x73a   : > { %v8426_v13 = vpop.f32.mrb[178].mxu1 }
 0x73b   : > { %8895 = vst [vmem:[%s17563_s16 + $0x78] sm:$0xff] %v8854_v47  ;;  %v8814_v45 = vadd.f32 %v8773_v42, %v8684_v63  ;;  %v8603_v37 = vadd.f32 %v8426_v13, %v17459_v7  ;;  %v12989_v27 = vpop.f32.mrb[179].mxu1 }
 0x73d   : > { %v8855_v53 = vmax.f32 %v8814_v45, 0.0  ;;  %v8774_v49 = vadd.f32 %v17553_v25, %v8603_v37  ;;  %v8691_v37 = vld [vmem:[%s13704_s24 + $0xd0] sm:$0xff] }
 0x73e   : > { %v8431_v2 = vpop.f32.mrb[180].mxu1 }
 0x73f   : > { %8896 = vst [vmem:[%s17563_s16 + $0x80] sm:$0xff] %v8855_v53  ;;  %v8815_v32 = vadd.f32 %v8774_v49, %v8685_v61  ;;  %v8604_v0 = vadd.f32 %v8431_v2, %v17464_v38  ;;  %v12992_v24 = vpop.f32.mrb[181].mxu1 }
 0x741   : > { %v8856_v3 = vmax.f32 %v8815_v32, 0.0  ;;  %v8775_v11 = vadd.f32 %v17553_v25, %v8604_v0  ;;  %v8692_v32 = vld [vmem:[%s13704_s24 + $0xd8] sm:$0xff] }
 0x742   : > { %v8436_v15 = vpop.f32.mrb[182].mxu1 }
 0x743   : > { %8897 = vst [vmem:[%s17563_s16 + $0x88] sm:$0xff] %v8856_v3  ;;  %v8816_v7 = vadd.f32 %v8775_v11, %v8686_v18  ;;  %v8605_v55 = vadd.f32 %v8436_v15, %v17469_v30  ;;  %v12995_v21 = vpop.f32.mrb[183].mxu1  ;;  %v8693_v15 = vld [vmem:[%s13704_s24 + $0xe0] sm:$0xff] }
 0x745   : > { %v8857_v20 = vmax.f32 %v8816_v7, 0.0  ;;  %v8776_v23 = vadd.f32 %v17553_v25, %v8605_v55 }
 0x746   : > { %v8441_v10 = vpop.f32.mrb[184].mxu1 }
 0x747   : > { %8898 = vst [vmem:[%s17563_s16 + $0x90] sm:$0xff] %v8857_v20  ;;  %v8817_v38 = vadd.f32 %v8776_v23, %v8687_v36  ;;  %v8606_v51 = vadd.f32 %v8441_v10, %v17474_v50  ;;  %v12998_v33 = vpop.f32.mrb[185].mxu1  ;;  %v8694_v23 = vld [vmem:[%s13704_s24 + $0xe8] sm:$0xff] }
 0x749   : > { %v8858_v35 = vmax.f32 %v8817_v38, 0.0  ;;  %v8777_v57 = vadd.f32 %v17553_v25, %v8606_v51 }
 0x74a   : > { %v8446_v5 = vpop.f32.mrb[186].mxu1 }
 0x74b   : > { %8899 = vst [vmem:[%s17563_s16 + $0x98] sm:$0xff] %v8858_v35  ;;  %v8818_v30 = vadd.f32 %v8777_v57, %v8688_v6  ;;  %v8607_v26 = vadd.f32 %v8446_v5, %v17479_v34  ;;  %v13001_v1 = vpop.f32.mrb[187].mxu1  ;;  %v8695_v35 = vld [vmem:[%s13704_s24 + $0xf0] sm:$0xff] }
 0x74d   : > { %v8859_v44 = vmax.f32 %v8818_v30, 0.0  ;;  %v8778_v28 = vadd.f32 %v17553_v25, %v8607_v26 }
 0x74e   : > { %v8451_v39 = vpop.f32.mrb[188].mxu1 }
 0x74f   : > { %8900 = vst [vmem:[%s17563_s16 + $0xa0] sm:$0xff] %v8859_v44  ;;  %v8819_v50 = vadd.f32 %v8778_v28, %v8689_v4  ;;  %v8608_v54 = vadd.f32 %v8451_v39, %v17484_v22  ;;  %v13004_v52 = vpop.f32.mrb[189].mxu1  ;;  %v8696_v4 = vld [vmem:[%s13704_s24 + $0xf8] sm:$0xff] }
 0x750   : > { %v8697_v52 = vld [vmem:[%s13704_s24 + $0x100] sm:$0xff] }
 0x751   : > { %v8860_v63 = vmax.f32 %v8819_v50, 0.0  ;;  %v8779_v47 = vadd.f32 %v17553_v25, %v8608_v54 }
 0x752   : > { %v8456_v42 = vpop.f32.mrb[190].mxu1 }
 0x753   : > { %8901 = vst [vmem:[%s17563_s16 + $0xa8] sm:$0xff] %v8860_v63  ;;  %v8820_v34 = vadd.f32 %v8779_v47, %v8690_v43  ;;  %v8609_v13 = vadd.f32 %v8456_v42, %v17489_v8  ;;  %v13007_v45 = vpop.f32.mrb[191].mxu1 }
 0x755   : > { %v8861_v27 = vmax.f32 %v8820_v34, 0.0  ;;  %v8780_v61 = vadd.f32 %v17553_v25, %v8609_v13  ;;  %v8698_v13 = vld [vmem:[%s13704_s24 + $0x108] sm:$0xff] }
 0x756   : > { %v8461_v53 = vpop.f32.mrb[192].mxu1 }
 0x757   : > { %8902 = vst [vmem:[%s17563_s16 + $0xb0] sm:$0xff] %v8861_v27  ;;  %v8821_v22 = vadd.f32 %v8780_v61, %v8691_v37  ;;  %v8610_v49 = vadd.f32 %v8461_v53, %v17494_v48  ;;  %v13010_v2 = vpop.f32.mrb[193].mxu1 }
 0x759   : > { %v8862_v0 = vmax.f32 %v8821_v22, 0.0  ;;  %v8781_v24 = vadd.f32 %v17553_v25, %v8610_v49  ;;  %v8699_v22 = vld [vmem:[%s13704_s24 + $0x110] sm:$0xff] }
 0x75a   : > { %v8466_v18 = vpop.f32.mrb[194].mxu1 }
 0x75b   : > { %8903 = vst [vmem:[%s17563_s16 + $0xb8] sm:$0xff] %v8862_v0  ;;  %v8822_v8 = vadd.f32 %v8781_v24, %v8692_v32  ;;  %v8611_v3 = vadd.f32 %v8466_v18, %v17499_v40  ;;  %v13013_v11 = vpop.f32.mrb[195].mxu1  ;;  %v8700_v18 = vld [vmem:[%s13704_s24 + $0x118] sm:$0xff] }
 0x75d   : > { %v8863_v7 = vmax.f32 %v8822_v8, 0.0  ;;  %v8782_v55 = vadd.f32 %v17553_v25, %v8611_v3 }
 0x75e   : > { %v8471_v21 = vpop.f32.mrb[196].mxu1 }
 0x75f   : > { %8904 = vst [vmem:[%s17563_s16 + $0xc0] sm:$0xff] %v8863_v7  ;;  %v8823_v48 = vadd.f32 %v8782_v55, %v8693_v15  ;;  %v8612_v36 = vadd.f32 %v8471_v21, %v17504_v62  ;;  %v13016_v20 = vpop.f32.mrb[197].mxu1  ;;  %v8701_v55 = vld [vmem:[%s13704_s24 + $0x120] sm:$0xff] }
 0x761   : > { %v8864_v10 = vmax.f32 %v8823_v48, 0.0  ;;  %v8783_v38 = vadd.f32 %v17553_v25, %v8612_v36 }
 0x762   : > { %v8476_v51 = vpop.f32.mrb[198].mxu1 }
 0x763   : > { %8905 = vst [vmem:[%s17563_s16 + $0xc8] sm:$0xff] %v8864_v10  ;;  %v8824_v40 = vadd.f32 %v8783_v38, %v8694_v23  ;;  %v8613_v33 = vadd.f32 %v8476_v51, %v17509_v29  ;;  %v13019_v6 = vpop.f32.mrb[199].mxu1  ;;  %v8702_v10 = vld [vmem:[%s13704_s24 + $0x128] sm:$0xff] }
 0x765   : > { %v8865_v57 = vmax.f32 %v8824_v40, 0.0  ;;  %v8784_v5 = vadd.f32 %v17553_v25, %v8613_v33 }
 0x766   : > { %v8481_v30 = vpop.f32.mrb[200].mxu1 }
 0x767   : > { %8906 = vst [vmem:[%s17563_s16 + $0xd0] sm:$0xff] %v8865_v57  ;;  %v8825_v62 = vadd.f32 %v8784_v5, %v8695_v35  ;;  %v8614_v26 = vadd.f32 %v8481_v30, %v17512_v60  ;;  %v13022_v1 = vpop.f32.mrb[201].mxu1  ;;  %v8703_v35 = vld [vmem:[%s13704_s24 + $0x130] sm:$0xff] }
 0x768   : > { %v8704_v1 = vld [vmem:[%s13704_s24 + $0x138] sm:$0xff] }
 0x769   : > { %v8866_v44 = vmax.f32 %v8825_v62, 0.0  ;;  %v8785_v28 = vadd.f32 %v17553_v25, %v8614_v26 }
 0x76a   : > { %v8486_v39 = vpop.f32.mrb[202].mxu1 }
 0x76b   : > { %8907 = vst [vmem:[%s17563_s16 + $0xd8] sm:$0xff] %v8866_v44  ;;  %v8826_v29 = vadd.f32 %v8785_v28, %v8696_v4  ;;  %v8615_v50 = vadd.f32 %v8486_v39, %v17515_v9  ;;  %v13025_v54 = vpop.f32.mrb[203].mxu1 }
 0x76d   : > { %v8867_v43 = vmax.f32 %v8826_v29, 0.0  ;;  %v8786_v63 = vadd.f32 %v17553_v25, %v8615_v50  ;;  %v8705_v50 = vld [vmem:[%s13704_s24 + $0x140] sm:$0xff] }
 0x76e   : > { %v8491_v47 = vpop.f32.mrb[204].mxu1 }
 0x76f   : > { %8908 = vst [vmem:[%s17563_s16 + $0xe0] sm:$0xff] %v8867_v43  ;;  %v8827_v60 = vadd.f32 %v8786_v63, %v8697_v52  ;;  %v8616_v42 = vadd.f32 %v8491_v47, %v17518_v58  ;;  %v13028_v34 = vpop.f32.mrb[205].mxu1 }
 0x771   : > { %v8868_v45 = vmax.f32 %v8827_v60, 0.0  ;;  %v8787_v37 = vadd.f32 %v17553_v25, %v8616_v42  ;;  %v8706_v60 = vld [vmem:[%s13704_s24 + $0x148] sm:$0xff] }
 0x772   : > { %v8496_v27 = vpop.f32.mrb[206].mxu1 }
 0x773   : > { %8909 = vst [vmem:[%s17563_s16 + $0xe8] sm:$0xff] %v8868_v45  ;;  %v8828_v9 = vadd.f32 %v8787_v37, %v8698_v13  ;;  %v8617_v61 = vadd.f32 %v8496_v27, %v17521_v16  ;;  %v13031_v53 = vpop.f32.mrb[207].mxu1  ;;  %v8707_v27 = vld [vmem:[%s13704_s24 + $0x150] sm:$0xff] }
 0x775   : > { %v8869_v49 = vmax.f32 %v8828_v9, 0.0  ;;  %v8788_v2 = vadd.f32 %v17553_v25, %v8617_v61 }
 0x776   : > { %v8501_v32 = vpop.f32.mrb[208].mxu1 }
 0x777   : > { %8910 = vst [vmem:[%s17563_s16 + $0xf0] sm:$0xff] %v8869_v49  ;;  %v8829_v58 = vadd.f32 %v8788_v2, %v8699_v22  ;;  %v8618_v0 = vadd.f32 %v8501_v32, %v17524_v14  ;;  %v13034_v24 = vpop.f32.mrb[209].mxu1  ;;  %v8708_v2 = vld [vmem:[%s13704_s24 + $0x158] sm:$0xff] }
 0x779   : > { %v8870_v8 = vmax.f32 %v8829_v58, 0.0  ;;  %v8789_v3 = vadd.f32 %v17553_v25, %v8618_v0 }
 0x77a   : > { %v8506_v11 = vpop.f32.mrb[210].mxu1 }
 0x77b   : > { %8911 = vst [vmem:[%s17563_s16 + $0xf8] sm:$0xff] %v8870_v8  ;;  %v8830_v16 = vadd.f32 %v8789_v3, %v8700_v18  ;;  %v8619_v15 = vadd.f32 %v8506_v11, %v17527_v31  ;;  %v13037_v7 = vpop.f32.mrb[211].mxu1 }
 0x77d   : > { %v8871_v21 = vmax.f32 %v8830_v16, 0.0  ;;  %v8790_v48 = vadd.f32 %v17553_v25, %v8619_v15 }
 0x77e   : > { %v8511_v36 = vpop.f32.mrb[212].mxu1 }
 0x77f   : > { %8912 = vst [vmem:[%s17563_s16 + $0x100] sm:$0xff] %v8871_v21  ;;  %v8831_v14 = vadd.f32 %v8790_v48, %v8701_v55  ;;  %v8620_v20 = vadd.f32 %v8511_v36, %v17530_v19  ;;  %v13040_v23 = vpop.f32.mrb[213].mxu1 }
 0x781   : > { %v8872_v38 = vmax.f32 %v8831_v14, 0.0  ;;  %v8791_v51 = vadd.f32 %v17553_v25, %v8620_v20 }
 0x782   : > { %v8516_v40 = vpop.f32.mrb[214].mxu1 }
 0x783   : > { %8913 = vst [vmem:[%s17563_s16 + $0x108] sm:$0xff] %v8872_v38  ;;  %v8832_v31 = vadd.f32 %v8791_v51, %v8702_v10  ;;  %v8621_v33 = vadd.f32 %v8516_v40, %v17533_v46  ;;  %v13043_v6 = vpop.f32.mrb[215].mxu1 }
 0x785   : > { %v8873_v57 = vmax.f32 %v8832_v31, 0.0  ;;  %v8792_v5 = vadd.f32 %v17553_v25, %v8621_v33 }
 0x786   : > { %v8521_v30 = vpop.f32.mrb[216].mxu1 }
 0x787   : > { %8914 = vst [vmem:[%s17563_s16 + $0x110] sm:$0xff] %v8873_v57  ;;  %v8833_v19 = vadd.f32 %v8792_v5, %v8703_v35  ;;  %v8622_v62 = vadd.f32 %v8521_v30, %v17536_v59  ;;  %v13046_v26 = vpop.f32.mrb[217].mxu1 }
 0x789   : > { %v8874_v4 = vmax.f32 %v8833_v19, 0.0  ;;  %v8793_v44 = vadd.f32 %v17553_v25, %v8622_v62 }
 0x78a   : > { %v8526_v28 = vpop.f32.mrb[218].mxu1 }
 0x78b   : > { %8915 = vst [vmem:[%s17563_s16 + $0x118] sm:$0xff] %v8874_v4  ;;  %v8834_v46 = vadd.f32 %v8793_v44, %v8704_v1  ;;  %v8623_v39 = vadd.f32 %v8526_v28, %v17539_v41  ;;  %v13049_v29 = vpop.f32.mrb[219].mxu1 }
 0x78d   : > { %v8875_v54 = vmax.f32 %v8834_v46, 0.0  ;;  %v8794_v52 = vadd.f32 %v17553_v25, %v8623_v39 }
 0x78e   : > { %v8531_v43 = vpop.f32.mrb[220].mxu1 }
 0x78f   : > { %8916 = vst [vmem:[%s17563_s16 + $0x120] sm:$0xff] %v8875_v54  ;;  %v8835_v59 = vadd.f32 %v8794_v52, %v8705_v50  ;;  %v8624_v63 = vadd.f32 %v8531_v43, %v17542_v17  ;;  %v13052_v47 = vpop.f32.mrb[221].mxu1 }
 0x791   : > { %v8876_v42 = vmax.f32 %v8835_v59, 0.0  ;;  %v8795_v34 = vadd.f32 %v17553_v25, %v8624_v63 }
 0x792   : > { %v8536_v13 = vpop.f32.mrb[222].mxu1 }
 0x793   : > { %8917 = vst [vmem:[%s17563_s16 + $0x128] sm:$0xff] %v8876_v42  ;;  %v8836_v41 = vadd.f32 %v8795_v34, %v8706_v60  ;;  %v8625_v45 = vadd.f32 %v8536_v13, %v17545_v12  ;;  %v13055_v37 = vpop.f32.mrb[223].mxu1 }
 0x795   : > { %v8877_v9 = vmax.f32 %v8836_v41, 0.0  ;;  %v8796_v61 = vadd.f32 %v17553_v25, %v8625_v45 }
 0x796   : > { %v8541_v53 = vpop.f32.mrb[224].mxu1 }
 0x797   : > { %8918 = vst [vmem:[%s17563_s16 + $0x130] sm:$0xff] %v8877_v9  ;;  %v8837_v17 = vadd.f32 %v8796_v61, %v8707_v27  ;;  %v8626_v22 = vadd.f32 %v8541_v53, %v17548_v56  ;;  %v13058_v49 = vpop.f32.mrb[225].mxu1 }
 0x799   : > { %v8878_v32 = vmax.f32 %v8837_v17, 0.0  ;;  %v8797_v58 = vadd.f32 %v17553_v25, %v8626_v22 }
 0x79b   : > { %8919 = vst [vmem:[%s17563_s16 + $0x138] sm:$0xff] %v8878_v32  ;;  %v8838_v0 = vadd.f32 %v8797_v58, %v8708_v2 }
 0x79d   : > { %v8879_v24 = vmax.f32 %v8838_v0, 0.0 }
 0x79f   : > { %8920 = vst [vmem:[%s17563_s16 + $0x140] sm:$0xff] %v8879_v24 }
 0x7a0 PF: > { %s16_s21 = sadd.s32 1, %s13524_s21  }
 0x7a1   : > { %p13_p4 = scmp.ge.s32.totalorder %s16_s21, 4  }
 0x7a3   :  { %15 = sbr.rel (!%p13_p4) target bundleno = 1 (0x1), region = 90 }

</bundles_post_ra>
